<compile_context>
chip_gen: v7x
topology: tpu7x:2x2x1
jax: 0.10.0
libtpu: 0.0.40
codegen_flags: <defaults>
</compile_context>

<pallas_src>
import jax
import jax.numpy as jnp
from jax.experimental import pallas as pl
from jax.experimental.pallas import tpu as pltpu

# ------------------------- model hyper-parameters -------------------------
NUM_HEADS = 2
# layer 1
IN_N1, IN_E1, OUT_N1, OUT_E1 = 34, 7, 128, 32
# layer 2 (inputs are head-flattened outputs of layer 1)
IN_N2, IN_E2, OUT_N2, OUT_E2 = OUT_N1 * NUM_HEADS, OUT_E1 * NUM_HEADS, 512, 128
PAD_N1, PAD_E1 = 64, 16          # zero-padded layer-1 input feature dims
BN_DIM = 512
BN_EPS = 1e-5
LEAKY_SLOPE = 0.01

HFN1, HFE1 = NUM_HEADS * OUT_N1, NUM_HEADS * OUT_E1   # 256, 64
HFN2, HFE2 = NUM_HEADS * OUT_N2, NUM_HEADS * OUT_E2   # 1024, 256


# ------------------------------- kernel body -------------------------------
def _egat_layer(nf, ef, S, D, scatter, w_node, w_fij, amat, bias, expand,
                hfn, hfe):
    """One EGATConv in head-flattened 2-D layout.

    w_node columns are [w_src | w_ni | w_nj] (one projection matmul), S gathers
    [h_proj | f_ni] in one pass, and the dst scatter carries
    [un-normalized messages | softmax denominator] in one pass.
    Returns (h_out, f_out, expl, inv_denom_n)."""
    f32, bf16 = jnp.float32, jnp.bfloat16

    proj = jnp.dot(nf, w_node, preferred_element_type=f32)            # (N, hfn+2*hfe)
    # fused src-gather of [h_proj | f_ni]  (bf16 one-hot x bf16 values, f32 accum)
    g_src = jnp.dot(S, proj[:, :hfn + hfe].astype(bf16),
                    preferred_element_type=f32)                       # (E, hfn+hfe)
    h_e = g_src[:, :hfn]                                              # (E, hfn)
    fe_src = g_src[:, hfn:]                                           # (E, hfe)
    fe_dst = jnp.dot(D, proj[:, hfn + hfe:].astype(bf16),
                     preferred_element_type=f32)                      # (E, hfe)
    f_fij = jnp.dot(ef, w_fij, preferred_element_type=f32)            # (E, hfe)

    f_out = fe_src + fe_dst + f_fij + bias
    f_out = jnp.where(f_out > 0, f_out, LEAKY_SLOPE * f_out)          # leaky_relu

    # per-head attention logits (f32); the global per-head shift cancels in softmax
    logits = jnp.dot(f_out, amat, preferred_element_type=f32)         # (E, H)
    expl = jnp.exp(logits - jnp.max(logits, axis=0, keepdims=True))   # (E, H)

    # broadcast exp-numerators over each head's feature block (K=H matmul, lane-dense)
    expl_b = jnp.dot(expl, expand, preferred_element_type=f32)        # (E, hfn)
    # one dst scatter-sum carries both the messages and the softmax denominator
    payload = jnp.concatenate([expl_b * h_e, expl], axis=1).astype(bf16)
    scat = scatter(payload)                                           # (N, hfn+H)
    h_pre = scat[:, :hfn]                                             # (N, hfn)
    denom_n = scat[:, hfn:]                                           # (N, H)

    # softmax normalization pulled out to node granularity (EUP reciprocal);
    # max() only guards zero-in-degree nodes (keeps them 0 instead of NaN).
    inv_n = pl.reciprocal(jnp.maximum(denom_n, 1e-38), approx=True)   # (N, H)
    h_out = h_pre * jnp.dot(inv_n, expand, preferred_element_type=f32)
    return h_out, f_out, expl, inv_n


def _forward_body(scatter, nf, ef, S, D, G,
                  wn1, wf1, am1, b1, ex1,
                  wn2, wf2, am2, b2, ex2,
                  gamma, beta, out_ref, attn_ref):
    f32, bf16 = jnp.float32, jnp.bfloat16

    # ----- EGAT layer 1 (head-flatten views are identity in this layout) -----
    n1, e1, _, _ = _egat_layer(nf, ef, S, D, scatter,
                               wn1, wf1, am1, b1, ex1, HFN1, HFE1)
    # ----- EGAT layer 2 (returns attention) -----
    n2, _, expl2, inv_n2 = _egat_layer(n1, e1, S, D, scatter,
                                       wn2, wf2, am2, b2, ex2, HFN2, HFE2)

    # layer-2 attention output: per-edge normalization of the exp-numerators.
    # NOTE: kept (E, H); a transposed (H, E) lane-dense store is a further win
    # for very large E but the output layout is kept identical to the reference.
    attn_ref[...] = expl2 * jnp.dot(D, inv_n2.astype(bf16),
                                    preferred_element_type=f32)

    # mean over heads (generic in NUM_HEADS; OUT_N2 is lane-aligned)
    n_mean = n2[:, :OUT_N2]
    for h in range(1, NUM_HEADS):
        n_mean = n_mean + n2[:, h * OUT_N2:(h + 1) * OUT_N2]
    n_mean = n_mean * jnp.float32(1.0 / NUM_HEADS)

    # get_batch_feats + sum over the node axis == per-graph segment sum
    pooled = jnp.dot(G, n_mean.astype(bf16), preferred_element_type=f32)  # (B, 512)

    # BatchNorm1d, training mode: batch statistics, biased variance.
    # TODO(synk): BatchNorm running-stat (momentum) buffer updates are stateful
    # training bookkeeping and are not reproduced; the normalization itself is.
    mu = jnp.mean(pooled, axis=0, keepdims=True)
    var = jnp.mean((pooled - mu) ** 2, axis=0, keepdims=True)
    out_ref[...] = (pooled - mu) * jax.lax.rsqrt(var + BN_EPS) * gamma + beta


def _kernel_fused_scatter(nf_ref, ef_ref, S_ref, D_ref, G_ref, *rest):
    """Preferred kernel: dst scatter = transposed contraction on D (no D.T buffer)."""
    *w_refs, out_ref, attn_ref = rest
    D = D_ref[...]

    def scatter(payload):            # D^T @ payload without materializing D^T
        return jax.lax.dot_general(D, payload, (((0,), (0,)), ((), ())),
                                   preferred_element_type=jnp.float32)

    _forward_body(scatter, nf_ref[...], ef_ref[...], S_ref[...], D, G_ref[...],
                  *[r[...] for r in w_refs], out_ref, attn_ref)


def _kernel_with_dt(nf_ref, ef_ref, S_ref, D_ref, DT_ref, G_ref, *rest):
    """Fallback kernel: explicit (bf16) D.T input, standard matmul scatter."""
    *w_refs, out_ref, attn_ref = rest
    Dt = DT_ref[...]

    def scatter(payload):
        return jnp.dot(Dt, payload, preferred_element_type=jnp.float32)

    _forward_body(scatter, nf_ref[...], ef_ref[...], S_ref[...], D_ref[...],
                  G_ref[...], *[r[...] for r in w_refs], out_ref, attn_ref)


# ------------------------------ python wrapper -----------------------------
def _pallas_forward(kernel, args, N, E, B):
    vmem = lambda: pl.BlockSpec(memory_space=pltpu.MemorySpace.VMEM)
    arg_bytes = sum(int(a.size) * a.dtype.itemsize for a in args)
    out_bytes = (B * BN_DIM + E * NUM_HEADS) * 4
    # Working-set based limit, clamped to [32 MiB, 48 MiB]: never request the
    # full 64 MiB physical VMEM of a v7x TensorCore (leave scratch/DMA headroom).
    vmem_limit = int(min(max(6 * (arg_bytes + out_bytes), 32 << 20), 48 << 20))
    return pl.pallas_call(
        kernel,
        out_shape=(jax.ShapeDtypeStruct((B, BN_DIM), jnp.float32),
                   jax.ShapeDtypeStruct((E, NUM_HEADS), jnp.float32)),
        in_specs=[vmem() for _ in args],
        out_specs=(vmem(), vmem()),
        compiler_params=pltpu.CompilerParams(vmem_limit_bytes=vmem_limit),
    )(*args)


def recgnn_forward(n_feats, e_feats, src, dst, graph_id, num_graphs, params):
    """Full RecGNN forward in one Pallas call.

    Returns (graph_feats (B, 512), attention (E, H, 1))."""
    N = n_feats.shape[0]
    E = e_feats.shape[0]
    B = num_graphs

    # zero-pad misaligned layer-1 feature dims (34->64, 7->16); padded weight rows
    # are zero so the math is unchanged.
    nf = jnp.pad(n_feats, ((0, 0), (0, PAD_N1 - IN_N1))).astype(jnp.float32)
    ef = jnp.pad(e_feats, ((0, 0), (0, PAD_E1 - IN_E1))).astype(jnp.float32)

    # 0/1 incidence matrices are exact in bf16: half the VMEM/HBM, 2x MXU rate.
    S = jax.nn.one_hot(src, N, dtype=jnp.bfloat16)          # (E, N) src gather
    D = jax.nn.one_hot(dst, N, dtype=jnp.bfloat16)          # (E, N) dst gather/scatter
    G = jax.nn.one_hot(graph_id, B, dtype=jnp.bfloat16).T   # (B, N) graph pooling

    l1, l2 = params["layer1"], params["layer2"]
    weights = (l1["w_node"], l1["w_fij"], l1["attn_mat"], l1["bias"], l1["expand"],
               l2["w_node"], l2["w_fij"], l2["attn_mat"], l2["bias"], l2["expand"],
               params["gamma"], params["beta"])

    try:
        out, attn = _pallas_forward(_kernel_fused_scatter,
                                    (nf, ef, S, D, G) + weights, N, E, B)
        jax.block_until_ready((out, attn))
    except Exception:
        # Fallback for Mosaic lowerings without transposed-lhs matmul support:
        # ship an explicit bf16 D.T (still half the old f32 DT footprint).
        out, attn = _pallas_forward(_kernel_with_dt,
                                    (nf, ef, S, D, D.T, G) + weights, N, E, B)
    return out, attn.reshape(E, NUM_HEADS, 1)


# --------------------------- parameter construction -------------------------
def _block_diag_attn(attn, out_edge_feats):
    """(H, Fe) -> (H*Fe, H) block-diagonal: logits = f_out @ amat is the per-head
    attention dot product."""
    m = jnp.zeros((NUM_HEADS * out_edge_feats, NUM_HEADS), jnp.float32)
    for h in range(NUM_HEADS):
        m = m.at[h * out_edge_feats:(h + 1) * out_edge_feats, h].set(attn[h])
    return m


def _head_expand(out_node_feats):
    """(H, H*Fn) block one-hot: x @ expand broadcasts per-head scalars lane-densely
    over that head's feature block."""
    m = jnp.zeros((NUM_HEADS, NUM_HEADS * out_node_feats), jnp.float32)
    for h in range(NUM_HEADS):
        m = m.at[h, h * out_node_feats:(h + 1) * out_node_feats].set(1.0)
    return m


def _init_layer(keys, in_n, in_e, out_n, out_e, pad_n, pad_e, scale=0.1):
    rnd = lambda k, shp: (scale * jax.random.normal(k, shp)).astype(jnp.float32)
    H = NUM_HEADS
    w_src = rnd(keys[0], (in_n, H * out_n))
    w_ni = rnd(keys[1], (in_n, H * out_e))
    w_nj = rnd(keys[2], (in_n, H * out_e))
    w_fij = rnd(keys[3], (in_e, H * out_e))
    attn = rnd(keys[4], (H, out_e))
    bias = rnd(keys[5], (1, H * out_e))
    # fused node projection [w_src | w_ni | w_nj]; rows padded to the padded input dim
    w_node = jnp.pad(jnp.concatenate([w_src, w_ni, w_nj], axis=1),
                     ((0, pad_n - in_n), (0, 0)))
    w_fij = jnp.pad(w_fij, ((0, pad_e - in_e), (0, 0)))
    return {"w_node": w_node, "w_fij": w_fij,
            "attn_mat": _block_diag_attn(attn, out_e),
            "bias": bias, "expand": _head_expand(out_n)}


def init_params(key):
    ks = jax.random.split(key, 12)
    return {
        "layer1": _init_layer(ks[:6], IN_N1, IN_E1, OUT_N1, OUT_E1, PAD_N1, PAD_E1),
        "layer2": _init_layer(ks[6:], IN_N2, IN_E2, OUT_N2, OUT_E2, IN_N2, IN_E2),
        # BatchNorm1d(512) default init
        "gamma": jnp.ones((1, BN_DIM), jnp.float32),
        "beta": jnp.zeros((1, BN_DIM), jnp.float32),
    }


# ----------------------------------- main -----------------------------------
if __name__ == "__main__":
    key = jax.random.PRNGKey(0)
    k_param, k_n, k_e = jax.random.split(key, 3)

    # Synthetic batched graph: 2 graphs with 5 and 3 nodes, 16 directed edges.
    B = 2
    N = 8
    graph_id = jnp.array([0] * 5 + [1] * 3, jnp.int32)
    # graph 0: bidirectional ring over nodes 0..4 ; graph 1: ring over 5..7
    src = jnp.array([0, 1, 2, 3, 4, 1, 2, 3, 4, 0, 5, 6, 7, 6, 7, 5], jnp.int32)
    dst = jnp.array([1, 2, 3, 4, 0, 0, 1, 2, 3, 4, 6, 7, 5, 5, 6, 7], jnp.int32)
    E = int(src.shape[0])

    n_feats = jax.random.normal(k_n, (N, IN_N1), jnp.float32)   # rec_g.ndata['feats']
    e_feats = jax.random.normal(k_e, (E, IN_E1), jnp.float32)   # rec_g.edata['feats']

    params = init_params(k_param)

    graph_out, pock_attention = recgnn_forward(
        n_feats, e_feats, src, dst, graph_id, B, params)
    jax.block_until_ready((graph_out, pock_attention))

    assert graph_out.shape == (B, BN_DIM)
    assert pock_attention.shape == (E, NUM_HEADS, 1)
    assert bool(jnp.all(jnp.isfinite(graph_out)))
    assert bool(jnp.all(jnp.isfinite(pock_attention)))
    print("KERNEL_OK")
</pallas_src>

<mosaic_0001>
module attributes {stable_mosaic.version = 11 : i64} {
  func.func @_kernel_fused_scatter(%arg0: memref<8x64xf32, #tpu.memory_space<vmem>>, %arg1: memref<16x16xf32, #tpu.memory_space<vmem>>, %arg2: memref<16x8xbf16, #tpu.memory_space<vmem>>, %arg3: memref<16x8xbf16, #tpu.memory_space<vmem>>, %arg4: memref<2x8xbf16, #tpu.memory_space<vmem>>, %arg5: memref<64x384xf32, #tpu.memory_space<vmem>>, %arg6: memref<16x64xf32, #tpu.memory_space<vmem>>, %arg7: memref<64x2xf32, #tpu.memory_space<vmem>>, %arg8: memref<1x64xf32, #tpu.memory_space<vmem>>, %arg9: memref<2x256xf32, #tpu.memory_space<vmem>>, %arg10: memref<256x1536xf32, #tpu.memory_space<vmem>>, %arg11: memref<64x256xf32, #tpu.memory_space<vmem>>, %arg12: memref<256x2xf32, #tpu.memory_space<vmem>>, %arg13: memref<1x256xf32, #tpu.memory_space<vmem>>, %arg14: memref<2x1024xf32, #tpu.memory_space<vmem>>, %arg15: memref<1x512xf32, #tpu.memory_space<vmem>>, %arg16: memref<1x512xf32, #tpu.memory_space<vmem>>, %arg17: memref<2x512xf32, #tpu.memory_space<vmem>>, %arg18: memref<16x2xf32, #tpu.memory_space<vmem>>) attributes {dimension_semantics = [], scalar_prefetch = 0 : i64, scratch_operands = 0 : i64, tpu.core_type = #tpu.core_type<tc>} {
    %c0 = arith.constant 0 : index
    %c0_0 = arith.constant 0 : index
    %0 = vector.load %arg3[%c0, %c0_0] : memref<16x8xbf16, #tpu.memory_space<vmem>>, vector<16x8xbf16>
    %c0_1 = arith.constant 0 : index
    %c0_2 = arith.constant 0 : index
    %1 = vector.load %arg0[%c0_1, %c0_2] : memref<8x64xf32, #tpu.memory_space<vmem>>, vector<8x64xf32>
    %c0_3 = arith.constant 0 : index
    %c0_4 = arith.constant 0 : index
    %2 = vector.load %arg1[%c0_3, %c0_4] : memref<16x16xf32, #tpu.memory_space<vmem>>, vector<16x16xf32>
    %c0_5 = arith.constant 0 : index
    %c0_6 = arith.constant 0 : index
    %3 = vector.load %arg2[%c0_5, %c0_6] : memref<16x8xbf16, #tpu.memory_space<vmem>>, vector<16x8xbf16>
    %c0_7 = arith.constant 0 : index
    %c0_8 = arith.constant 0 : index
    %4 = vector.load %arg4[%c0_7, %c0_8] : memref<2x8xbf16, #tpu.memory_space<vmem>>, vector<2x8xbf16>
    %c0_9 = arith.constant 0 : index
    %c0_10 = arith.constant 0 : index
    %5 = vector.load %arg5[%c0_9, %c0_10] : memref<64x384xf32, #tpu.memory_space<vmem>>, vector<64x384xf32>
    %c0_11 = arith.constant 0 : index
    %c0_12 = arith.constant 0 : index
    %6 = vector.load %arg6[%c0_11, %c0_12] : memref<16x64xf32, #tpu.memory_space<vmem>>, vector<16x64xf32>
    %c0_13 = arith.constant 0 : index
    %c0_14 = arith.constant 0 : index
    %7 = vector.load %arg7[%c0_13, %c0_14] : memref<64x2xf32, #tpu.memory_space<vmem>>, vector<64x2xf32>
    %c0_15 = arith.constant 0 : index
    %c0_16 = arith.constant 0 : index
    %8 = vector.load %arg8[%c0_15, %c0_16] : memref<1x64xf32, #tpu.memory_space<vmem>>, vector<1x64xf32>
    %c0_17 = arith.constant 0 : index
    %c0_18 = arith.constant 0 : index
    %9 = vector.load %arg9[%c0_17, %c0_18] : memref<2x256xf32, #tpu.memory_space<vmem>>, vector<2x256xf32>
    %c0_19 = arith.constant 0 : index
    %c0_20 = arith.constant 0 : index
    %10 = vector.load %arg10[%c0_19, %c0_20] : memref<256x1536xf32, #tpu.memory_space<vmem>>, vector<256x1536xf32>
    %c0_21 = arith.constant 0 : index
    %c0_22 = arith.constant 0 : index
    %11 = vector.load %arg11[%c0_21, %c0_22] : memref<64x256xf32, #tpu.memory_space<vmem>>, vector<64x256xf32>
    %c0_23 = arith.constant 0 : index
    %c0_24 = arith.constant 0 : index
    %12 = vector.load %arg12[%c0_23, %c0_24] : memref<256x2xf32, #tpu.memory_space<vmem>>, vector<256x2xf32>
    %c0_25 = arith.constant 0 : index
    %c0_26 = arith.constant 0 : index
    %13 = vector.load %arg13[%c0_25, %c0_26] : memref<1x256xf32, #tpu.memory_space<vmem>>, vector<1x256xf32>
    %c0_27 = arith.constant 0 : index
    %c0_28 = arith.constant 0 : index
    %14 = vector.load %arg14[%c0_27, %c0_28] : memref<2x1024xf32, #tpu.memory_space<vmem>>, vector<2x1024xf32>
    %c0_29 = arith.constant 0 : index
    %c0_30 = arith.constant 0 : index
    %15 = vector.load %arg15[%c0_29, %c0_30] : memref<1x512xf32, #tpu.memory_space<vmem>>, vector<1x512xf32>
    %c0_31 = arith.constant 0 : index
    %c0_32 = arith.constant 0 : index
    %16 = vector.load %arg16[%c0_31, %c0_32] : memref<1x512xf32, #tpu.memory_space<vmem>>, vector<1x512xf32>
    %cst = arith.constant dense<0.000000e+00> : vector<8x384xf32>
    %17 = tpu.matmul %1, %5, %cst {dimension_numbers = #tpu.dot_dimension_numbers<[1], [0], [0], [1], [0, 0, 1, 1], [], []>} : vector<8x64xf32>, vector<64x384xf32>, vector<8x384xf32> -> vector<8x384xf32>
    %18 = vector.extract_strided_slice %17 {offsets = [0, 0], sizes = [8, 320], strides = [1, 1]} : vector<8x384xf32> to vector<8x320xf32>
    %19 = arith.truncf %18 : vector<8x320xf32> to vector<8x320xbf16>
    %cst_33 = arith.constant dense<0.000000e+00> : vector<16x320xf32>
    %20 = tpu.matmul %3, %19, %cst_33 {dimension_numbers = #tpu.dot_dimension_numbers<[1], [0], [0], [1], [0, 0, 1, 1], [], []>} : vector<16x8xbf16>, vector<8x320xbf16>, vector<16x320xf32> -> vector<16x320xf32>
    %21 = vector.extract_strided_slice %20 {offsets = [0, 0], sizes = [16, 256], strides = [1, 1]} : vector<16x320xf32> to vector<16x256xf32>
    %22 = vector.extract_strided_slice %20 {offsets = [0, 256], sizes = [16, 64], strides = [1, 1]} : vector<16x320xf32> to vector<16x64xf32>
    %23 = vector.extract_strided_slice %17 {offsets = [0, 320], sizes = [8, 64], strides = [1, 1]} : vector<8x384xf32> to vector<8x64xf32>
    %24 = arith.truncf %23 : vector<8x64xf32> to vector<8x64xbf16>
    %cst_34 = arith.constant dense<0.000000e+00> : vector<16x64xf32>
    %25 = tpu.matmul %0, %24, %cst_34 {dimension_numbers = #tpu.dot_dimension_numbers<[1], [0], [0], [1], [0, 0, 1, 1], [], []>} : vector<16x8xbf16>, vector<8x64xbf16>, vector<16x64xf32> -> vector<16x64xf32>
    %cst_35 = arith.constant dense<0.000000e+00> : vector<16x64xf32>
    %26 = tpu.matmul %2, %6, %cst_35 {dimension_numbers = #tpu.dot_dimension_numbers<[1], [0], [0], [1], [0, 0, 1, 1], [], []>} : vector<16x16xf32>, vector<16x64xf32>, vector<16x64xf32> -> vector<16x64xf32>
    %27 = arith.addf %22, %25 : vector<16x64xf32>
    %28 = arith.addf %27, %26 : vector<16x64xf32>
    %29 = vector.broadcast %8 : vector<1x64xf32> to vector<16x64xf32>
    %30 = arith.addf %28, %29 : vector<16x64xf32>
    %cst_36 = arith.constant 0.000000e+00 : f32
    %31 = vector.broadcast %cst_36 : f32 to vector<16x64xf32>
    %32 = arith.cmpf ogt, %30, %31 : vector<16x64xf32>
    %cst_37 = arith.constant 0.00999999977 : f32
    %33 = vector.broadcast %cst_37 : f32 to vector<16x64xf32>
    %34 = arith.mulf %33, %30 : vector<16x64xf32>
    %35 = arith.select %32, %30, %34 : vector<16x64xi1>, vector<16x64xf32>
    %cst_38 = arith.constant dense<0.000000e+00> : vector<16x2xf32>
    %36 = tpu.matmul %35, %7, %cst_38 {dimension_numbers = #tpu.dot_dimension_numbers<[1], [0], [0], [1], [0, 0, 1, 1], [], []>} : vector<16x64xf32>, vector<64x2xf32>, vector<16x2xf32> -> vector<16x2xf32>
    %cst_39 = arith.constant dense<0xFF800000> : vector<2xf32>
    %37 = vector.multi_reduction <maximumf>, %36, %cst_39 [0] : vector<16x2xf32> to vector<2xf32>
    %38 = vector.shape_cast %37 : vector<2xf32> to vector<1x2xf32>
    %39 = vector.broadcast %38 : vector<1x2xf32> to vector<16x2xf32>
    %40 = arith.subf %36, %39 : vector<16x2xf32>
    %41 = math.exp %40 : vector<16x2xf32>
    %cst_40 = arith.constant dense<0.000000e+00> : vector<16x256xf32>
    %42 = tpu.matmul %41, %9, %cst_40 {dimension_numbers = #tpu.dot_dimension_numbers<[1], [0], [0], [1], [0, 0, 1, 1], [], []>} : vector<16x2xf32>, vector<2x256xf32>, vector<16x256xf32> -> vector<16x256xf32>
    %43 = arith.mulf %42, %21 : vector<16x256xf32>
    %44 = tpu.concatenate %43, %41 in 1 : vector<16x256xf32>, vector<16x2xf32> -> vector<16x258xf32>
    %45 = arith.truncf %44 : vector<16x258xf32> to vector<16x258xbf16>
    %cst_41 = arith.constant dense<0.000000e+00> : vector<8x258xf32>
    %46 = tpu.matmul %0, %45, %cst_41 {dimension_numbers = #tpu.dot_dimension_numbers<[0], [0], [1], [1], [0, 1, 1, 1], [], []>} : vector<16x8xbf16>, vector<16x258xbf16>, vector<8x258xf32> -> vector<8x258xf32>
    %47 = vector.extract_strided_slice %46 {offsets = [0, 0], sizes = [8, 256], strides = [1, 1]} : vector<8x258xf32> to vector<8x256xf32>
    %48 = vector.extract_strided_slice %46 {offsets = [0, 256], sizes = [8, 2], strides = [1, 1]} : vector<8x258xf32> to vector<8x2xf32>
    %cst_42 = arith.constant 9.99999935E-39 : f32
    %49 = vector.broadcast %cst_42 : f32 to vector<8x2xf32>
    %50 = arith.maximumf %48, %49 : vector<8x2xf32>
    %51 = tpu.reciprocal %50 {approx = true} : vector<8x2xf32> -> vector<8x2xf32>
    %cst_43 = arith.constant dense<0.000000e+00> : vector<8x256xf32>
    %52 = tpu.matmul %51, %9, %cst_43 {dimension_numbers = #tpu.dot_dimension_numbers<[1], [0], [0], [1], [0, 0, 1, 1], [], []>} : vector<8x2xf32>, vector<2x256xf32>, vector<8x256xf32> -> vector<8x256xf32>
    %53 = arith.mulf %47, %52 : vector<8x256xf32>
    %cst_44 = arith.constant dense<0.000000e+00> : vector<8x1536xf32>
    %54 = tpu.matmul %53, %10, %cst_44 {dimension_numbers = #tpu.dot_dimension_numbers<[1], [0], [0], [1], [0, 0, 1, 1], [], []>} : vector<8x256xf32>, vector<256x1536xf32>, vector<8x1536xf32> -> vector<8x1536xf32>
    %55 = vector.extract_strided_slice %54 {offsets = [0, 0], sizes = [8, 1280], strides = [1, 1]} : vector<8x1536xf32> to vector<8x1280xf32>
    %56 = arith.truncf %55 : vector<8x1280xf32> to vector<8x1280xbf16>
    %cst_45 = arith.constant dense<0.000000e+00> : vector<16x1280xf32>
    %57 = tpu.matmul %3, %56, %cst_45 {dimension_numbers = #tpu.dot_dimension_numbers<[1], [0], [0], [1], [0, 0, 1, 1], [], []>} : vector<16x8xbf16>, vector<8x1280xbf16>, vector<16x1280xf32> -> vector<16x1280xf32>
    %58 = vector.extract_strided_slice %57 {offsets = [0, 0], sizes = [16, 1024], strides = [1, 1]} : vector<16x1280xf32> to vector<16x1024xf32>
    %59 = vector.extract_strided_slice %57 {offsets = [0, 1024], sizes = [16, 256], strides = [1, 1]} : vector<16x1280xf32> to vector<16x256xf32>
    %60 = vector.extract_strided_slice %54 {offsets = [0, 1280], sizes = [8, 256], strides = [1, 1]} : vector<8x1536xf32> to vector<8x256xf32>
    %61 = arith.truncf %60 : vector<8x256xf32> to vector<8x256xbf16>
    %cst_46 = arith.constant dense<0.000000e+00> : vector<16x256xf32>
    %62 = tpu.matmul %0, %61, %cst_46 {dimension_numbers = #tpu.dot_dimension_numbers<[1], [0], [0], [1], [0, 0, 1, 1], [], []>} : vector<16x8xbf16>, vector<8x256xbf16>, vector<16x256xf32> -> vector<16x256xf32>
    %cst_47 = arith.constant dense<0.000000e+00> : vector<16x256xf32>
    %63 = tpu.matmul %35, %11, %cst_47 {dimension_numbers = #tpu.dot_dimension_numbers<[1], [0], [0], [1], [0, 0, 1, 1], [], []>} : vector<16x64xf32>, vector<64x256xf32>, vector<16x256xf32> -> vector<16x256xf32>
    %64 = arith.addf %59, %62 : vector<16x256xf32>
    %65 = arith.addf %64, %63 : vector<16x256xf32>
    %66 = vector.broadcast %13 : vector<1x256xf32> to vector<16x256xf32>
    %67 = arith.addf %65, %66 : vector<16x256xf32>
    %cst_48 = arith.constant 0.000000e+00 : f32
    %68 = vector.broadcast %cst_48 : f32 to vector<16x256xf32>
    %69 = arith.cmpf ogt, %67, %68 : vector<16x256xf32>
    %cst_49 = arith.constant 0.00999999977 : f32
    %70 = vector.broadcast %cst_49 : f32 to vector<16x256xf32>
    %71 = arith.mulf %70, %67 : vector<16x256xf32>
    %72 = arith.select %69, %67, %71 : vector<16x256xi1>, vector<16x256xf32>
    %cst_50 = arith.constant dense<0.000000e+00> : vector<16x2xf32>
    %73 = tpu.matmul %72, %12, %cst_50 {dimension_numbers = #tpu.dot_dimension_numbers<[1], [0], [0], [1], [0, 0, 1, 1], [], []>} : vector<16x256xf32>, vector<256x2xf32>, vector<16x2xf32> -> vector<16x2xf32>
    %cst_51 = arith.constant dense<0xFF800000> : vector<2xf32>
    %74 = vector.multi_reduction <maximumf>, %73, %cst_51 [0] : vector<16x2xf32> to vector<2xf32>
    %75 = vector.shape_cast %74 : vector<2xf32> to vector<1x2xf32>
    %76 = vector.broadcast %75 : vector<1x2xf32> to vector<16x2xf32>
    %77 = arith.subf %73, %76 : vector<16x2xf32>
    %78 = math.exp %77 : vector<16x2xf32>
    %cst_52 = arith.constant dense<0.000000e+00> : vector<16x1024xf32>
    %79 = tpu.matmul %78, %14, %cst_52 {dimension_numbers = #tpu.dot_dimension_numbers<[1], [0], [0], [1], [0, 0, 1, 1], [], []>} : vector<16x2xf32>, vector<2x1024xf32>, vector<16x1024xf32> -> vector<16x1024xf32>
    %80 = arith.mulf %79, %58 : vector<16x1024xf32>
    %81 = tpu.concatenate %80, %78 in 1 : vector<16x1024xf32>, vector<16x2xf32> -> vector<16x1026xf32>
    %82 = arith.truncf %81 : vector<16x1026xf32> to vector<16x1026xbf16>
    %cst_53 = arith.constant dense<0.000000e+00> : vector<8x1026xf32>
    %83 = tpu.matmul %0, %82, %cst_53 {dimension_numbers = #tpu.dot_dimension_numbers<[0], [0], [1], [1], [0, 1, 1, 1], [], []>} : vector<16x8xbf16>, vector<16x1026xbf16>, vector<8x1026xf32> -> vector<8x1026xf32>
    %84 = vector.extract_strided_slice %83 {offsets = [0, 0], sizes = [8, 1024], strides = [1, 1]} : vector<8x1026xf32> to vector<8x1024xf32>
    %85 = vector.extract_strided_slice %83 {offsets = [0, 1024], sizes = [8, 2], strides = [1, 1]} : vector<8x1026xf32> to vector<8x2xf32>
    %cst_54 = arith.constant 9.99999935E-39 : f32
    %86 = vector.broadcast %cst_54 : f32 to vector<8x2xf32>
    %87 = arith.maximumf %85, %86 : vector<8x2xf32>
    %88 = tpu.reciprocal %87 {approx = true} : vector<8x2xf32> -> vector<8x2xf32>
    %cst_55 = arith.constant dense<0.000000e+00> : vector<8x1024xf32>
    %89 = tpu.matmul %88, %14, %cst_55 {dimension_numbers = #tpu.dot_dimension_numbers<[1], [0], [0], [1], [0, 0, 1, 1], [], []>} : vector<8x2xf32>, vector<2x1024xf32>, vector<8x1024xf32> -> vector<8x1024xf32>
    %90 = arith.mulf %84, %89 : vector<8x1024xf32>
    %91 = arith.truncf %88 : vector<8x2xf32> to vector<8x2xbf16>
    %cst_56 = arith.constant dense<0.000000e+00> : vector<16x2xf32>
    %92 = tpu.matmul %0, %91, %cst_56 {dimension_numbers = #tpu.dot_dimension_numbers<[1], [0], [0], [1], [0, 0, 1, 1], [], []>} : vector<16x8xbf16>, vector<8x2xbf16>, vector<16x2xf32> -> vector<16x2xf32>
    %93 = arith.mulf %78, %92 : vector<16x2xf32>
    %c0_57 = arith.constant 0 : index
    %c0_58 = arith.constant 0 : index
    %94 = vector.load %arg18[%c0_57, %c0_58] : memref<16x2xf32, #tpu.memory_space<vmem>>, vector<16x2xf32>
    tpu.vector_store %arg18[%c0_57, %c0_58], %93 {strides = array<i32>} : memref<16x2xf32, #tpu.memory_space<vmem>>, vector<16x2xf32>,
    %95 = vector.extract_strided_slice %90 {offsets = [0, 0], sizes = [8, 512], strides = [1, 1]} : vector<8x1024xf32> to vector<8x512xf32>
    %96 = vector.extract_strided_slice %90 {offsets = [0, 512], sizes = [8, 512], strides = [1, 1]} : vector<8x1024xf32> to vector<8x512xf32>
    %97 = arith.addf %95, %96 : vector<8x512xf32>
    %cst_59 = arith.constant 5.000000e-01 : f32
    %98 = vector.broadcast %cst_59 : f32 to vector<8x512xf32>
    %99 = arith.mulf %97, %98 : vector<8x512xf32>
    %100 = arith.truncf %99 : vector<8x512xf32> to vector<8x512xbf16>
    %cst_60 = arith.constant dense<0.000000e+00> : vector<2x512xf32>
    %101 = tpu.matmul %4, %100, %cst_60 {dimension_numbers = #tpu.dot_dimension_numbers<[1], [0], [0], [1], [0, 0, 1, 1], [], []>} : vector<2x8xbf16>, vector<8x512xbf16>, vector<2x512xf32> -> vector<2x512xf32>
    %cst_61 = arith.constant dense<0.000000e+00> : vector<512xf32>
    %102 = vector.multi_reduction <add>, %101, %cst_61 [0] : vector<2x512xf32> to vector<512xf32>
    %103 = vector.shape_cast %102 : vector<512xf32> to vector<1x512xf32>
    %cst_62 = arith.constant 2.000000e+00 : f32
    %104 = vector.broadcast %cst_62 : f32 to vector<1x512xf32>
    %105 = arith.divf %103, %104 : vector<1x512xf32>
    %106 = vector.broadcast %105 : vector<1x512xf32> to vector<2x512xf32>
    %107 = arith.subf %101, %106 : vector<2x512xf32>
    %108 = arith.mulf %107, %107 : vector<2x512xf32>
    %cst_63 = arith.constant dense<0.000000e+00> : vector<512xf32>
    %109 = vector.multi_reduction <add>, %108, %cst_63 [0] : vector<2x512xf32> to vector<512xf32>
    %110 = vector.shape_cast %109 : vector<512xf32> to vector<1x512xf32>
    %cst_64 = arith.constant 2.000000e+00 : f32
    %111 = vector.broadcast %cst_64 : f32 to vector<1x512xf32>
    %112 = arith.divf %110, %111 : vector<1x512xf32>
    %113 = vector.broadcast %105 : vector<1x512xf32> to vector<2x512xf32>
    %114 = arith.subf %101, %113 : vector<2x512xf32>
    %cst_65 = arith.constant 9.99999974E-6 : f32
    %115 = vector.broadcast %cst_65 : f32 to vector<1x512xf32>
    %116 = arith.addf %112, %115 : vector<1x512xf32>
    %117 = math.rsqrt %116 : vector<1x512xf32>
    %118 = vector.broadcast %117 : vector<1x512xf32> to vector<2x512xf32>
    %119 = arith.mulf %114, %118 : vector<2x512xf32>
    %120 = vector.broadcast %15 : vector<1x512xf32> to vector<2x512xf32>
    %121 = arith.mulf %119, %120 : vector<2x512xf32>
    %122 = vector.broadcast %16 : vector<1x512xf32> to vector<2x512xf32>
    %123 = arith.addf %121, %122 : vector<2x512xf32>
    %c0_66 = arith.constant 0 : index
    %c0_67 = arith.constant 0 : index
    %124 = vector.load %arg17[%c0_66, %c0_67] : memref<2x512xf32, #tpu.memory_space<vmem>>, vector<2x512xf32>
    tpu.vector_store %arg17[%c0_66, %c0_67], %123 {strides = array<i32>} : memref<2x512xf32, #tpu.memory_space<vmem>>, vector<2x512xf32>,
    return
  }
}

module attributes {stable_mosaic.version = 11 : i64} {
  func.func @_kernel_with_dt(%arg0: memref<8x64xf32, #tpu.memory_space<vmem>>, %arg1: memref<16x16xf32, #tpu.memory_space<vmem>>, %arg2: memref<16x8xbf16, #tpu.memory_space<vmem>>, %arg3: memref<16x8xbf16, #tpu.memory_space<vmem>>, %arg4: memref<8x16xbf16, #tpu.memory_space<vmem>>, %arg5: memref<2x8xbf16, #tpu.memory_space<vmem>>, %arg6: memref<64x384xf32, #tpu.memory_space<vmem>>, %arg7: memref<16x64xf32, #tpu.memory_space<vmem>>, %arg8: memref<64x2xf32, #tpu.memory_space<vmem>>, %arg9: memref<1x64xf32, #tpu.memory_space<vmem>>, %arg10: memref<2x256xf32, #tpu.memory_space<vmem>>, %arg11: memref<256x1536xf32, #tpu.memory_space<vmem>>, %arg12: memref<64x256xf32, #tpu.memory_space<vmem>>, %arg13: memref<256x2xf32, #tpu.memory_space<vmem>>, %arg14: memref<1x256xf32, #tpu.memory_space<vmem>>, %arg15: memref<2x1024xf32, #tpu.memory_space<vmem>>, %arg16: memref<1x512xf32, #tpu.memory_space<vmem>>, %arg17: memref<1x512xf32, #tpu.memory_space<vmem>>, %arg18: memref<2x512xf32, #tpu.memory_space<vmem>>, %arg19: memref<16x2xf32, #tpu.memory_space<vmem>>) attributes {dimension_semantics = [], scalar_prefetch = 0 : i64, scratch_operands = 0 : i64, tpu.core_type = #tpu.core_type<tc>} {
    %c0 = arith.constant 0 : index
    %c0_0 = arith.constant 0 : index
    %0 = vector.load %arg4[%c0, %c0_0] : memref<8x16xbf16, #tpu.memory_space<vmem>>, vector<8x16xbf16>
    %c0_1 = arith.constant 0 : index
    %c0_2 = arith.constant 0 : index
    %1 = vector.load %arg0[%c0_1, %c0_2] : memref<8x64xf32, #tpu.memory_space<vmem>>, vector<8x64xf32>
    %c0_3 = arith.constant 0 : index
    %c0_4 = arith.constant 0 : index
    %2 = vector.load %arg1[%c0_3, %c0_4] : memref<16x16xf32, #tpu.memory_space<vmem>>, vector<16x16xf32>
    %c0_5 = arith.constant 0 : index
    %c0_6 = arith.constant 0 : index
    %3 = vector.load %arg2[%c0_5, %c0_6] : memref<16x8xbf16, #tpu.memory_space<vmem>>, vector<16x8xbf16>
    %c0_7 = arith.constant 0 : index
    %c0_8 = arith.constant 0 : index
    %4 = vector.load %arg3[%c0_7, %c0_8] : memref<16x8xbf16, #tpu.memory_space<vmem>>, vector<16x8xbf16>
    %c0_9 = arith.constant 0 : index
    %c0_10 = arith.constant 0 : index
    %5 = vector.load %arg5[%c0_9, %c0_10] : memref<2x8xbf16, #tpu.memory_space<vmem>>, vector<2x8xbf16>
    %c0_11 = arith.constant 0 : index
    %c0_12 = arith.constant 0 : index
    %6 = vector.load %arg6[%c0_11, %c0_12] : memref<64x384xf32, #tpu.memory_space<vmem>>, vector<64x384xf32>
    %c0_13 = arith.constant 0 : index
    %c0_14 = arith.constant 0 : index
    %7 = vector.load %arg7[%c0_13, %c0_14] : memref<16x64xf32, #tpu.memory_space<vmem>>, vector<16x64xf32>
    %c0_15 = arith.constant 0 : index
    %c0_16 = arith.constant 0 : index
    %8 = vector.load %arg8[%c0_15, %c0_16] : memref<64x2xf32, #tpu.memory_space<vmem>>, vector<64x2xf32>
    %c0_17 = arith.constant 0 : index
    %c0_18 = arith.constant 0 : index
    %9 = vector.load %arg9[%c0_17, %c0_18] : memref<1x64xf32, #tpu.memory_space<vmem>>, vector<1x64xf32>
    %c0_19 = arith.constant 0 : index
    %c0_20 = arith.constant 0 : index
    %10 = vector.load %arg10[%c0_19, %c0_20] : memref<2x256xf32, #tpu.memory_space<vmem>>, vector<2x256xf32>
    %c0_21 = arith.constant 0 : index
    %c0_22 = arith.constant 0 : index
    %11 = vector.load %arg11[%c0_21, %c0_22] : memref<256x1536xf32, #tpu.memory_space<vmem>>, vector<256x1536xf32>
    %c0_23 = arith.constant 0 : index
    %c0_24 = arith.constant 0 : index
    %12 = vector.load %arg12[%c0_23, %c0_24] : memref<64x256xf32, #tpu.memory_space<vmem>>, vector<64x256xf32>
    %c0_25 = arith.constant 0 : index
    %c0_26 = arith.constant 0 : index
    %13 = vector.load %arg13[%c0_25, %c0_26] : memref<256x2xf32, #tpu.memory_space<vmem>>, vector<256x2xf32>
    %c0_27 = arith.constant 0 : index
    %c0_28 = arith.constant 0 : index
    %14 = vector.load %arg14[%c0_27, %c0_28] : memref<1x256xf32, #tpu.memory_space<vmem>>, vector<1x256xf32>
    %c0_29 = arith.constant 0 : index
    %c0_30 = arith.constant 0 : index
    %15 = vector.load %arg15[%c0_29, %c0_30] : memref<2x1024xf32, #tpu.memory_space<vmem>>, vector<2x1024xf32>
    %c0_31 = arith.constant 0 : index
    %c0_32 = arith.constant 0 : index
    %16 = vector.load %arg16[%c0_31, %c0_32] : memref<1x512xf32, #tpu.memory_space<vmem>>, vector<1x512xf32>
    %c0_33 = arith.constant 0 : index
    %c0_34 = arith.constant 0 : index
    %17 = vector.load %arg17[%c0_33, %c0_34] : memref<1x512xf32, #tpu.memory_space<vmem>>, vector<1x512xf32>
    %cst = arith.constant dense<0.000000e+00> : vector<8x384xf32>
    %18 = tpu.matmul %1, %6, %cst {dimension_numbers = #tpu.dot_dimension_numbers<[1], [0], [0], [1], [0, 0, 1, 1], [], []>} : vector<8x64xf32>, vector<64x384xf32>, vector<8x384xf32> -> vector<8x384xf32>
    %19 = vector.extract_strided_slice %18 {offsets = [0, 0], sizes = [8, 320], strides = [1, 1]} : vector<8x384xf32> to vector<8x320xf32>
    %20 = arith.truncf %19 : vector<8x320xf32> to vector<8x320xbf16>
    %cst_35 = arith.constant dense<0.000000e+00> : vector<16x320xf32>
    %21 = tpu.matmul %3, %20, %cst_35 {dimension_numbers = #tpu.dot_dimension_numbers<[1], [0], [0], [1], [0, 0, 1, 1], [], []>} : vector<16x8xbf16>, vector<8x320xbf16>, vector<16x320xf32> -> vector<16x320xf32>
    %22 = vector.extract_strided_slice %21 {offsets = [0, 0], sizes = [16, 256], strides = [1, 1]} : vector<16x320xf32> to vector<16x256xf32>
    %23 = vector.extract_strided_slice %21 {offsets = [0, 256], sizes = [16, 64], strides = [1, 1]} : vector<16x320xf32> to vector<16x64xf32>
    %24 = vector.extract_strided_slice %18 {offsets = [0, 320], sizes = [8, 64], strides = [1, 1]} : vector<8x384xf32> to vector<8x64xf32>
    %25 = arith.truncf %24 : vector<8x64xf32> to vector<8x64xbf16>
    %cst_36 = arith.constant dense<0.000000e+00> : vector<16x64xf32>
    %26 = tpu.matmul %4, %25, %cst_36 {dimension_numbers = #tpu.dot_dimension_numbers<[1], [0], [0], [1], [0, 0, 1, 1], [], []>} : vector<16x8xbf16>, vector<8x64xbf16>, vector<16x64xf32> -> vector<16x64xf32>
    %cst_37 = arith.constant dense<0.000000e+00> : vector<16x64xf32>
    %27 = tpu.matmul %2, %7, %cst_37 {dimension_numbers = #tpu.dot_dimension_numbers<[1], [0], [0], [1], [0, 0, 1, 1], [], []>} : vector<16x16xf32>, vector<16x64xf32>, vector<16x64xf32> -> vector<16x64xf32>
    %28 = arith.addf %23, %26 : vector<16x64xf32>
    %29 = arith.addf %28, %27 : vector<16x64xf32>
    %30 = vector.broadcast %9 : vector<1x64xf32> to vector<16x64xf32>
    %31 = arith.addf %29, %30 : vector<16x64xf32>
    %cst_38 = arith.constant 0.000000e+00 : f32
    %32 = vector.broadcast %cst_38 : f32 to vector<16x64xf32>
    %33 = arith.cmpf ogt, %31, %32 : vector<16x64xf32>
    %cst_39 = arith.constant 0.00999999977 : f32
    %34 = vector.broadcast %cst_39 : f32 to vector<16x64xf32>
    %35 = arith.mulf %34, %31 : vector<16x64xf32>
    %36 = arith.select %33, %31, %35 : vector<16x64xi1>, vector<16x64xf32>
    %cst_40 = arith.constant dense<0.000000e+00> : vector<16x2xf32>
    %37 = tpu.matmul %36, %8, %cst_40 {dimension_numbers = #tpu.dot_dimension_numbers<[1], [0], [0], [1], [0, 0, 1, 1], [], []>} : vector<16x64xf32>, vector<64x2xf32>, vector<16x2xf32> -> vector<16x2xf32>
    %cst_41 = arith.constant dense<0xFF800000> : vector<2xf32>
    %38 = vector.multi_reduction <maximumf>, %37, %cst_41 [0] : vector<16x2xf32> to vector<2xf32>
    %39 = vector.shape_cast %38 : vector<2xf32> to vector<1x2xf32>
    %40 = vector.broadcast %39 : vector<1x2xf32> to vector<16x2xf32>
    %41 = arith.subf %37, %40 : vector<16x2xf32>
    %42 = math.exp %41 : vector<16x2xf32>
    %cst_42 = arith.constant dense<0.000000e+00> : vector<16x256xf32>
    %43 = tpu.matmul %42, %10, %cst_42 {dimension_numbers = #tpu.dot_dimension_numbers<[1], [0], [0], [1], [0, 0, 1, 1], [], []>} : vector<16x2xf32>, vector<2x256xf32>, vector<16x256xf32> -> vector<16x256xf32>
    %44 = arith.mulf %43, %22 : vector<16x256xf32>
    %45 = tpu.concatenate %44, %42 in 1 : vector<16x256xf32>, vector<16x2xf32> -> vector<16x258xf32>
    %46 = arith.truncf %45 : vector<16x258xf32> to vector<16x258xbf16>
    %cst_43 = arith.constant dense<0.000000e+00> : vector<8x258xf32>
    %47 = tpu.matmul %0, %46, %cst_43 {dimension_numbers = #tpu.dot_dimension_numbers<[1], [0], [0], [1], [0, 0, 1, 1], [], []>} : vector<8x16xbf16>, vector<16x258xbf16>, vector<8x258xf32> -> vector<8x258xf32>
    %48 = vector.extract_strided_slice %47 {offsets = [0, 0], sizes = [8, 256], strides = [1, 1]} : vector<8x258xf32> to vector<8x256xf32>
    %49 = vector.extract_strided_slice %47 {offsets = [0, 256], sizes = [8, 2], strides = [1, 1]} : vector<8x258xf32> to vector<8x2xf32>
    %cst_44 = arith.constant 9.99999935E-39 : f32
    %50 = vector.broadcast %cst_44 : f32 to vector<8x2xf32>
    %51 = arith.maximumf %49, %50 : vector<8x2xf32>
    %52 = tpu.reciprocal %51 {approx = true} : vector<8x2xf32> -> vector<8x2xf32>
    %cst_45 = arith.constant dense<0.000000e+00> : vector<8x256xf32>
    %53 = tpu.matmul %52, %10, %cst_45 {dimension_numbers = #tpu.dot_dimension_numbers<[1], [0], [0], [1], [0, 0, 1, 1], [], []>} : vector<8x2xf32>, vector<2x256xf32>, vector<8x256xf32> -> vector<8x256xf32>
    %54 = arith.mulf %48, %53 : vector<8x256xf32>
    %cst_46 = arith.constant dense<0.000000e+00> : vector<8x1536xf32>
    %55 = tpu.matmul %54, %11, %cst_46 {dimension_numbers = #tpu.dot_dimension_numbers<[1], [0], [0], [1], [0, 0, 1, 1], [], []>} : vector<8x256xf32>, vector<256x1536xf32>, vector<8x1536xf32> -> vector<8x1536xf32>
    %56 = vector.extract_strided_slice %55 {offsets = [0, 0], sizes = [8, 1280], strides = [1, 1]} : vector<8x1536xf32> to vector<8x1280xf32>
    %57 = arith.truncf %56 : vector<8x1280xf32> to vector<8x1280xbf16>
    %cst_47 = arith.constant dense<0.000000e+00> : vector<16x1280xf32>
    %58 = tpu.matmul %3, %57, %cst_47 {dimension_numbers = #tpu.dot_dimension_numbers<[1], [0], [0], [1], [0, 0, 1, 1], [], []>} : vector<16x8xbf16>, vector<8x1280xbf16>, vector<16x1280xf32> -> vector<16x1280xf32>
    %59 = vector.extract_strided_slice %58 {offsets = [0, 0], sizes = [16, 1024], strides = [1, 1]} : vector<16x1280xf32> to vector<16x1024xf32>
    %60 = vector.extract_strided_slice %58 {offsets = [0, 1024], sizes = [16, 256], strides = [1, 1]} : vector<16x1280xf32> to vector<16x256xf32>
    %61 = vector.extract_strided_slice %55 {offsets = [0, 1280], sizes = [8, 256], strides = [1, 1]} : vector<8x1536xf32> to vector<8x256xf32>
    %62 = arith.truncf %61 : vector<8x256xf32> to vector<8x256xbf16>
    %cst_48 = arith.constant dense<0.000000e+00> : vector<16x256xf32>
    %63 = tpu.matmul %4, %62, %cst_48 {dimension_numbers = #tpu.dot_dimension_numbers<[1], [0], [0], [1], [0, 0, 1, 1], [], []>} : vector<16x8xbf16>, vector<8x256xbf16>, vector<16x256xf32> -> vector<16x256xf32>
    %cst_49 = arith.constant dense<0.000000e+00> : vector<16x256xf32>
    %64 = tpu.matmul %36, %12, %cst_49 {dimension_numbers = #tpu.dot_dimension_numbers<[1], [0], [0], [1], [0, 0, 1, 1], [], []>} : vector<16x64xf32>, vector<64x256xf32>, vector<16x256xf32> -> vector<16x256xf32>
    %65 = arith.addf %60, %63 : vector<16x256xf32>
    %66 = arith.addf %65, %64 : vector<16x256xf32>
    %67 = vector.broadcast %14 : vector<1x256xf32> to vector<16x256xf32>
    %68 = arith.addf %66, %67 : vector<16x256xf32>
    %cst_50 = arith.constant 0.000000e+00 : f32
    %69 = vector.broadcast %cst_50 : f32 to vector<16x256xf32>
    %70 = arith.cmpf ogt, %68, %69 : vector<16x256xf32>
    %cst_51 = arith.constant 0.00999999977 : f32
    %71 = vector.broadcast %cst_51 : f32 to vector<16x256xf32>
    %72 = arith.mulf %71, %68 : vector<16x256xf32>
    %73 = arith.select %70, %68, %72 : vector<16x256xi1>, vector<16x256xf32>
    %cst_52 = arith.constant dense<0.000000e+00> : vector<16x2xf32>
    %74 = tpu.matmul %73, %13, %cst_52 {dimension_numbers = #tpu.dot_dimension_numbers<[1], [0], [0], [1], [0, 0, 1, 1], [], []>} : vector<16x256xf32>, vector<256x2xf32>, vector<16x2xf32> -> vector<16x2xf32>
    %cst_53 = arith.constant dense<0xFF800000> : vector<2xf32>
    %75 = vector.multi_reduction <maximumf>, %74, %cst_53 [0] : vector<16x2xf32> to vector<2xf32>
    %76 = vector.shape_cast %75 : vector<2xf32> to vector<1x2xf32>
    %77 = vector.broadcast %76 : vector<1x2xf32> to vector<16x2xf32>
    %78 = arith.subf %74, %77 : vector<16x2xf32>
    %79 = math.exp %78 : vector<16x2xf32>
    %cst_54 = arith.constant dense<0.000000e+00> : vector<16x1024xf32>
    %80 = tpu.matmul %79, %15, %cst_54 {dimension_numbers = #tpu.dot_dimension_numbers<[1], [0], [0], [1], [0, 0, 1, 1], [], []>} : vector<16x2xf32>, vector<2x1024xf32>, vector<16x1024xf32> -> vector<16x1024xf32>
    %81 = arith.mulf %80, %59 : vector<16x1024xf32>
    %82 = tpu.concatenate %81, %79 in 1 : vector<16x1024xf32>, vector<16x2xf32> -> vector<16x1026xf32>
    %83 = arith.truncf %82 : vector<16x1026xf32> to vector<16x1026xbf16>
    %cst_55 = arith.constant dense<0.000000e+00> : vector<8x1026xf32>
    %84 = tpu.matmul %0, %83, %cst_55 {dimension_numbers = #tpu.dot_dimension_numbers<[1], [0], [0], [1], [0, 0, 1, 1], [], []>} : vector<8x16xbf16>, vector<16x1026xbf16>, vector<8x1026xf32> -> vector<8x1026xf32>
    %85 = vector.extract_strided_slice %84 {offsets = [0, 0], sizes = [8, 1024], strides = [1, 1]} : vector<8x1026xf32> to vector<8x1024xf32>
    %86 = vector.extract_strided_slice %84 {offsets = [0, 1024], sizes = [8, 2], strides = [1, 1]} : vector<8x1026xf32> to vector<8x2xf32>
    %cst_56 = arith.constant 9.99999935E-39 : f32
    %87 = vector.broadcast %cst_56 : f32 to vector<8x2xf32>
    %88 = arith.maximumf %86, %87 : vector<8x2xf32>
    %89 = tpu.reciprocal %88 {approx = true} : vector<8x2xf32> -> vector<8x2xf32>
    %cst_57 = arith.constant dense<0.000000e+00> : vector<8x1024xf32>
    %90 = tpu.matmul %89, %15, %cst_57 {dimension_numbers = #tpu.dot_dimension_numbers<[1], [0], [0], [1], [0, 0, 1, 1], [], []>} : vector<8x2xf32>, vector<2x1024xf32>, vector<8x1024xf32> -> vector<8x1024xf32>
    %91 = arith.mulf %85, %90 : vector<8x1024xf32>
    %92 = arith.truncf %89 : vector<8x2xf32> to vector<8x2xbf16>
    %cst_58 = arith.constant dense<0.000000e+00> : vector<16x2xf32>
    %93 = tpu.matmul %4, %92, %cst_58 {dimension_numbers = #tpu.dot_dimension_numbers<[1], [0], [0], [1], [0, 0, 1, 1], [], []>} : vector<16x8xbf16>, vector<8x2xbf16>, vector<16x2xf32> -> vector<16x2xf32>
    %94 = arith.mulf %79, %93 : vector<16x2xf32>
    %c0_59 = arith.constant 0 : index
    %c0_60 = arith.constant 0 : index
    %95 = vector.load %arg19[%c0_59, %c0_60] : memref<16x2xf32, #tpu.memory_space<vmem>>, vector<16x2xf32>
    tpu.vector_store %arg19[%c0_59, %c0_60], %94 {strides = array<i32>} : memref<16x2xf32, #tpu.memory_space<vmem>>, vector<16x2xf32>,
    %96 = vector.extract_strided_slice %91 {offsets = [0, 0], sizes = [8, 512], strides = [1, 1]} : vector<8x1024xf32> to vector<8x512xf32>
    %97 = vector.extract_strided_slice %91 {offsets = [0, 512], sizes = [8, 512], strides = [1, 1]} : vector<8x1024xf32> to vector<8x512xf32>
    %98 = arith.addf %96, %97 : vector<8x512xf32>
    %cst_61 = arith.constant 5.000000e-01 : f32
    %99 = vector.broadcast %cst_61 : f32 to vector<8x512xf32>
    %100 = arith.mulf %98, %99 : vector<8x512xf32>
    %101 = arith.truncf %100 : vector<8x512xf32> to vector<8x512xbf16>
    %cst_62 = arith.constant dense<0.000000e+00> : vector<2x512xf32>
    %102 = tpu.matmul %5, %101, %cst_62 {dimension_numbers = #tpu.dot_dimension_numbers<[1], [0], [0], [1], [0, 0, 1, 1], [], []>} : vector<2x8xbf16>, vector<8x512xbf16>, vector<2x512xf32> -> vector<2x512xf32>
    %cst_63 = arith.constant dense<0.000000e+00> : vector<512xf32>
    %103 = vector.multi_reduction <add>, %102, %cst_63 [0] : vector<2x512xf32> to vector<512xf32>
    %104 = vector.shape_cast %103 : vector<512xf32> to vector<1x512xf32>
    %cst_64 = arith.constant 2.000000e+00 : f32
    %105 = vector.broadcast %cst_64 : f32 to vector<1x512xf32>
    %106 = arith.divf %104, %105 : vector<1x512xf32>
    %107 = vector.broadcast %106 : vector<1x512xf32> to vector<2x512xf32>
    %108 = arith.subf %102, %107 : vector<2x512xf32>
    %109 = arith.mulf %108, %108 : vector<2x512xf32>
    %cst_65 = arith.constant dense<0.000000e+00> : vector<512xf32>
    %110 = vector.multi_reduction <add>, %109, %cst_65 [0] : vector<2x512xf32> to vector<512xf32>
    %111 = vector.shape_cast %110 : vector<512xf32> to vector<1x512xf32>
    %cst_66 = arith.constant 2.000000e+00 : f32
    %112 = vector.broadcast %cst_66 : f32 to vector<1x512xf32>
    %113 = arith.divf %111, %112 : vector<1x512xf32>
    %114 = vector.broadcast %106 : vector<1x512xf32> to vector<2x512xf32>
    %115 = arith.subf %102, %114 : vector<2x512xf32>
    %cst_67 = arith.constant 9.99999974E-6 : f32
    %116 = vector.broadcast %cst_67 : f32 to vector<1x512xf32>
    %117 = arith.addf %113, %116 : vector<1x512xf32>
    %118 = math.rsqrt %117 : vector<1x512xf32>
    %119 = vector.broadcast %118 : vector<1x512xf32> to vector<2x512xf32>
    %120 = arith.mulf %115, %119 : vector<2x512xf32>
    %121 = vector.broadcast %16 : vector<1x512xf32> to vector<2x512xf32>
    %122 = arith.mulf %120, %121 : vector<2x512xf32>
    %123 = vector.broadcast %17 : vector<1x512xf32> to vector<2x512xf32>
    %124 = arith.addf %122, %123 : vector<2x512xf32>
    %c0_68 = arith.constant 0 : index
    %c0_69 = arith.constant 0 : index
    %125 = vector.load %arg18[%c0_68, %c0_69] : memref<2x512xf32, #tpu.memory_space<vmem>>, vector<2x512xf32>
    tpu.vector_store %arg18[%c0_68, %c0_69], %124 {strides = array<i32>} : memref<2x512xf32, #tpu.memory_space<vmem>>, vector<2x512xf32>,
    return
  }
}

</mosaic_0001>

<bundles_post_ra>
// kernel: tpu_custom_call.1
= control target key start
LH: loop header
LB: loop body
LE: loop exit
PB: predicated region body
PF: predicated region fallthrough
CT: control target
= control target key end

     0   :  { %s5534_s0 = inlined_call_operand.hbm [shape: f32[8,64], index: 0, kind: input, shape index: {}]   ;;  %s5535_s1 = inlined_call_operand.hbm [shape: f32[16,16], index: 1, kind: input, shape index: {}]   ;;  %s5536_s2 = inlined_call_operand.vmem [shape: bf16[16,8], index: 2, kind: input, shape index: {}]   ;;  %s5537_s3 = inlined_call_operand.vmem [shape: bf16[16,8], index: 3, kind: input, shape index: {}]   ;;  %s5538_s4 = inlined_call_operand.hbm [shape: bf16[2,8], index: 4, kind: input, shape index: {}]   ;;  %s5539_s5 = inlined_call_operand.hbm [shape: f32[64,384], index: 5, kind: input, shape index: {}]   ;;  %s5540_s6 = inlined_call_operand.hbm [shape: f32[16,64], index: 6, kind: input, shape index: {}]   ;;  %s5541_s7 = inlined_call_operand.vmem [shape: f32[64,2], index: 7, kind: input, shape index: {}]   ;;  %s5542_s8 = inlined_call_operand.hbm [shape: f32[1,64], index: 8, kind: input, shape index: {}]   ;;  %s5543_s9 = inlined_call_operand.hbm [shape: f32[2,256], index: 9, kind: input, shape index: {}]   ;;  %s5544_s10 = inlined_call_operand.hbm [shape: f32[256,1536], index: 10, kind: input, shape index: {}]   ;;  %s5545_s11 = inlined_call_operand.hbm [shape: f32[64,256], index: 11, kind: input, shape index: {}]   ;;  %s5546_s12 = inlined_call_operand.vmem [shape: f32[256,2], index: 12, kind: input, shape index: {}]   ;;  %s5547_s13 = inlined_call_operand.hbm [shape: f32[1,256], index: 13, kind: input, shape index: {}]   ;;  %s5548_s14 = inlined_call_operand.hbm [shape: f32[2,1024], index: 14, kind: input, shape index: {}]   ;;  %s5549_s15 = inlined_call_operand.hbm [shape: f32[1,512], index: 15, kind: input, shape index: {}]   ;;  %s5550_s16 = inlined_call_operand.hbm [shape: f32[1,512], index: 16, kind: input, shape index: {}]   ;;  %s5551_s17 = inlined_call_operand.hbm [shape: f32[2,512], index: 17, kind: output, shape index: {0}]   ;;  %s5552_s18 = inlined_call_operand.vmem [shape: f32[16,2], index: 18, kind: output, shape index: {1}]  }
   0x1   :  { %5559 = sst [smem:[#allocation32_spill]] %s5534_s0 }
   0x2   :  { %5560 = sst [smem:[#allocation33_spill]] %s5535_s1 }
   0x3   :  { %5561 = sst [smem:[#allocation34_spill]] %s5536_s2 }
   0x4   :  { %5562 = sst [smem:[#allocation35_spill]] %s5551_s17 }
   0x5   :  { %24 = vsyncpa [#allocation3], 0 }
   0x6   :  { %25 = vsyncpa [#allocation6], 0 }
   0x7   :  { %26 = vsyncpa [#allocation9], 0 }
   0x8   :  { %27 = vsyncpa [#allocation12], 0 }
   0x9   :  { %28 = vsyncpa [#allocation15], 0 }
   0xa   :  { %29 = vsyncpa [#allocation18], 0 }
   0xb   :  { %30 = vsyncpa [#allocation21], 0 }
   0xc   :  { %31 = vsyncpa [#allocation4], 0  ;;  %s4741_s27 = smov [#allocation5]   ;;  %s5563_s0 = sld [smem:[#allocation33_spill]] }
   0xd   :  { %s47_s28 = sshll.u32 %s4741_s27, 4  ;;  %s48_s28 = int_to_ptr.vmem [resolvable:$true] %s47_s28 }
  0x12   :  { %s4417_s19 = scalar_lea.hbm %s5563_s0, 256 }
  0x13   :  { %p4418_p0 = scmp.ne.s32.totalorder %s5563_s0, %s4417_s19  ;;  %p4421_p1 = scmp.lt.u32.totalorder %s4417_s19, %s5563_s0 }
  0x15   :  { %p4423_p2 = pnand %p4421_p1, %p4418_p0 }
  0x17   :  { %4426 = shalt.err (!%p4423_p2)
}
  0x18   :  { %s4427_s2 = scalar_lea.vmem %s48_s28, 256  ;;  %p4432_p4 = scmp.lt.s32.totalorder %s48_s28, %s48_s28 }
  0x19   :  { %p4428_p3 = scmp.ne.s32.totalorder %s48_s28, %s4427_s2  ;;  %p4433_p5 = scmp.lt.s32.totalorder %s4427_s2, %s4427_s2 }
  0x1b   :  { %p4434_p6 = por %p4433_p5, %p4432_p4 }
  0x1d   :  { %p4435_p7 = pnand %p4434_p6, %p4428_p3 }
  0x1f   :  { %4438 = shalt.err (!%p4435_p7)
}
  0x20   :  { %s5557_s23 = smov 128   ;;  %s5558_s24 = smov 8  }
  0x21   :  { %53 = dma.hbm_to_vmem [thread:$0]  %s5563_s0, 256, %s48_s28, [#allocation6], %s5557_s23, %s5557_s23, %s5558_s24  }
  0x22   :  { %s4744_s27 = smov [#allocation8]   ;;  %s4439_s1 = scalar_lea.hbm %s5539_s5, 3072 }
  0x23   :  { %s73_s29 = sshll.u32 %s4744_s27, 4  ;;  %p4440_p8 = scmp.ne.s32.totalorder %s5539_s5, %s4439_s1  ;;  %s74_s29 = int_to_ptr.vmem [resolvable:$true] %s73_s29 }
  0x24   :  { %p4443_p9 = scmp.lt.u32.totalorder %s4439_s1, %s5539_s5 }
  0x26   :  { %p4445_p10 = pnand %p4443_p9, %p4440_p8 }
  0x28   :  { %4448 = shalt.err (!%p4445_p10)
}
  0x29   :  { %s4449_s17 = scalar_lea.vmem %s74_s29, 3072  ;;  %p4454_p12 = scmp.lt.s32.totalorder %s74_s29, %s74_s29 }
  0x2a   :  { %p4450_p11 = scmp.ne.s32.totalorder %s74_s29, %s4449_s17  ;;  %p4455_p13 = scmp.lt.s32.totalorder %s4449_s17, %s4449_s17 }
  0x2c   :  { %p4456_p0 = por %p4455_p13, %p4454_p12 }
  0x2e   :  { %p4457_p1 = pnand %p4456_p0, %p4450_p11 }
  0x30   :  { %4460 = shalt.err (!%p4457_p1)
}
  0x31   :  { %s4745_s28 = smov 384   ;;  %s4746_s0 = smov 24  }
  0x32   :  { %79 = dma.hbm_to_vmem [thread:$0]  %s5539_s5, 3072, %s74_s29, [#allocation9], %s4745_s28, %s4745_s28, %s4746_s0  }
  0x33   :  { %s4747_s27 = smov [#allocation11]   ;;  %s4748_s19 = smov [#allocation14]  }
  0x34   :  { %s100_s30 = sshll.u32 %s4747_s27, 4  ;;  %s119_s20 = sshll.u32 %s4748_s19, 4  ;;  %s101_s30 = int_to_ptr.vmem [resolvable:$true] %s100_s30  ;;  %s4891_s20 = int_to_ptr.vmem [resolvable:$true] %s119_s20 }
  0x35   :  { %s4461_s17 = scalar_lea.hbm %s5542_s8, 16 }
  0x36   :  { %p4462_p2 = scmp.ne.s32.totalorder %s5542_s8, %s4461_s17  ;;  %p4465_p3 = scmp.lt.u32.totalorder %s4461_s17, %s5542_s8 }
  0x38   :  { %p4467_p4 = pnand %p4465_p3, %p4462_p2 }
  0x3a   :  { %4470 = shalt.err (!%p4467_p4)
}
  0x3b   :  { %s4471_s5 = scalar_lea.vmem %s101_s30, 16  ;;  %s4475_s29 = scalar_lea.vmem %s101_s30, 32 }
  0x3c   :  { %p4472_p5 = scmp.ne.s32.totalorder %s101_s30, %s4471_s5  ;;  %p4476_p6 = scmp.lt.s32.totalorder %s101_s30, %s101_s30 }
  0x3d   :  { %p4477_p7 = scmp.lt.s32.totalorder %s4475_s29, %s4471_s5 }
  0x3f   :  { %p4478_p8 = por %p4477_p7, %p4476_p6 }
  0x41   :  { %p4479_p9 = pnand %p4478_p8, %p4472_p5 }
  0x43   :  { %4482 = shalt.err (!%p4479_p9)
}
  0x44   :  { %103 = dma.hbm_to_vmem [thread:$0]  %s5542_s8, 16, %s101_s30, [#allocation12]  }
  0x45   :  { %s4483_s27 = scalar_lea.hbm %s5544_s10, 49152 }
  0x46   :  { %p4484_p10 = scmp.ne.s32.totalorder %s5544_s10, %s4483_s27  ;;  %p4487_p11 = scmp.lt.u32.totalorder %s4483_s27, %s5544_s10 }
  0x48   :  { %p4489_p12 = pnand %p4487_p11, %p4484_p10 }
  0x4a   :  { %4492 = shalt.err (!%p4489_p12)
}
  0x4b   :  { %s4493_s21 = scalar_lea.vmem %s4891_s20, 49152  ;;  %p4498_p0 = scmp.lt.s32.totalorder %s4891_s20, %s4891_s20 }
  0x4c   :  { %p4494_p13 = scmp.ne.s32.totalorder %s4891_s20, %s4493_s21  ;;  %p4499_p1 = scmp.lt.s32.totalorder %s4493_s21, %s4493_s21 }
  0x4e   :  { %p4500_p2 = por %p4499_p1, %p4498_p0 }
  0x50   :  { %p4501_p3 = pnand %p4500_p2, %p4494_p13 }
  0x52   :  { %4504 = shalt.err (!%p4501_p3)
}
  0x53   :  { %s4749_s8 = smov 1536   ;;  %s4750_s30 = smov 96  }
  0x54   :  { %125 = dma.hbm_to_vmem [thread:$0]  %s5544_s10, 49152, %s4891_s20, [#allocation15], %s4749_s8, %s4749_s8, %s4750_s30  }
  0x55   :  { %s4751_s2 = smov [#allocation17]   ;;  %s4752_s29 = smov [#allocation20]  }
  0x56   :  { %s146_s5 = sshll.u32 %s4751_s2, 4  ;;  %s166_s28 = sshll.u32 %s4752_s29, 4  ;;  %s147_s5 = int_to_ptr.vmem [resolvable:$true] %s146_s5  ;;  %s167_s28 = int_to_ptr.vmem [resolvable:$true] %s166_s28 }
  0x57   :  { %s4505_s26 = scalar_lea.hbm %s5547_s13, 32 }
  0x58   :  { %p4506_p4 = scmp.ne.s32.totalorder %s5547_s13, %s4505_s26  ;;  %p4509_p5 = scmp.lt.u32.totalorder %s4505_s26, %s5547_s13 }
  0x5a   :  { %p4511_p6 = pnand %p4509_p5, %p4506_p4 }
  0x5c   :  { %4514 = shalt.err (!%p4511_p6)
}
  0x5d   :  { %s4515_s10 = scalar_lea.vmem %s147_s5, 32  ;;  %p4520_p8 = scmp.lt.s32.totalorder %s147_s5, %s147_s5 }
  0x5e   :  { %p4516_p7 = scmp.ne.s32.totalorder %s147_s5, %s4515_s10  ;;  %p4521_p9 = scmp.lt.s32.totalorder %s4515_s10, %s4515_s10 }
  0x60   :  { %p4522_p10 = por %p4521_p9, %p4520_p8 }
  0x62   :  { %p4523_p11 = pnand %p4522_p10, %p4516_p7 }
  0x64   :  { %4526 = shalt.err (!%p4523_p11)
}
  0x65   :  { %149 = dma.hbm_to_vmem [thread:$0]  %s5547_s13, 32, %s147_s5, [#allocation18]  }
  0x66   :  { %s4527_s30 = scalar_lea.hbm %s5549_s15, 64 }
  0x67   :  { %p4528_p12 = scmp.ne.s32.totalorder %s5549_s15, %s4527_s30  ;;  %p4531_p13 = scmp.lt.u32.totalorder %s4527_s30, %s5549_s15 }
  0x69   :  { %p4533_p0 = pnand %p4531_p13, %p4528_p12 }
  0x6b   :  { %4536 = shalt.err (!%p4533_p0)
}
  0x6c   :  { %s4537_s0 = scalar_lea.vmem %s167_s28, 64  ;;  %p4542_p2 = scmp.lt.s32.totalorder %s167_s28, %s167_s28 }
  0x6d   :  { %p4538_p1 = scmp.ne.s32.totalorder %s167_s28, %s4537_s0  ;;  %p4543_p3 = scmp.lt.s32.totalorder %s4537_s0, %s4537_s0 }
  0x6f   :  { %p4544_p4 = por %p4543_p3, %p4542_p2 }
  0x71   :  { %p4545_p5 = pnand %p4544_p4, %p4538_p1 }
  0x73   :  { %4548 = shalt.err (!%p4545_p5)
}
  0x74   :  { %169 = dma.hbm_to_vmem [thread:$0]  %s5549_s15, 64, %s167_s28, [#allocation21]  }
  0x75   :  { %s4753_s25 = smov [#allocation2]   ;;  %s4754_s27 = smov [#allocation7]  }
  0x76   :  { %s38_s26 = sshll.u32 %s4753_s25, 4  ;;  %s64_s23 = sshll.u32 %s4754_s27, 4  ;;  %s39_s26 = int_to_ptr.vmem [resolvable:$true] %s38_s26  ;;  %s65_s23 = int_to_ptr.vmem [resolvable:$true] %s64_s23 }
  0x77   :  { %s5564_s10 = sld [smem:[#allocation32_spill]] }
  0x7d   :  { %s4549_s20 = scalar_lea.hbm %s5564_s10, 128 }
  0x7e   :  { %p4550_p6 = scmp.ne.s32.totalorder %s5564_s10, %s4549_s20  ;;  %p4553_p7 = scmp.lt.u32.totalorder %s4549_s20, %s5564_s10 }
  0x80   :  { %p4555_p8 = pnand %p4553_p7, %p4550_p6 }
  0x82   :  { %4558 = shalt.err (!%p4555_p8)
}
  0x83   :  { %s4559_s15 = scalar_lea.vmem %s39_s26, 128  ;;  %p4564_p10 = scmp.lt.s32.totalorder %s39_s26, %s39_s26 }
  0x84   :  { %p4560_p9 = scmp.ne.s32.totalorder %s39_s26, %s4559_s15  ;;  %p4565_p11 = scmp.lt.s32.totalorder %s4559_s15, %s4559_s15 }
  0x86   :  { %p4566_p12 = por %p4565_p11, %p4564_p10 }
  0x88   :  { %p4567_p13 = pnand %p4566_p12, %p4560_p9 }
  0x8a   :  { %4570 = shalt.err (!%p4567_p13)
}
  0x8b   :  { %41 = dma.hbm_to_vmem [thread:$0]  %s5564_s10, 128, %s39_s26, [#allocation3]  }
  0x8c   :  { %s4571_s29 = scalar_lea.hbm %s5538_s4, 16 }
  0x8d   :  { %p4572_p0 = scmp.ne.s32.totalorder %s5538_s4, %s4571_s29  ;;  %p4575_p1 = scmp.lt.u32.totalorder %s4571_s29, %s5538_s4 }
  0x8f   :  { %p4577_p2 = pnand %p4575_p1, %p4572_p0 }
  0x91   :  { %4580 = shalt.err (!%p4577_p2)
}
  0x92   :  { %s4581_s27 = scalar_lea.vmem %s65_s23, 16  ;;  %s4585_s24 = scalar_lea.vmem %s65_s23, 32 }
  0x93   :  { %p4582_p3 = scmp.ne.s32.totalorder %s65_s23, %s4581_s27  ;;  %p4586_p4 = scmp.lt.s32.totalorder %s65_s23, %s65_s23 }
  0x94   :  { %p4587_p5 = scmp.lt.s32.totalorder %s4585_s24, %s4581_s27 }
  0x96   :  { %p4588_p6 = por %p4587_p5, %p4586_p4 }
  0x98   :  { %p4589_p7 = pnand %p4588_p6, %p4582_p3 }
  0x9a   :  { %4592 = shalt.err (!%p4589_p7)
}
  0x9b   :  { %67 = dma.hbm_to_vmem [thread:$0]  %s5538_s4, 16, %s65_s23, [#allocation6]  }
  0x9c   :  { %s4755_s10 = smov [#allocation10]   ;;  %s4756_s1 = smov [#allocation13]  }
  0x9d   :  { %s85_s20 = sshll.u32 %s4755_s10, 4  ;;  %s110_s21 = sshll.u32 %s4756_s1, 4  ;;  %s86_s20 = int_to_ptr.vmem [resolvable:$true] %s85_s20  ;;  %s111_s21 = int_to_ptr.vmem [resolvable:$true] %s110_s21 }
  0x9e   :  { %s4593_s15 = scalar_lea.hbm %s5540_s6, 256 }
  0x9f   :  { %p4594_p8 = scmp.ne.s32.totalorder %s5540_s6, %s4593_s15  ;;  %p4597_p9 = scmp.lt.u32.totalorder %s4593_s15, %s5540_s6 }
  0xa1   :  { %p4599_p10 = pnand %p4597_p9, %p4594_p8 }
  0xa3   :  { %4602 = shalt.err (!%p4599_p10)
}
  0xa4   :  { %s4603_s4 = scalar_lea.vmem %s86_s20, 256  ;;  %p4608_p12 = scmp.lt.s32.totalorder %s86_s20, %s86_s20 }
  0xa5   :  { %p4604_p11 = scmp.ne.s32.totalorder %s86_s20, %s4603_s4  ;;  %p4609_p13 = scmp.lt.s32.totalorder %s4603_s4, %s4603_s4 }
  0xa7   :  { %p4610_p0 = por %p4609_p13, %p4608_p12 }
  0xa9   :  { %p4611_p1 = pnand %p4610_p0, %p4604_p11 }
  0xab   :  { %4614 = shalt.err (!%p4611_p1)
}
  0xac   :  { %s5565_s23 = smov 8   ;;  %s5566_s29 = smov 128  }
  0xad   :  { %91 = dma.hbm_to_vmem [thread:$0]  %s5540_s6, 256, %s86_s20, [#allocation9], %s5566_s29, %s5566_s29, %s5565_s23  }
  0xae   :  { %s4615_s27 = scalar_lea.hbm %s5543_s9, 64 }
  0xaf   :  { %p4616_p2 = scmp.ne.s32.totalorder %s5543_s9, %s4615_s27  ;;  %p4619_p3 = scmp.lt.u32.totalorder %s4615_s27, %s5543_s9 }
  0xb1   :  { %p4621_p4 = pnand %p4619_p3, %p4616_p2 }
  0xb3   :  { %4624 = shalt.err (!%p4621_p4)
}
  0xb4   :  { %s4625_s1 = scalar_lea.vmem %s111_s21, 64  ;;  %p4630_p6 = scmp.lt.s32.totalorder %s111_s21, %s111_s21 }
  0xb5   :  { %p4626_p5 = scmp.ne.s32.totalorder %s111_s21, %s4625_s1  ;;  %p4631_p7 = scmp.lt.s32.totalorder %s4625_s1, %s4625_s1 }
  0xb7   :  { %p4632_p8 = por %p4631_p7, %p4630_p6 }
  0xb9   :  { %p4633_p9 = pnand %p4632_p8, %p4626_p5 }
  0xbb   :  { %4636 = shalt.err (!%p4633_p9)
}
  0xbc   :  { %113 = dma.hbm_to_vmem [thread:$0]  %s5543_s9, 64, %s111_s21, [#allocation12]  }
  0xbd   :  { %s4757_s8 = smov [#allocation16]   ;;  %s4637_s17 = scalar_lea.hbm %s5545_s11, 2048 }
  0xbe   :  { %s131_s30 = sshll.u32 %s4757_s8, 4  ;;  %p4638_p10 = scmp.ne.s32.totalorder %s5545_s11, %s4637_s17  ;;  %s132_s30 = int_to_ptr.vmem [resolvable:$true] %s131_s30 }
  0xbf   :  { %p4641_p11 = scmp.lt.u32.totalorder %s4637_s17, %s5545_s11 }
  0xc1   :  { %p4643_p12 = pnand %p4641_p11, %p4638_p10 }
  0xc3   :  { %4646 = shalt.err (!%p4643_p12)
}
  0xc4   :  { %s4647_s29 = scalar_lea.vmem %s132_s30, 2048  ;;  %p4652_p0 = scmp.lt.s32.totalorder %s132_s30, %s132_s30 }
  0xc5   :  { %p4648_p13 = scmp.ne.s32.totalorder %s132_s30, %s4647_s29  ;;  %p4653_p1 = scmp.lt.s32.totalorder %s4647_s29, %s4647_s29 }
  0xc7   :  { %p4654_p2 = por %p4653_p1, %p4652_p0 }
  0xc9   :  { %p4655_p3 = pnand %p4654_p2, %p4648_p13 }
  0xcb   :  { %4658 = shalt.err (!%p4655_p3)
}
  0xcc   :  { %s4758_s9 = smov 256   ;;  %s4759_s21 = smov 16  }
  0xcd   :  { %137 = dma.hbm_to_vmem [thread:$0]  %s5545_s11, 2048, %s132_s30, [#allocation15], %s4758_s9, %s4758_s9, %s4759_s21  }
  0xce   :  { %s4760_s5 = smov [#allocation19]   ;;  %s4761_s27 = smov [#allocation22]  }
  0xcf   :  { %s156_s25 = sshll.u32 %s4760_s5, 4  ;;  %s176_s24 = sshll.u32 %s4761_s27, 4  ;;  %s157_s25 = int_to_ptr.vmem [resolvable:$true] %s156_s25  ;;  %s177_s24 = int_to_ptr.vmem [resolvable:$true] %s176_s24 }
  0xd0   :  { %s4659_s10 = scalar_lea.hbm %s5548_s14, 256 }
  0xd1   :  { %p4660_p4 = scmp.ne.s32.totalorder %s5548_s14, %s4659_s10  ;;  %p4663_p5 = scmp.lt.u32.totalorder %s4659_s10, %s5548_s14 }
  0xd3   :  { %p4665_p6 = pnand %p4663_p5, %p4660_p4 }
  0xd5   :  { %4668 = shalt.err (!%p4665_p6)
}
  0xd6   :  { %s4669_s11 = scalar_lea.vmem %s157_s25, 256  ;;  %p4674_p8 = scmp.lt.s32.totalorder %s157_s25, %s157_s25 }
  0xd7   :  { %p4670_p7 = scmp.ne.s32.totalorder %s157_s25, %s4669_s11  ;;  %p4675_p9 = scmp.lt.s32.totalorder %s4669_s11, %s4669_s11 }
  0xd9   :  { %p4676_p10 = por %p4675_p9, %p4674_p8 }
  0xdb   :  { %p4677_p11 = pnand %p4676_p10, %p4670_p7 }
  0xdd   :  { %4680 = shalt.err (!%p4677_p11)
}
  0xde   :  { %159 = dma.hbm_to_vmem [thread:$0]  %s5548_s14, 256, %s157_s25, [#allocation18]  }
  0xdf   :  { %s4681_s22 = scalar_lea.hbm %s5550_s16, 64 }
  0xe0   :  { %p4682_p12 = scmp.ne.s32.totalorder %s5550_s16, %s4681_s22  ;;  %p4685_p13 = scmp.lt.u32.totalorder %s4681_s22, %s5550_s16 }
  0xe2   :  { %p4687_p0 = pnand %p4685_p13, %p4682_p12 }
  0xe4   :  { %4690 = shalt.err (!%p4687_p0)
}
  0xe5   :  { %s4691_s9 = scalar_lea.vmem %s177_s24, 64  ;;  %p4696_p2 = scmp.lt.s32.totalorder %s177_s24, %s177_s24 }
  0xe6   :  { %p4692_p1 = scmp.ne.s32.totalorder %s177_s24, %s4691_s9  ;;  %p4697_p3 = scmp.lt.s32.totalorder %s4691_s9, %s4691_s9 }
  0xe8   :  { %p4698_p4 = por %p4697_p3, %p4696_p2 }
  0xea   :  { %p4699_p5 = pnand %p4698_p4, %p4692_p1 }
  0xec   :  { %4702 = shalt.err (!%p4699_p5)
}
  0xed   :  { %179 = dma.hbm_to_vmem [thread:$0]  %s5550_s16, 64, %s177_s24, [#allocation21]  }
  0xee   :  { %4725 = dma.done.wait [#allocation3], 128  }
  0xef   :  { %4726 = vsyncadd [#allocation3], 4294967168 }
  0xf0   :  { %4727 = dma.done.wait [#allocation6], 272  }
  0xf1   :  { %4728 = vsyncadd [#allocation6], 4294967024 }
  0xf2   :  { %4729 = dma.done.wait [#allocation9], 3328  }
  0xf3   :  { %4730 = vsyncadd [#allocation9], 4294963968 }
  0xf4   :  { %4731 = dma.done.wait [#allocation12], 80  }
  0xf5   :  { %4732 = vsyncadd [#allocation12], 4294967216 }
  0xf6   :  { %4733 = dma.done.wait [#allocation15], 51200  }
  0xf7   :  { %4734 = vsyncadd [#allocation15], 4294916096 }
  0xf8   :  { %4735 = dma.done.wait [#allocation18], 288  }
  0xf9   :  { %4736 = vsyncadd [#allocation18], 4294967008 }
  0xfa   :  { %4737 = dma.done.wait [#allocation21], 128  }
  0xfb   :  { %4738 = vsyncadd [#allocation21], 4294967168  ;;  %v4762_v0 = vmov 0.0|0.0   ;;  %vm4763_vm0 = vmmov 0   ;;  %v4764_v1 = vmov 0.0   ;;  %v230_v2 = vld [vmem:[#allocation8 + $0x10] sm:$0xff] }
  0xfc   :  { %3891 = vmatprep.subr.bf16.mxu1 %v4762_v0  ;;  %3816 = vmatprep.mubr.msk.f32.mxu1 %vm4763_vm0, %v4764_v1  ;;  %v233_v3 = vld [vmem:[#allocation8 + $0x28] sm:$0xff]  ;;  %v236_v4 = vld [vmem:[#allocation8 + $0x40] sm:$0xff]  ;;  %v239_v6 = vld [vmem:[#allocation8 + $0x58] sm:$0xff]  ;;  %vm701_vm1 = vcmask 523264   ;;  %v4765_v39 = vmov 0   ;;  %vm858_vm2 = vcmask 1043456  }
  0xfd   :  { %769 = vmatprep.mubr.f32.mxu0 %v4764_v1  ;;  %v3892_v5 = vpack.c.bf16 %v233_v3, %v230_v2  ;;  %v242_v7 = vld [vmem:[#allocation8 + $0x70] sm:$0xff]  ;;  %v245_v8 = vld [vmem:[#allocation8 + $0x88] sm:$0xff]  ;;  %v3895_v9 = vpack.c.bf16 %v239_v6, %v236_v4  ;;  %v232_v11 = vld [vmem:[#allocation8 + $0x20] sm:$0xff]  ;;  %s4766_s16 = smov 64   ;;  %s5567_s5 = sld [smem:[#allocation34_spill]]  ;;  %vm854_vm3 = vcmask 64512  }
  0xfe   :  { %v229_v10 = vld [vmem:[#allocation8 + $0x8] sm:$0xff]  ;;  %v228_v12 = vld [vmem:[#allocation8] sm:$0xff]  ;;  %v231_v14 = vld [vmem:[#allocation8 + $0x18] sm:$0xff]  ;;  %v3898_v24 = vpack.c.bf16 %v245_v8, %v242_v7  ;;  %vm1007_vm4 = vcmask 130048   ;;  %vm1219_vm7 = vcmask 1041408   ;;  %vm1188_vm8 = vcmask 15360  }
  0xff   :  { %3893 = vmatpush3.bf16.msra.mxu1 %v3892_v5  ;;  %v3875_v13 = vpack.c.bf16 %v232_v11, %v229_v10  ;;  %v235_v15 = vld [vmem:[#allocation8 + $0x38] sm:$0xff]  ;;  %v238_v16 = vld [vmem:[#allocation8 + $0x50] sm:$0xff]  ;;  %v3877_v17 = vpack.c.bf16 %v231_v14, %v228_v12  ;;  %v237_v20 = vld [vmem:[#allocation8 + $0x48] sm:$0xff] }
 0x100   :  { %3894 = vmatprep.subr.bf16.mxu1 %v4762_v0  ;;  %v3879_v18 = vpack.c.bf16 %v238_v16, %v235_v15  ;;  %v234_v19 = vld [vmem:[#allocation8 + $0x30] sm:$0xff]  ;;  %v241_v21 = vld [vmem:[#allocation8 + $0x68] sm:$0xff]  ;;  %v248_v22 = vld [vmem:[#allocation8 + $0xa0] sm:$0xff] }
 0x101   :  { %3876 = vmatprep.subr.bf16.mxu0 %v3875_v13  ;;  %v244_v23 = vld [vmem:[#allocation8 + $0x80] sm:$0xff]  ;;  %v251_v25 = vld [vmem:[#allocation8 + $0xb8] sm:$0xff]  ;;  %v3881_v26 = vpack.c.bf16 %v237_v20, %v234_v19  ;;  %v250_v31 = vld [vmem:[#allocation8 + $0xb0] sm:$0xff] }
 0x102   :  { %3878 = vmatpush1.bf16.msra.mxu0 %v3877_v17  ;;  %v240_v27 = vld [vmem:[#allocation8 + $0x60] sm:$0xff]  ;;  %v243_v28 = vld [vmem:[#allocation8 + $0x78] sm:$0xff]  ;;  %v3883_v29 = vpack.c.bf16 %v244_v23, %v241_v21  ;;  %v3901_v32 = vpack.c.bf16 %v251_v25, %v248_v22  ;;  %v246_v35 = vld [vmem:[#allocation8 + $0x90] sm:$0xff] }
 0x103   :  { %3896 = vmatpush3.bf16.msra.mxu1 %v3895_v9  ;;  %3880 = vmatprep.subr.bf16.mxu0 %v3879_v18  ;;  %v247_v30 = vld [vmem:[#allocation8 + $0x98] sm:$0xff]  ;;  %v3885_v33 = vpack.c.bf16 %v243_v28, %v240_v27  ;;  %v249_v36 = vld [vmem:[#allocation8 + $0xa8] sm:$0xff]  ;;  %v252_v45 = vld [vmem:[#allocation10] sm:$0xff] }
 0x104   :  { %3897 = vmatprep.subr.bf16.mxu1 %v4762_v0  ;;  %v3887_v34 = vpack.c.bf16 %v250_v31, %v247_v30  ;;  %v222_v37 = vld [vmem:[#allocation2] sm:$0xff]  ;;  %v3889_v38 = vpack.c.bf16 %v249_v36, %v246_v35  ;;  %v223_v53 = vld [vmem:[#allocation5] sm:$0xff]  ;;  %v224_v54 = vld [vmem:[#allocation5 + $0x8] sm:$0xff] }
 0x105   :  { %v4391_v44 = vld [vmem:[%s5567_s5] sm:$0xff]   ;;  %v255_v57 = vld [vmem:[%s5541_s7 + $0x8] sm:$0xff]  ;;  %v256_v59 = vld [vmem:[%s5541_s7 + $0x10] sm:$0xff] }
 0x106   :  { %3882 = vmatpush1.bf16.msra.mxu0 %v3881_v26  ;;  %v253_v46 = vld [vmem:[#allocation10 + $0x8] sm:$0xff]  ;;  %v257_v60 = vld [vmem:[%s5541_s7 + $0x18] sm:$0xff]  ;;  %v260_v4 = vld [vmem:[%s5541_s7 + $0x30] sm:$0xff] }
 0x107   :  { %3899 = vmatpush3.bf16.msra.mxu1 %v3898_v24  ;;  %3884 = vmatprep.subr.bf16.mxu0 %v3883_v29  ;;  %v3903_v51 = vpack.c.bf16 %v253_v46, %v252_v45  ;;  %v4392_v55 = vld [vmem:[%s5537_s3] sm:$0xff]   ;;  %v3911_v61 = vpack.c.bf16 %v257_v60, %v256_v59  ;;  %v259_v2 = vld [vmem:[%s5541_s7 + $0x28] sm:$0xff]  ;;  %v261_v5 = vld [vmem:[%s5541_s7 + $0x38] sm:$0xff] }
 0x108   :  { %3900 = vmatprep.subr.bf16.mxu1 %v4762_v0  ;;  %v254_v56 = vld [vmem:[%s5541_s7] sm:$0xff]  ;;  %v3919_v6 = vpack.c.bf16 %v261_v5, %v260_v4  ;;  %v3664_v14 = vld [vmem:[#allocation11] ss:$0 sm:$0xff]  ;;  %v313_v60 = vld [vmem:[#allocation14 + $0x188] sm:$0xff] }
 0x109   :  { %v3907_v58 = vpack.c.bf16 %v255_v57, %v254_v56  ;;  %v258_v0 = vld [vmem:[%s5541_s7 + $0x20] sm:$0xff]  ;;  %v5104_v26 = vld.sshfl [vmem:[#allocation13] sm:$0x33 pattern:$0x76325410]  ;;  %v288_v57 = vld [vmem:[#allocation14 + $0xc0] sm:$0xff] }
 0x10a   :  { %3886 = vmatpush1.bf16.msra.mxu0 %v3885_v33  ;;  %v3915_v3 = vpack.c.bf16 %v259_v2, %v258_v0  ;;  %v5108_v27 = vcombine.high %v5104_v26, %v5104_v26  ;;  %v324_v0 = vld [vmem:[#allocation14 + $0x1e0] sm:$0xff]  ;;  %v349_v4 = vld [vmem:[#allocation14 + $0x2a8] sm:$0xff] }
 0x10b   :  { %3902 = vmatpush3.bf16.msra.mxu1 %v3901_v32  ;;  %3888 = vmatprep.subr.bf16.mxu0 %v3887_v34 }
 0x10c   :  { %3819 = vmatprep.subr.bf16.mxu1 %v4764_v1 }
 0x10e   :  { %3817 = vmatmul.mubr.msk.f32.vlgmr.msra.gmra.mrb[0].mxu1 %vm701_vm1, %v222_v37  ;;  %3890 = vmatpush1.bf16.msra.mxu0 %v3889_v38 }
 0x10f   :  { %3821 = vmatprep.mubr.msk.bf16.mxu1 %vm4763_vm0, %v4764_v1 }
 0x111   :  { %3654 = vmatmul.mubr.msk.f32.vlgmr.msra.gmra.mrb[0].mxu0 %vm701_vm1, %v222_v37 }
 0x112   :  { %900 = vmatprep.mubr.bf16.mxu0 %v4765_v39 }
 0x1e1   :  { %v842_v40 = vpop.f32.mrb[0].mxu1 }
 0x1e2   :  { %v848_v41 = vpack.c.bf16 %v842_v40, %v842_v40  ;;  %v3818_v42 = vpop.f32.mrb[1].mxu1 }
 0x1e4   :  { %v866_v43 = vsel %vm858_vm2, %v848_v41, 0  ;;  %958 = vrot.lane.b32.xlu0 %v848_v41, %s4766_s16  ;;  %v771_v47 = vpop.f32.mrb[0].mxu0 }
 0x1e5   :  { %3820 = vmatpush3.bf16.msra.mxu1 %v866_v43  ;;  %v846_v48 = vpack.c.bf16 %v771_v47, %v771_v47  ;;  %v773_v49 = vpop.f32.mrb[1].mxu0 }
 0x1e6   :  { %3825 = vmatprep.subr.bf16.mxu1 %v4764_v1  ;;  %v847_v50 = vpack.c.bf16 %v773_v49, %v773_v49  ;;  %v277_v49 = vld [vmem:[#allocation14 + $0x68] sm:$0xff] }
 0x1e7   :  { %v860_v52 = vsel %vm858_vm2, %v846_v48, 0  ;;  %v265_v48 = vld [vmem:[#allocation14 + $0x8] sm:$0xff] }
 0x1e8   :  { %3822 = vmatmul.mubr.msk.bf16.vlgmr.msra.gmra.mrb[4].mxu1 %vm854_vm3, %v4391_v44  ;;  %3657 = vmatprep.subr.msk.bf16.mxu0 %vm858_vm2, %v847_v50  ;;  %v3923_v50 = vpack.c.bf16 %v277_v49, %v265_v48  ;;  %v481_v49 = vld [vmem:[#allocation14 + $0x6c8] sm:$0xff] }
 0x1e9   :  { %3827 = vmatprep.mubr.msk.bf16.mxu1 %vm4763_vm0, %v4764_v1  ;;  %869 = vmatpush1.bf16.msra.mxu0 %v860_v52  ;;  %v276_v52 = vld [vmem:[#allocation14 + $0x60] sm:$0xff] }
 0x1ea   :  { %3904 = vmatprep.subr.bf16.mxu0 %v3903_v51 }
 0x1ec   :  { %3658 = vmatmul.mubr.msk.bf16.vlgmr.msra.gmra.mrb[4].mxu0 %vm854_vm3, %v4391_v44 }
 0x1ed   :  { %3906 = vmatpush3.bf16.msra.mxu0 %v3903_v51  ;;  %3835 = vmatprep.mubr.msk.f32.mxu0 %vm1007_vm4, %v223_v53  ;;  %v264_v51 = vld [vmem:[#allocation14] sm:$0xff] }
 0x1ee   :  { %3908 = vmatprep.subr.bf16.mxu0 %v3907_v58  ;;  %v3925_v53 = vpack.c.bf16 %v276_v52, %v264_v51  ;;  %v480_v52 = vld [vmem:[#allocation14 + $0x6c0] sm:$0xff] }
 0x1f4   :  { %3836 = vmatmul.mubr.msk.f32.vlgmr.msra.gmra.mrb[2].mxu0 %vm1007_vm4, %v224_v54  ;;  %v289_v54 = vld [vmem:[#allocation14 + $0xc8] sm:$0xff] }
 0x1f5   :  { %3910 = vmatpush3.bf16.msra.mxu0 %v3907_v58  ;;  %v300_v58 = vld [vmem:[#allocation14 + $0x120] sm:$0xff] }
 0x1f6   :  { %3912 = vmatprep.subr.bf16.mxu0 %v3911_v61  ;;  %v3929_v59 = vpack.c.bf16 %v300_v58, %v288_v57  ;;  %v504_v58 = vld [vmem:[#allocation14 + $0x780] sm:$0xff] }
 0x1f9   :  { %3914 = vmatpush3.bf16.msra.mxu0 %v3911_v61  ;;  %v325_v61 = vld [vmem:[#allocation14 + $0x1e8] sm:$0xff] }
 0x1fa   :  { %3916 = vmatprep.subr.bf16.mxu0 %v3915_v3 }
 0x1fd   :  { %3918 = vmatpush3.bf16.msra.mxu0 %v3915_v3  ;;  %v337_v3 = vld [vmem:[#allocation14 + $0x248] sm:$0xff] }
 0x1fe   :  { %3920 = vmatprep.subr.bf16.mxu0 %v3919_v6  ;;  %v3935_v5 = vpack.c.bf16 %v349_v4, %v337_v3  ;;  %v553_v4 = vld [vmem:[#allocation14 + $0x908] sm:$0xff] }
 0x201   :  { %3922 = vmatpush3.bf16.msra.mxu0 %v3919_v6  ;;  %v336_v6 = vld [vmem:[#allocation14 + $0x240] sm:$0xff] }
 0x202   :  { %1309 = vxpose.xlu0.c.b16.start.end [1/1] (short) (narrow) %v4392_v55, 16  ;;  %3857 = vmatprep.subr.bf16.mxu0 %v4764_v1 }
 0x256   :  { %v959_v62 = vpop.permute.xlu0 %958 }
 0x257   :  { %v964_v63 = vsel %vm858_vm2, %v959_v62, 0  ;;  %v3931_v62 = vpack.c.bf16 %v325_v61, %v313_v60  ;;  %v529_v61 = vld [vmem:[#allocation14 + $0x848] sm:$0xff] }
 0x258   :  { %3826 = vmatpush3.bf16.msra.mxu1 %v964_v63  ;;  %v312_v63 = vld [vmem:[#allocation14 + $0x180] sm:$0xff] }
 0x259   :  { %3668 = vmatprep.subr.msk.mxu1 %vm1219_vm7, %v5108_v27  ;;  %v3933_v2 = vpack.c.bf16 %v324_v0, %v312_v63  ;;  %v528_v0 = vld [vmem:[#allocation14 + $0x840] sm:$0xff] }
 0x25b   :  { %3828 = vmatmul.mubr.msk.bf16.vlgmr.msra.gmra.mrb[4].mxu1 %vm854_vm3, %v4392_v55  ;;  %v301_v55 = vld [vmem:[#allocation14 + $0x128] sm:$0xff] }
 0x25c   :  { %1288 = vmatprep.mubr.f32.mxu1 %v4764_v1  ;;  %3669 = vmatpush1.msk.msra.mxu1 %vm1219_vm7, %v5104_v26  ;;  %v3927_v56 = vpack.c.bf16 %v301_v55, %v289_v54  ;;  %v505_v55 = vld [vmem:[#allocation14 + $0x788] sm:$0xff] }
 0x268   :  { %v5118_v47 = vpop.trf.xlu0 }
 0x2bf   :  { %v5086_v7 = vpop.f32.mrb[4].mxu0 }
 0x2c0   :  { %v5088_v8 = vpop.f32.mrb[5].mxu0 }
 0x2c1   :  { %v5090_v9 = vpop.f32.mrb[6].mxu0 }
 0x2c2   :  { %v5092_v10 = vpop.f32.mrb[7].mxu0 }
 0x2c7   :  { %v3837_v11 = vpop.f32.mrb[2].mxu0 }
 0x2c8   :  { %v1080_v12 = vpop.f32.mrb[3].mxu0 }
 0x32e   :  { %v1000_v13 = vpop.f32.mrb[4].mxu1 }
 0x32f   :  { %v1091_v15 = vadd.f32 %v1080_v12, %v1000_v13  ;;  %v3829_v16 = vpop.f32.mrb[5].mxu1  ;;  %v361_v13 = vld [vmem:[#allocation14 + $0x308] sm:$0xff] }
 0x330   :  { %v1003_v17 = vpop.f32.mrb[6].mxu1  ;;  %v360_v16 = vld [vmem:[#allocation14 + $0x300] sm:$0xff] }
 0x331   :  { %v1099_v18 = vadd.f32 %v3664_v14, %v1091_v15  ;;  %v1092_v19 = vadd.f32 %v3837_v11, %v1003_v17  ;;  %v3830_v20 = vpop.f32.mrb[7].mxu1  ;;  %v348_v11 = vld [vmem:[#allocation14 + $0x2a0] sm:$0xff] }
 0x332   :  { %v3937_v12 = vpack.c.bf16 %v348_v11, %v336_v6  ;;  %v372_v17 = vld [vmem:[#allocation14 + $0x360] sm:$0xff]  ;;  %v397_v20 = vld [vmem:[#allocation14 + $0x428] sm:$0xff] }
 0x333   :  { %v1103_v21 = vmul.f32 0.01, %v1099_v18  ;;  %v1100_v22 = vadd.f32 %v3664_v14, %v1092_v19  ;;  %vm1101_vm5 = vcmp.gt.f32.partialorder %v1099_v18, 0.0  ;;  %v373_v14 = vld [vmem:[#allocation14 + $0x368] sm:$0xff]  ;;  %v552_v11 = vld [vmem:[#allocation14 + $0x900] sm:$0xff] }
 0x334   :  { %v3939_v15 = vpack.c.bf16 %v373_v14, %v361_v13  ;;  %v385_v19 = vld [vmem:[#allocation14 + $0x3c8] sm:$0xff] }
 0x335   :  { %vm1102_vm6 = vcmp.gt.f32.partialorder %v1100_v22, 0.0  ;;  %v1104_v23 = vmul.f32 0.01, %v1100_v22  ;;  %v5094_v24 = vsel %vm1101_vm5, %v1099_v18, %v1103_v21  ;;  %v3941_v18 = vpack.c.bf16 %v372_v17, %v360_v16 }
 0x336   :  { %3854 = vmatprep.mubr.msk.f32.mxu0 %vm701_vm1, %v5094_v24  ;;  %v3943_v21 = vpack.c.bf16 %v397_v20, %v385_v19 }
 0x337   :  { %v5098_v25 = vsel %vm1102_vm6, %v1100_v22, %v1104_v23  ;;  %v384_v22 = vld [vmem:[#allocation14 + $0x3c0] sm:$0xff] }
 0x338   :  { %3855 = vmatmul.mubr.msk.f32.vlgmr.msra.gmra.mrb[8].mxu0 %vm701_vm1, %v5098_v25  ;;  %v396_v23 = vld [vmem:[#allocation14 + $0x420] sm:$0xff] }
 0x339   :  { %3859 = vmatprep.mubr.msk.bf16.mxu0 %vm4763_vm0, %v4764_v1 }
 0x40b   :  { %v3856_v28 = vpop.f32.mrb[8].mxu0 }
 0x40c   :  { %v1190_v29 = vsel %vm1188_vm8, %v3856_v28, -inf  ;;  %v1179_v30 = vpop.f32.mrb[9].mxu0 }
 0x40d   :  { %v1189_v31 = vsel %vm1188_vm8, %v1179_v30, -inf }
 0x40e   :  { %v1191_v32 = vmax.f32 %v1189_v31, %v1190_v29  ;;  %v409_v29 = vld [vmem:[#allocation14 + $0x488] sm:$0xff] }
 0x410   :  { %v1192_v33 = vrot.slane %v1191_v32, 4 }
 0x412   :  { %v1193_v34 = vmax.f32 %v1191_v32, %v1192_v33  ;;  %v408_v32 = vld [vmem:[#allocation14 + $0x480] sm:$0xff] }
 0x413   :  { %v420_v33 = vld [vmem:[#allocation14 + $0x4e0] sm:$0xff] }
 0x414   :  { %v1194_v35 = vrot.slane %v1193_v34, 2 }
 0x416   :  { %v1195_v36 = vmax.f32 %v1193_v34, %v1194_v35  ;;  %v3949_v34 = vpack.c.bf16 %v420_v33, %v408_v32  ;;  %v433_v35 = vld [vmem:[#allocation14 + $0x548] sm:$0xff]  ;;  %v267_v33 = vld [vmem:[#allocation14 + $0x18] sm:$0xff] }
 0x418   :  { %v1196_v37 = vrot.slane %v1195_v36, 1 }
 0x41a   :  { %v1197_v38 = vmax.f32 %v1195_v36, %v1196_v37  ;;  %v445_v36 = vld [vmem:[#allocation14 + $0x5a8] sm:$0xff] }
 0x41b   :  { %v3951_v37 = vpack.c.bf16 %v445_v36, %v433_v35  ;;  %v303_v35 = vld [vmem:[#allocation14 + $0x138] sm:$0xff] }
 0x41c   :  { %v1198_v40 = vsub.f32 %v1179_v30, %v1197_v38  ;;  %v1199_v41 = vsub.f32 %v3856_v28, %v1197_v38  ;;  %v3945_v28 = vpack.c.bf16 %v396_v23, %v384_v22  ;;  %v421_v30 = vld [vmem:[#allocation14 + $0x4e8] sm:$0xff]  ;;  %v432_v38 = vld [vmem:[#allocation14 + $0x540] sm:$0xff] }
 0x41d   :  { %v3947_v31 = vpack.c.bf16 %v421_v30, %v409_v29 }
 0x41e   :  { %v1200_v42 = vmul.f32 1.442695, %v1198_v40  ;;  %v1202_v43 = vmul.f32 1.442695, %v1199_v41  ;;  %v444_v40 = vld [vmem:[#allocation14 + $0x5a0] sm:$0xff] }
 0x41f   :  { %v3953_v41 = vpack.c.bf16 %v444_v40, %v432_v38  ;;  %v290_v40 = vld [vmem:[#allocation14 + $0xd0] sm:$0xff] }
 0x420   :  { %4395 = vpow2.f32 %v1200_v42  ;;  %v457_v42 = vld [vmem:[#allocation14 + $0x608] sm:$0xff] }
 0x421   :  { %4397 = vpow2.f32 %v1202_v43  ;;  %v469_v43 = vld [vmem:[#allocation14 + $0x668] sm:$0xff] }
 0x42a   :  { %v4396_v44 = vpop.eup %4395 }
 0x42b   :  { %v4398_v45 = vpop.eup %4397  ;;  %3670 = vmatmul.mubr.msk.f32.vlgmr.msra.gmra.mrb[2].mxu1 %vm1188_vm8, %v4396_v44 }
 0x42c   :  { %v1307_v46 = vpack.c.bf16 %v4398_v45, %v4396_v44  ;;  %1294 = vmatprep.mubr.f32.mxu1 %v4764_v1  ;;  %v3955_v44 = vpack.c.bf16 %v469_v43, %v457_v42  ;;  %v327_v42 = vld [vmem:[#allocation14 + $0x1f8] sm:$0xff] }
 0x42e   :  { %3858 = vmatpush3.bf16.msra.mxu0 %v1307_v46  ;;  %v468_v46 = vld [vmem:[#allocation14 + $0x660] sm:$0xff] }
 0x42f   :  { %3671 = vmatmul.mubr.msk.f32.gmra.mrb[8].mxu1 %vm1188_vm8, %v4398_v45  ;;  %3924 = vmatprep.subr.bf16.mxu0 %v3923_v50  ;;  %v456_v45 = vld [vmem:[#allocation14 + $0x600] sm:$0xff]  ;;  %v493_v50 = vld [vmem:[#allocation14 + $0x728] sm:$0xff] }
 0x430   :  { %1360 = vmatprep.mubr.bf16.mxu1 %v4765_v39  ;;  %v3957_v48 = vpack.c.bf16 %v468_v46, %v456_v45  ;;  %v3959_v51 = vpack.c.bf16 %v493_v50, %v481_v49  ;;  %v326_v45 = vld [vmem:[#allocation14 + $0x1f0] sm:$0xff]  ;;  %v339_v46 = vld [vmem:[#allocation14 + $0x258] sm:$0xff] }
 0x431   :  { %3860 = vmatmul.mubr.msk.bf16.vlgmr.msra.gmra.mrb[12].mxu0 %vm1007_vm4, %v5118_v47 }
 0x432   :  { %3926 = vmatpush1.bf16.msra.mxu0 %v3925_v53  ;;  %v492_v53 = vld [vmem:[#allocation14 + $0x720] sm:$0xff] }
 0x433   :  { %3928 = vmatprep.subr.bf16.mxu0 %v3927_v56  ;;  %v3961_v54 = vpack.c.bf16 %v492_v53, %v480_v52  ;;  %v517_v56 = vld [vmem:[#allocation14 + $0x7e8] sm:$0xff]  ;;  %v350_v52 = vld [vmem:[#allocation14 + $0x2b0] sm:$0xff]  ;;  %v363_v53 = vld [vmem:[#allocation14 + $0x318] sm:$0xff] }
 0x434   :  { %v3963_v57 = vpack.c.bf16 %v517_v56, %v505_v55 }
 0x436   :  { %3930 = vmatpush1.bf16.msra.mxu0 %v3929_v59  ;;  %v516_v59 = vld [vmem:[#allocation14 + $0x7e0] sm:$0xff] }
 0x437   :  { %3932 = vmatprep.subr.bf16.mxu0 %v3931_v62  ;;  %v3965_v60 = vpack.c.bf16 %v516_v59, %v504_v58  ;;  %v541_v62 = vld [vmem:[#allocation14 + $0x8a8] sm:$0xff]  ;;  %v374_v58 = vld [vmem:[#allocation14 + $0x370] sm:$0xff]  ;;  %v387_v59 = vld [vmem:[#allocation14 + $0x3d8] sm:$0xff] }
 0x438   :  { %v3967_v63 = vpack.c.bf16 %v541_v62, %v529_v61 }
 0x43a   :  { %3934 = vmatpush1.bf16.msra.mxu0 %v3933_v2  ;;  %v540_v2 = vld [vmem:[#allocation14 + $0x8a0] sm:$0xff] }
 0x43b   :  { %3936 = vmatprep.subr.bf16.mxu0 %v3935_v5  ;;  %v3969_v3 = vpack.c.bf16 %v540_v2, %v528_v0  ;;  %v565_v5 = vld [vmem:[#allocation14 + $0x968] sm:$0xff]  ;;  %v398_v0 = vld [vmem:[#allocation14 + $0x430] sm:$0xff]  ;;  %v411_v2 = vld [vmem:[#allocation14 + $0x498] sm:$0xff] }
 0x43c   :  { %v3971_v6 = vpack.c.bf16 %v565_v5, %v553_v4 }
 0x43e   :  { %3938 = vmatpush1.bf16.msra.mxu0 %v3937_v12  ;;  %v564_v12 = vld [vmem:[#allocation14 + $0x960] sm:$0xff] }
 0x43f   :  { %3940 = vmatprep.subr.bf16.mxu0 %v3939_v15  ;;  %v3973_v13 = vpack.c.bf16 %v564_v12, %v552_v11  ;;  %v422_v11 = vld [vmem:[#allocation14 + $0x4f0] sm:$0xff]  ;;  %v435_v12 = vld [vmem:[#allocation14 + $0x558] sm:$0xff] }
 0x442   :  { %3942 = vmatpush1.bf16.msra.mxu0 %v3941_v18 }
 0x443   :  { %3944 = vmatprep.subr.bf16.mxu0 %v3943_v21 }
 0x446   :  { %3946 = vmatpush1.bf16.msra.mxu0 %v3945_v28 }
 0x447   :  { %3948 = vmatprep.subr.bf16.mxu0 %v3947_v31 }
 0x44a   :  { %3950 = vmatpush1.bf16.msra.mxu0 %v3949_v34  ;;  %v279_v34 = vld [vmem:[#allocation14 + $0x78] sm:$0xff] }
 0x44b   :  { %3952 = vmatprep.subr.bf16.mxu0 %v3951_v37 }
 0x44e   :  { %3954 = vmatpush1.bf16.msra.mxu0 %v3953_v41  ;;  %v302_v41 = vld [vmem:[#allocation14 + $0x130] sm:$0xff] }
 0x44f   :  { %3956 = vmatprep.subr.bf16.mxu0 %v3955_v44  ;;  %v3993_v43 = vpack.c.bf16 %v302_v41, %v290_v40  ;;  %v314_v44 = vld [vmem:[#allocation14 + $0x190] sm:$0xff] }
 0x450   :  { %v3997_v49 = vpack.c.bf16 %v326_v45, %v314_v44  ;;  %v530_v41 = vld [vmem:[#allocation14 + $0x850] sm:$0xff] }
 0x451   :  { %v554_v45 = vld [vmem:[#allocation14 + $0x910] sm:$0xff] }
 0x452   :  { %3958 = vmatpush1.bf16.msra.mxu0 %v3957_v48  ;;  %v351_v48 = vld [vmem:[#allocation14 + $0x2b8] sm:$0xff] }
 0x453   :  { %3960 = vmatprep.subr.bf16.mxu0 %v3959_v51  ;;  %v3999_v50 = vpack.c.bf16 %v351_v48, %v339_v46  ;;  %v338_v51 = vld [vmem:[#allocation14 + $0x250] sm:$0xff] }
 0x454   :  { %v4001_v55 = vpack.c.bf16 %v350_v52, %v338_v51  ;;  %v566_v46 = vld [vmem:[#allocation14 + $0x970] sm:$0xff]  ;;  %v579_v51 = vld [vmem:[#allocation14 + $0x9d8] sm:$0xff] }
 0x455   :  { %v4037_v48 = vpack.c.bf16 %v566_v46, %v554_v45  ;;  %v307_v45 = vld [vmem:[#allocation14 + $0x158] sm:$0xff] }
 0x456   :  { %3962 = vmatpush1.bf16.msra.mxu0 %v3961_v54  ;;  %v375_v54 = vld [vmem:[#allocation14 + $0x378] sm:$0xff] }
 0x457   :  { %3964 = vmatprep.subr.bf16.mxu0 %v3963_v57  ;;  %v4003_v56 = vpack.c.bf16 %v375_v54, %v363_v53  ;;  %v362_v57 = vld [vmem:[#allocation14 + $0x310] sm:$0xff]  ;;  %v591_v53 = vld [vmem:[#allocation14 + $0xa38] sm:$0xff]  ;;  %v576_v54 = vld [vmem:[#allocation14 + $0x9c0] sm:$0xff] }
 0x458   :  { %v4005_v61 = vpack.c.bf16 %v374_v58, %v362_v57  ;;  %v578_v58 = vld [vmem:[#allocation14 + $0x9d0] sm:$0xff] }
 0x45a   :  { %3966 = vmatpush1.bf16.msra.mxu0 %v3965_v60  ;;  %v399_v60 = vld [vmem:[#allocation14 + $0x438] sm:$0xff] }
 0x45b   :  { %3968 = vmatprep.subr.bf16.mxu0 %v3967_v63  ;;  %v4007_v62 = vpack.c.bf16 %v399_v60, %v387_v59  ;;  %v386_v63 = vld [vmem:[#allocation14 + $0x3d0] sm:$0xff] }
 0x45c   :  { %v4009_v4 = vpack.c.bf16 %v398_v0, %v386_v63  ;;  %v590_v59 = vld [vmem:[#allocation14 + $0xa30] sm:$0xff]  ;;  %v603_v63 = vld [vmem:[#allocation14 + $0xa98] sm:$0xff] }
 0x45d   :  { %v4041_v60 = vpack.c.bf16 %v590_v59, %v578_v58  ;;  %v319_v58 = vld [vmem:[#allocation14 + $0x1b8] sm:$0xff] }
 0x45e   :  { %3970 = vmatpush1.bf16.msra.mxu0 %v3969_v3  ;;  %v423_v3 = vld [vmem:[#allocation14 + $0x4f8] sm:$0xff] }
 0x45f   :  { %3972 = vmatprep.subr.bf16.mxu0 %v3971_v6  ;;  %v4011_v5 = vpack.c.bf16 %v423_v3, %v411_v2  ;;  %v410_v6 = vld [vmem:[#allocation14 + $0x490] sm:$0xff]  ;;  %v615_v2 = vld [vmem:[#allocation14 + $0xaf8] sm:$0xff]  ;;  %v600_v3 = vld [vmem:[#allocation14 + $0xa80] sm:$0xff] }
 0x460   :  { %v331_v59 = vld [vmem:[#allocation14 + $0x218] sm:$0xff] }
 0x462   :  { %3974 = vmatpush1.bf16.msra.mxu0 %v3973_v13  ;;  %v447_v13 = vld [vmem:[#allocation14 + $0x5b8] sm:$0xff] }
 0x4fe   :  { %v1290_v14 = vpop.f32.mrb[2].mxu1 }
 0x4ff   :  { %v1301_v15 = vmul.f32 %v1290_v14, %v5086_v7  ;;  %v1292_v16 = vpop.f32.mrb[3].mxu1  ;;  %v3987_v7 = vpack.c.bf16 %v279_v34, %v267_v33  ;;  %v4013_v14 = vpack.c.bf16 %v422_v11, %v410_v6  ;;  %v494_v33 = vld [vmem:[#allocation14 + $0x730] sm:$0xff]  ;;  %v507_v34 = vld [vmem:[#allocation14 + $0x798] sm:$0xff] }
 0x500   :  { %v1302_v17 = vmul.f32 %v1292_v16, %v5088_v8  ;;  %v266_v8 = vld [vmem:[#allocation14 + $0x10] sm:$0xff] }
 0x501   :  { %v434_v16 = vld [vmem:[#allocation14 + $0x550] sm:$0xff] }
 0x502   :  { %v1296_v18 = vpop.f32.mrb[8].mxu1  ;;  %v602_v11 = vld [vmem:[#allocation14 + $0xa90] sm:$0xff] }
 0x503   :  { %v1303_v19 = vmul.f32 %v1296_v18, %v5090_v9  ;;  %v1298_v20 = vpop.f32.mrb[9].mxu1  ;;  %v278_v9 = vld [vmem:[#allocation14 + $0x70] sm:$0xff]  ;;  %v459_v18 = vld [vmem:[#allocation14 + $0x618] sm:$0xff] }
 0x504   :  { %v1304_v21 = vmul.f32 %v1298_v20, %v5092_v10  ;;  %v1403_v22 = vpop.f32.mrb[12].mxu0  ;;  %v291_v10 = vld [vmem:[#allocation14 + $0xd8] sm:$0xff]  ;;  %v3989_v37 = vpack.c.bf16 %v278_v9, %v266_v8 }
 0x505   :  { %v1305_v23 = vpack.c.bf16 %v1303_v19, %v1301_v15  ;;  %v1409_v28 = vmax.f32 %v1403_v22, 1e-38  ;;  %v3861_v29 = vpop.f32.mrb[13].mxu0  ;;  %v3991_v38 = vpack.c.bf16 %v303_v35, %v291_v10  ;;  %v4015_v15 = vpack.c.bf16 %v447_v13, %v435_v12  ;;  %v471_v19 = vld [vmem:[#allocation14 + $0x678] sm:$0xff]  ;;  %v458_v22 = vld [vmem:[#allocation14 + $0x610] sm:$0xff] }
 0x506   :  { %v1306_v30 = vpack.c.bf16 %v1304_v21, %v1302_v17  ;;  %v1406_v31 = vpop.f32.mrb[14].mxu0  ;;  %v446_v17 = vld [vmem:[#allocation14 + $0x5b0] sm:$0xff]  ;;  %v4019_v21 = vpack.c.bf16 %v471_v19, %v459_v18  ;;  %v495_v29 = vld [vmem:[#allocation14 + $0x738] sm:$0xff]  ;;  %v624_v19 = vld [vmem:[#allocation14 + $0xb40] sm:$0xff] }
 0x507   :  { %4399 = vrcp.f32 %v1409_v28  ;;  %v3862_v32 = vpop.f32.mrb[15].mxu0  ;;  %v4017_v20 = vpack.c.bf16 %v446_v17, %v434_v16  ;;  %v483_v28 = vld [vmem:[#allocation14 + $0x6d8] sm:$0xff]  ;;  %v506_v10 = vld [vmem:[#allocation14 + $0x790] sm:$0xff] }
 0x508   :  { %1328 = vmatprep.subr.bf16.mxu1 %v1306_v30  ;;  %v4023_v31 = vpack.c.bf16 %v495_v29, %v483_v28  ;;  %v482_v32 = vld [vmem:[#allocation14 + $0x6d0] sm:$0xff]  ;;  %v627_v16 = vld [vmem:[#allocation14 + $0xb58] sm:$0xff] }
 0x509   :  { %1329 = vmatpush1.bf16.msra.mxu1 %v1305_v23  ;;  %v470_v23 = vld [vmem:[#allocation14 + $0x670] sm:$0xff]  ;;  %v4025_v8 = vpack.c.bf16 %v494_v33, %v482_v32  ;;  %v639_v18 = vld [vmem:[#allocation14 + $0xbb8] sm:$0xff] }
 0x50a   :  { %3674 = vmatprep.subr.msk.mxu1 %vm1219_vm7, %v5108_v27  ;;  %v315_v27 = vld [vmem:[#allocation14 + $0x198] sm:$0xff]  ;;  %v4021_v30 = vpack.c.bf16 %v470_v23, %v458_v22  ;;  %v518_v35 = vld [vmem:[#allocation14 + $0x7f0] sm:$0xff] }
 0x50b   :  { %v614_v12 = vld [vmem:[#allocation14 + $0xaf0] sm:$0xff]  ;;  %v271_v32 = vld [vmem:[#allocation14 + $0x38] sm:$0xff] }
 0x50c   :  { %3672 = vmatmul.mubr.msk.bf16.vlgmr.msra.gmra.mrb[12].mxu1 %vm1007_vm4, %v5118_v47  ;;  %v4045_v13 = vpack.c.bf16 %v614_v12, %v602_v11  ;;  %v626_v23 = vld [vmem:[#allocation14 + $0xb50] sm:$0xff]  ;;  %v343_v11 = vld [vmem:[#allocation14 + $0x278] sm:$0xff] }
 0x50d   :  { %3675 = vmatpush1.msk.msra.mxu1 %vm1219_vm7, %v5104_v26  ;;  %1478 = vmatprep.mubr.f32.mxu1 %v4764_v1  ;;  %v3995_v26 = vpack.c.bf16 %v327_v42, %v315_v27  ;;  %v542_v27 = vld [vmem:[#allocation14 + $0x8b0] sm:$0xff]  ;;  %v555_v42 = vld [vmem:[#allocation14 + $0x918] sm:$0xff] }
 0x50e   :  { %3988 = vmatprep.subr.bf16.mxu1 %v3987_v7  ;;  %v519_v7 = vld [vmem:[#allocation14 + $0x7f8] sm:$0xff]  ;;  %v638_v28 = vld [vmem:[#allocation14 + $0xbb0] sm:$0xff] }
 0x50f   :  { %v4027_v9 = vpack.c.bf16 %v519_v7, %v507_v34  ;;  %v4049_v29 = vpack.c.bf16 %v638_v28, %v626_v23  ;;  %v283_v34 = vld [vmem:[#allocation14 + $0x98] sm:$0xff] }
 0x510   :  { %v4115_v7 = vpack.c.bf16 %v283_v34, %v271_v32  ;;  %v355_v12 = vld [vmem:[#allocation14 + $0x2d8] sm:$0xff]  ;;  %v376_v32 = vld [vmem:[#allocation14 + $0x380] sm:$0xff] }
 0x511   :  { %v4400_v36 = vpop.eup %4399  ;;  %v367_v23 = vld [vmem:[#allocation14 + $0x338] sm:$0xff] }
 0x512   :  { %v379_v28 = vld [vmem:[#allocation14 + $0x398] sm:$0xff] }
 0x513   :  { %v4131_v34 = vpack.c.bf16 %v379_v28, %v367_v23  ;;  %v474_v23 = vld [vmem:[#allocation14 + $0x690] sm:$0xff]  ;;  %v485_v28 = vld [vmem:[#allocation14 + $0x6e8] sm:$0xff] }
 0x514   :  { %3676 = vmatmul.mubr.msk.f32.vlgmr.msra.gmra.mrb[10].mxu1 %vm1188_vm8, %v4400_v36  ;;  %v531_v36 = vld [vmem:[#allocation14 + $0x858] sm:$0xff] }
 0x515   :  { %3990 = vmatpush1.bf16.msra.mxu1 %v3989_v37  ;;  %v543_v37 = vld [vmem:[#allocation14 + $0x8b8] sm:$0xff] }
 0x516   :  { %3992 = vmatprep.subr.bf16.mxu1 %v3991_v38  ;;  %v4029_v38 = vpack.c.bf16 %v518_v35, %v506_v10  ;;  %v4031_v40 = vpack.c.bf16 %v543_v37, %v531_v36  ;;  %v268_v36 = vld [vmem:[#allocation14 + $0x20] sm:$0xff] }
 0x517   :  { %v280_v37 = vld [vmem:[#allocation14 + $0x80] sm:$0xff] }
 0x519   :  { %3994 = vmatpush1.bf16.msra.mxu1 %v3993_v43  ;;  %v567_v43 = vld [vmem:[#allocation14 + $0x978] sm:$0xff] }
 0x51a   :  { %3996 = vmatprep.subr.bf16.mxu1 %v3995_v26  ;;  %v4033_v26 = vpack.c.bf16 %v542_v27, %v530_v41  ;;  %v4035_v44 = vpack.c.bf16 %v567_v43, %v555_v42  ;;  %v293_v27 = vld [vmem:[#allocation14 + $0xe8] sm:$0xff] }
 0x51d   :  { %3998 = vmatpush1.bf16.msra.mxu1 %v3997_v49  ;;  %v577_v49 = vld [vmem:[#allocation14 + $0x9c8] sm:$0xff] }
 0x51e   :  { %4000 = vmatprep.subr.bf16.mxu1 %v3999_v50  ;;  %v589_v50 = vld [vmem:[#allocation14 + $0xa28] sm:$0xff] }
 0x51f   :  { %v3975_v52 = vpack.c.bf16 %v589_v50, %v577_v49  ;;  %v292_v50 = vld [vmem:[#allocation14 + $0xe0] sm:$0xff] }
 0x521   :  { %4002 = vmatpush1.bf16.msra.mxu1 %v4001_v55  ;;  %v588_v55 = vld [vmem:[#allocation14 + $0xa20] sm:$0xff]  ;;  %3976 = vmatprep.subr.bf16.mxu0 %v3975_v52  ;;  %v294_v52 = vld [vmem:[#allocation14 + $0xf0] sm:$0xff] }
 0x522   :  { %4004 = vmatprep.subr.bf16.mxu1 %v4003_v56  ;;  %v4039_v56 = vpack.c.bf16 %v591_v53, %v579_v51  ;;  %v3977_v57 = vpack.c.bf16 %v588_v55, %v576_v54  ;;  %v304_v51 = vld [vmem:[#allocation14 + $0x140] sm:$0xff]  ;;  %v306_v53 = vld [vmem:[#allocation14 + $0x150] sm:$0xff]  ;;  %v317_v54 = vld [vmem:[#allocation14 + $0x1a8] sm:$0xff] }
 0x524   :  { %3978 = vmatpush1.bf16.msra.mxu0 %v3977_v57  ;;  %v329_v57 = vld [vmem:[#allocation14 + $0x208] sm:$0xff] }
 0x525   :  { %4006 = vmatpush1.bf16.msra.mxu1 %v4005_v61  ;;  %v601_v61 = vld [vmem:[#allocation14 + $0xa88] sm:$0xff] }
 0x526   :  { %4008 = vmatprep.subr.bf16.mxu1 %v4007_v62  ;;  %v613_v62 = vld [vmem:[#allocation14 + $0xae8] sm:$0xff] }
 0x527   :  { %v3979_v0 = vpack.c.bf16 %v613_v62, %v601_v61  ;;  %v4121_v61 = vpack.c.bf16 %v306_v53, %v294_v52  ;;  %v316_v62 = vld [vmem:[#allocation14 + $0x1a0] sm:$0xff] }
 0x528   :  { %v412_v53 = vld [vmem:[#allocation14 + $0x4a0] sm:$0xff] }
 0x529   :  { %4010 = vmatpush1.bf16.msra.mxu1 %v4009_v4  ;;  %v612_v4 = vld [vmem:[#allocation14 + $0xae0] sm:$0xff]  ;;  %3980 = vmatprep.subr.bf16.mxu0 %v3979_v0  ;;  %v4059_v0 = vpack.c.bf16 %v329_v57, %v317_v54  ;;  %v414_v57 = vld [vmem:[#allocation14 + $0x4b0] sm:$0xff] }
 0x52a   :  { %4012 = vmatprep.subr.bf16.mxu1 %v4011_v5  ;;  %v4043_v5 = vpack.c.bf16 %v615_v2, %v603_v63  ;;  %v3981_v6 = vpack.c.bf16 %v612_v4, %v600_v3  ;;  %v328_v63 = vld [vmem:[#allocation14 + $0x200] sm:$0xff]  ;;  %v4123_v2 = vpack.c.bf16 %v331_v59, %v319_v58  ;;  %v318_v3 = vld [vmem:[#allocation14 + $0x1b0] sm:$0xff]  ;;  %v437_v59 = vld [vmem:[#allocation14 + $0x568] sm:$0xff] }
 0x52b   :  { %v330_v4 = vld [vmem:[#allocation14 + $0x210] sm:$0xff]  ;;  %v424_v54 = vld [vmem:[#allocation14 + $0x500] sm:$0xff] }
 0x52c   :  { %3982 = vmatpush1.bf16.msra.mxu0 %v3981_v6  ;;  %v353_v6 = vld [vmem:[#allocation14 + $0x2c8] sm:$0xff]  ;;  %v426_v58 = vld [vmem:[#allocation14 + $0x510] sm:$0xff] }
 0x52d   :  { %4014 = vmatpush1.bf16.msra.mxu1 %v4013_v14  ;;  %v625_v14 = vld [vmem:[#allocation14 + $0xb48] sm:$0xff] }
 0x52e   :  { %4016 = vmatprep.subr.bf16.mxu1 %v4015_v15  ;;  %v637_v15 = vld [vmem:[#allocation14 + $0xba8] sm:$0xff] }
 0x52f   :  { %v3983_v17 = vpack.c.bf16 %v637_v15, %v625_v14  ;;  %v4125_v14 = vpack.c.bf16 %v330_v4, %v318_v3  ;;  %v340_v15 = vld [vmem:[#allocation14 + $0x260] sm:$0xff] }
 0x530   :  { %v448_v3 = vld [vmem:[#allocation14 + $0x5c0] sm:$0xff] }
 0x531   :  { %4018 = vmatpush1.bf16.msra.mxu1 %v4017_v20  ;;  %v636_v20 = vld [vmem:[#allocation14 + $0xba0] sm:$0xff]  ;;  %3984 = vmatprep.subr.bf16.mxu0 %v3983_v17 }
 0x532   :  { %4020 = vmatprep.subr.bf16.mxu1 %v4019_v21  ;;  %v4047_v21 = vpack.c.bf16 %v639_v18, %v627_v16  ;;  %v3985_v22 = vpack.c.bf16 %v636_v20, %v624_v19  ;;  %v352_v16 = vld [vmem:[#allocation14 + $0x2c0] sm:$0xff]  ;;  %v4127_v18 = vpack.c.bf16 %v355_v12, %v343_v11  ;;  %v342_v19 = vld [vmem:[#allocation14 + $0x270] sm:$0xff]  ;;  %v461_v12 = vld [vmem:[#allocation14 + $0x628] sm:$0xff] }
 0x533   :  { %v354_v20 = vld [vmem:[#allocation14 + $0x2d0] sm:$0xff] }
 0x534   :  { %3986 = vmatpush1.bf16.msra.mxu0 %v3985_v22  ;;  %v377_v22 = vld [vmem:[#allocation14 + $0x388] sm:$0xff]  ;;  %v450_v11 = vld [vmem:[#allocation14 + $0x5d0] sm:$0xff] }
 0x535   :  { %4022 = vmatpush1.bf16.msra.mxu1 %v4021_v30  ;;  %v269_v30 = vld [vmem:[#allocation14 + $0x28] sm:$0xff] }
 0x536   :  { %4024 = vmatprep.subr.bf16.mxu1 %v4023_v31  ;;  %v281_v31 = vld [vmem:[#allocation14 + $0x88] sm:$0xff] }
 0x537   :  { %v4051_v33 = vpack.c.bf16 %v281_v31, %v269_v30  ;;  %v4129_v30 = vpack.c.bf16 %v354_v20, %v342_v19  ;;  %v364_v31 = vld [vmem:[#allocation14 + $0x320] sm:$0xff] }
 0x538   :  { %v472_v19 = vld [vmem:[#allocation14 + $0x680] sm:$0xff] }
 0x539   :  { %4026 = vmatpush1.bf16.msra.mxu1 %v4025_v8  ;;  %4052 = vmatprep.subr.bf16.mxu0 %v4051_v33 }
 0x53a   :  { %4028 = vmatprep.subr.bf16.mxu1 %v4027_v9 }
 0x53d   :  { %4030 = vmatpush1.bf16.msra.mxu1 %v4029_v38  ;;  %v270_v38 = vld [vmem:[#allocation14 + $0x30] sm:$0xff] }
 0x53e   :  { %4032 = vmatprep.subr.bf16.mxu1 %v4031_v40  ;;  %v282_v40 = vld [vmem:[#allocation14 + $0x90] sm:$0xff] }
 0x53f   :  { %v4117_v49 = vpack.c.bf16 %v282_v40, %v270_v38  ;;  %v388_v40 = vld [vmem:[#allocation14 + $0x3e0] sm:$0xff] }
 0x541   :  { %4034 = vmatpush1.bf16.msra.mxu1 %v4033_v26  ;;  %v305_v26 = vld [vmem:[#allocation14 + $0x148] sm:$0xff] }
 0x542   :  { %4036 = vmatprep.subr.bf16.mxu1 %v4035_v44  ;;  %v295_v44 = vld [vmem:[#allocation14 + $0xf8] sm:$0xff]  ;;  %v4055_v55 = vpack.c.bf16 %v305_v26, %v293_v27  ;;  %v390_v26 = vld [vmem:[#allocation14 + $0x3f0] sm:$0xff] }
 0x545   :  { %4038 = vmatpush1.bf16.msra.mxu1 %v4037_v48  ;;  %v4053_v48 = vpack.c.bf16 %v280_v37, %v268_v36  ;;  %v403_v36 = vld [vmem:[#allocation14 + $0x458] sm:$0xff]  ;;  %v4069_v37 = vpack.c.bf16 %v376_v32, %v364_v31 }
 0x546   :  { %4040 = vmatprep.subr.bf16.mxu1 %v4039_v56  ;;  %v4119_v56 = vpack.c.bf16 %v307_v45, %v295_v44  ;;  %v402_v44 = vld [vmem:[#allocation14 + $0x450] sm:$0xff]  ;;  %v413_v45 = vld [vmem:[#allocation14 + $0x4a8] sm:$0xff]  ;;  %v499_v31 = vld [vmem:[#allocation14 + $0x758] sm:$0xff] }
 0x547   :  { %v4137_v52 = vpack.c.bf16 %v402_v44, %v390_v26  ;;  %v520_v26 = vld [vmem:[#allocation14 + $0x800] sm:$0xff] }
 0x549   :  { %4042 = vmatpush1.bf16.msra.mxu1 %v4041_v60  ;;  %v4057_v60 = vpack.c.bf16 %v304_v51, %v292_v50  ;;  %v427_v50 = vld [vmem:[#allocation14 + $0x518] sm:$0xff] }
 0x54a   :  { %4044 = vmatprep.subr.bf16.mxu1 %v4043_v5  ;;  %v341_v5 = vld [vmem:[#allocation14 + $0x268] sm:$0xff] }
 0x54b   :  { %v4063_v17 = vpack.c.bf16 %v353_v6, %v341_v5  ;;  %v438_v6 = vld [vmem:[#allocation14 + $0x570] sm:$0xff] }
 0x54d   :  { %4046 = vmatpush1.bf16.msra.mxu1 %v4045_v13  ;;  %v4061_v13 = vpack.c.bf16 %v328_v63, %v316_v62  ;;  %v451_v62 = vld [vmem:[#allocation14 + $0x5d8] sm:$0xff]  ;;  %v4077_v63 = vpack.c.bf16 %v424_v54, %v412_v53 }
 0x54e   :  { %4048 = vmatprep.subr.bf16.mxu1 %v4047_v21  ;;  %v365_v21 = vld [vmem:[#allocation14 + $0x328] sm:$0xff]  ;;  %v547_v53 = vld [vmem:[#allocation14 + $0x8d8] sm:$0xff] }
 0x54f   :  { %v4067_v33 = vpack.c.bf16 %v377_v22, %v365_v21  ;;  %v462_v22 = vld [vmem:[#allocation14 + $0x630] sm:$0xff] }
 0x551   :  { %4050 = vmatpush1.bf16.msra.mxu1 %v4049_v29  ;;  %v4065_v29 = vpack.c.bf16 %v352_v16, %v340_v15  ;;  %v475_v15 = vld [vmem:[#allocation14 + $0x698] sm:$0xff] }
 0x552   :  { %4116 = vmatprep.subr.bf16.mxu1 %v4115_v7  ;;  %v366_v7 = vld [vmem:[#allocation14 + $0x330] sm:$0xff] }
 0x5df   :  { %v1362_v8 = vpop.f32.mrb[12].mxu1 }
 0x5e0   :  { %v1364_v9 = vpop.f32.mrb[13].mxu1 }
 0x5e1   :  { %v1366_v10 = vpop.f32.mrb[14].mxu1 }
 0x5e2   :  { %v1367_v35 = vpop.f32.mrb[15].mxu1  ;;  %v401_v10 = vld [vmem:[#allocation14 + $0x448] sm:$0xff] }
 0x5e3   :  { %v391_v35 = vld [vmem:[#allocation14 + $0x3f8] sm:$0xff] }
 0x5e7   :  { %v1480_v41 = vpop.f32.mrb[10].mxu1 }
 0x5e8   :  { %v5136_v42 = vmul.f32 %v1480_v41, %v1362_v8  ;;  %v1482_v43 = vpop.f32.mrb[11].mxu1  ;;  %v378_v8 = vld [vmem:[#allocation14 + $0x390] sm:$0xff]  ;;  %v400_v41 = vld [vmem:[#allocation14 + $0x440] sm:$0xff] }
 0x5e9   :  { %v5138_v46 = vmul.f32 %v1482_v43, %v1364_v9  ;;  %v389_v9 = vld [vmem:[#allocation14 + $0x3e8] sm:$0xff]  ;;  %v4133_v38 = vpack.c.bf16 %v378_v8, %v366_v7  ;;  %v4135_v43 = vpack.c.bf16 %v403_v36, %v391_v35  ;;  %v4073_v51 = vpack.c.bf16 %v400_v41, %v388_v40  ;;  %v496_v7 = vld [vmem:[#allocation14 + $0x740] sm:$0xff]  ;;  %v498_v35 = vld [vmem:[#allocation14 + $0x750] sm:$0xff] }
 0x5ea   :  { %v4071_v27 = vpack.c.bf16 %v401_v10, %v389_v9  ;;  %v486_v10 = vld [vmem:[#allocation14 + $0x6f0] sm:$0xff]  ;;  %v509_v36 = vld [vmem:[#allocation14 + $0x7a8] sm:$0xff]  ;;  %v523_v40 = vld [vmem:[#allocation14 + $0x818] sm:$0xff] }
 0x5eb   :  { %1551 = vmatprep.mubr.f32.mxu0 %v5138_v46  ;;  %1622 = vmatprep.mubr.f32.mxu1 %v5138_v46 }
 0x5ec   :  { %1552 = vmatmul.mubr.f32.vlgmr.msra.gmra.mrb[10].mxu0 %v5136_v42  ;;  %1623 = vmatmul.mubr.f32.vlgmr.msra.gmra.mrb[16].mxu1 %v5136_v42 }
 0x5ed   :  { %4054 = vmatpush1.bf16.msra.mxu0 %v4053_v48  ;;  %4118 = vmatpush1.bf16.msra.mxu1 %v4117_v49  ;;  %v425_v48 = vld [vmem:[#allocation14 + $0x508] sm:$0xff]  ;;  %v415_v49 = vld [vmem:[#allocation14 + $0x4b8] sm:$0xff] }
 0x5ee   :  { %1693 = vmatprep.mubr.f32.mxu0 %v5138_v46  ;;  %1764 = vmatprep.mubr.f32.mxu1 %v5138_v46 }
 0x5ef   :  { %4056 = vmatprep.subr.bf16.mxu0 %v4055_v55  ;;  %4120 = vmatprep.subr.bf16.mxu1 %v4119_v56  ;;  %v4075_v55 = vpack.c.bf16 %v425_v48, %v413_v45  ;;  %v4139_v56 = vpack.c.bf16 %v427_v50, %v415_v49  ;;  %v510_v48 = vld [vmem:[#allocation14 + $0x7b0] sm:$0xff]  ;;  %v533_v50 = vld [vmem:[#allocation14 + $0x868] sm:$0xff] }
 0x5f0   :  { %v522_v49 = vld [vmem:[#allocation14 + $0x810] sm:$0xff] }
 0x5f1   :  { %4058 = vmatpush1.bf16.msra.mxu0 %v4057_v60  ;;  %4122 = vmatpush1.bf16.msra.mxu1 %v4121_v61  ;;  %v449_v60 = vld [vmem:[#allocation14 + $0x5c8] sm:$0xff]  ;;  %v439_v61 = vld [vmem:[#allocation14 + $0x578] sm:$0xff] }
 0x5f2   :  { %4060 = vmatprep.subr.bf16.mxu0 %v4059_v0  ;;  %4124 = vmatprep.subr.bf16.mxu1 %v4123_v2  ;;  %v4141_v0 = vpack.c.bf16 %v426_v58, %v414_v57  ;;  %v436_v2 = vld [vmem:[#allocation14 + $0x560] sm:$0xff]  ;;  %v4079_v4 = vpack.c.bf16 %v449_v60, %v437_v59  ;;  %v4143_v5 = vpack.c.bf16 %v451_v62, %v439_v61  ;;  %v534_v60 = vld [vmem:[#allocation14 + $0x870] sm:$0xff]  ;;  %v557_v62 = vld [vmem:[#allocation14 + $0x928] sm:$0xff] }
 0x5f3   :  { %v4081_v16 = vpack.c.bf16 %v448_v3, %v436_v2  ;;  %v544_v57 = vld [vmem:[#allocation14 + $0x8c0] sm:$0xff]  ;;  %v546_v61 = vld [vmem:[#allocation14 + $0x8d0] sm:$0xff]  ;;  %v571_v2 = vld [vmem:[#allocation14 + $0x998] sm:$0xff] }
 0x5f5   :  { %4062 = vmatpush1.bf16.msra.mxu0 %v4061_v13  ;;  %4126 = vmatpush1.bf16.msra.mxu1 %v4125_v14  ;;  %v473_v13 = vld [vmem:[#allocation14 + $0x688] sm:$0xff]  ;;  %v463_v14 = vld [vmem:[#allocation14 + $0x638] sm:$0xff] }
 0x5f6   :  { %4064 = vmatprep.subr.bf16.mxu0 %v4063_v17  ;;  %4128 = vmatprep.subr.bf16.mxu1 %v4127_v18  ;;  %v4145_v17 = vpack.c.bf16 %v450_v11, %v438_v6  ;;  %v460_v18 = vld [vmem:[#allocation14 + $0x620] sm:$0xff]  ;;  %v4083_v20 = vpack.c.bf16 %v473_v13, %v461_v12  ;;  %v4147_v21 = vpack.c.bf16 %v475_v15, %v463_v14  ;;  %v558_v13 = vld [vmem:[#allocation14 + $0x930] sm:$0xff]  ;;  %v581_v15 = vld [vmem:[#allocation14 + $0x9e8] sm:$0xff] }
 0x5f7   :  { %v4085_v32 = vpack.c.bf16 %v472_v19, %v460_v18  ;;  %v568_v6 = vld [vmem:[#allocation14 + $0x980] sm:$0xff]  ;;  %v570_v14 = vld [vmem:[#allocation14 + $0x990] sm:$0xff]  ;;  %v595_v18 = vld [vmem:[#allocation14 + $0xa58] sm:$0xff] }
 0x5f9   :  { %4066 = vmatpush1.bf16.msra.mxu0 %v4065_v29  ;;  %4130 = vmatpush1.bf16.msra.mxu1 %v4129_v30  ;;  %v497_v29 = vld [vmem:[#allocation14 + $0x748] sm:$0xff]  ;;  %v487_v30 = vld [vmem:[#allocation14 + $0x6f8] sm:$0xff] }
 0x5fa   :  { %4068 = vmatprep.subr.bf16.mxu0 %v4067_v33  ;;  %4132 = vmatprep.subr.bf16.mxu1 %v4131_v34  ;;  %v4149_v33 = vpack.c.bf16 %v474_v23, %v462_v22  ;;  %v484_v34 = vld [vmem:[#allocation14 + $0x6e0] sm:$0xff]  ;;  %v4087_v8 = vpack.c.bf16 %v497_v29, %v485_v28  ;;  %v4151_v9 = vpack.c.bf16 %v499_v31, %v487_v30  ;;  %v582_v29 = vld [vmem:[#allocation14 + $0x9f0] sm:$0xff]  ;;  %v605_v31 = vld [vmem:[#allocation14 + $0xaa8] sm:$0xff] }
 0x5fb   :  { %v4089_v41 = vpack.c.bf16 %v496_v7, %v484_v34  ;;  %v592_v22 = vld [vmem:[#allocation14 + $0xa40] sm:$0xff]  ;;  %v594_v30 = vld [vmem:[#allocation14 + $0xa50] sm:$0xff]  ;;  %v619_v34 = vld [vmem:[#allocation14 + $0xb18] sm:$0xff] }
 0x5fd   :  { %4070 = vmatpush1.bf16.msra.mxu0 %v4069_v37  ;;  %4134 = vmatpush1.bf16.msra.mxu1 %v4133_v38  ;;  %v521_v37 = vld [vmem:[#allocation14 + $0x808] sm:$0xff]  ;;  %v511_v38 = vld [vmem:[#allocation14 + $0x7b8] sm:$0xff] }
 0x5fe   :  { %4072 = vmatprep.subr.bf16.mxu0 %v4071_v27  ;;  %4136 = vmatprep.subr.bf16.mxu1 %v4135_v43  ;;  %v4153_v27 = vpack.c.bf16 %v498_v35, %v486_v10  ;;  %v508_v43 = vld [vmem:[#allocation14 + $0x7a0] sm:$0xff]  ;;  %v4091_v44 = vpack.c.bf16 %v521_v37, %v509_v36  ;;  %v4155_v45 = vpack.c.bf16 %v523_v40, %v511_v38  ;;  %v606_v37 = vld [vmem:[#allocation14 + $0xab0] sm:$0xff]  ;;  %v629_v40 = vld [vmem:[#allocation14 + $0xb68] sm:$0xff] }
 0x5ff   :  { %v4093_v54 = vpack.c.bf16 %v520_v26, %v508_v43  ;;  %v616_v10 = vld [vmem:[#allocation14 + $0xb00] sm:$0xff]  ;;  %v618_v38 = vld [vmem:[#allocation14 + $0xb10] sm:$0xff]  ;;  %v643_v43 = vld [vmem:[#allocation14 + $0xbd8] sm:$0xff] }
 0x601   :  { %4074 = vmatpush1.bf16.msra.mxu0 %v4073_v51  ;;  %4138 = vmatpush1.bf16.msra.mxu1 %v4137_v52  ;;  %v545_v51 = vld [vmem:[#allocation14 + $0x8c8] sm:$0xff]  ;;  %v535_v52 = vld [vmem:[#allocation14 + $0x878] sm:$0xff] }
 0x602   :  { %4076 = vmatprep.subr.bf16.mxu0 %v4075_v55  ;;  %4140 = vmatprep.subr.bf16.mxu1 %v4139_v56  ;;  %v4157_v55 = vpack.c.bf16 %v522_v49, %v510_v48  ;;  %v532_v56 = vld [vmem:[#allocation14 + $0x860] sm:$0xff]  ;;  %v4095_v58 = vpack.c.bf16 %v545_v51, %v533_v50  ;;  %v4159_v59 = vpack.c.bf16 %v547_v53, %v535_v52  ;;  %v630_v51 = vld [vmem:[#allocation14 + $0xb70] sm:$0xff]  ;;  %v273_v53 = vld [vmem:[#allocation14 + $0x48] sm:$0xff] }
 0x603   :  { %v4097_v3 = vpack.c.bf16 %v544_v57, %v532_v56  ;;  %v640_v48 = vld [vmem:[#allocation14 + $0xbc0] sm:$0xff]  ;;  %v642_v52 = vld [vmem:[#allocation14 + $0xbd0] sm:$0xff]  ;;  %v287_v56 = vld [vmem:[#allocation14 + $0xb8] sm:$0xff] }
 0x605   :  { %4078 = vmatpush1.bf16.msra.mxu0 %v4077_v63  ;;  %4142 = vmatpush1.bf16.msra.mxu1 %v4141_v0  ;;  %v569_v63 = vld [vmem:[#allocation14 + $0x988] sm:$0xff]  ;;  %v559_v0 = vld [vmem:[#allocation14 + $0x938] sm:$0xff] }
 0x606   :  { %4080 = vmatprep.subr.bf16.mxu0 %v4079_v4  ;;  %4144 = vmatprep.subr.bf16.mxu1 %v4143_v5  ;;  %v4161_v4 = vpack.c.bf16 %v546_v61, %v534_v60  ;;  %v556_v5 = vld [vmem:[#allocation14 + $0x920] sm:$0xff]  ;;  %v4099_v11 = vpack.c.bf16 %v569_v63, %v557_v62  ;;  %v4163_v12 = vpack.c.bf16 %v571_v2, %v559_v0  ;;  %v274_v63 = vld [vmem:[#allocation14 + $0x50] sm:$0xff]  ;;  %v297_v2 = vld [vmem:[#allocation14 + $0x108] sm:$0xff] }
 0x607   :  { %v4101_v19 = vpack.c.bf16 %v568_v6, %v556_v5  ;;  %v272_v61 = vld [vmem:[#allocation14 + $0x40] sm:$0xff]  ;;  %v286_v0 = vld [vmem:[#allocation14 + $0xb0] sm:$0xff]  ;;  %v311_v5 = vld [vmem:[#allocation14 + $0x178] sm:$0xff] }
 0x608   :  { %v284_v62 = vld [vmem:[#allocation14 + $0xa0] sm:$0xff] }
 0x609   :  { %4082 = vmatpush1.bf16.msra.mxu0 %v4081_v16  ;;  %4146 = vmatpush1.bf16.msra.mxu1 %v4145_v17  ;;  %v593_v16 = vld [vmem:[#allocation14 + $0xa48] sm:$0xff]  ;;  %v583_v17 = vld [vmem:[#allocation14 + $0x9f8] sm:$0xff]  ;;  %v4181_v6 = vpack.c.bf16 %v284_v62, %v272_v61  ;;  %v392_v62 = vld [vmem:[#allocation14 + $0x400] sm:$0xff] }
 0x60a   :  { %4084 = vmatprep.subr.bf16.mxu0 %v4083_v20  ;;  %4148 = vmatprep.subr.bf16.mxu1 %v4147_v21  ;;  %v4165_v20 = vpack.c.bf16 %v570_v14, %v558_v13  ;;  %v580_v21 = vld [vmem:[#allocation14 + $0x9e0] sm:$0xff]  ;;  %v4103_v23 = vpack.c.bf16 %v593_v16, %v581_v15  ;;  %v4167_v28 = vpack.c.bf16 %v595_v18, %v583_v17  ;;  %v298_v14 = vld [vmem:[#allocation14 + $0x110] sm:$0xff]  ;;  %v321_v18 = vld [vmem:[#allocation14 + $0x1c8] sm:$0xff] }
 0x60b   :  { %v4105_v7 = vpack.c.bf16 %v592_v22, %v580_v21  ;;  %v308_v13 = vld [vmem:[#allocation14 + $0x160] sm:$0xff]  ;;  %v310_v17 = vld [vmem:[#allocation14 + $0x170] sm:$0xff]  ;;  %v335_v21 = vld [vmem:[#allocation14 + $0x238] sm:$0xff] }
 0x60d   :  { %4086 = vmatpush1.bf16.msra.mxu0 %v4085_v32  ;;  %4150 = vmatpush1.bf16.msra.mxu1 %v4149_v33  ;;  %v617_v32 = vld [vmem:[#allocation14 + $0xb08] sm:$0xff]  ;;  %v607_v33 = vld [vmem:[#allocation14 + $0xab8] sm:$0xff] }
 0x60e   :  { %4088 = vmatprep.subr.bf16.mxu0 %v4087_v8  ;;  %4152 = vmatprep.subr.bf16.mxu1 %v4151_v9  ;;  %v4169_v8 = vpack.c.bf16 %v594_v30, %v582_v29  ;;  %v604_v9 = vld [vmem:[#allocation14 + $0xaa0] sm:$0xff]  ;;  %v4107_v35 = vpack.c.bf16 %v617_v32, %v605_v31  ;;  %v4171_v36 = vpack.c.bf16 %v619_v34, %v607_v33  ;;  %v322_v31 = vld [vmem:[#allocation14 + $0x1d0] sm:$0xff]  ;;  %v345_v34 = vld [vmem:[#allocation14 + $0x288] sm:$0xff] }
 0x60f   :  { %v4109_v26 = vpack.c.bf16 %v616_v10, %v604_v9  ;;  %v320_v29 = vld [vmem:[#allocation14 + $0x1c0] sm:$0xff]  ;;  %v334_v33 = vld [vmem:[#allocation14 + $0x230] sm:$0xff]  ;;  %v359_v9 = vld [vmem:[#allocation14 + $0x2f8] sm:$0xff] }
 0x610   :  { %v332_v30 = vld [vmem:[#allocation14 + $0x220] sm:$0xff] }
 0x611   :  { %4090 = vmatpush1.bf16.msra.mxu0 %v4089_v41  ;;  %4154 = vmatpush1.bf16.msra.mxu1 %v4153_v27  ;;  %v641_v41 = vld [vmem:[#allocation14 + $0xbc8] sm:$0xff]  ;;  %v631_v27 = vld [vmem:[#allocation14 + $0xb78] sm:$0xff]  ;;  %v4189_v10 = vpack.c.bf16 %v332_v30, %v320_v29 }
 0x612   :  { %4092 = vmatprep.subr.bf16.mxu0 %v4091_v44  ;;  %4156 = vmatprep.subr.bf16.mxu1 %v4155_v45  ;;  %v4173_v44 = vpack.c.bf16 %v618_v38, %v606_v37  ;;  %v628_v45 = vld [vmem:[#allocation14 + $0xb60] sm:$0xff]  ;;  %v4111_v49 = vpack.c.bf16 %v641_v41, %v629_v40  ;;  %v4175_v50 = vpack.c.bf16 %v643_v43, %v631_v27  ;;  %v346_v38 = vld [vmem:[#allocation14 + $0x290] sm:$0xff]  ;;  %v369_v27 = vld [vmem:[#allocation14 + $0x348] sm:$0xff] }
 0x613   :  { %v4113_v57 = vpack.c.bf16 %v640_v48, %v628_v45  ;;  %v356_v37 = vld [vmem:[#allocation14 + $0x2e0] sm:$0xff]  ;;  %v358_v41 = vld [vmem:[#allocation14 + $0x2f0] sm:$0xff]  ;;  %v381_v43 = vld [vmem:[#allocation14 + $0x3a8] sm:$0xff] }
 0x614   :  { %v4257_v48 = vpack.c.bf16 %v358_v41, %v346_v38  ;;  %v464_v38 = vld [vmem:[#allocation14 + $0x640] sm:$0xff]  ;;  %v466_v41 = vld [vmem:[#allocation14 + $0x650] sm:$0xff] }
 0x615   :  { %4094 = vmatpush1.bf16.msra.mxu0 %v4093_v54  ;;  %4158 = vmatpush1.bf16.msra.mxu1 %v4157_v55  ;;  %v285_v54 = vld [vmem:[#allocation14 + $0xa8] sm:$0xff]  ;;  %v275_v55 = vld [vmem:[#allocation14 + $0x58] sm:$0xff] }
 0x616   :  { %4096 = vmatprep.subr.bf16.mxu0 %v4095_v58  ;;  %4160 = vmatprep.subr.bf16.mxu1 %v4159_v59  ;;  %v4177_v58 = vpack.c.bf16 %v642_v52, %v630_v51  ;;  %v4179_v59 = vpack.c.bf16 %v285_v54, %v273_v53  ;;  %v4243_v60 = vpack.c.bf16 %v287_v56, %v275_v55  ;;  %v380_v51 = vld [vmem:[#allocation14 + $0x3a0] sm:$0xff]  ;;  %v370_v52 = vld [vmem:[#allocation14 + $0x350] sm:$0xff]  ;;  %v393_v55 = vld [vmem:[#allocation14 + $0x408] sm:$0xff] }
 0x617   :  { %v382_v54 = vld [vmem:[#allocation14 + $0x3b0] sm:$0xff]  ;;  %v405_v56 = vld [vmem:[#allocation14 + $0x468] sm:$0xff] }
 0x618   :  { %v4199_v61 = vpack.c.bf16 %v405_v56, %v393_v55  ;;  %v502_v56 = vld [vmem:[#allocation14 + $0x770] sm:$0xff] }
 0x619   :  { %4098 = vmatpush1.bf16.msra.mxu0 %v4097_v3  ;;  %4162 = vmatpush1.bf16.msra.mxu1 %v4161_v4  ;;  %v309_v3 = vld [vmem:[#allocation14 + $0x168] sm:$0xff]  ;;  %v299_v4 = vld [vmem:[#allocation14 + $0x118] sm:$0xff] }
 0x61a   :  { %4100 = vmatprep.subr.bf16.mxu0 %v4099_v11  ;;  %4164 = vmatprep.subr.bf16.mxu1 %v4163_v12  ;;  %v4245_v11 = vpack.c.bf16 %v286_v0, %v274_v63  ;;  %v296_v12 = vld [vmem:[#allocation14 + $0x100] sm:$0xff]  ;;  %v4183_v15 = vpack.c.bf16 %v309_v3, %v297_v2  ;;  %v4247_v16 = vpack.c.bf16 %v311_v5, %v299_v4  ;;  %v394_v0 = vld [vmem:[#allocation14 + $0x410] sm:$0xff]  ;;  %v417_v4 = vld [vmem:[#allocation14 + $0x4c8] sm:$0xff] }
 0x61b   :  { %v4185_v22 = vpack.c.bf16 %v308_v13, %v296_v12  ;;  %v404_v63 = vld [vmem:[#allocation14 + $0x460] sm:$0xff]  ;;  %v406_v3 = vld [vmem:[#allocation14 + $0x470] sm:$0xff]  ;;  %v429_v5 = vld [vmem:[#allocation14 + $0x528] sm:$0xff] }
 0x61c   :  { %v4201_v12 = vpack.c.bf16 %v404_v63, %v392_v62  ;;  %v4265_v13 = vpack.c.bf16 %v406_v3, %v394_v0  ;;  %v512_v0 = vld [vmem:[#allocation14 + $0x7c0] sm:$0xff]  ;;  %v514_v3 = vld [vmem:[#allocation14 + $0x7d0] sm:$0xff] }
 0x61d   :  { %4102 = vmatpush1.bf16.msra.mxu0 %v4101_v19  ;;  %4166 = vmatpush1.bf16.msra.mxu1 %v4165_v20  ;;  %v333_v19 = vld [vmem:[#allocation14 + $0x228] sm:$0xff]  ;;  %v323_v20 = vld [vmem:[#allocation14 + $0x1d8] sm:$0xff] }
 0x61e   :  { %4104 = vmatprep.subr.bf16.mxu0 %v4103_v23  ;;  %4168 = vmatprep.subr.bf16.mxu1 %v4167_v28  ;;  %v4249_v23 = vpack.c.bf16 %v310_v17, %v298_v14  ;;  %v4187_v28 = vpack.c.bf16 %v333_v19, %v321_v18  ;;  %v4251_v32 = vpack.c.bf16 %v335_v21, %v323_v20  ;;  %v418_v17 = vld [vmem:[#allocation14 + $0x4d0] sm:$0xff]  ;;  %v441_v20 = vld [vmem:[#allocation14 + $0x588] sm:$0xff] }
 0x61f   :  { %v4203_v14 = vpack.c.bf16 %v429_v5, %v417_v4  ;;  %v430_v19 = vld [vmem:[#allocation14 + $0x530] sm:$0xff]  ;;  %v453_v21 = vld [vmem:[#allocation14 + $0x5e8] sm:$0xff] }
 0x620   :  { %v4269_v29 = vpack.c.bf16 %v430_v19, %v418_v17  ;;  %v4207_v30 = vpack.c.bf16 %v453_v21, %v441_v20  ;;  %v526_v5 = vld [vmem:[#allocation14 + $0x830] sm:$0xff]  ;;  %v536_v17 = vld [vmem:[#allocation14 + $0x880] sm:$0xff] }
 0x621   :  { %4106 = vmatpush1.bf16.msra.mxu0 %v4105_v7  ;;  %4170 = vmatpush1.bf16.msra.mxu1 %v4169_v8  ;;  %v357_v7 = vld [vmem:[#allocation14 + $0x2e8] sm:$0xff]  ;;  %v347_v8 = vld [vmem:[#allocation14 + $0x298] sm:$0xff]  ;;  %v538_v19 = vld [vmem:[#allocation14 + $0x890] sm:$0xff] }
 0x622   :  { %4108 = vmatprep.subr.bf16.mxu0 %v4107_v35  ;;  %4172 = vmatprep.subr.bf16.mxu1 %v4171_v36  ;;  %v4253_v35 = vpack.c.bf16 %v334_v33, %v322_v31  ;;  %v4191_v36 = vpack.c.bf16 %v357_v7, %v345_v34  ;;  %v4255_v40 = vpack.c.bf16 %v359_v9, %v347_v8  ;;  %v440_v31 = vld [vmem:[#allocation14 + $0x580] sm:$0xff]  ;;  %v442_v33 = vld [vmem:[#allocation14 + $0x590] sm:$0xff]  ;;  %v465_v8 = vld [vmem:[#allocation14 + $0x648] sm:$0xff] }
 0x623   :  { %v454_v7 = vld [vmem:[#allocation14 + $0x5f0] sm:$0xff]  ;;  %v477_v9 = vld [vmem:[#allocation14 + $0x6a8] sm:$0xff] }
 0x624   :  { %v550_v21 = vld [vmem:[#allocation14 + $0x8f0] sm:$0xff] }
 0x625   :  { %4110 = vmatpush1.bf16.msra.mxu0 %v4109_v26  ;;  %4174 = vmatpush1.bf16.msra.mxu1 %v4173_v44  ;;  %v371_v26 = vld [vmem:[#allocation14 + $0x358] sm:$0xff] }
 0x626   :  { %4112 = vmatprep.subr.bf16.mxu0 %v4111_v49  ;;  %4176 = vmatprep.subr.bf16.mxu1 %v4175_v50  ;;  %v383_v44 = vld [vmem:[#allocation14 + $0x3b8] sm:$0xff]  ;;  %v4195_v49 = vpack.c.bf16 %v381_v43, %v369_v27  ;;  %v368_v50 = vld [vmem:[#allocation14 + $0x340] sm:$0xff]  ;;  %v478_v43 = vld [vmem:[#allocation14 + $0x6b0] sm:$0xff] }
 0x627   :  { %v4259_v53 = vpack.c.bf16 %v383_v44, %v371_v26  ;;  %v489_v26 = vld [vmem:[#allocation14 + $0x708] sm:$0xff] }
 0x628   :  { %v501_v44 = vld [vmem:[#allocation14 + $0x768] sm:$0xff] }
 0x629   :  { %4114 = vmatpush1.bf16.msra.mxu0 %v4113_v57  ;;  %4178 = vmatpush1.bf16.msra.mxu1 %v4177_v58  ;;  %v395_v57 = vld [vmem:[#allocation14 + $0x418] sm:$0xff] }
 0x62a   :  { %4180 = vmatprep.subr.bf16.mxu0 %v4179_v59  ;;  %4244 = vmatprep.subr.bf16.mxu1 %v4243_v60  ;;  %v407_v58 = vld [vmem:[#allocation14 + $0x478] sm:$0xff]  ;;  %v4197_v59 = vpack.c.bf16 %v380_v51, %v368_v50  ;;  %v4261_v60 = vpack.c.bf16 %v382_v54, %v370_v52  ;;  %v4277_v50 = vpack.c.bf16 %v478_v43, %v466_v41  ;;  %v488_v52 = vld [vmem:[#allocation14 + $0x700] sm:$0xff]  ;;  %v490_v54 = vld [vmem:[#allocation14 + $0x710] sm:$0xff] }
 0x62b   :  { %v4263_v2 = vpack.c.bf16 %v407_v58, %v395_v57  ;;  %v4215_v51 = vpack.c.bf16 %v501_v44, %v489_v26  ;;  %v513_v57 = vld [vmem:[#allocation14 + $0x7c8] sm:$0xff]  ;;  %v4281_v62 = vpack.c.bf16 %v502_v56, %v490_v54  ;;  %v584_v41 = vld [vmem:[#allocation14 + $0xa00] sm:$0xff]  ;;  %v586_v43 = vld [vmem:[#allocation14 + $0xa10] sm:$0xff] }
 0x62c   :  { %1694 = vmatmul.mubr.f32.vlgmr.msra.gmra.mrb[16].mxu0 %v5136_v42  ;;  %1765 = vmatmul.mubr.f32.vlgmr.msra.gmra.mrb[18].mxu1 %v5136_v42  ;;  %v525_v58 = vld [vmem:[#allocation14 + $0x828] sm:$0xff]  ;;  %v598_v44 = vld [vmem:[#allocation14 + $0xa70] sm:$0xff]  ;;  %v608_v54 = vld [vmem:[#allocation14 + $0xac0] sm:$0xff] }
 0x62d   :  { %4182 = vmatpush1.bf16.msra.mxu0 %v4181_v6  ;;  %1835 = vmatprep.mubr.f32.mxu0 %v5138_v46  ;;  %v419_v6 = vld [vmem:[#allocation14 + $0x4d8] sm:$0xff]  ;;  %v4219_v63 = vpack.c.bf16 %v525_v58, %v513_v57  ;;  %v610_v56 = vld [vmem:[#allocation14 + $0xad0] sm:$0xff] }
 0x62e   :  { %4246 = vmatpush1.bf16.msra.mxu1 %v4245_v11  ;;  %1906 = vmatprep.mubr.f32.mxu1 %v5138_v46  ;;  %v344_v46 = vld [vmem:[#allocation14 + $0x280] sm:$0xff]  ;;  %v431_v11 = vld [vmem:[#allocation14 + $0x538] sm:$0xff]  ;;  %v622_v58 = vld [vmem:[#allocation14 + $0xb30] sm:$0xff] }
 0x62f   :  { %4184 = vmatprep.subr.bf16.mxu0 %v4183_v15  ;;  %4248 = vmatprep.subr.bf16.mxu1 %v4247_v16  ;;  %v4193_v45 = vpack.c.bf16 %v356_v37, %v344_v46  ;;  %v416_v15 = vld [vmem:[#allocation14 + $0x4c0] sm:$0xff]  ;;  %v4267_v18 = vpack.c.bf16 %v431_v11, %v419_v6  ;;  %v4273_v46 = vpack.c.bf16 %v454_v7, %v442_v33  ;;  %v537_v6 = vld [vmem:[#allocation14 + $0x888] sm:$0xff]  ;;  %v562_v7 = vld [vmem:[#allocation14 + $0x950] sm:$0xff] }
 0x630   :  { %v428_v16 = vld [vmem:[#allocation14 + $0x520] sm:$0xff]  ;;  %v4211_v37 = vpack.c.bf16 %v477_v9, %v465_v8  ;;  %v549_v11 = vld [vmem:[#allocation14 + $0x8e8] sm:$0xff]  ;;  %v574_v9 = vld [vmem:[#allocation14 + $0x9b0] sm:$0xff] }
 0x631   :  { %4186 = vmatpush1.bf16.msra.mxu0 %v4185_v22  ;;  %v443_v22 = vld [vmem:[#allocation14 + $0x598] sm:$0xff]  ;;  %v560_v33 = vld [vmem:[#allocation14 + $0x940] sm:$0xff] }
 0x632   :  { %4250 = vmatpush1.bf16.msra.mxu1 %v4249_v23  ;;  %4188 = vmatprep.subr.bf16.mxu0 %v4187_v28  ;;  %v455_v23 = vld [vmem:[#allocation14 + $0x5f8] sm:$0xff]  ;;  %v4205_v28 = vpack.c.bf16 %v428_v16, %v416_v15  ;;  %v4285_v15 = vpack.c.bf16 %v526_v5, %v514_v3  ;;  %v4223_v16 = vpack.c.bf16 %v549_v11, %v537_v6  ;;  %v632_v3 = vld [vmem:[#allocation14 + $0xb80] sm:$0xff]  ;;  %v634_v6 = vld [vmem:[#allocation14 + $0xb90] sm:$0xff] }
 0x633   :  { %4252 = vmatprep.subr.bf16.mxu1 %v4251_v32  ;;  %v452_v32 = vld [vmem:[#allocation14 + $0x5e0] sm:$0xff]  ;;  %v4271_v34 = vpack.c.bf16 %v455_v23, %v443_v22  ;;  %v561_v22 = vld [vmem:[#allocation14 + $0x948] sm:$0xff]  ;;  %v646_v11 = vld [vmem:[#allocation14 + $0xbf0] sm:$0xff] }
 0x634   :  { %v573_v23 = vld [vmem:[#allocation14 + $0x9a8] sm:$0xff] }
 0x635   :  { %4190 = vmatpush1.bf16.msra.mxu0 %v4189_v10  ;;  %v467_v10 = vld [vmem:[#allocation14 + $0x658] sm:$0xff] }
 0x636   :  { %4254 = vmatpush1.bf16.msra.mxu1 %v4253_v35  ;;  %4192 = vmatprep.subr.bf16.mxu0 %v4191_v36  ;;  %v479_v35 = vld [vmem:[#allocation14 + $0x6b8] sm:$0xff]  ;;  %v4209_v36 = vpack.c.bf16 %v452_v32, %v440_v31  ;;  %v4289_v31 = vpack.c.bf16 %v550_v21, %v538_v19  ;;  %v4227_v32 = vpack.c.bf16 %v573_v23, %v561_v22 }
 0x637   :  { %4256 = vmatprep.subr.bf16.mxu1 %v4255_v40  ;;  %v476_v40 = vld [vmem:[#allocation14 + $0x6a0] sm:$0xff]  ;;  %v4275_v27 = vpack.c.bf16 %v479_v35, %v467_v10  ;;  %v585_v10 = vld [vmem:[#allocation14 + $0xa08] sm:$0xff] }
 0x638   :  { %v597_v35 = vld [vmem:[#allocation14 + $0xa68] sm:$0xff] }
 0x639   :  { %4194 = vmatpush1.bf16.msra.mxu0 %v4193_v45  ;;  %v491_v45 = vld [vmem:[#allocation14 + $0x718] sm:$0xff] }
 0x63a   :  { %4258 = vmatpush1.bf16.msra.mxu1 %v4257_v48  ;;  %4196 = vmatprep.subr.bf16.mxu0 %v4195_v49  ;;  %v503_v48 = vld [vmem:[#allocation14 + $0x778] sm:$0xff]  ;;  %v4213_v49 = vpack.c.bf16 %v476_v40, %v464_v38  ;;  %v4293_v38 = vpack.c.bf16 %v574_v9, %v562_v7  ;;  %v4231_v40 = vpack.c.bf16 %v597_v35, %v585_v10  ;;  %v648_v35 = vld [vmem:[#allocation16] sm:$0xff] }
 0x63b   :  { %4260 = vmatprep.subr.bf16.mxu1 %v4259_v53  ;;  %v500_v53 = vld [vmem:[#allocation14 + $0x760] sm:$0xff]  ;;  %v4279_v55 = vpack.c.bf16 %v503_v48, %v491_v45  ;;  %v609_v45 = vld [vmem:[#allocation14 + $0xac8] sm:$0xff] }
 0x63c   :  { %v621_v48 = vld [vmem:[#allocation14 + $0xb28] sm:$0xff] }
 0x63d   :  { %4198 = vmatpush1.bf16.msra.mxu0 %v4197_v59  ;;  %v515_v59 = vld [vmem:[#allocation14 + $0x7d8] sm:$0xff] }
 0x63e   :  { %4262 = vmatpush1.bf16.msra.mxu1 %v4261_v60  ;;  %4200 = vmatprep.subr.bf16.mxu0 %v4199_v61  ;;  %v527_v60 = vld [vmem:[#allocation14 + $0x838] sm:$0xff]  ;;  %v4217_v61 = vpack.c.bf16 %v500_v53, %v488_v52  ;;  %v4297_v52 = vpack.c.bf16 %v598_v44, %v586_v43  ;;  %v4235_v53 = vpack.c.bf16 %v621_v48, %v609_v45  ;;  %v652_v43 = vld [vmem:[#allocation16 + $0x20] sm:$0xff]  ;;  %v657_v44 = vld [vmem:[#allocation16 + $0x48] sm:$0xff] }
 0x63f   :  { %4264 = vmatprep.subr.bf16.mxu1 %v4263_v2  ;;  %v524_v2 = vld [vmem:[#allocation14 + $0x820] sm:$0xff]  ;;  %v4283_v4 = vpack.c.bf16 %v527_v60, %v515_v59  ;;  %v633_v59 = vld [vmem:[#allocation14 + $0xb88] sm:$0xff]  ;;  %v659_v45 = vld [vmem:[#allocation16 + $0x58] sm:$0xff] }
 0x640   :  { %v645_v60 = vld [vmem:[#allocation14 + $0xbe8] sm:$0xff] }
 0x641   :  { %4202 = vmatpush1.bf16.msra.mxu0 %v4201_v12  ;;  %v539_v12 = vld [vmem:[#allocation14 + $0x898] sm:$0xff] }
 0x642   :  { %4266 = vmatpush1.bf16.msra.mxu1 %v4265_v13  ;;  %4204 = vmatprep.subr.bf16.mxu0 %v4203_v14  ;;  %v551_v13 = vld [vmem:[#allocation14 + $0x8f8] sm:$0xff]  ;;  %v4221_v14 = vpack.c.bf16 %v524_v2, %v512_v0  ;;  %v4301_v0 = vpack.c.bf16 %v622_v58, %v610_v56  ;;  %v4239_v2 = vpack.c.bf16 %v645_v60, %v633_v59  ;;  %v660_v56 = vld [vmem:[#allocation16 + $0x60] sm:$0xff] }
 0x643   :  { %4268 = vmatprep.subr.bf16.mxu1 %v4267_v18  ;;  %v548_v18 = vld [vmem:[#allocation14 + $0x8e0] sm:$0xff]  ;;  %v4287_v20 = vpack.c.bf16 %v551_v13, %v539_v12  ;;  %v4305_v13 = vpack.c.bf16 %v646_v11, %v634_v6  ;;  %v681_v6 = vld [vmem:[%s5546_s12 + $0x88] sm:$0xff]  ;;  %v664_v11 = vld [vmem:[%s5546_s12] sm:$0xff] }
 0x645   :  { %4206 = vmatpush1.bf16.msra.mxu0 %v4205_v28  ;;  %v563_v28 = vld [vmem:[#allocation14 + $0x958] sm:$0xff] }
 0x646   :  { %4270 = vmatpush1.bf16.msra.mxu1 %v4269_v29  ;;  %4208 = vmatprep.subr.bf16.mxu0 %v4207_v30  ;;  %v575_v29 = vld [vmem:[#allocation14 + $0x9b8] sm:$0xff]  ;;  %v4225_v30 = vpack.c.bf16 %v548_v18, %v536_v17 }
 0x647   :  { %4272 = vmatprep.subr.bf16.mxu1 %v4271_v34  ;;  %v572_v34 = vld [vmem:[#allocation14 + $0x9a0] sm:$0xff]  ;;  %v4291_v8 = vpack.c.bf16 %v575_v29, %v563_v28  ;;  %v649_v28 = vld [vmem:[#allocation16 + $0x8] sm:$0xff]  ;;  %v651_v29 = vld [vmem:[#allocation16 + $0x18] sm:$0xff] }
 0x648   :  { %v4307_v10 = vpack.c.bf16 %v651_v29, %v649_v28  ;;  %v669_v28 = vld [vmem:[%s5546_s12 + $0x28] sm:$0xff]  ;;  %v686_v29 = vld [vmem:[%s5546_s12 + $0xb0] sm:$0xff] }
 0x649   :  { %4210 = vmatpush1.bf16.msra.mxu0 %v4209_v36  ;;  %v587_v36 = vld [vmem:[#allocation14 + $0xa18] sm:$0xff] }
 0x64a   :  { %4274 = vmatpush1.bf16.msra.mxu1 %v4273_v46  ;;  %4212 = vmatprep.subr.bf16.mxu0 %v4211_v37  ;;  %v599_v46 = vld [vmem:[#allocation14 + $0xa78] sm:$0xff]  ;;  %v4229_v37 = vpack.c.bf16 %v572_v34, %v560_v33 }
 0x64b   :  { %4276 = vmatprep.subr.bf16.mxu1 %v4275_v27  ;;  %v596_v27 = vld [vmem:[#allocation14 + $0xa60] sm:$0xff]  ;;  %v4295_v26 = vpack.c.bf16 %v599_v46, %v587_v36  ;;  %v650_v36 = vld [vmem:[#allocation16 + $0x10] sm:$0xff] }
 0x64d   :  { %4214 = vmatpush1.bf16.msra.mxu0 %v4213_v49  ;;  %v611_v49 = vld [vmem:[#allocation14 + $0xad8] sm:$0xff] }
 0x64e   :  { %4278 = vmatpush1.bf16.msra.mxu1 %v4277_v50  ;;  %4216 = vmatprep.subr.bf16.mxu0 %v4215_v51  ;;  %v623_v50 = vld [vmem:[#allocation14 + $0xb38] sm:$0xff]  ;;  %v4233_v51 = vpack.c.bf16 %v596_v27, %v584_v41  ;;  %v4309_v41 = vpack.c.bf16 %v650_v36, %v648_v35  ;;  %v672_v35 = vld [vmem:[%s5546_s12 + $0x40] sm:$0xff] }
 0x64f   :  { %4280 = vmatprep.subr.bf16.mxu1 %v4279_v55  ;;  %v620_v55 = vld [vmem:[#allocation14 + $0xb20] sm:$0xff]  ;;  %v4299_v57 = vpack.c.bf16 %v623_v50, %v611_v49  ;;  %v4315_v49 = vpack.c.bf16 %v659_v45, %v657_v44  ;;  %v673_v36 = vld [vmem:[%s5546_s12 + $0x48] sm:$0xff] }
 0x650   :  { %v656_v50 = vld [vmem:[#allocation16 + $0x40] sm:$0xff] }
 0x651   :  { %4218 = vmatpush1.bf16.msra.mxu0 %v4217_v61  ;;  %v635_v61 = vld [vmem:[#allocation14 + $0xb98] sm:$0xff] }
 0x652   :  { %4282 = vmatpush1.bf16.msra.mxu1 %v4281_v62  ;;  %4220 = vmatprep.subr.bf16.mxu0 %v4219_v63  ;;  %v647_v62 = vld [vmem:[#allocation14 + $0xbf8] sm:$0xff]  ;;  %v4237_v63 = vpack.c.bf16 %v620_v55, %v608_v54 }
 0x653   :  { %4284 = vmatprep.subr.bf16.mxu1 %v4283_v4  ;;  %v644_v4 = vld [vmem:[#allocation14 + $0xbe0] sm:$0xff]  ;;  %v4303_v5 = vpack.c.bf16 %v647_v62, %v635_v61 }
 0x654   :  { %v4241_v12 = vpack.c.bf16 %v644_v4, %v632_v3 }
 0x655   :  { %4222 = vmatpush1.bf16.msra.mxu0 %v4221_v14 }
 0x656   :  { %4286 = vmatpush1.bf16.msra.mxu1 %v4285_v15  ;;  %4224 = vmatprep.subr.bf16.mxu0 %v4223_v16 }
 0x657   :  { %4288 = vmatprep.subr.bf16.mxu1 %v4287_v20 }
 0x659   :  { %4226 = vmatpush1.bf16.msra.mxu0 %v4225_v30 }
 0x65a   :  { %4290 = vmatpush1.bf16.msra.mxu1 %v4289_v31  ;;  %4228 = vmatprep.subr.bf16.mxu0 %v4227_v32 }
 0x65b   :  { %4292 = vmatprep.subr.bf16.mxu1 %v4291_v8 }
 0x65d   :  { %4230 = vmatpush1.bf16.msra.mxu0 %v4229_v37 }
 0x65e   :  { %4294 = vmatpush1.bf16.msra.mxu1 %v4293_v38  ;;  %4232 = vmatprep.subr.bf16.mxu0 %v4231_v40  ;;  %v653_v38 = vld [vmem:[#allocation16 + $0x28] sm:$0xff]  ;;  %v655_v40 = vld [vmem:[#allocation16 + $0x38] sm:$0xff] }
 0x65f   :  { %4296 = vmatprep.subr.bf16.mxu1 %v4295_v26  ;;  %v4311_v27 = vpack.c.bf16 %v655_v40, %v653_v38  ;;  %v654_v26 = vld [vmem:[#allocation16 + $0x30] sm:$0xff]  ;;  %v4341_v38 = vpack.c.bf16 %v673_v36, %v672_v35 }
 0x660   :  { %v4313_v48 = vpack.c.bf16 %v654_v26, %v652_v43 }
 0x661   :  { %4234 = vmatpush1.bf16.msra.mxu0 %v4233_v51  ;;  %v658_v51 = vld [vmem:[#allocation16 + $0x50] sm:$0xff] }
 0x662   :  { %4298 = vmatpush1.bf16.msra.mxu1 %v4297_v52  ;;  %4236 = vmatprep.subr.bf16.mxu0 %v4235_v53  ;;  %v661_v52 = vld [vmem:[#allocation16 + $0x68] sm:$0xff]  ;;  %v663_v53 = vld [vmem:[#allocation16 + $0x78] sm:$0xff]  ;;  %v4317_v54 = vpack.c.bf16 %v658_v51, %v656_v50 }
 0x663   :  { %4300 = vmatprep.subr.bf16.mxu1 %v4299_v57  ;;  %v4319_v55 = vpack.c.bf16 %v663_v53, %v661_v52  ;;  %v662_v57 = vld [vmem:[#allocation16 + $0x70] sm:$0xff] }
 0x664   :  { %v4321_v58 = vpack.c.bf16 %v662_v57, %v660_v56  ;;  %v692_v53 = vld [vmem:[%s5546_s12 + $0xe0] sm:$0xff]  ;;  %v677_v57 = vld [vmem:[%s5546_s12 + $0x68] sm:$0xff] }
 0x665   :  { %4238 = vmatpush1.bf16.msra.mxu0 %v4237_v63  ;;  %v676_v56 = vld [vmem:[%s5546_s12 + $0x60] sm:$0xff] }
 0x666   :  { %4302 = vmatpush1.bf16.msra.mxu1 %v4301_v0  ;;  %4240 = vmatprep.subr.bf16.mxu0 %v4239_v2 }
 0x667   :  { %4304 = vmatprep.subr.bf16.mxu1 %v4303_v5  ;;  %v680_v5 = vld [vmem:[%s5546_s12 + $0x80] sm:$0xff] }
 0x669   :  { %4242 = vmatpush1.bf16.msra.mxu0 %v4241_v12  ;;  %v4323_v12 = vpack.c.bf16 %v681_v6, %v680_v5 }
 0x66a   :  { %4306 = vmatpush1.bf16.msra.mxu1 %v4305_v13  ;;  %v665_v13 = vld [vmem:[%s5546_s12 + $0x8] sm:$0xff] }
 0x66c   :  { %1836 = vmatmul.mubr.f32.vlgmr.msra.gmra.mrb[18].mxu0 %v5136_v42 }
 0x66d   :  { %1907 = vmatmul.mubr.f32.vlgmr.msra.gmra.mrb[20].mxu1 %v5136_v42  ;;  %1985 = vmatprep.mubr.bf16.mxu0 %v4765_v39  ;;  %v5161_v42 = vld [vmem:[%s5567_s5] sm:$0xff]  }
 0x66e   :  { %2028 = vmatprep.mubr.bf16.mxu1 %v4765_v39 }
 0x6bf   :  { %v1553_v14 = vpop.f32.mrb[10].mxu0  ;;  %v1624_v15 = vpop.f32.mrb[16].mxu1 }
 0x6c0   :  { %v1913_v16 = vpack.c.bf16 %v1553_v14, %v1553_v14  ;;  %v1915_v17 = vpack.c.bf16 %v1624_v15, %v1624_v15  ;;  %v1555_v18 = vpop.f32.mrb[11].mxu0  ;;  %v1626_v19 = vpop.f32.mrb[17].mxu1  ;;  %v682_v14 = vld [vmem:[%s5546_s12 + $0x90] sm:$0xff]  ;;  %v683_v15 = vld [vmem:[%s5546_s12 + $0x98] sm:$0xff] }
 0x6c1   :  { %v1914_v20 = vpack.c.bf16 %v1555_v18, %v1555_v18  ;;  %v1916_v21 = vpack.c.bf16 %v1626_v19, %v1626_v19  ;;  %v666_v18 = vld [vmem:[%s5546_s12 + $0x10] sm:$0xff]  ;;  %v667_v19 = vld [vmem:[%s5546_s12 + $0x18] sm:$0xff] }
 0x6c2   :  { %v1924_v22 = vsel %vm858_vm2, %v1913_v16, 0  ;;  %v1930_v23 = vsel %vm858_vm2, %v1915_v17, 0  ;;  %v4325_v16 = vpack.c.bf16 %v665_v13, %v664_v11  ;;  %v4327_v17 = vpack.c.bf16 %v683_v15, %v682_v14 }
 0x6c3   :  { %3677 = vmatprep.subr.msk.bf16.mxu0 %vm858_vm2, %v1914_v20  ;;  %3679 = vmatprep.subr.msk.bf16.mxu1 %vm858_vm2, %v1916_v21  ;;  %v684_v20 = vld [vmem:[%s5546_s12 + $0xa0] sm:$0xff]  ;;  %v685_v21 = vld [vmem:[%s5546_s12 + $0xa8] sm:$0xff] }
 0x6c4   :  { %1954 = vmatpush1.bf16.msra.mxu0 %v1924_v22  ;;  %1997 = vmatpush1.bf16.msra.mxu1 %v1930_v23  ;;  %v4329_v22 = vpack.c.bf16 %v667_v19, %v666_v18  ;;  %v4331_v23 = vpack.c.bf16 %v685_v21, %v684_v20  ;;  %v696_v20 = vld [vmem:[#allocation17] sm:$0x3] }
 0x6c7   :  { %3680 = vmatmul.mubr.msk.bf16.vlgmr.msra.gmra.mrb[24].mxu1 %vm854_vm3, %v5161_v42  ;;  %3678 = vmatmul.mubr.msk.bf16.vlgmr.msra.gmra.mrb[20].mxu0 %vm854_vm3, %v5161_v42 }
 0x6c8   :  { %2114 = vmatprep.mubr.bf16.mxu1 %v4765_v39  ;;  %2071 = vmatprep.mubr.bf16.mxu0 %v4765_v39 }
 0x6ff   :  { %v1695_v30 = vpop.f32.mrb[16].mxu0  ;;  %v1766_v31 = vpop.f32.mrb[18].mxu1 }
 0x700   :  { %v1917_v32 = vpack.c.bf16 %v1695_v30, %v1695_v30  ;;  %v1919_v33 = vpack.c.bf16 %v1766_v31, %v1766_v31  ;;  %v1697_v34 = vpop.f32.mrb[17].mxu0  ;;  %v1768_v7 = vpop.f32.mrb[19].mxu1  ;;  %v687_v30 = vld [vmem:[%s5546_s12 + $0xb8] sm:$0xff] }
 0x701   :  { %v1918_v8 = vpack.c.bf16 %v1697_v34, %v1697_v34  ;;  %v1920_v9 = vpack.c.bf16 %v1768_v7, %v1768_v7  ;;  %v671_v34 = vld [vmem:[%s5546_s12 + $0x38] sm:$0xff]  ;;  %v688_v7 = vld [vmem:[%s5546_s12 + $0xc0] sm:$0xff] }
 0x702   :  { %v1936_v46 = vsel %vm858_vm2, %v1917_v32, 0  ;;  %v1942_v37 = vsel %vm858_vm2, %v1919_v33, 0  ;;  %v4335_v32 = vpack.c.bf16 %v687_v30, %v686_v29  ;;  %v670_v33 = vld [vmem:[%s5546_s12 + $0x30] sm:$0xff] }
 0x703   :  { %3681 = vmatprep.subr.msk.bf16.mxu0 %vm858_vm2, %v1918_v8  ;;  %3683 = vmatprep.subr.msk.bf16.mxu1 %vm858_vm2, %v1920_v9  ;;  %v689_v8 = vld [vmem:[%s5546_s12 + $0xc8] sm:$0xff]  ;;  %v4337_v9 = vpack.c.bf16 %v671_v34, %v670_v33 }
 0x704   :  { %2040 = vmatpush1.bf16.msra.mxu0 %v1936_v46  ;;  %2083 = vmatpush1.bf16.msra.mxu1 %v1942_v37  ;;  %v690_v46 = vld [vmem:[%s5546_s12 + $0xd0] sm:$0xff]  ;;  %v691_v37 = vld [vmem:[%s5546_s12 + $0xd8] sm:$0xff] }
 0x705   :  { %4308 = vmatprep.subr.bf16.mxu1 %v4307_v10  ;;  %v4339_v10 = vpack.c.bf16 %v689_v8, %v688_v7  ;;  %v4343_v40 = vpack.c.bf16 %v691_v37, %v690_v46 }
 0x707   :  { %3684 = vmatmul.mubr.msk.bf16.vlgmr.msra.gmra.mrb[28].mxu1 %vm854_vm3, %v5161_v42  ;;  %3682 = vmatmul.mubr.msk.bf16.vlgmr.msra.gmra.mrb[24].mxu0 %vm854_vm3, %v5161_v42 }
 0x708   :  { %4310 = vmatpush1.bf16.msra.mxu1 %v4309_v41  ;;  %2283 = vmatprep.mubr.f32.mxu1 %v4764_v1  ;;  %v674_v41 = vld [vmem:[%s5546_s12 + $0x50] sm:$0xff] }
 0x709   :  { %4312 = vmatprep.subr.bf16.mxu1 %v4311_v27  ;;  %2157 = vmatprep.mubr.bf16.mxu0 %v4765_v39  ;;  %v675_v27 = vld [vmem:[%s5546_s12 + $0x58] sm:$0xff] }
 0x70a   :  { %v4345_v43 = vpack.c.bf16 %v675_v27, %v674_v41 }
 0x70c   :  { %4314 = vmatpush1.bf16.msra.mxu1 %v4313_v48 }
 0x70d   :  { %4316 = vmatprep.subr.bf16.mxu1 %v4315_v49 }
 0x710   :  { %4318 = vmatpush1.bf16.msra.mxu1 %v4317_v54  ;;  %v693_v54 = vld [vmem:[%s5546_s12 + $0xe8] sm:$0xff] }
 0x711   :  { %4320 = vmatprep.subr.bf16.mxu1 %v4319_v55  ;;  %v4347_v55 = vpack.c.bf16 %v693_v54, %v692_v53 }
 0x714   :  { %4322 = vmatpush1.bf16.msra.mxu1 %v4321_v58  ;;  %v4349_v58 = vpack.c.bf16 %v677_v57, %v676_v56 }
 0x717   :  { %3689 = vmatmul.mubr.msk.f32.vlgmr.msra.gmra.mrb[22].mxu1 %vm701_vm1, %v5094_v24 }
 0x718   :  { %2289 = vmatprep.mubr.f32.mxu1 %v4764_v1 }
 0x71b   :  { %3690 = vmatmul.mubr.msk.f32.gmra.mrb[32].mxu1 %vm701_vm1, %v5098_v25  ;;  %v5195_v25 = vld [vmem:[%s5537_s3] sm:$0xff]  }
 0x71c   :  { %2543 = vmatprep.mubr.f32.mxu1 %v4764_v1 }
 0x73f   :  { %v1837_v59 = vpop.f32.mrb[18].mxu0 }
 0x740   :  { %v1921_v60 = vpack.c.bf16 %v1837_v59, %v1837_v59  ;;  %v1908_v61 = vpop.f32.mrb[20].mxu1  ;;  %v1839_v62 = vpop.f32.mrb[19].mxu0  ;;  %v694_v59 = vld [vmem:[%s5546_s12 + $0xf0] sm:$0xff] }
 0x741   :  { %v1922_v63 = vpack.c.bf16 %v1839_v62, %v1839_v62  ;;  %v1910_v0 = vpop.f32.mrb[21].mxu1  ;;  %v2168_v3 = vpack.c.bf16 %v1908_v61, %v1908_v61  ;;  %v678_v62 = vld [vmem:[%s5546_s12 + $0x70] sm:$0xff] }
 0x742   :  { %v1948_v2 = vsel %vm858_vm2, %v1921_v60, 0  ;;  %v2169_v4 = vpack.c.bf16 %v1910_v0, %v1910_v0  ;;  %v695_v60 = vld [vmem:[%s5546_s12 + $0xf8] sm:$0xff] }
 0x743   :  { %3685 = vmatprep.subr.msk.bf16.mxu0 %vm858_vm2, %v1922_v63  ;;  %v2171_v24 = vsel %vm858_vm2, %v2168_v3, 0  ;;  %v4351_v61 = vpack.c.bf16 %v695_v60, %v694_v59  ;;  %v679_v63 = vld [vmem:[%s5546_s12 + $0x78] sm:$0xff] }
 0x744   :  { %2126 = vmatpush1.bf16.msra.mxu0 %v1948_v2  ;;  %v4353_v0 = vpack.c.bf16 %v679_v63, %v678_v62 }
 0x745   :  { %3687 = vmatprep.subr.msk.bf16.mxu0 %vm858_vm2, %v2169_v4 }
 0x747   :  { %3686 = vmatmul.mubr.msk.bf16.vlgmr.msra.gmra.mrb[28].mxu0 %vm854_vm3, %v5161_v42  ;;  %v668_v42 = vld [vmem:[%s5546_s12 + $0x20] sm:$0xff] }
 0x748   :  { %2177 = vmatpush1.bf16.msra.mxu0 %v2171_v24  ;;  %2208 = vmatprep.mubr.bf16.mxu0 %v4765_v39  ;;  %v4333_v31 = vpack.c.bf16 %v669_v28, %v668_v42 }
 0x749   :  { %4324 = vmatprep.subr.bf16.mxu0 %v4323_v12 }
 0x753   :  { %3688 = vmatmul.mubr.msk.bf16.vlgmr.msra.gmra.mrb[28].mxu0 %vm854_vm3, %v5195_v25 }
 0x754   :  { %4326 = vmatpush3.bf16.msra.mxu0 %v4325_v16 }
 0x755   :  { %4328 = vmatprep.subr.bf16.mxu0 %v4327_v17  ;;  %v2305_v17 = vlaneseq }
 0x757   :  { %v5327_v18 = vshrl.u32 %v2305_v17, 7 }
 0x758   :  { %4330 = vmatpush3.bf16.msra.mxu0 %v4329_v22 }
 0x759   :  { %4332 = vmatprep.subr.bf16.mxu0 %v4331_v23  ;;  %v5330_v19 = vsub.s32 0, %v5327_v18  ;;  %v5333_v21 = vsub.s32 1, %v5327_v18 }
 0x75b   :  { %v2308_v22 = vrot.slane %v696_v20, %v5330_v19  ;;  %v2312_v42 = vrot.slane %v696_v20, %v5333_v21 }
 0x75c   :  { %4334 = vmatpush3.bf16.msra.mxu0 %v4333_v31 }
 0x75d   :  { %4336 = vmatprep.subr.bf16.mxu0 %v4335_v32 }
 0x760   :  { %4338 = vmatpush3.bf16.msra.mxu0 %v4337_v9 }
 0x761   :  { %4340 = vmatprep.subr.bf16.mxu0 %v4339_v10 }
 0x764   :  { %4342 = vmatpush3.bf16.msra.mxu0 %v4341_v38 }
 0x765   :  { %4344 = vmatprep.subr.bf16.mxu0 %v4343_v40 }
 0x768   :  { %4346 = vmatpush3.bf16.msra.mxu0 %v4345_v43  ;;  %v4767_v43 = vmov 1983009808  }
 0x769   :  { %4348 = vmatprep.subr.bf16.mxu0 %v4347_v55  ;;  %v2425_v53 = vunpack.c.l.s4 %v4767_v43  ;;  %v697_v55 = vld [vmem:[#allocation19] sm:$0xff] }
 0x76a   :  { %v2423_v59 = vcombine.high %v697_v55, %v697_v55 }
 0x76b   :  { %v2426_v54 = vunpack.c.0.s8 %v2425_v53 }
 0x76c   :  { %4350 = vmatpush3.bf16.msra.mxu0 %v4349_v58 }
 0x76d   :  { %4352 = vmatprep.subr.bf16.mxu0 %v4351_v61  ;;  %v5339_v56 = vsub.s32 %v2426_v54, %v5327_v18 }
 0x76f   :  { %v5342_v57 = vrot.slane %v697_v55, %v5339_v56  ;;  %v5353_v60 = vrot.slane %v2423_v59, %v5339_v56 }
 0x770   :  { %4354 = vmatpush3.bf16.msra.mxu0 %v4353_v0 }
 0x771   :  { %v5346_v58 = vcombine.high %v5342_v57, %v5342_v57  ;;  %v5357_v61 = vcombine.high %v5353_v60, %v5353_v60 }
 0x773   :  { %3691 = vmatprep.subr.msk.mxu1 %vm1219_vm7, %v5346_v58 }
 0x774   :  { %3692 = vmatpush1.msk.msra.mxu1 %vm1219_vm7, %v5342_v57 }
 0x775   :  { %3695 = vmatprep.subr.msk.mxu1 %vm1219_vm7, %v5357_v61 }
 0x79a   :  { %v5271_v26 = vpop.f32.mrb[24].mxu1  ;;  %v5273_v44 = vpop.f32.mrb[20].mxu0 }
 0x79b   :  { %v5275_v45 = vpop.f32.mrb[25].mxu1  ;;  %v5277_v48 = vpop.f32.mrb[21].mxu0 }
 0x79c   :  { %v5279_v49 = vpop.f32.mrb[26].mxu1  ;;  %v5281_v50 = vpop.f32.mrb[22].mxu0 }
 0x79d   :  { %v5283_v51 = vpop.f32.mrb[27].mxu1  ;;  %v5285_v52 = vpop.f32.mrb[23].mxu0 }
 0x7da   :  { %v5311_v2 = vpop.f32.mrb[28].mxu1  ;;  %v5313_v3 = vpop.f32.mrb[24].mxu0 }
 0x7db   :  { %v5315_v4 = vpop.f32.mrb[29].mxu1  ;;  %v5317_v24 = vpop.f32.mrb[25].mxu0 }
 0x7dc   :  { %v5319_v5 = vpop.f32.mrb[30].mxu1  ;;  %v5321_v6 = vpop.f32.mrb[26].mxu0 }
 0x7dd   :  { %v5323_v11 = vpop.f32.mrb[31].mxu1  ;;  %v5325_v12 = vpop.f32.mrb[27].mxu0 }
 0x7ea   :  { %v2285_v13 = vpop.f32.mrb[22].mxu1 }
 0x7eb   :  { %v2287_v14 = vpop.f32.mrb[23].mxu1 }
 0x7ee   :  { %v2291_v15 = vpop.f32.mrb[32].mxu1 }
 0x7ef   :  { %v2293_v16 = vpop.f32.mrb[33].mxu1 }
 0x826   :  { %v2210_v23 = vpop.f32.mrb[28].mxu0 }
 0x827   :  { %v2300_v28 = vadd.f32 %v2285_v13, %v2210_v23  ;;  %v2212_v29 = vpop.f32.mrb[29].mxu0 }
 0x828   :  { %v2301_v30 = vadd.f32 %v2287_v14, %v2212_v29  ;;  %v2214_v31 = vpop.f32.mrb[30].mxu0 }
 0x829   :  { %v2315_v32 = vadd.f32 %v2308_v22, %v2300_v28  ;;  %v2302_v33 = vadd.f32 %v2291_v15, %v2214_v31  ;;  %v2216_v34 = vpop.f32.mrb[31].mxu0 }
 0x82a   :  { %v2316_v7 = vadd.f32 %v2312_v42, %v2301_v30  ;;  %v2303_v8 = vadd.f32 %v2293_v16, %v2216_v34 }
 0x82b   :  { %v2323_v9 = vmul.f32 0.01, %v2315_v32  ;;  %v2317_v10 = vadd.f32 %v2308_v22, %v2302_v33  ;;  %vm2319_vm10 = vcmp.gt.f32.partialorder %v2315_v32, 0.0 }
 0x82c   :  { %v2318_v35 = vadd.f32 %v2312_v42, %v2303_v8  ;;  %vm2320_vm9 = vcmp.gt.f32.partialorder %v2316_v7, 0.0  ;;  %v2324_v36 = vmul.f32 0.01, %v2316_v7 }
 0x82d   :  { %v2327_v38 = vsel %vm2319_vm10, %v2315_v32, %v2323_v9  ;;  %v2325_v40 = vmul.f32 0.01, %v2317_v10  ;;  %vm2321_vm12 = vcmp.gt.f32.partialorder %v2317_v10, 0.0 }
 0x82e   :  { %v2328_v46 = vsel %vm2320_vm9, %v2316_v7, %v2324_v36  ;;  %vm2322_vm11 = vcmp.gt.f32.partialorder %v2318_v35, 0.0  ;;  %v2326_v37 = vmul.f32 0.01, %v2318_v35  ;;  %v698_v7 = vld [vmem:[#allocation19 + $0x8] sm:$0xff] }
 0x82f   :  { %2395 = vmatprep.mubr.f32.mxu0 %v2328_v46  ;;  %v2329_v27 = vsel %vm2321_vm12, %v2317_v10, %v2325_v40  ;;  %v5364_v8 = vrot.slane %v698_v7, %v5339_v56  ;;  %v2440_v10 = vcombine.high %v698_v7, %v698_v7 }
 0x830   :  { %2396 = vmatmul.mubr.f32.vlgmr.msra.gmra.mrb[32].mxu0 %v2327_v38  ;;  %v2330_v41 = vsel %vm2322_vm11, %v2318_v35, %v2326_v37 }
 0x831   :  { %2400 = vmatprep.mubr.f32.mxu0 %v2330_v41  ;;  %v5368_v9 = vcombine.high %v5364_v8, %v5364_v8  ;;  %v5380_v36 = vrot.slane %v2440_v10, %v5339_v56 }
 0x833   :  { %v5389_v37 = vcombine.high %v5380_v36, %v5380_v36 }
 0x834   :  { %2401 = vmatmul.mubr.f32.gmra.mrb[34].mxu0 %v2329_v27 }
 0x835   :  { %2844 = vmatprep.mubr.bf16.mxu0 %v4765_v39 }
 0x903   :  { %v3790_v62 = vpop.f32.mrb[32].mxu0 }
 0x904   :  { %v3791_v63 = vpop.f32.mrb[33].mxu0 }
 0x905   :  { %v3792_v0 = vadd.f32 %v3791_v63, %v3790_v62 }
 0x907   :  { %v3793_v13 = vpop.f32.mrb[34].mxu0  ;;  %v2406_v16 = vsel %vm1188_vm8, %v3792_v0, -inf }
 0x908   :  { %v3794_v14 = vpop.f32.mrb[35].mxu0 }
 0x909   :  { %v3795_v15 = vadd.f32 %v3794_v14, %v3793_v13 }
 0x90b   :  { %v2407_v17 = vsel %vm1188_vm8, %v3795_v15, -inf }
 0x90c   :  { %v2408_v20 = vmax.f32 %v2406_v16, %v2407_v17 }
 0x90e   :  { %v2409_v22 = vrot.slane %v2408_v20, 4 }
 0x910   :  { %v2410_v23 = vmax.f32 %v2408_v20, %v2409_v22 }
 0x912   :  { %v2411_v42 = vrot.slane %v2410_v23, 2 }
 0x914   :  { %v2412_v28 = vmax.f32 %v2410_v23, %v2411_v42 }
 0x916   :  { %v2413_v29 = vrot.slane %v2412_v28, 1 }
 0x918   :  { %v2414_v30 = vmax.f32 %v2412_v28, %v2413_v29 }
 0x91a   :  { %v2415_v31 = vsub.f32 %v3792_v0, %v2414_v30  ;;  %v2416_v32 = vsub.f32 %v3795_v15, %v2414_v30 }
 0x91c   :  { %v2417_v33 = vmul.f32 1.442695, %v2415_v31  ;;  %v2419_v34 = vmul.f32 1.442695, %v2416_v32 }
 0x91e   :  { %4401 = vpow2.f32 %v2417_v33 }
 0x91f   :  { %4403 = vpow2.f32 %v2419_v34 }
 0x928   :  { %v5370_v35 = vpop.eup %4401 }
 0x929   :  { %3693 = vmatmul.mubr.msk.f32.vlgmr.msra.gmra.mrb[34].mxu1 %vm1188_vm8, %v5370_v35  ;;  %v5382_v46 = vpop.eup %4403 }
 0x92a   :  { %2549 = vmatprep.mubr.f32.mxu1 %v4764_v1  ;;  %3696 = vmatpush1.msk.msra.mxu1 %vm1219_vm7, %v5353_v60  ;;  %v2811_v32 = vpack.c.bf16 %v5382_v46, %v5370_v35 }
 0x92b   :  { %3699 = vmatprep.subr.msk.mxu1 %vm1219_vm7, %v5368_v9 }
 0x92d   :  { %3694 = vmatmul.mubr.msk.f32.gmra.mrb[36].mxu1 %vm1188_vm8, %v5382_v46 }
 0x92e   :  { %2620 = vmatprep.mubr.f32.mxu1 %v4764_v1 }
 0x931   :  { %3697 = vmatmul.mubr.msk.f32.vlgmr.msra.gmra.mrb[38].mxu1 %vm1188_vm8, %v5370_v35 }
 0x932   :  { %2626 = vmatprep.mubr.f32.mxu1 %v4764_v1  ;;  %3700 = vmatpush1.msk.msra.mxu1 %vm1219_vm7, %v5364_v8 }
 0x933   :  { %3703 = vmatprep.subr.msk.mxu1 %vm1219_vm7, %v5389_v37 }
 0x935   :  { %3698 = vmatmul.mubr.msk.f32.gmra.mrb[40].mxu1 %vm1188_vm8, %v5382_v46 }
 0x936   :  { %2697 = vmatprep.mubr.f32.mxu1 %v4764_v1 }
 0x939   :  { %3701 = vmatmul.mubr.msk.f32.vlgmr.msra.gmra.mrb[42].mxu1 %vm1188_vm8, %v5370_v35 }
 0x93a   :  { %2703 = vmatprep.mubr.f32.mxu1 %v4764_v1  ;;  %3704 = vmatpush1.msk.msra.mxu1 %vm1219_vm7, %v5380_v36 }
 0x93d   :  { %3702 = vmatmul.mubr.msk.f32.gmra.mrb[44].mxu1 %vm1188_vm8, %v5382_v46 }
 0x93e   :  { %2774 = vmatprep.mubr.f32.mxu1 %v4764_v1 }
 0x941   :  { %3705 = vmatmul.mubr.msk.f32.vlgmr.msra.gmra.mrb[46].mxu1 %vm1188_vm8, %v5370_v35 }
 0x942   :  { %2780 = vmatprep.mubr.f32.mxu1 %v4764_v1 }
 0x945   :  { %3706 = vmatmul.mubr.msk.f32.gmra.mrb[48].mxu1 %vm1188_vm8, %v5382_v46 }
 0x946   :  { %2885 = vmatprep.mubr.bf16.mxu1 %v4765_v39 }
 0x9fc   :  { %v2545_v38 = vpop.f32.mrb[34].mxu1 }
 0x9fd   :  { %v2787_v40 = vmul.f32 %v2545_v38, %v5273_v44  ;;  %v2547_v41 = vpop.f32.mrb[35].mxu1 }
 0x9fe   :  { %v2788_v27 = vmul.f32 %v2547_v41, %v5277_v48 }
 0xa00   :  { %v2551_v43 = vpop.f32.mrb[36].mxu1 }
 0xa01   :  { %v2795_v53 = vmul.f32 %v2551_v43, %v5281_v50  ;;  %v2553_v54 = vpop.f32.mrb[37].mxu1 }
 0xa02   :  { %v2796_v55 = vmul.f32 %v2553_v54, %v5285_v52 }
 0xa03   :  { %v2803_v59 = vpack.c.bf16 %v2795_v53, %v2787_v40 }
 0xa04   :  { %v2804_v62 = vpack.c.bf16 %v2796_v55, %v2788_v27  ;;  %v2622_v63 = vpop.f32.mrb[38].mxu1 }
 0xa05   :  { %v2789_v0 = vmul.f32 %v2622_v63, %v5271_v26  ;;  %v2624_v13 = vpop.f32.mrb[39].mxu1 }
 0xa06   :  { %v2790_v14 = vmul.f32 %v2624_v13, %v5275_v45  ;;  %2812 = vmatprep.subr.bf16.mxu0 %v2804_v62 }
 0xa07   :  { %2813 = vmatpush1.bf16.msra.mxu0 %v2803_v59 }
 0xa08   :  { %v2628_v44 = vpop.f32.mrb[40].mxu1 }
 0xa09   :  { %v2797_v15 = vmul.f32 %v2628_v44, %v5279_v49  ;;  %v2630_v48 = vpop.f32.mrb[41].mxu1 }
 0xa0a   :  { %v2798_v16 = vmul.f32 %v2630_v48, %v5283_v51  ;;  %3707 = vmatmul.mubr.msk.bf16.vlgmr.msra.gmra.mrb[36].mxu0 %vm1007_vm4, %v5118_v47 }
 0xa0b   :  { %v2805_v50 = vpack.c.bf16 %v2797_v15, %v2789_v0  ;;  %2926 = vmatprep.mubr.bf16.mxu0 %v4765_v39 }
 0xa0c   :  { %v2806_v52 = vpack.c.bf16 %v2798_v16, %v2790_v14  ;;  %v2699_v17 = vpop.f32.mrb[42].mxu1 }
 0xa0d   :  { %v2791_v26 = vmul.f32 %v2699_v17, %v5313_v3  ;;  %v2701_v20 = vpop.f32.mrb[43].mxu1 }
 0xa0e   :  { %v2792_v45 = vmul.f32 %v2701_v20, %v5317_v24  ;;  %2853 = vmatprep.subr.bf16.mxu1 %v2806_v52 }
 0xa0f   :  { %2854 = vmatpush1.bf16.msra.mxu1 %v2805_v50 }
 0xa10   :  { %v2705_v22 = vpop.f32.mrb[44].mxu1 }
 0xa11   :  { %v2799_v49 = vmul.f32 %v2705_v22, %v5321_v6  ;;  %v2707_v23 = vpop.f32.mrb[45].mxu1 }
 0xa12   :  { %v2800_v51 = vmul.f32 %v2707_v23, %v5325_v12  ;;  %3708 = vmatmul.mubr.msk.bf16.vlgmr.msra.gmra.mrb[52].mxu1 %vm1007_vm4, %v5118_v47 }
 0xa13   :  { %v2807_v42 = vpack.c.bf16 %v2799_v49, %v2791_v26  ;;  %2967 = vmatprep.mubr.bf16.mxu1 %v4765_v39 }
 0xa14   :  { %v2808_v28 = vpack.c.bf16 %v2800_v51, %v2792_v45  ;;  %v2776_v29 = vpop.f32.mrb[46].mxu1 }
 0xa15   :  { %v2793_v3 = vmul.f32 %v2776_v29, %v5311_v2  ;;  %v2778_v30 = vpop.f32.mrb[47].mxu1 }
 0xa16   :  { %v2794_v24 = vmul.f32 %v2778_v30, %v5315_v4  ;;  %2894 = vmatprep.subr.bf16.mxu0 %v2808_v28 }
 0xa17   :  { %2895 = vmatpush1.bf16.msra.mxu0 %v2807_v42 }
 0xa18   :  { %v2782_v31 = vpop.f32.mrb[48].mxu1  ;;  %3863 = vmatprep.subr.bf16.mxu0 %v4764_v1 }
 0xa19   :  { %v2801_v6 = vmul.f32 %v2782_v31, %v5319_v5  ;;  %v2784_v12 = vpop.f32.mrb[49].mxu1 }
 0xa1a   :  { %v2802_v33 = vmul.f32 %v2784_v12, %v5323_v11  ;;  %3709 = vmatmul.mubr.msk.bf16.vlgmr.msra.gmra.mrb[40].mxu0 %vm1007_vm4, %v5118_v47 }
 0xa1b   :  { %v2809_v2 = vpack.c.bf16 %v2801_v6, %v2793_v3  ;;  %3864 = vmatpush3.bf16.msra.mxu0 %v2811_v32  ;;  %3865 = vmatprep.mubr.msk.bf16.mxu0 %vm4763_vm0, %v4764_v1 }
 0xa1c   :  { %v2810_v4 = vpack.c.bf16 %v2802_v33, %v2794_v24  ;;  %3715 = vmatprep.subr.msk.mxu0 %vm1219_vm7, %v5357_v61 }
 0xa1e   :  { %2935 = vmatprep.subr.bf16.mxu1 %v2810_v4 }
 0xa1f   :  { %2936 = vmatpush1.bf16.msra.mxu1 %v2809_v2 }
 0xa20   :  { %3712 = vmatprep.subr.msk.mxu1 %vm1219_vm7, %v5346_v58 }
 0xa22   :  { %3710 = vmatmul.mubr.msk.bf16.vlgmr.msra.gmra.mrb[56].mxu1 %vm1007_vm4, %v5118_v47  ;;  %3866 = vmatmul.mubr.msk.bf16.vlgmr.msra.gmra.mrb[44].mxu0 %vm1007_vm4, %v5118_v47 }
 0xa23   :  { %3713 = vmatpush1.msk.msra.mxu1 %vm1219_vm7, %v5342_v57  ;;  %3085 = vmatprep.mubr.f32.mxu1 %v4764_v1 }
 0xa24   :  { %3716 = vmatpush1.msk.msra.mxu0 %vm1219_vm7, %v5353_v60  ;;  %3156 = vmatprep.mubr.f32.mxu0 %v4764_v1 }
 0xa25   :  { %3718 = vmatprep.subr.msk.mxu1 %vm1219_vm7, %v5368_v9  ;;  %3721 = vmatprep.subr.msk.mxu0 %vm1219_vm7, %v5389_v37 }
 0xadd   :  { %v2846_v5 = vpop.f32.mrb[36].mxu0 }
 0xade   :  { %v2848_v11 = vpop.f32.mrb[37].mxu0 }
 0xadf   :  { %v2850_v58 = vpop.f32.mrb[38].mxu0 }
 0xae0   :  { %v2851_v47 = vpop.f32.mrb[39].mxu0 }
 0xae5   :  { %v2887_v61 = vpop.f32.mrb[52].mxu1 }
 0xae6   :  { %v2889_v34 = vpop.f32.mrb[53].mxu1 }
 0xae7   :  { %v2891_v57 = vpop.f32.mrb[54].mxu1 }
 0xae8   :  { %v2892_v7 = vpop.f32.mrb[55].mxu1 }
 0xaed   :  { %v2928_v10 = vpop.f32.mrb[40].mxu0 }
 0xaee   :  { %v2930_v38 = vpop.f32.mrb[41].mxu0 }
 0xaef   :  { %v2932_v40 = vpop.f32.mrb[42].mxu0 }
 0xaf0   :  { %v2933_v60 = vpop.f32.mrb[43].mxu0 }
 0xaf5   :  { %v2969_v41 = vpop.f32.mrb[56].mxu1  ;;  %v3010_v27 = vpop.f32.mrb[44].mxu0 }
 0xaf6   :  { %v3016_v43 = vmax.f32 %v3010_v27, 1e-38  ;;  %v2971_v53 = vpop.f32.mrb[57].mxu1  ;;  %v3867_v9 = vpop.f32.mrb[45].mxu0 }
 0xaf7   :  { %v2973_v54 = vpop.f32.mrb[58].mxu1  ;;  %v3013_v55 = vpop.f32.mrb[46].mxu0 }
 0xaf8   :  { %4405 = vrcp.f32 %v3016_v43  ;;  %v2974_v37 = vpop.f32.mrb[59].mxu1  ;;  %v3868_v59 = vpop.f32.mrb[47].mxu0 }
 0xb02   :  { %v4406_v62 = vpop.eup %4405 }
 0xb03   :  { %3714 = vmatmul.mubr.msk.f32.vlgmr.msra.gmra.mrb[50].mxu1 %vm1188_vm8, %v4406_v62  ;;  %3717 = vmatmul.mubr.msk.f32.vlgmr.msra.gmra.mrb[48].mxu0 %vm1188_vm8, %v4406_v62  ;;  %v3313_v63 = vpack.c.bf16 %v4406_v62, %v4406_v62 }
 0xb04   :  { %3719 = vmatpush1.msk.msra.mxu1 %vm1219_vm7, %v5364_v8  ;;  %3227 = vmatprep.mubr.f32.mxu1 %v4764_v1 }
 0xb05   :  { %3722 = vmatpush1.msk.msra.mxu0 %vm1219_vm7, %v5380_v36  ;;  %3298 = vmatprep.mubr.f32.mxu0 %v4764_v1  ;;  %v3315_v0 = vsel %vm858_vm2, %v3313_v63, 0 }
 0xb06   :  { %3869 = vmatprep.subr.bf16.mxu1 %v4764_v1 }
 0xb07   :  { %3720 = vmatmul.mubr.msk.f32.vlgmr.msra.gmra.mrb[60].mxu1 %vm1188_vm8, %v4406_v62  ;;  %3723 = vmatmul.mubr.msk.f32.vlgmr.msra.gmra.mrb[50].mxu0 %vm1188_vm8, %v4406_v62 }
 0xb08   :  { %3870 = vmatpush3.bf16.msra.mxu1 %v3315_v0  ;;  %3871 = vmatprep.mubr.msk.bf16.mxu1 %vm4763_vm0, %v4764_v1 }
 0xb09   :  { %3421 = vmatprep.mubr.bf16.mxu0 %v4765_v39 }
 0xb0b   :  { %3872 = vmatmul.mubr.msk.bf16.vlgmr.msra.gmra.mrb[64].mxu1 %vm854_vm3, %v5195_v25 }
 0xb0c   :  { %3462 = vmatprep.mubr.bf16.mxu1 %v4765_v39 }
 0xbd6   :  { %v3087_v8 = vpop.f32.mrb[50].mxu1  ;;  %v3158_v36 = vpop.f32.mrb[48].mxu0 }
 0xbd7   :  { %v3305_v13 = vmul.f32 %v3087_v8, %v2846_v5  ;;  %v3307_v14 = vmul.f32 %v3158_v36, %v2887_v61  ;;  %v3089_v44 = vpop.f32.mrb[51].mxu1  ;;  %v3160_v15 = vpop.f32.mrb[49].mxu0 }
 0xbd8   :  { %v3306_v48 = vmul.f32 %v3089_v44, %v2848_v11  ;;  %v3308_v16 = vmul.f32 %v3160_v15, %v2889_v34  ;;  %v227_v11 = vld [vmem:[#allocation7] sm:$0x1] }
 0xbda   :  { %v3229_v50 = vpop.f32.mrb[60].mxu1  ;;  %v3300_v52 = vpop.f32.mrb[50].mxu0 }
 0xbdb   :  { %v3309_v17 = vmul.f32 %v3229_v50, %v2928_v10  ;;  %v3311_v26 = vmul.f32 %v3300_v52, %v2969_v41  ;;  %v3231_v1 = vpop.f32.mrb[61].mxu1  ;;  %v3302_v20 = vpop.f32.mrb[51].mxu0 }
 0xbdc   :  { %v3310_v45 = vmul.f32 %v3231_v1, %v2930_v38  ;;  %v3312_v22 = vmul.f32 %v3302_v20, %v2971_v53 }
 0xbdd   :  { %v3362_v49 = vadd.f32 %v3309_v17, %v3305_v13  ;;  %v3364_v25 = vadd.f32 %v3311_v26, %v3307_v14 }
 0xbde   :  { %v3363_v23 = vadd.f32 %v3310_v45, %v3306_v48  ;;  %v3365_v39 = vadd.f32 %v3312_v22, %v3308_v16  ;;  %v3351_v51 = vpop.f32.mrb[64].mxu1 }
 0xbdf   :  { %v3366_v42 = vmul.f32 0.5, %v3362_v49  ;;  %v3368_v28 = vmul.f32 0.5, %v3364_v25  ;;  %v3358_v29 = vmul.f32 %v5370_v35, %v3351_v51  ;;  %v3873_v3 = vpop.f32.mrb[65].mxu1 }
 0xbe0   :  { %v3367_v30 = vmul.f32 0.5, %v3363_v23  ;;  %v3369_v24 = vmul.f32 0.5, %v3365_v39  ;;  %v3354_v31 = vpop.f32.mrb[66].mxu1 }
 0xbe1   :  { %v3370_v6 = vpack.c.bf16 %v3366_v42, %v3366_v42  ;;  %v3372_v12 = vpack.c.bf16 %v3368_v28, %v3368_v28  ;;  %3360 = vst.msk [vmem:[%s5552_s18] sm:$0xff] %vm1188_vm8, %v3358_v29  ;;  %v3359_v32 = vmul.f32 %v5382_v46, %v3354_v31  ;;  %v3874_v33 = vpop.f32.mrb[67].mxu1 }
 0xbe2   :  { %v3371_v2 = vpack.c.bf16 %v3367_v30, %v3367_v30  ;;  %v3373_v4 = vpack.c.bf16 %v3369_v24, %v3369_v24 }
 0xbe3   :  { %3361 = vst.msk [vmem:[%s5552_s18 + $0x8] sm:$0xff] %vm1188_vm8, %v3359_v32  ;;  %v3378_v35 = vsel %vm858_vm2, %v3370_v6, 0  ;;  %v3384_v5 = vsel %vm858_vm2, %v3372_v12, 0  ;;  %s4768_s18 = smov [#allocation23]  }
 0xbe4   :  { %3725 = vmatprep.subr.msk.bf16.mxu0 %vm858_vm2, %v3371_v2  ;;  %3727 = vmatprep.subr.msk.bf16.mxu1 %vm858_vm2, %v3373_v4  ;;  %s3635_s24 = sshll.u32 %s4768_s18, 4  ;;  %s3636_s24 = int_to_ptr.vmem [resolvable:$true] %s3635_s24 }
 0xbe5   :  { %3390 = vmatpush1.bf16.msra.mxu0 %v3378_v35  ;;  %3431 = vmatpush1.bf16.msra.mxu1 %v3384_v5  ;;  %s4703_s26 = scalar_lea.vmem %s3636_s24, 128  ;;  %p4708_p7 = scmp.lt.s32.totalorder %s3636_s24, %s3636_s24 }
 0xbe6   :  { %p4704_p6 = scmp.ne.s32.totalorder %s3636_s24, %s4703_s26  ;;  %p4709_p8 = scmp.lt.s32.totalorder %s4703_s26, %s4703_s26 }
 0xbe8   :  { %3726 = vmatmul.mubr.msk.bf16.vlgmr.msra.gmra.mrb[52].mxu0 %vm854_vm3, %v227_v11  ;;  %3728 = vmatmul.mubr.msk.bf16.vlgmr.msra.gmra.mrb[68].mxu1 %vm854_vm3, %v227_v11  ;;  %p4710_p9 = por %p4709_p8, %p4708_p7 }
 0xbea   :  { %p4711_p10 = pnand %p4710_p9, %p4704_p6 }
 0xcbb   :  { %v3423_v46 = vpop.f32.mrb[52].mxu0  ;;  %v3464_v58 = vpop.f32.mrb[68].mxu1 }
 0xcbc   :  { %v3471_v47 = vsel %vm1219_vm7, %v3423_v46, 0.0  ;;  %v3485_v61 = vsel %vm1219_vm7, %v3464_v58, 0.0  ;;  %v3425_v34 = vpop.f32.mrb[53].mxu0  ;;  %v3466_v57 = vpop.f32.mrb[69].mxu1 }
 0xcbd   :  { %v3472_v7 = vrot.slane %v3471_v47, 4  ;;  %v3486_v10 = vrot.slane %v3485_v61, 4  ;;  %v3478_v38 = vsel %vm1219_vm7, %v3425_v34, 0.0  ;;  %v3492_v40 = vsel %vm1219_vm7, %v3466_v57, 0.0  ;;  %v3427_v60 = vpop.f32.mrb[54].mxu0  ;;  %v3468_v41 = vpop.f32.mrb[70].mxu1 }
 0xcbe   :  { %v3479_v27 = vrot.slane %v3478_v38, 4  ;;  %v3493_v43 = vrot.slane %v3492_v40, 4  ;;  %v3428_v53 = vpop.f32.mrb[55].mxu0  ;;  %v3469_v9 = vpop.f32.mrb[71].mxu1 }
 0xcbf   :  { %v3473_v54 = vadd.f32 %v3472_v7, %v3471_v47  ;;  %v3487_v55 = vadd.f32 %v3486_v10, %v3485_v61 }
 0xcc0   :  { %v3480_v37 = vadd.f32 %v3479_v27, %v3478_v38  ;;  %v3494_v59 = vadd.f32 %v3493_v43, %v3492_v40 }
 0xcc1   :  { %v3474_v62 = vrot.slane %v3473_v54, 2  ;;  %v3488_v63 = vrot.slane %v3487_v55, 2 }
 0xcc2   :  { %v3481_v0 = vrot.slane %v3480_v37, 2  ;;  %v3495_v8 = vrot.slane %v3494_v59, 2 }
 0xcc3   :  { %v3475_v36 = vadd.f32 %v3474_v62, %v3473_v54  ;;  %v3489_v13 = vadd.f32 %v3488_v63, %v3487_v55 }
 0xcc4   :  { %v3482_v14 = vadd.f32 %v3481_v0, %v3480_v37  ;;  %v3496_v44 = vadd.f32 %v3495_v8, %v3494_v59 }
 0xcc5   :  { %v3476_v15 = vrot.slane %v3475_v36, 1  ;;  %v3490_v48 = vrot.slane %v3489_v13, 1 }
 0xcc6   :  { %v3483_v16 = vrot.slane %v3482_v14, 1  ;;  %v3497_v50 = vrot.slane %v3496_v44, 1 }
 0xcc7   :  { %v3477_v52 = vadd.f32 %v3476_v15, %v3475_v36  ;;  %v3491_v17 = vadd.f32 %v3490_v48, %v3489_v13  ;;  %v699_v36 = vld [vmem:[#allocation20] sm:$0xf]  ;;  %v3567_v13 = vsub.s32 2, %v5327_v18 }
 0xcc8   :  { %v3484_v26 = vadd.f32 %v3483_v16, %v3482_v14  ;;  %v3498_v1 = vadd.f32 %v3497_v50, %v3496_v44  ;;  %v700_v14 = vld [vmem:[#allocation22] sm:$0xf]  ;;  %v3571_v44 = vsub.s32 3, %v5327_v18  ;;  %v3560_v15 = vrot.slane %v699_v36, %v5330_v19 }
 0xcc9   :  { %v3500_v20 = vmul.f32 0.5, %v3477_v52  ;;  %v3502_v45 = vmul.f32 0.5, %v3491_v17  ;;  %v3568_v16 = vrot.slane %v699_v36, %v3567_v13  ;;  %v3585_v17 = vrot.slane %v700_v14, %v5330_v19 }
 0xcca   :  { %v3501_v22 = vmul.f32 0.5, %v3484_v26  ;;  %v3503_v49 = vmul.f32 0.5, %v3498_v1  ;;  %v3564_v26 = vrot.slane %v699_v36, %v5333_v21  ;;  %v3589_v18 = vrot.slane %v700_v14, %v5333_v21 }
 0xccb   :  { %v3504_v25 = vsub.f32 %v3423_v46, %v3500_v20  ;;  %v3506_v23 = vsub.f32 %v3464_v58, %v3502_v45  ;;  %v3593_v45 = vrot.slane %v700_v14, %v3567_v13 }
 0xccc   :  { %v5500_v39 = vsub.f32 %v3425_v34, %v3501_v22  ;;  %v5502_v51 = vsub.f32 %v3466_v57, %v3503_v49  ;;  %v3572_v22 = vrot.slane %v699_v36, %v3571_v44 }
 0xccd   :  { %v3508_v42 = vmul.f32 %v3504_v25, %v3504_v25  ;;  %v3510_v28 = vmul.f32 %v3506_v23, %v3506_v23 }
 0xcce   :  { %v3509_v29 = vmul.f32 %v5500_v39, %v5500_v39  ;;  %v3511_v3 = vmul.f32 %v5502_v51, %v5502_v51 }
 0xccf   :  { %v3512_v30 = vsel %vm1219_vm7, %v3508_v42, 0.0  ;;  %v3526_v24 = vsel %vm1219_vm7, %v3510_v28, 0.0 }
 0xcd0   :  { %v3513_v31 = vrot.slane %v3512_v30, 4  ;;  %v3527_v6 = vrot.slane %v3526_v24, 4  ;;  %v3519_v12 = vsel %vm1219_vm7, %v3509_v29, 0.0  ;;  %v3533_v32 = vsel %vm1219_vm7, %v3511_v3, 0.0 }
 0xcd1   :  { %v3520_v33 = vrot.slane %v3519_v12, 4  ;;  %v3534_v2 = vrot.slane %v3533_v32, 4 }
 0xcd2   :  { %v3514_v4 = vadd.f32 %v3513_v31, %v3512_v30  ;;  %v3528_v35 = vadd.f32 %v3527_v6, %v3526_v24  ;;  %v3597_v30 = vrot.slane %v700_v14, %v3571_v44 }
 0xcd3   :  { %v3521_v5 = vadd.f32 %v3520_v33, %v3519_v12  ;;  %v3535_v11 = vadd.f32 %v3534_v2, %v3533_v32 }
 0xcd4   :  { %v3515_v46 = vrot.slane %v3514_v4, 2  ;;  %v3529_v58 = vrot.slane %v3528_v35, 2 }
 0xcd5   :  { %v3522_v47 = vrot.slane %v3521_v5, 2  ;;  %v3536_v61 = vrot.slane %v3535_v11, 2 }
 0xcd6   :  { %v3516_v34 = vadd.f32 %v3515_v46, %v3514_v4  ;;  %v3530_v57 = vadd.f32 %v3529_v58, %v3528_v35 }
 0xcd7   :  { %v3523_v7 = vadd.f32 %v3522_v47, %v3521_v5  ;;  %v3537_v10 = vadd.f32 %v3536_v61, %v3535_v11 }
 0xcd8   :  { %v3517_v38 = vrot.slane %v3516_v34, 1  ;;  %v3531_v40 = vrot.slane %v3530_v57, 1 }
 0xcd9   :  { %v3524_v60 = vrot.slane %v3523_v7, 1  ;;  %v3538_v41 = vrot.slane %v3537_v10, 1 }
 0xcda   :  { %v3518_v27 = vadd.f32 %v3517_v38, %v3516_v34  ;;  %v3532_v43 = vadd.f32 %v3531_v40, %v3530_v57 }
 0xcdb   :  { %v3525_v53 = vadd.f32 %v3524_v60, %v3523_v7  ;;  %v3539_v9 = vadd.f32 %v3538_v41, %v3537_v10 }
 0xcdc   :  { %v3540_v54 = vmul.f32 0.5, %v3518_v27  ;;  %v3542_v55 = vmul.f32 0.5, %v3532_v43 }
 0xcdd   :  { %v3541_v37 = vmul.f32 0.5, %v3525_v53  ;;  %v3543_v59 = vmul.f32 0.5, %v3539_v9 }
 0xcde   :  { %v3544_v62 = vadd.f32 1e-05, %v3540_v54  ;;  %v3546_v63 = vadd.f32 1e-05, %v3542_v55 }
 0xcdf   :  { %v3545_v0 = vadd.f32 1e-05, %v3541_v37  ;;  %v3547_v8 = vadd.f32 1e-05, %v3543_v59 }
 0xce0   :  { %4407 = vrsqrt.f32 %v3544_v62 }
 0xce1   :  { %4409 = vrsqrt.f32 %v3546_v63 }
 0xce2   :  { %4411 = vrsqrt.f32 %v3545_v0 }
 0xce3   :  { %4413 = vrsqrt.f32 %v3547_v8 }
 0xcea   :  { %v4408_v48 = vpop.eup %4407 }
 0xceb   :  { %v4410_v50 = vpop.eup %4409  ;;  %v3552_v52 = vmul.f32 %v4408_v48, %v3504_v25 }
 0xcec   :  { %v4412_v1 = vpop.eup %4411  ;;  %v3554_v20 = vmul.f32 %v4410_v50, %v3506_v23 }
 0xced   :  { %v4414_v49 = vpop.eup %4413  ;;  %v3577_v42 = vmul.f32 %v3560_v15, %v3552_v52  ;;  %v3553_v28 = vmul.f32 %v4412_v1, %v5500_v39 }
 0xcee   :  { %v3579_v29 = vmul.f32 %v3568_v16, %v3554_v20  ;;  %v3555_v3 = vmul.f32 %v4414_v49, %v5502_v51 }
 0xcef   :  { %v3602_v24 = vadd.f32 %v3585_v17, %v3577_v42  ;;  %v3578_v25 = vmul.f32 %v3564_v26, %v3553_v28 }
 0xcf0   :  { %v3604_v31 = vadd.f32 %v3593_v45, %v3579_v29  ;;  %v3580_v19 = vmul.f32 %v3572_v22, %v3555_v3 }
 0xcf1   :  { %v3603_v6 = vadd.f32 %v3589_v18, %v3578_v25 }
 0xcf2   :  { %v3605_v12 = vadd.f32 %v3597_v30, %v3580_v19 }
 0xcf3   :  { %v3610_v32 = vcombine.low %v3602_v24, %v3603_v6 }
 0xcf4   :  { %v3611_v23 = vcombine.low %v3604_v31, %v3605_v12 }
 0xcf5   :  { %v3618_v33 = vrot.slane %v3610_v32, %v5339_v56 }
 0xcf6   :  { %v3625_v39 = vrot.slane %v3611_v23, %v5339_v56 }
 0xcf8   :  { %v3626_v2 = vcombine.low %v3618_v33, %v3625_v39 }
 0xcfa   :  { %3628 = vst [vmem:[#allocation23] sm:$0xff] %v3626_v2 }
 0xcfb   :  { %4714 = shalt.err (!%p4711_p10)
}
 0xcfc   :  { %s5568_s1 = sld [smem:[#allocation35_spill]] }
 0xd02   :  { %s4715_s6 = scalar_lea.hbm %s5568_s1, 128 }
 0xd03   :  { %p4716_p11 = scmp.ne.s32.totalorder %s5568_s1, %s4715_s6  ;;  %p4719_p12 = scmp.lt.u32.totalorder %s4715_s6, %s5568_s1 }
 0xd05   :  { %p4721_p13 = pnand %p4719_p12, %p4716_p11 }
 0xd07   :  { %4724 = shalt.err (!%p4721_p13)
}
 0xd08   :  { %3638 = dma.vmem_to_hbm [thread:$0]  %s3636_s24, 128, %s5568_s1, [#allocation4]  }
 0xd09   :  { %4739 = dma.done.wait [#allocation4], 128  }
 0xd0a   :  { %4740 = vsyncadd [#allocation4], 4294967168 }
 0xd0b   :  { %3646 = vsyncpa [#allocation3], 1 }
 0xd0c   :  { %3647 = vsyncpa [#allocation6], 1 }
 0xd0d   :  { %3648 = vsyncpa [#allocation9], 1 }
 0xd0e   :  { %3649 = vsyncpa [#allocation12], 1 }
 0xd0f   :  { %3650 = vsyncpa [#allocation15], 1 }
 0xd10   :  { %3651 = vsyncpa [#allocation18], 1 }
 0xd11   :  { %3652 = vsyncpa [#allocation21], 1 }
 0xd12   :  { %3653 = vsyncpa [#allocation4], 1 }

// kernel: tpu_custom_call.1
= control target key start
LH: loop header
LB: loop body
LE: loop exit
PB: predicated region body
PF: predicated region fallthrough
CT: control target
= control target key end

     0   :  { %s5566_s0 = inlined_call_operand.hbm [shape: f32[8,64], index: 0, kind: input, shape index: {}]   ;;  %s5567_s1 = inlined_call_operand.hbm [shape: f32[16,16], index: 1, kind: input, shape index: {}]   ;;  %s5568_s2 = inlined_call_operand.vmem [shape: bf16[16,8], index: 2, kind: input, shape index: {}]   ;;  %s5569_s3 = inlined_call_operand.vmem [shape: bf16[16,8], index: 3, kind: input, shape index: {}]   ;;  %s5570_s4 = inlined_call_operand.hbm [shape: bf16[8,16], index: 4, kind: input, shape index: {}]   ;;  %s5571_s5 = inlined_call_operand.hbm [shape: bf16[2,8], index: 5, kind: input, shape index: {}]   ;;  %s5572_s6 = inlined_call_operand.hbm [shape: f32[64,384], index: 6, kind: input, shape index: {}]   ;;  %s5573_s7 = inlined_call_operand.hbm [shape: f32[16,64], index: 7, kind: input, shape index: {}]   ;;  %s5574_s8 = inlined_call_operand.vmem [shape: f32[64,2], index: 8, kind: input, shape index: {}]   ;;  %s5575_s9 = inlined_call_operand.hbm [shape: f32[1,64], index: 9, kind: input, shape index: {}]   ;;  %s5576_s10 = inlined_call_operand.hbm [shape: f32[2,256], index: 10, kind: input, shape index: {}]   ;;  %s5577_s11 = inlined_call_operand.hbm [shape: f32[256,1536], index: 11, kind: input, shape index: {}]   ;;  %s5578_s12 = inlined_call_operand.hbm [shape: f32[64,256], index: 12, kind: input, shape index: {}]   ;;  %s5579_s13 = inlined_call_operand.vmem [shape: f32[256,2], index: 13, kind: input, shape index: {}]   ;;  %s5580_s14 = inlined_call_operand.hbm [shape: f32[1,256], index: 14, kind: input, shape index: {}]   ;;  %s5581_s15 = inlined_call_operand.hbm [shape: f32[2,1024], index: 15, kind: input, shape index: {}]   ;;  %s5582_s16 = inlined_call_operand.hbm [shape: f32[1,512], index: 16, kind: input, shape index: {}]   ;;  %s5583_s17 = inlined_call_operand.hbm [shape: f32[1,512], index: 17, kind: input, shape index: {}]   ;;  %s5584_s18 = inlined_call_operand.hbm [shape: f32[2,512], index: 18, kind: output, shape index: {0}]   ;;  %s5585_s19 = inlined_call_operand.vmem [shape: f32[16,2], index: 19, kind: output, shape index: {1}]  }
   0x1   :  { %5592 = sst [smem:[#allocation35_spill]] %s5566_s0 }
   0x2   :  { %5593 = sst [smem:[#allocation36_spill]] %s5567_s1 }
   0x3   :  { %5594 = sst [smem:[#allocation37_spill]] %s5568_s2 }
   0x4   :  { %5595 = sst [smem:[#allocation38_spill]] %s5569_s3 }
   0x5   :  { %5596 = sst [smem:[#allocation39_spill]] %s5584_s18 }
   0x6   :  { %5597 = sst [smem:[#allocation40_spill]] %s5585_s19 }
   0x7   :  { %25 = vsyncpa [#allocation3], 0 }
   0x8   :  { %26 = vsyncpa [#allocation6], 0 }
   0x9   :  { %27 = vsyncpa [#allocation9], 0 }
   0xa   :  { %28 = vsyncpa [#allocation12], 0 }
   0xb   :  { %29 = vsyncpa [#allocation15], 0 }
   0xc   :  { %30 = vsyncpa [#allocation18], 0 }
   0xd   :  { %31 = vsyncpa [#allocation21], 0 }
   0xe   :  { %32 = vsyncpa [#allocation24], 0 }
   0xf   :  { %33 = vsyncpa [#allocation4], 0  ;;  %s4767_s0 = smov [#allocation5]   ;;  %s5598_s1 = sld [smem:[#allocation36_spill]] }
  0x10   :  { %s49_s30 = sshll.u32 %s4767_s0, 4  ;;  %s50_s30 = int_to_ptr.vmem [resolvable:$true] %s49_s30 }
  0x15   :  { %s4419_s22 = scalar_lea.hbm %s5598_s1, 256 }
  0x16   :  { %p4420_p0 = scmp.ne.s32.totalorder %s5598_s1, %s4419_s22  ;;  %p4423_p1 = scmp.lt.u32.totalorder %s4419_s22, %s5598_s1 }
  0x18   :  { %p4425_p2 = pnand %p4423_p1, %p4420_p0 }
  0x1a   :  { %4428 = shalt.err (!%p4425_p2)
}
  0x1b   :  { %s4429_s3 = scalar_lea.vmem %s50_s30, 256  ;;  %p4434_p4 = scmp.lt.s32.totalorder %s50_s30, %s50_s30 }
  0x1c   :  { %p4430_p3 = scmp.ne.s32.totalorder %s50_s30, %s4429_s3  ;;  %p4435_p5 = scmp.lt.s32.totalorder %s4429_s3, %s4429_s3 }
  0x1e   :  { %p4436_p6 = por %p4435_p5, %p4434_p4 }
  0x20   :  { %p4437_p7 = pnand %p4436_p6, %p4430_p3 }
  0x22   :  { %4440 = shalt.err (!%p4437_p7)
}
  0x23   :  { %s4768_s26 = smov 128   ;;  %s4769_s27 = smov 8  }
  0x24   :  { %55 = dma.hbm_to_vmem [thread:$0]  %s5598_s1, 256, %s50_s30, [#allocation6], %s4768_s26, %s4768_s26, %s4769_s27  }
  0x25   :  { %s4770_s0 = smov [#allocation8]   ;;  %s4771_s21 = smov [#allocation11]  }
  0x26   :  { %s76_s20 = sshll.u32 %s4770_s0, 4  ;;  %s97_s22 = sshll.u32 %s4771_s21, 4  ;;  %s77_s20 = int_to_ptr.vmem [resolvable:$true] %s76_s20  ;;  %s98_s22 = int_to_ptr.vmem [resolvable:$true] %s97_s22 }
  0x27   :  { %s4441_s24 = scalar_lea.hbm %s5571_s5, 16 }
  0x28   :  { %p4442_p8 = scmp.ne.s32.totalorder %s5571_s5, %s4441_s24  ;;  %p4445_p9 = scmp.lt.u32.totalorder %s4441_s24, %s5571_s5 }
  0x2a   :  { %p4447_p10 = pnand %p4445_p9, %p4442_p8 }
  0x2c   :  { %4450 = shalt.err (!%p4447_p10)
}
  0x2d   :  { %s4451_s30 = scalar_lea.vmem %s77_s20, 16  ;;  %s4455_s1 = scalar_lea.vmem %s77_s20, 32 }
  0x2e   :  { %p4452_p11 = scmp.ne.s32.totalorder %s77_s20, %s4451_s30  ;;  %p4456_p12 = scmp.lt.s32.totalorder %s77_s20, %s77_s20 }
  0x2f   :  { %p4457_p13 = scmp.lt.s32.totalorder %s4455_s1, %s4451_s30 }
  0x31   :  { %p4458_p0 = por %p4457_p13, %p4456_p12 }
  0x33   :  { %p4459_p1 = pnand %p4458_p0, %p4452_p11 }
  0x35   :  { %4462 = shalt.err (!%p4459_p1)
}
  0x36   :  { %79 = dma.hbm_to_vmem [thread:$0]  %s5571_s5, 16, %s77_s20, [#allocation9]  }
  0x37   :  { %s4463_s18 = scalar_lea.hbm %s5573_s7, 256 }
  0x38   :  { %p4464_p2 = scmp.ne.s32.totalorder %s5573_s7, %s4463_s18  ;;  %p4467_p3 = scmp.lt.u32.totalorder %s4463_s18, %s5573_s7 }
  0x3a   :  { %p4469_p4 = pnand %p4467_p3, %p4464_p2 }
  0x3c   :  { %4472 = shalt.err (!%p4469_p4)
}
  0x3d   :  { %s4473_s25 = scalar_lea.vmem %s98_s22, 256  ;;  %p4478_p6 = scmp.lt.s32.totalorder %s98_s22, %s98_s22 }
  0x3e   :  { %p4474_p5 = scmp.ne.s32.totalorder %s98_s22, %s4473_s25  ;;  %p4479_p7 = scmp.lt.s32.totalorder %s4473_s25, %s4473_s25 }
  0x40   :  { %p4480_p8 = por %p4479_p7, %p4478_p6 }
  0x42   :  { %p4481_p9 = pnand %p4480_p8, %p4474_p5 }
  0x44   :  { %4484 = shalt.err (!%p4481_p9)
}
  0x45   :  { %103 = dma.hbm_to_vmem [thread:$0]  %s5573_s7, 256, %s98_s22, [#allocation12], %s4768_s26, %s4768_s26, %s4769_s27  }
  0x46   :  { %s4772_s3 = smov [#allocation14]   ;;  %s4773_s1 = smov [#allocation17]  }
  0x47   :  { %s122_s30 = sshll.u32 %s4772_s3, 4  ;;  %s143_s28 = sshll.u32 %s4773_s1, 4  ;;  %s123_s30 = int_to_ptr.vmem [resolvable:$true] %s122_s30  ;;  %s144_s28 = int_to_ptr.vmem [resolvable:$true] %s143_s28 }
  0x48   :  { %s4485_s21 = scalar_lea.hbm %s5576_s10, 64 }
  0x49   :  { %p4486_p10 = scmp.ne.s32.totalorder %s5576_s10, %s4485_s21  ;;  %p4489_p11 = scmp.lt.u32.totalorder %s4485_s21, %s5576_s10 }
  0x4b   :  { %p4491_p12 = pnand %p4489_p11, %p4486_p10 }
  0x4d   :  { %4494 = shalt.err (!%p4491_p12)
}
  0x4e   :  { %s4495_s7 = scalar_lea.vmem %s123_s30, 64  ;;  %p4500_p0 = scmp.lt.s32.totalorder %s123_s30, %s123_s30 }
  0x4f   :  { %p4496_p13 = scmp.ne.s32.totalorder %s123_s30, %s4495_s7  ;;  %p4501_p1 = scmp.lt.s32.totalorder %s4495_s7, %s4495_s7 }
  0x51   :  { %p4502_p2 = por %p4501_p1, %p4500_p0 }
  0x53   :  { %p4503_p3 = pnand %p4502_p2, %p4496_p13 }
  0x55   :  { %4506 = shalt.err (!%p4503_p3)
}
  0x56   :  { %125 = dma.hbm_to_vmem [thread:$0]  %s5576_s10, 64, %s123_s30, [#allocation15]  }
  0x57   :  { %s4507_s25 = scalar_lea.hbm %s5578_s12, 2048 }
  0x58   :  { %p4508_p4 = scmp.ne.s32.totalorder %s5578_s12, %s4507_s25  ;;  %p4511_p5 = scmp.lt.u32.totalorder %s4507_s25, %s5578_s12 }
  0x5a   :  { %p4513_p6 = pnand %p4511_p5, %p4508_p4 }
  0x5c   :  { %4516 = shalt.err (!%p4513_p6)
}
  0x5d   :  { %s4517_s29 = scalar_lea.vmem %s144_s28, 2048  ;;  %p4522_p8 = scmp.lt.s32.totalorder %s144_s28, %s144_s28 }
  0x5e   :  { %p4518_p7 = scmp.ne.s32.totalorder %s144_s28, %s4517_s29  ;;  %p4523_p9 = scmp.lt.s32.totalorder %s4517_s29, %s4517_s29 }
  0x60   :  { %p4524_p10 = por %p4523_p9, %p4522_p8 }
  0x62   :  { %p4525_p11 = pnand %p4524_p10, %p4518_p7 }
  0x64   :  { %4528 = shalt.err (!%p4525_p11)
}
  0x65   :  { %s4774_s10 = smov 256   ;;  %s4775_s30 = smov 16  }
  0x66   :  { %149 = dma.hbm_to_vmem [thread:$0]  %s5578_s12, 2048, %s144_s28, [#allocation18], %s4774_s10, %s4774_s10, %s4775_s30  }
  0x67   :  { %s4776_s18 = smov [#allocation20]   ;;  %s4777_s2 = smov [#allocation2]  }
  0x68   :  { %s168_s19 = sshll.u32 %s4776_s18, 4  ;;  %s40_s23 = sshll.u32 %s4777_s2, 4  ;;  %s169_s19 = int_to_ptr.vmem [resolvable:$true] %s168_s19  ;;  %s41_s23 = int_to_ptr.vmem [resolvable:$true] %s40_s23 }
  0x69   :  { %s4529_s27 = scalar_lea.hbm %s5581_s15, 256 }
  0x6a   :  { %p4530_p12 = scmp.ne.s32.totalorder %s5581_s15, %s4529_s27  ;;  %p4533_p13 = scmp.lt.u32.totalorder %s4529_s27, %s5581_s15 }
  0x6c   :  { %p4535_p0 = pnand %p4533_p13, %p4530_p12 }
  0x6e   :  { %4538 = shalt.err (!%p4535_p0)
}
  0x6f   :  { %s4539_s12 = scalar_lea.vmem %s169_s19, 256  ;;  %p4544_p2 = scmp.lt.s32.totalorder %s169_s19, %s169_s19 }
  0x70   :  { %p4540_p1 = scmp.ne.s32.totalorder %s169_s19, %s4539_s12  ;;  %p4545_p3 = scmp.lt.s32.totalorder %s4539_s12, %s4539_s12 }
  0x72   :  { %p4546_p4 = por %p4545_p3, %p4544_p2 }
  0x74   :  { %p4547_p5 = pnand %p4546_p4, %p4540_p1 }
  0x76   :  { %4550 = shalt.err (!%p4547_p5)
}
  0x77   :  { %171 = dma.hbm_to_vmem [thread:$0]  %s5581_s15, 256, %s169_s19, [#allocation21]  }
  0x78   :  { %s5599_s29 = sld [smem:[#allocation35_spill]] }
  0x7e   :  { %s4551_s10 = scalar_lea.hbm %s5599_s29, 128 }
  0x7f   :  { %p4552_p6 = scmp.ne.s32.totalorder %s5599_s29, %s4551_s10  ;;  %p4555_p7 = scmp.lt.u32.totalorder %s4551_s10, %s5599_s29 }
  0x81   :  { %p4557_p8 = pnand %p4555_p7, %p4552_p6 }
  0x83   :  { %4560 = shalt.err (!%p4557_p8)
}
  0x84   :  { %s4561_s2 = scalar_lea.vmem %s41_s23, 128  ;;  %p4566_p10 = scmp.lt.s32.totalorder %s41_s23, %s41_s23 }
  0x85   :  { %p4562_p9 = scmp.ne.s32.totalorder %s41_s23, %s4561_s2  ;;  %p4567_p11 = scmp.lt.s32.totalorder %s4561_s2, %s4561_s2 }
  0x87   :  { %p4568_p12 = por %p4567_p11, %p4566_p10 }
  0x89   :  { %p4569_p13 = pnand %p4568_p12, %p4562_p9 }
  0x8b   :  { %4572 = shalt.err (!%p4569_p13)
}
  0x8c   :  { %43 = dma.hbm_to_vmem [thread:$0]  %s5599_s29, 128, %s41_s23, [#allocation3]  }
  0x8d   :  { %s4778_s7 = smov [#allocation7]   ;;  %s4779_s27 = smov [#allocation10]  }
  0x8e   :  { %s66_s26 = sshll.u32 %s4778_s7, 4  ;;  %s85_s22 = sshll.u32 %s4779_s27, 4  ;;  %s67_s26 = int_to_ptr.vmem [resolvable:$true] %s66_s26  ;;  %s86_s22 = int_to_ptr.vmem [resolvable:$true] %s85_s22 }
  0x8f   :  { %s4573_s5 = scalar_lea.hbm %s5570_s4, 64 }
  0x90   :  { %p4574_p0 = scmp.ne.s32.totalorder %s5570_s4, %s4573_s5  ;;  %p4577_p1 = scmp.lt.u32.totalorder %s4573_s5, %s5570_s4 }
  0x92   :  { %p4579_p2 = pnand %p4577_p1, %p4574_p0 }
  0x94   :  { %4582 = shalt.err (!%p4579_p2)
}
  0x95   :  { %s4583_s23 = scalar_lea.vmem %s67_s26, 64  ;;  %p4588_p4 = scmp.lt.s32.totalorder %s67_s26, %s67_s26 }
  0x96   :  { %p4584_p3 = scmp.ne.s32.totalorder %s67_s26, %s4583_s23  ;;  %p4589_p5 = scmp.lt.s32.totalorder %s4583_s23, %s4583_s23 }
  0x98   :  { %p4590_p6 = por %p4589_p5, %p4588_p4 }
  0x9a   :  { %p4591_p7 = pnand %p4590_p6, %p4584_p3 }
  0x9c   :  { %4594 = shalt.err (!%p4591_p7)
}
  0x9d   :  { %69 = dma.hbm_to_vmem [thread:$0]  %s5570_s4, 64, %s67_s26, [#allocation6]  }
  0x9e   :  { %s4595_s0 = scalar_lea.hbm %s5572_s6, 3072 }
  0x9f   :  { %p4596_p8 = scmp.ne.s32.totalorder %s5572_s6, %s4595_s0  ;;  %p4599_p9 = scmp.lt.u32.totalorder %s4595_s0, %s5572_s6 }
  0xa1   :  { %p4601_p10 = pnand %p4599_p9, %p4596_p8 }
  0xa3   :  { %4604 = shalt.err (!%p4601_p10)
}
  0xa4   :  { %s4605_s19 = scalar_lea.vmem %s86_s22, 3072  ;;  %p4610_p12 = scmp.lt.s32.totalorder %s86_s22, %s86_s22 }
  0xa5   :  { %p4606_p11 = scmp.ne.s32.totalorder %s86_s22, %s4605_s19  ;;  %p4611_p13 = scmp.lt.s32.totalorder %s4605_s19, %s4605_s19 }
  0xa7   :  { %p4612_p0 = por %p4611_p13, %p4610_p12 }
  0xa9   :  { %p4613_p1 = pnand %p4612_p0, %p4606_p11 }
  0xab   :  { %4616 = shalt.err (!%p4613_p1)
}
  0xac   :  { %s4780_s4 = smov 384   ;;  %s4781_s7 = smov 24  }
  0xad   :  { %91 = dma.hbm_to_vmem [thread:$0]  %s5572_s6, 3072, %s86_s22, [#allocation9], %s4780_s4, %s4780_s4, %s4781_s7  }
  0xae   :  { %s4782_s24 = smov [#allocation13]   ;;  %s4783_s5 = smov [#allocation16]  }
  0xaf   :  { %s112_s25 = sshll.u32 %s4782_s24, 4  ;;  %s131_s12 = sshll.u32 %s4783_s5, 4  ;;  %s113_s25 = int_to_ptr.vmem [resolvable:$true] %s112_s25  ;;  %s132_s12 = int_to_ptr.vmem [resolvable:$true] %s131_s12 }
  0xb0   :  { %s4617_s3 = scalar_lea.hbm %s5575_s9, 16 }
  0xb1   :  { %p4618_p2 = scmp.ne.s32.totalorder %s5575_s9, %s4617_s3  ;;  %p4621_p3 = scmp.lt.u32.totalorder %s4617_s3, %s5575_s9 }
  0xb3   :  { %p4623_p4 = pnand %p4621_p3, %p4618_p2 }
  0xb5   :  { %4626 = shalt.err (!%p4623_p4)
}
  0xb6   :  { %s4627_s6 = scalar_lea.vmem %s113_s25, 16  ;;  %s4631_s22 = scalar_lea.vmem %s113_s25, 32 }
  0xb7   :  { %p4628_p5 = scmp.ne.s32.totalorder %s113_s25, %s4627_s6  ;;  %p4632_p6 = scmp.lt.s32.totalorder %s113_s25, %s113_s25 }
  0xb8   :  { %p4633_p7 = scmp.lt.s32.totalorder %s4631_s22, %s4627_s6 }
  0xba   :  { %p4634_p8 = por %p4633_p7, %p4632_p6 }
  0xbc   :  { %p4635_p9 = pnand %p4634_p8, %p4628_p5 }
  0xbe   :  { %4638 = shalt.err (!%p4635_p9)
}
  0xbf   :  { %115 = dma.hbm_to_vmem [thread:$0]  %s5575_s9, 16, %s113_s25, [#allocation12]  }
  0xc0   :  { %s4639_s2 = scalar_lea.hbm %s5577_s11, 49152 }
  0xc1   :  { %p4640_p10 = scmp.ne.s32.totalorder %s5577_s11, %s4639_s2  ;;  %p4643_p11 = scmp.lt.u32.totalorder %s4639_s2, %s5577_s11 }
  0xc3   :  { %p4645_p12 = pnand %p4643_p11, %p4640_p10 }
  0xc5   :  { %4648 = shalt.err (!%p4645_p12)
}
  0xc6   :  { %s4649_s26 = scalar_lea.vmem %s132_s12, 49152  ;;  %p4654_p0 = scmp.lt.s32.totalorder %s132_s12, %s132_s12 }
  0xc7   :  { %p4650_p13 = scmp.ne.s32.totalorder %s132_s12, %s4649_s26  ;;  %p4655_p1 = scmp.lt.s32.totalorder %s4649_s26, %s4649_s26 }
  0xc9   :  { %p4656_p2 = por %p4655_p1, %p4654_p0 }
  0xcb   :  { %p4657_p3 = pnand %p4656_p2, %p4650_p13 }
  0xcd   :  { %4660 = shalt.err (!%p4657_p3)
}
  0xce   :  { %s4784_s9 = smov 1536   ;;  %s4785_s27 = smov 96  }
  0xcf   :  { %137 = dma.hbm_to_vmem [thread:$0]  %s5577_s11, 49152, %s132_s12, [#allocation15], %s4784_s9, %s4784_s9, %s4785_s27  }
  0xd0   :  { %s4786_s5 = smov [#allocation19]   ;;  %s4787_s20 = smov [#allocation22]  }
  0xd1   :  { %s158_s28 = sshll.u32 %s4786_s5, 4  ;;  %s178_s3 = sshll.u32 %s4787_s20, 4  ;;  %s159_s28 = int_to_ptr.vmem [resolvable:$true] %s158_s28  ;;  %s179_s3 = int_to_ptr.vmem [resolvable:$true] %s178_s3 }
  0xd2   :  { %s4661_s29 = scalar_lea.hbm %s5580_s14, 32 }
  0xd3   :  { %p4662_p4 = scmp.ne.s32.totalorder %s5580_s14, %s4661_s29  ;;  %p4665_p5 = scmp.lt.u32.totalorder %s4661_s29, %s5580_s14 }
  0xd5   :  { %p4667_p6 = pnand %p4665_p5, %p4662_p4 }
  0xd7   :  { %4670 = shalt.err (!%p4667_p6)
}
  0xd8   :  { %s4671_s11 = scalar_lea.vmem %s159_s28, 32  ;;  %p4676_p8 = scmp.lt.s32.totalorder %s159_s28, %s159_s28 }
  0xd9   :  { %p4672_p7 = scmp.ne.s32.totalorder %s159_s28, %s4671_s11  ;;  %p4677_p9 = scmp.lt.s32.totalorder %s4671_s11, %s4671_s11 }
  0xdb   :  { %p4678_p10 = por %p4677_p9, %p4676_p8 }
  0xdd   :  { %p4679_p11 = pnand %p4678_p10, %p4672_p7 }
  0xdf   :  { %4682 = shalt.err (!%p4679_p11)
}
  0xe0   :  { %161 = dma.hbm_to_vmem [thread:$0]  %s5580_s14, 32, %s159_s28, [#allocation18]  }
  0xe1   :  { %s4683_s2 = scalar_lea.hbm %s5582_s16, 64 }
  0xe2   :  { %p4684_p12 = scmp.ne.s32.totalorder %s5582_s16, %s4683_s2  ;;  %p4687_p13 = scmp.lt.u32.totalorder %s4683_s2, %s5582_s16 }
  0xe4   :  { %p4689_p0 = pnand %p4687_p13, %p4684_p12 }
  0xe6   :  { %4692 = shalt.err (!%p4689_p0)
}
  0xe7   :  { %s4693_s26 = scalar_lea.vmem %s179_s3, 64  ;;  %p4698_p2 = scmp.lt.s32.totalorder %s179_s3, %s179_s3 }
  0xe8   :  { %p4694_p1 = scmp.ne.s32.totalorder %s179_s3, %s4693_s26  ;;  %p4699_p3 = scmp.lt.s32.totalorder %s4693_s26, %s4693_s26 }
  0xea   :  { %p4700_p4 = por %p4699_p3, %p4698_p2 }
  0xec   :  { %p4701_p5 = pnand %p4700_p4, %p4694_p1 }
  0xee   :  { %4704 = shalt.err (!%p4701_p5)
}
  0xef   :  { %181 = dma.hbm_to_vmem [thread:$0]  %s5582_s16, 64, %s179_s3, [#allocation21]  }
  0xf0   :  { %s4788_s27 = smov [#allocation23]   ;;  %s4705_s28 = scalar_lea.hbm %s5583_s17, 64 }
  0xf1   :  { %s188_s24 = sshll.u32 %s4788_s27, 4  ;;  %p4706_p6 = scmp.ne.s32.totalorder %s5583_s17, %s4705_s28  ;;  %s189_s24 = int_to_ptr.vmem [resolvable:$true] %s188_s24 }
  0xf2   :  { %p4709_p7 = scmp.lt.u32.totalorder %s4705_s28, %s5583_s17 }
  0xf4   :  { %p4711_p8 = pnand %p4709_p7, %p4706_p6 }
  0xf6   :  { %4714 = shalt.err (!%p4711_p8)
}
  0xf7   :  { %s4715_s10 = scalar_lea.vmem %s189_s24, 64  ;;  %p4720_p10 = scmp.lt.s32.totalorder %s189_s24, %s189_s24 }
  0xf8   :  { %p4716_p9 = scmp.ne.s32.totalorder %s189_s24, %s4715_s10  ;;  %p4721_p11 = scmp.lt.s32.totalorder %s4715_s10, %s4715_s10 }
  0xfa   :  { %p4722_p12 = por %p4721_p11, %p4720_p10 }
  0xfc   :  { %p4723_p13 = pnand %p4722_p12, %p4716_p9 }
  0xfe   :  { %4726 = shalt.err (!%p4723_p13)
}
  0xff   :  { %191 = dma.hbm_to_vmem [thread:$0]  %s5583_s17, 64, %s189_s24, [#allocation24]  }
 0x100   :  { %4749 = dma.done.wait [#allocation3], 128  }
 0x101   :  { %4750 = vsyncadd [#allocation3], 4294967168 }
 0x102   :  { %4751 = dma.done.wait [#allocation6], 320  }
 0x103   :  { %4752 = vsyncadd [#allocation6], 4294966976 }
 0x104   :  { %4753 = dma.done.wait [#allocation9], 3088  }
 0x105   :  { %4754 = vsyncadd [#allocation9], 4294964208 }
 0x106   :  { %4755 = dma.done.wait [#allocation12], 272  }
 0x107   :  { %4756 = vsyncadd [#allocation12], 4294967024 }
 0x108   :  { %4757 = dma.done.wait [#allocation15], 49216  }
 0x109   :  { %4758 = vsyncadd [#allocation15], 4294918080 }
 0x10a   :  { %4759 = dma.done.wait [#allocation18], 2080  }
 0x10b   :  { %4760 = vsyncadd [#allocation18], 4294965216 }
 0x10c   :  { %4761 = dma.done.wait [#allocation21], 320  }
 0x10d   :  { %4762 = vsyncadd [#allocation21], 4294966976 }
 0x10e   :  { %4763 = dma.done.wait [#allocation24], 64  }
 0x10f   :  { %4764 = vsyncadd [#allocation24], 4294967232  ;;  %v4789_v0 = vmov 0.0|0.0   ;;  %vm4790_vm0 = vmmov 0   ;;  %v4791_v1 = vmov 0.0   ;;  %v246_v2 = vld [vmem:[#allocation10 + $0x10] sm:$0xff] }
 0x110   :  { %3891 = vmatprep.subr.bf16.mxu1 %v4789_v0  ;;  %3816 = vmatprep.mubr.msk.f32.mxu1 %vm4790_vm0, %v4791_v1  ;;  %v249_v3 = vld [vmem:[#allocation10 + $0x28] sm:$0xff]  ;;  %v252_v4 = vld [vmem:[#allocation10 + $0x40] sm:$0xff]  ;;  %v255_v6 = vld [vmem:[#allocation10 + $0x58] sm:$0xff]  ;;  %vm717_vm1 = vcmask 523264   ;;  %v4792_v39 = vmov 0   ;;  %vm874_vm2 = vcmask 1043456  }
 0x111   :  { %785 = vmatprep.mubr.f32.mxu0 %v4791_v1  ;;  %v3892_v5 = vpack.c.bf16 %v249_v3, %v246_v2  ;;  %v258_v7 = vld [vmem:[#allocation10 + $0x70] sm:$0xff]  ;;  %v261_v8 = vld [vmem:[#allocation10 + $0x88] sm:$0xff]  ;;  %v3895_v9 = vpack.c.bf16 %v255_v6, %v252_v4  ;;  %v248_v11 = vld [vmem:[#allocation10 + $0x20] sm:$0xff]  ;;  %s4793_s17 = smov 64   ;;  %s5600_s30 = sld [smem:[#allocation37_spill]]  ;;  %vm870_vm3 = vcmask 64512  }
 0x112   :  { %v245_v10 = vld [vmem:[#allocation10 + $0x8] sm:$0xff]  ;;  %v244_v12 = vld [vmem:[#allocation10] sm:$0xff]  ;;  %v247_v14 = vld [vmem:[#allocation10 + $0x18] sm:$0xff]  ;;  %v3898_v24 = vpack.c.bf16 %v261_v8, %v258_v7  ;;  %vm1023_vm4 = vcmask 130048   ;;  %s5601_s26 = sld [smem:[#allocation38_spill]]  ;;  %vm1235_vm7 = vcmask 1041408  }
 0x113   :  { %3893 = vmatpush3.bf16.msra.mxu1 %v3892_v5  ;;  %v3875_v13 = vpack.c.bf16 %v248_v11, %v245_v10  ;;  %v251_v15 = vld [vmem:[#allocation10 + $0x38] sm:$0xff]  ;;  %v254_v16 = vld [vmem:[#allocation10 + $0x50] sm:$0xff]  ;;  %v3877_v17 = vpack.c.bf16 %v247_v14, %v244_v12  ;;  %v253_v20 = vld [vmem:[#allocation10 + $0x48] sm:$0xff]  ;;  %vm1204_vm8 = vcmask 15360   ;;  %s5602_s22 = sld [smem:[#allocation40_spill]]  ;;  %s4795_s12 = smov [#allocation25]  }
 0x114   :  { %3894 = vmatprep.subr.bf16.mxu1 %v4789_v0  ;;  %v3879_v18 = vpack.c.bf16 %v254_v16, %v251_v15  ;;  %v250_v19 = vld [vmem:[#allocation10 + $0x30] sm:$0xff]  ;;  %v257_v21 = vld [vmem:[#allocation10 + $0x68] sm:$0xff]  ;;  %v264_v22 = vld [vmem:[#allocation10 + $0xa0] sm:$0xff]  ;;  %s3634_s0 = sshll.u32 %s4795_s12, 4  ;;  %s3635_s0 = int_to_ptr.vmem [resolvable:$true] %s3634_s0 }
 0x115   :  { %3876 = vmatprep.subr.bf16.mxu0 %v3875_v13  ;;  %v260_v23 = vld [vmem:[#allocation10 + $0x80] sm:$0xff]  ;;  %v267_v25 = vld [vmem:[#allocation10 + $0xb8] sm:$0xff]  ;;  %v3881_v26 = vpack.c.bf16 %v253_v20, %v250_v19  ;;  %v266_v31 = vld [vmem:[#allocation10 + $0xb0] sm:$0xff]  ;;  %s4727_s21 = scalar_lea.vmem %s3635_s0, 128  ;;  %p4732_p1 = scmp.lt.s32.totalorder %s3635_s0, %s3635_s0 }
 0x116   :  { %3878 = vmatpush1.bf16.msra.mxu0 %v3877_v17  ;;  %v256_v27 = vld [vmem:[#allocation10 + $0x60] sm:$0xff]  ;;  %v259_v28 = vld [vmem:[#allocation10 + $0x78] sm:$0xff]  ;;  %v3883_v29 = vpack.c.bf16 %v260_v23, %v257_v21  ;;  %v3901_v32 = vpack.c.bf16 %v267_v25, %v264_v22  ;;  %v262_v35 = vld [vmem:[#allocation10 + $0x90] sm:$0xff]  ;;  %p4728_p0 = scmp.ne.s32.totalorder %s3635_s0, %s4727_s21  ;;  %p4733_p2 = scmp.lt.s32.totalorder %s4727_s21, %s4727_s21 }
 0x117   :  { %3896 = vmatpush3.bf16.msra.mxu1 %v3895_v9  ;;  %3880 = vmatprep.subr.bf16.mxu0 %v3879_v18  ;;  %v263_v30 = vld [vmem:[#allocation10 + $0x98] sm:$0xff]  ;;  %v3885_v33 = vpack.c.bf16 %v259_v28, %v256_v27  ;;  %v265_v36 = vld [vmem:[#allocation10 + $0xa8] sm:$0xff]  ;;  %v268_v45 = vld [vmem:[#allocation11] sm:$0xff] }
 0x118   :  { %3897 = vmatprep.subr.bf16.mxu1 %v4789_v0  ;;  %v3887_v34 = vpack.c.bf16 %v266_v31, %v263_v30  ;;  %v236_v37 = vld [vmem:[#allocation2] sm:$0xff]  ;;  %v3889_v38 = vpack.c.bf16 %v265_v36, %v262_v35  ;;  %v237_v53 = vld [vmem:[#allocation5] sm:$0xff]  ;;  %v238_v54 = vld [vmem:[#allocation5 + $0x8] sm:$0xff]  ;;  %p4734_p3 = por %p4733_p2, %p4732_p1 }
 0x119   :  { %v4392_v44 = vld [vmem:[%s5600_s30] sm:$0xff]   ;;  %v271_v56 = vld [vmem:[%s5574_s8 + $0x8] sm:$0xff]  ;;  %v272_v58 = vld [vmem:[%s5574_s8 + $0x10] sm:$0xff] }
 0x11a   :  { %3882 = vmatpush1.bf16.msra.mxu0 %v3881_v26  ;;  %v269_v46 = vld [vmem:[#allocation11 + $0x8] sm:$0xff]  ;;  %v273_v59 = vld [vmem:[%s5574_s8 + $0x18] sm:$0xff]  ;;  %v276_v4 = vld [vmem:[%s5574_s8 + $0x30] sm:$0xff]  ;;  %p4735_p4 = pnand %p4734_p3, %p4728_p0 }
 0x11b   :  { %3899 = vmatpush3.bf16.msra.mxu1 %v3898_v24  ;;  %3884 = vmatprep.subr.bf16.mxu0 %v3883_v29  ;;  %v3903_v51 = vpack.c.bf16 %v269_v46, %v268_v45  ;;  %v270_v55 = vld [vmem:[%s5574_s8] sm:$0xff]  ;;  %v3911_v60 = vpack.c.bf16 %v273_v59, %v272_v58  ;;  %v275_v2 = vld [vmem:[%s5574_s8 + $0x28] sm:$0xff]  ;;  %v277_v5 = vld [vmem:[%s5574_s8 + $0x38] sm:$0xff] }
 0x11c   :  { %3900 = vmatprep.subr.bf16.mxu1 %v4789_v0  ;;  %v3907_v57 = vpack.c.bf16 %v271_v56, %v270_v55  ;;  %v4393_v63 = vld [vmem:[%s5601_s26] sm:$0xff]   ;;  %v3919_v6 = vpack.c.bf16 %v277_v5, %v276_v4  ;;  %v3664_v14 = vld [vmem:[#allocation13] ss:$0 sm:$0xff]  ;;  %v316_v58 = vld [vmem:[#allocation16 + $0x120] sm:$0xff] }
 0x11d   :  { %v274_v0 = vld [vmem:[%s5574_s8 + $0x20] sm:$0xff]  ;;  %v5141_v26 = vld.sshfl [vmem:[#allocation14] sm:$0x33 pattern:$0x76325410] }
 0x11e   :  { %3886 = vmatpush1.bf16.msra.mxu0 %v3885_v33  ;;  %v3915_v3 = vpack.c.bf16 %v275_v2, %v274_v0  ;;  %v5145_v27 = vcombine.high %v5141_v26, %v5141_v26  ;;  %v317_v55 = vld [vmem:[#allocation16 + $0x128] sm:$0xff]  ;;  %v340_v0 = vld [vmem:[#allocation16 + $0x1e0] sm:$0xff] }
 0x11f   :  { %3902 = vmatpush3.bf16.msra.mxu1 %v3901_v32  ;;  %3888 = vmatprep.subr.bf16.mxu0 %v3887_v34  ;;  %v365_v4 = vld [vmem:[#allocation16 + $0x2a8] sm:$0xff] }
 0x120   :  { %3819 = vmatprep.subr.bf16.mxu1 %v4791_v1 }
 0x122   :  { %3817 = vmatmul.mubr.msk.f32.vlgmr.msra.gmra.mrb[0].mxu1 %vm717_vm1, %v236_v37  ;;  %3890 = vmatpush1.bf16.msra.mxu0 %v3889_v38 }
 0x123   :  { %3821 = vmatprep.mubr.msk.bf16.mxu1 %vm4790_vm0, %v4791_v1 }
 0x125   :  { %3654 = vmatmul.mubr.msk.f32.vlgmr.msra.gmra.mrb[0].mxu0 %vm717_vm1, %v236_v37 }
 0x126   :  { %916 = vmatprep.mubr.bf16.mxu0 %v4792_v39 }
 0x1f5   :  { %v858_v40 = vpop.f32.mrb[0].mxu1 }
 0x1f6   :  { %v864_v41 = vpack.c.bf16 %v858_v40, %v858_v40  ;;  %v3818_v42 = vpop.f32.mrb[1].mxu1 }
 0x1f8   :  { %v882_v43 = vsel %vm874_vm2, %v864_v41, 0  ;;  %974 = vrot.lane.b32.xlu0 %v864_v41, %s4793_s17  ;;  %v787_v47 = vpop.f32.mrb[0].mxu0 }
 0x1f9   :  { %3820 = vmatpush3.bf16.msra.mxu1 %v882_v43  ;;  %v862_v48 = vpack.c.bf16 %v787_v47, %v787_v47  ;;  %v789_v49 = vpop.f32.mrb[1].mxu0  ;;  %v5155_v47 = vld [vmem:[#allocation7] sm:$0xf] }
 0x1fa   :  { %3825 = vmatprep.subr.bf16.mxu1 %v4791_v1  ;;  %v863_v50 = vpack.c.bf16 %v789_v49, %v789_v49  ;;  %v293_v49 = vld [vmem:[#allocation16 + $0x68] sm:$0xff] }
 0x1fb   :  { %v876_v52 = vsel %vm874_vm2, %v862_v48, 0  ;;  %v281_v48 = vld [vmem:[#allocation16 + $0x8] sm:$0xff] }
 0x1fc   :  { %3822 = vmatmul.mubr.msk.bf16.vlgmr.msra.gmra.mrb[4].mxu1 %vm870_vm3, %v4392_v44  ;;  %3657 = vmatprep.subr.msk.bf16.mxu0 %vm874_vm2, %v863_v50  ;;  %v3923_v50 = vpack.c.bf16 %v293_v49, %v281_v48  ;;  %v497_v49 = vld [vmem:[#allocation16 + $0x6c8] sm:$0xff] }
 0x1fd   :  { %3827 = vmatprep.mubr.msk.bf16.mxu1 %vm4790_vm0, %v4791_v1  ;;  %885 = vmatpush1.bf16.msra.mxu0 %v876_v52  ;;  %v292_v52 = vld [vmem:[#allocation16 + $0x60] sm:$0xff] }
 0x1fe   :  { %3904 = vmatprep.subr.bf16.mxu0 %v3903_v51 }
 0x200   :  { %3658 = vmatmul.mubr.msk.bf16.vlgmr.msra.gmra.mrb[4].mxu0 %vm870_vm3, %v4392_v44 }
 0x201   :  { %3906 = vmatpush3.bf16.msra.mxu0 %v3903_v51  ;;  %3835 = vmatprep.mubr.msk.f32.mxu0 %vm1023_vm4, %v237_v53  ;;  %v280_v51 = vld [vmem:[#allocation16] sm:$0xff] }
 0x202   :  { %3908 = vmatprep.subr.bf16.mxu0 %v3907_v57  ;;  %v3925_v53 = vpack.c.bf16 %v292_v52, %v280_v51  ;;  %v496_v52 = vld [vmem:[#allocation16 + $0x6c0] sm:$0xff] }
 0x208   :  { %3836 = vmatmul.mubr.msk.f32.vlgmr.msra.gmra.mrb[2].mxu0 %vm1023_vm4, %v238_v54  ;;  %v305_v54 = vld [vmem:[#allocation16 + $0xc8] sm:$0xff] }
 0x209   :  { %3910 = vmatpush3.bf16.msra.mxu0 %v3907_v57  ;;  %v3927_v56 = vpack.c.bf16 %v317_v55, %v305_v54  ;;  %v304_v57 = vld [vmem:[#allocation16 + $0xc0] sm:$0xff]  ;;  %v521_v55 = vld [vmem:[#allocation16 + $0x788] sm:$0xff] }
 0x20a   :  { %3912 = vmatprep.subr.bf16.mxu0 %v3911_v60  ;;  %v3929_v59 = vpack.c.bf16 %v316_v58, %v304_v57  ;;  %v520_v58 = vld [vmem:[#allocation16 + $0x780] sm:$0xff] }
 0x20d   :  { %3914 = vmatpush3.bf16.msra.mxu0 %v3911_v60  ;;  %v329_v60 = vld [vmem:[#allocation16 + $0x188] sm:$0xff] }
 0x20e   :  { %3916 = vmatprep.subr.bf16.mxu0 %v3915_v3 }
 0x211   :  { %3918 = vmatpush3.bf16.msra.mxu0 %v3915_v3  ;;  %v353_v3 = vld [vmem:[#allocation16 + $0x248] sm:$0xff] }
 0x212   :  { %3920 = vmatprep.subr.bf16.mxu0 %v3919_v6  ;;  %v3935_v5 = vpack.c.bf16 %v365_v4, %v353_v3  ;;  %v569_v4 = vld [vmem:[#allocation16 + $0x908] sm:$0xff] }
 0x215   :  { %3922 = vmatpush3.bf16.msra.mxu0 %v3919_v6  ;;  %v352_v6 = vld [vmem:[#allocation16 + $0x240] sm:$0xff] }
 0x216   :  { %3857 = vmatprep.subr.bf16.mxu0 %v4791_v1 }
 0x26a   :  { %v975_v61 = vpop.permute.xlu0 %974 }
 0x26b   :  { %v980_v62 = vsel %vm874_vm2, %v975_v61, 0  ;;  %v341_v61 = vld [vmem:[#allocation16 + $0x1e8] sm:$0xff] }
 0x26c   :  { %3826 = vmatpush3.bf16.msra.mxu1 %v980_v62  ;;  %v3931_v62 = vpack.c.bf16 %v341_v61, %v329_v60  ;;  %v545_v61 = vld [vmem:[#allocation16 + $0x848] sm:$0xff] }
 0x26d   :  { %3668 = vmatprep.subr.msk.mxu1 %vm1235_vm7, %v5145_v27 }
 0x26f   :  { %3828 = vmatmul.mubr.msk.bf16.vlgmr.msra.gmra.mrb[4].mxu1 %vm870_vm3, %v4393_v63  ;;  %v328_v63 = vld [vmem:[#allocation16 + $0x180] sm:$0xff] }
 0x270   :  { %1304 = vmatprep.mubr.f32.mxu1 %v4791_v1  ;;  %3669 = vmatpush1.msk.msra.mxu1 %vm1235_vm7, %v5141_v26  ;;  %v3933_v2 = vpack.c.bf16 %v340_v0, %v328_v63  ;;  %v544_v0 = vld [vmem:[#allocation16 + $0x840] sm:$0xff] }
 0x2d3   :  { %v5123_v7 = vpop.f32.mrb[4].mxu0 }
 0x2d4   :  { %v5125_v8 = vpop.f32.mrb[5].mxu0 }
 0x2d5   :  { %v5127_v9 = vpop.f32.mrb[6].mxu0 }
 0x2d6   :  { %v5129_v10 = vpop.f32.mrb[7].mxu0 }
 0x2db   :  { %v3837_v11 = vpop.f32.mrb[2].mxu0 }
 0x2dc   :  { %v1096_v12 = vpop.f32.mrb[3].mxu0 }
 0x342   :  { %v1016_v13 = vpop.f32.mrb[4].mxu1 }
 0x343   :  { %v1107_v15 = vadd.f32 %v1096_v12, %v1016_v13  ;;  %v3829_v16 = vpop.f32.mrb[5].mxu1  ;;  %v377_v13 = vld [vmem:[#allocation16 + $0x308] sm:$0xff] }
 0x344   :  { %v1019_v17 = vpop.f32.mrb[6].mxu1  ;;  %v376_v16 = vld [vmem:[#allocation16 + $0x300] sm:$0xff] }
 0x345   :  { %v1115_v18 = vadd.f32 %v3664_v14, %v1107_v15  ;;  %v1108_v19 = vadd.f32 %v3837_v11, %v1019_v17  ;;  %v3830_v20 = vpop.f32.mrb[7].mxu1  ;;  %v364_v11 = vld [vmem:[#allocation16 + $0x2a0] sm:$0xff] }
 0x346   :  { %v3937_v12 = vpack.c.bf16 %v364_v11, %v352_v6  ;;  %v388_v17 = vld [vmem:[#allocation16 + $0x360] sm:$0xff]  ;;  %v413_v20 = vld [vmem:[#allocation16 + $0x428] sm:$0xff] }
 0x347   :  { %v1119_v21 = vmul.f32 0.01, %v1115_v18  ;;  %v1116_v22 = vadd.f32 %v3664_v14, %v1108_v19  ;;  %vm1117_vm5 = vcmp.gt.f32.partialorder %v1115_v18, 0.0  ;;  %v389_v14 = vld [vmem:[#allocation16 + $0x368] sm:$0xff]  ;;  %v568_v11 = vld [vmem:[#allocation16 + $0x900] sm:$0xff] }
 0x348   :  { %v3939_v15 = vpack.c.bf16 %v389_v14, %v377_v13  ;;  %v401_v19 = vld [vmem:[#allocation16 + $0x3c8] sm:$0xff] }
 0x349   :  { %vm1118_vm6 = vcmp.gt.f32.partialorder %v1116_v22, 0.0  ;;  %v1120_v23 = vmul.f32 0.01, %v1116_v22  ;;  %v5131_v24 = vsel %vm1117_vm5, %v1115_v18, %v1119_v21  ;;  %v3941_v18 = vpack.c.bf16 %v388_v17, %v376_v16  ;;  %v593_v14 = vld [vmem:[#allocation16 + $0x9c8] sm:$0xff] }
 0x34a   :  { %3854 = vmatprep.mubr.msk.f32.mxu0 %vm717_vm1, %v5131_v24  ;;  %v3943_v21 = vpack.c.bf16 %v413_v20, %v401_v19 }
 0x34b   :  { %v5135_v25 = vsel %vm1118_vm6, %v1116_v22, %v1120_v23  ;;  %v400_v22 = vld [vmem:[#allocation16 + $0x3c0] sm:$0xff] }
 0x34c   :  { %3855 = vmatmul.mubr.msk.f32.vlgmr.msra.gmra.mrb[8].mxu0 %vm717_vm1, %v5135_v25  ;;  %v412_v23 = vld [vmem:[#allocation16 + $0x420] sm:$0xff] }
 0x34d   :  { %3859 = vmatprep.mubr.msk.bf16.mxu0 %vm4790_vm0, %v4791_v1 }
 0x41f   :  { %v3856_v28 = vpop.f32.mrb[8].mxu0 }
 0x420   :  { %v1206_v29 = vsel %vm1204_vm8, %v3856_v28, -inf  ;;  %v1195_v30 = vpop.f32.mrb[9].mxu0 }
 0x421   :  { %v1205_v31 = vsel %vm1204_vm8, %v1195_v30, -inf }
 0x422   :  { %v1207_v32 = vmax.f32 %v1205_v31, %v1206_v29  ;;  %v425_v29 = vld [vmem:[#allocation16 + $0x488] sm:$0xff] }
 0x424   :  { %v1208_v33 = vrot.slane %v1207_v32, 4 }
 0x426   :  { %v1209_v34 = vmax.f32 %v1207_v32, %v1208_v33  ;;  %v424_v32 = vld [vmem:[#allocation16 + $0x480] sm:$0xff] }
 0x427   :  { %v436_v33 = vld [vmem:[#allocation16 + $0x4e0] sm:$0xff] }
 0x428   :  { %v1210_v35 = vrot.slane %v1209_v34, 2 }
 0x42a   :  { %v1211_v36 = vmax.f32 %v1209_v34, %v1210_v35  ;;  %v3949_v34 = vpack.c.bf16 %v436_v33, %v424_v32  ;;  %v449_v35 = vld [vmem:[#allocation16 + $0x548] sm:$0xff] }
 0x42c   :  { %v1212_v37 = vrot.slane %v1211_v36, 1 }
 0x42e   :  { %v1213_v38 = vmax.f32 %v1211_v36, %v1212_v37  ;;  %v461_v36 = vld [vmem:[#allocation16 + $0x5a8] sm:$0xff] }
 0x42f   :  { %v3951_v37 = vpack.c.bf16 %v461_v36, %v449_v35  ;;  %v283_v36 = vld [vmem:[#allocation16 + $0x18] sm:$0xff] }
 0x430   :  { %v1214_v40 = vsub.f32 %v1195_v30, %v1213_v38  ;;  %v1215_v41 = vsub.f32 %v3856_v28, %v1213_v38  ;;  %v3945_v28 = vpack.c.bf16 %v412_v23, %v400_v22  ;;  %v437_v30 = vld [vmem:[#allocation16 + $0x4e8] sm:$0xff]  ;;  %v448_v38 = vld [vmem:[#allocation16 + $0x540] sm:$0xff] }
 0x431   :  { %v3947_v31 = vpack.c.bf16 %v437_v30, %v425_v29 }
 0x432   :  { %v1216_v42 = vmul.f32 1.442695, %v1214_v40  ;;  %v1218_v43 = vmul.f32 1.442695, %v1215_v41  ;;  %v460_v40 = vld [vmem:[#allocation16 + $0x5a0] sm:$0xff] }
 0x433   :  { %v3953_v41 = vpack.c.bf16 %v460_v40, %v448_v38  ;;  %v319_v38 = vld [vmem:[#allocation16 + $0x138] sm:$0xff] }
 0x434   :  { %4396 = vpow2.f32 %v1216_v42  ;;  %v473_v42 = vld [vmem:[#allocation16 + $0x608] sm:$0xff] }
 0x435   :  { %4398 = vpow2.f32 %v1218_v43  ;;  %v485_v43 = vld [vmem:[#allocation16 + $0x668] sm:$0xff] }
 0x43e   :  { %v4397_v44 = vpop.eup %4396 }
 0x43f   :  { %v4399_v45 = vpop.eup %4398  ;;  %3670 = vmatmul.mubr.msk.f32.vlgmr.msra.gmra.mrb[2].mxu1 %vm1204_vm8, %v4397_v44 }
 0x440   :  { %v1323_v46 = vpack.c.bf16 %v4399_v45, %v4397_v44  ;;  %1310 = vmatprep.mubr.f32.mxu1 %v4791_v1  ;;  %v3955_v44 = vpack.c.bf16 %v485_v43, %v473_v42  ;;  %v306_v43 = vld [vmem:[#allocation16 + $0xd0] sm:$0xff] }
 0x442   :  { %3858 = vmatpush3.bf16.msra.mxu0 %v1323_v46  ;;  %v484_v46 = vld [vmem:[#allocation16 + $0x660] sm:$0xff] }
 0x443   :  { %3671 = vmatmul.mubr.msk.f32.gmra.mrb[8].mxu1 %vm1204_vm8, %v4399_v45  ;;  %3924 = vmatprep.subr.bf16.mxu0 %v3923_v50  ;;  %v472_v45 = vld [vmem:[#allocation16 + $0x600] sm:$0xff]  ;;  %v509_v50 = vld [vmem:[#allocation16 + $0x728] sm:$0xff] }
 0x444   :  { %1359 = vmatprep.mubr.bf16.mxu1 %v4792_v39  ;;  %v3957_v48 = vpack.c.bf16 %v484_v46, %v472_v45  ;;  %v3959_v51 = vpack.c.bf16 %v509_v50, %v497_v49  ;;  %v343_v45 = vld [vmem:[#allocation16 + $0x1f8] sm:$0xff]  ;;  %v330_v46 = vld [vmem:[#allocation16 + $0x190] sm:$0xff] }
 0x445   :  { %3860 = vmatmul.mubr.msk.bf16.vlgmr.msra.gmra.mrb[12].mxu0 %vm1023_vm4, %v5155_v47  ;;  %v355_v49 = vld [vmem:[#allocation16 + $0x258] sm:$0xff] }
 0x446   :  { %3926 = vmatpush1.bf16.msra.mxu0 %v3925_v53  ;;  %v508_v53 = vld [vmem:[#allocation16 + $0x720] sm:$0xff]  ;;  %v367_v50 = vld [vmem:[#allocation16 + $0x2b8] sm:$0xff] }
 0x447   :  { %3928 = vmatprep.subr.bf16.mxu0 %v3927_v56  ;;  %v3961_v54 = vpack.c.bf16 %v508_v53, %v496_v52  ;;  %v533_v56 = vld [vmem:[#allocation16 + $0x7e8] sm:$0xff]  ;;  %v3999_v52 = vpack.c.bf16 %v367_v50, %v355_v49  ;;  %v354_v53 = vld [vmem:[#allocation16 + $0x250] sm:$0xff]  ;;  %v595_v49 = vld [vmem:[#allocation16 + $0x9d8] sm:$0xff] }
 0x448   :  { %v3963_v57 = vpack.c.bf16 %v533_v56, %v521_v55  ;;  %v379_v55 = vld [vmem:[#allocation16 + $0x318] sm:$0xff] }
 0x449   :  { %v391_v56 = vld [vmem:[#allocation16 + $0x378] sm:$0xff] }
 0x44a   :  { %3930 = vmatpush1.bf16.msra.mxu0 %v3929_v59  ;;  %v532_v59 = vld [vmem:[#allocation16 + $0x7e0] sm:$0xff]  ;;  %v607_v50 = vld [vmem:[#allocation16 + $0xa38] sm:$0xff] }
 0x44b   :  { %3932 = vmatprep.subr.bf16.mxu0 %v3931_v62  ;;  %v3965_v60 = vpack.c.bf16 %v532_v59, %v520_v58  ;;  %v557_v62 = vld [vmem:[#allocation16 + $0x8a8] sm:$0xff]  ;;  %v4003_v58 = vpack.c.bf16 %v391_v56, %v379_v55  ;;  %v378_v59 = vld [vmem:[#allocation16 + $0x310] sm:$0xff] }
 0x44c   :  { %v3967_v63 = vpack.c.bf16 %v557_v62, %v545_v61  ;;  %v403_v61 = vld [vmem:[#allocation16 + $0x3d8] sm:$0xff]  ;;  %v594_v55 = vld [vmem:[#allocation16 + $0x9d0] sm:$0xff] }
 0x44d   :  { %v415_v62 = vld [vmem:[#allocation16 + $0x438] sm:$0xff] }
 0x44e   :  { %3934 = vmatpush1.bf16.msra.mxu0 %v3933_v2  ;;  %v556_v2 = vld [vmem:[#allocation16 + $0x8a0] sm:$0xff] }
 0x44f   :  { %3936 = vmatprep.subr.bf16.mxu0 %v3935_v5  ;;  %v3969_v3 = vpack.c.bf16 %v556_v2, %v544_v0  ;;  %v581_v5 = vld [vmem:[#allocation16 + $0x968] sm:$0xff]  ;;  %v4007_v0 = vpack.c.bf16 %v415_v62, %v403_v61  ;;  %v402_v2 = vld [vmem:[#allocation16 + $0x3d0] sm:$0xff]  ;;  %v619_v61 = vld [vmem:[#allocation16 + $0xa98] sm:$0xff] }
 0x450   :  { %v3971_v6 = vpack.c.bf16 %v581_v5, %v569_v4  ;;  %v427_v4 = vld [vmem:[#allocation16 + $0x498] sm:$0xff] }
 0x451   :  { %v439_v5 = vld [vmem:[#allocation16 + $0x4f8] sm:$0xff] }
 0x452   :  { %3938 = vmatpush1.bf16.msra.mxu0 %v3937_v12  ;;  %v580_v12 = vld [vmem:[#allocation16 + $0x960] sm:$0xff] }
 0x453   :  { %3940 = vmatprep.subr.bf16.mxu0 %v3939_v15  ;;  %v3973_v13 = vpack.c.bf16 %v580_v12, %v568_v11  ;;  %v605_v15 = vld [vmem:[#allocation16 + $0xa28] sm:$0xff]  ;;  %v4011_v11 = vpack.c.bf16 %v439_v5, %v427_v4  ;;  %v426_v12 = vld [vmem:[#allocation16 + $0x490] sm:$0xff] }
 0x454   :  { %v3975_v16 = vpack.c.bf16 %v605_v15, %v593_v14  ;;  %v451_v14 = vld [vmem:[#allocation16 + $0x558] sm:$0xff]  ;;  %v618_v5 = vld [vmem:[#allocation16 + $0xa90] sm:$0xff] }
 0x455   :  { %v463_v15 = vld [vmem:[#allocation16 + $0x5b8] sm:$0xff] }
 0x456   :  { %3942 = vmatpush1.bf16.msra.mxu0 %v3941_v18 }
 0x457   :  { %3944 = vmatprep.subr.bf16.mxu0 %v3943_v21 }
 0x45a   :  { %3946 = vmatpush1.bf16.msra.mxu0 %v3945_v28 }
 0x45b   :  { %3948 = vmatprep.subr.bf16.mxu0 %v3947_v31 }
 0x45e   :  { %3950 = vmatpush1.bf16.msra.mxu0 %v3949_v34 }
 0x45f   :  { %3952 = vmatprep.subr.bf16.mxu0 %v3951_v37  ;;  %v295_v37 = vld [vmem:[#allocation16 + $0x78] sm:$0xff] }
 0x462   :  { %3954 = vmatpush1.bf16.msra.mxu0 %v3953_v41 }
 0x463   :  { %3956 = vmatprep.subr.bf16.mxu0 %v3955_v44  ;;  %v318_v44 = vld [vmem:[#allocation16 + $0x130] sm:$0xff] }
 0x466   :  { %3958 = vmatpush1.bf16.msra.mxu0 %v3957_v48  ;;  %v342_v48 = vld [vmem:[#allocation16 + $0x1f0] sm:$0xff] }
 0x467   :  { %3960 = vmatprep.subr.bf16.mxu0 %v3959_v51  ;;  %v3997_v51 = vpack.c.bf16 %v342_v48, %v330_v46  ;;  %v570_v46 = vld [vmem:[#allocation16 + $0x910] sm:$0xff] }
 0x468   :  { %v582_v48 = vld [vmem:[#allocation16 + $0x970] sm:$0xff] }
 0x46a   :  { %3962 = vmatpush1.bf16.msra.mxu0 %v3961_v54  ;;  %v366_v54 = vld [vmem:[#allocation16 + $0x2b0] sm:$0xff] }
 0x46b   :  { %3964 = vmatprep.subr.bf16.mxu0 %v3963_v57  ;;  %v4001_v57 = vpack.c.bf16 %v366_v54, %v354_v53  ;;  %v592_v53 = vld [vmem:[#allocation16 + $0x9c0] sm:$0xff] }
 0x46c   :  { %v604_v54 = vld [vmem:[#allocation16 + $0xa20] sm:$0xff] }
 0x46d   :  { %v3977_v56 = vpack.c.bf16 %v604_v54, %v592_v53  ;;  %v345_v54 = vld [vmem:[#allocation16 + $0x208] sm:$0xff] }
 0x46e   :  { %3966 = vmatpush1.bf16.msra.mxu0 %v3965_v60  ;;  %v390_v60 = vld [vmem:[#allocation16 + $0x370] sm:$0xff] }
 0x46f   :  { %3968 = vmatprep.subr.bf16.mxu0 %v3967_v63  ;;  %v4005_v63 = vpack.c.bf16 %v390_v60, %v378_v59  ;;  %v617_v59 = vld [vmem:[#allocation16 + $0xa88] sm:$0xff] }
 0x470   :  { %v629_v60 = vld [vmem:[#allocation16 + $0xae8] sm:$0xff] }
 0x471   :  { %v3979_v62 = vpack.c.bf16 %v629_v60, %v617_v59  ;;  %v332_v59 = vld [vmem:[#allocation16 + $0x1a0] sm:$0xff] }
 0x472   :  { %3970 = vmatpush1.bf16.msra.mxu0 %v3969_v3  ;;  %v414_v3 = vld [vmem:[#allocation16 + $0x430] sm:$0xff]  ;;  %v344_v60 = vld [vmem:[#allocation16 + $0x200] sm:$0xff] }
 0x473   :  { %3972 = vmatprep.subr.bf16.mxu0 %v3971_v6  ;;  %v4009_v6 = vpack.c.bf16 %v414_v3, %v402_v2  ;;  %v628_v2 = vld [vmem:[#allocation16 + $0xae0] sm:$0xff] }
 0x476   :  { %3974 = vmatpush1.bf16.msra.mxu0 %v3973_v13  ;;  %v438_v13 = vld [vmem:[#allocation16 + $0x4f0] sm:$0xff] }
 0x477   :  { %3976 = vmatprep.subr.bf16.mxu0 %v3975_v16  ;;  %v4013_v16 = vpack.c.bf16 %v438_v13, %v426_v12  ;;  %v641_v12 = vld [vmem:[#allocation16 + $0xb48] sm:$0xff] }
 0x478   :  { %v653_v13 = vld [vmem:[#allocation16 + $0xba8] sm:$0xff] }
 0x47a   :  { %3978 = vmatpush1.bf16.msra.mxu0 %v3977_v56  ;;  %v347_v56 = vld [vmem:[#allocation16 + $0x218] sm:$0xff] }
 0x47b   :  { %3980 = vmatprep.subr.bf16.mxu0 %v3979_v62 }
 0x512   :  { %v1306_v17 = vpop.f32.mrb[2].mxu1 }
 0x513   :  { %v1317_v18 = vmul.f32 %v1306_v17, %v5123_v7  ;;  %v1308_v19 = vpop.f32.mrb[3].mxu1  ;;  %v3987_v7 = vpack.c.bf16 %v295_v37, %v283_v36  ;;  %v4015_v17 = vpack.c.bf16 %v463_v15, %v451_v14  ;;  %v523_v36 = vld [vmem:[#allocation16 + $0x798] sm:$0xff]  ;;  %v3983_v15 = vpack.c.bf16 %v653_v13, %v641_v12  ;;  %v356_v12 = vld [vmem:[#allocation16 + $0x260] sm:$0xff] }
 0x514   :  { %v1318_v20 = vmul.f32 %v1308_v19, %v5125_v8  ;;  %v282_v8 = vld [vmem:[#allocation16 + $0x10] sm:$0xff]  ;;  %v535_v37 = vld [vmem:[#allocation16 + $0x7f8] sm:$0xff]  ;;  %v368_v13 = vld [vmem:[#allocation16 + $0x2c0] sm:$0xff] }
 0x515   :  { %v462_v19 = vld [vmem:[#allocation16 + $0x5b0] sm:$0xff]  ;;  %v643_v14 = vld [vmem:[#allocation16 + $0xb58] sm:$0xff] }
 0x516   :  { %v1312_v21 = vpop.f32.mrb[8].mxu1 }
 0x517   :  { %v1319_v22 = vmul.f32 %v1312_v21, %v5127_v9  ;;  %v1314_v23 = vpop.f32.mrb[9].mxu1  ;;  %v294_v9 = vld [vmem:[#allocation16 + $0x70] sm:$0xff]  ;;  %v487_v21 = vld [vmem:[#allocation16 + $0x678] sm:$0xff] }
 0x518   :  { %v1320_v28 = vmul.f32 %v1314_v23, %v5129_v10  ;;  %v1402_v29 = vpop.f32.mrb[12].mxu0  ;;  %v307_v10 = vld [vmem:[#allocation16 + $0xd8] sm:$0xff]  ;;  %v3989_v41 = vpack.c.bf16 %v294_v9, %v282_v8  ;;  %v4027_v8 = vpack.c.bf16 %v535_v37, %v523_v36  ;;  %v522_v9 = vld [vmem:[#allocation16 + $0x790] sm:$0xff] }
 0x519   :  { %v1321_v30 = vpack.c.bf16 %v1319_v22, %v1317_v18  ;;  %v1408_v31 = vmax.f32 %v1402_v29, 1e-38  ;;  %v3861_v32 = vpop.f32.mrb[13].mxu0  ;;  %v3991_v42 = vpack.c.bf16 %v319_v38, %v307_v10  ;;  %v450_v18 = vld [vmem:[#allocation16 + $0x550] sm:$0xff]  ;;  %v547_v38 = vld [vmem:[#allocation16 + $0x858] sm:$0xff] }
 0x51a   :  { %v1322_v33 = vpack.c.bf16 %v1320_v28, %v1318_v20  ;;  %v1405_v34 = vpop.f32.mrb[14].mxu0  ;;  %v475_v20 = vld [vmem:[#allocation16 + $0x618] sm:$0xff]  ;;  %v4017_v22 = vpack.c.bf16 %v462_v19, %v450_v18  ;;  %v474_v28 = vld [vmem:[#allocation16 + $0x610] sm:$0xff]  ;;  %v652_v18 = vld [vmem:[#allocation16 + $0xba0] sm:$0xff] }
 0x51b   :  { %4400 = vrcp.f32 %v1408_v31  ;;  %v3862_v35 = vpop.f32.mrb[15].mxu0  ;;  %v4019_v23 = vpack.c.bf16 %v487_v21, %v475_v20  ;;  %v486_v29 = vld [vmem:[#allocation16 + $0x670] sm:$0xff]  ;;  %v511_v31 = vld [vmem:[#allocation16 + $0x738] sm:$0xff] }
 0x51c   :  { %1327 = vmatprep.subr.bf16.mxu1 %v1322_v33  ;;  %v4021_v32 = vpack.c.bf16 %v486_v29, %v474_v28  ;;  %v498_v34 = vld [vmem:[#allocation16 + $0x6d0] sm:$0xff]  ;;  %v285_v28 = vld [vmem:[#allocation16 + $0x28] sm:$0xff] }
 0x51d   :  { %1328 = vmatpush1.bf16.msra.mxu1 %v1321_v30  ;;  %v499_v30 = vld [vmem:[#allocation16 + $0x6d8] sm:$0xff]  ;;  %v510_v35 = vld [vmem:[#allocation16 + $0x730] sm:$0xff]  ;;  %v297_v29 = vld [vmem:[#allocation16 + $0x88] sm:$0xff] }
 0x51e   :  { %3674 = vmatprep.subr.msk.mxu1 %vm1235_vm7, %v5145_v27  ;;  %v331_v27 = vld [vmem:[#allocation16 + $0x198] sm:$0xff]  ;;  %v4023_v33 = vpack.c.bf16 %v511_v31, %v499_v30  ;;  %v534_v10 = vld [vmem:[#allocation16 + $0x7f0] sm:$0xff]  ;;  %v4051_v31 = vpack.c.bf16 %v297_v29, %v285_v28  ;;  %v380_v28 = vld [vmem:[#allocation16 + $0x320] sm:$0xff] }
 0x51f   :  { %v642_v21 = vld [vmem:[#allocation16 + $0xb50] sm:$0xff]  ;;  %v287_v30 = vld [vmem:[#allocation16 + $0x38] sm:$0xff]  ;;  %v392_v29 = vld [vmem:[#allocation16 + $0x380] sm:$0xff] }
 0x520   :  { %3672 = vmatmul.mubr.msk.bf16.vlgmr.msra.gmra.mrb[12].mxu1 %vm1023_vm4, %v5155_v47  ;;  %v3993_v47 = vpack.c.bf16 %v318_v44, %v306_v43  ;;  %v546_v43 = vld [vmem:[#allocation16 + $0x850] sm:$0xff] }
 0x521   :  { %3675 = vmatpush1.msk.msra.mxu1 %vm1235_vm7, %v5141_v26  ;;  %1477 = vmatprep.mubr.f32.mxu1 %v4791_v1  ;;  %v3995_v26 = vpack.c.bf16 %v343_v45, %v331_v27  ;;  %v558_v44 = vld [vmem:[#allocation16 + $0x8b0] sm:$0xff]  ;;  %v571_v27 = vld [vmem:[#allocation16 + $0x918] sm:$0xff] }
 0x522   :  { %3988 = vmatprep.subr.bf16.mxu1 %v3987_v7  ;;  %v4025_v7 = vpack.c.bf16 %v510_v35, %v498_v34  ;;  %v583_v45 = vld [vmem:[#allocation16 + $0x978] sm:$0xff] }
 0x525   :  { %v4401_v40 = vpop.eup %4400 }
 0x528   :  { %3676 = vmatmul.mubr.msk.f32.vlgmr.msra.gmra.mrb[10].mxu1 %vm1204_vm8, %v4401_v40  ;;  %v559_v40 = vld [vmem:[#allocation16 + $0x8b8] sm:$0xff] }
 0x529   :  { %3990 = vmatpush1.bf16.msra.mxu1 %v3989_v41  ;;  %v4029_v41 = vpack.c.bf16 %v534_v10, %v522_v9  ;;  %v286_v9 = vld [vmem:[#allocation16 + $0x30] sm:$0xff] }
 0x52a   :  { %3992 = vmatprep.subr.bf16.mxu1 %v3991_v42  ;;  %v4031_v42 = vpack.c.bf16 %v559_v40, %v547_v38  ;;  %v298_v10 = vld [vmem:[#allocation16 + $0x90] sm:$0xff]  ;;  %v309_v40 = vld [vmem:[#allocation16 + $0xe8] sm:$0xff] }
 0x52d   :  { %3994 = vmatpush1.bf16.msra.mxu1 %v3993_v47  ;;  %v4033_v47 = vpack.c.bf16 %v558_v44, %v546_v43  ;;  %v321_v43 = vld [vmem:[#allocation16 + $0x148] sm:$0xff]  ;;  %v311_v44 = vld [vmem:[#allocation16 + $0xf8] sm:$0xff] }
 0x52e   :  { %3996 = vmatprep.subr.bf16.mxu1 %v3995_v26  ;;  %v4035_v26 = vpack.c.bf16 %v583_v45, %v571_v27  ;;  %v323_v27 = vld [vmem:[#allocation16 + $0x158] sm:$0xff] }
 0x52f   :  { %v4119_v53 = vpack.c.bf16 %v323_v27, %v311_v44  ;;  %v429_v44 = vld [vmem:[#allocation16 + $0x4a8] sm:$0xff] }
 0x530   :  { %v441_v27 = vld [vmem:[#allocation16 + $0x508] sm:$0xff] }
 0x531   :  { %3998 = vmatpush1.bf16.msra.mxu1 %v3997_v51  ;;  %v4037_v51 = vpack.c.bf16 %v582_v48, %v570_v46  ;;  %v308_v46 = vld [vmem:[#allocation16 + $0xe0] sm:$0xff] }
 0x532   :  { %4000 = vmatprep.subr.bf16.mxu1 %v3999_v52  ;;  %v4039_v52 = vpack.c.bf16 %v607_v50, %v595_v49  ;;  %v320_v48 = vld [vmem:[#allocation16 + $0x140] sm:$0xff]  ;;  %v310_v49 = vld [vmem:[#allocation16 + $0xf0] sm:$0xff] }
 0x533   :  { %v322_v50 = vld [vmem:[#allocation16 + $0x150] sm:$0xff] }
 0x535   :  { %4002 = vmatpush1.bf16.msra.mxu1 %v4001_v57  ;;  %v606_v57 = vld [vmem:[#allocation16 + $0xa30] sm:$0xff] }
 0x536   :  { %4004 = vmatprep.subr.bf16.mxu1 %v4003_v58  ;;  %v4041_v58 = vpack.c.bf16 %v606_v57, %v594_v55  ;;  %v335_v55 = vld [vmem:[#allocation16 + $0x1b8] sm:$0xff]  ;;  %v4057_v57 = vpack.c.bf16 %v320_v48, %v308_v46 }
 0x537   :  { %v4123_v62 = vpack.c.bf16 %v347_v56, %v335_v55  ;;  %v453_v55 = vld [vmem:[#allocation16 + $0x568] sm:$0xff] }
 0x538   :  { %v465_v56 = vld [vmem:[#allocation16 + $0x5c8] sm:$0xff] }
 0x539   :  { %4006 = vmatpush1.bf16.msra.mxu1 %v4005_v63  ;;  %v631_v63 = vld [vmem:[#allocation16 + $0xaf8] sm:$0xff] }
 0x53a   :  { %4008 = vmatprep.subr.bf16.mxu1 %v4007_v0  ;;  %v616_v0 = vld [vmem:[#allocation16 + $0xa80] sm:$0xff]  ;;  %v4043_v3 = vpack.c.bf16 %v631_v63, %v619_v61  ;;  %v334_v63 = vld [vmem:[#allocation16 + $0x1b0] sm:$0xff] }
 0x53b   :  { %v3981_v4 = vpack.c.bf16 %v628_v2, %v616_v0  ;;  %v346_v0 = vld [vmem:[#allocation16 + $0x210] sm:$0xff]  ;;  %v357_v2 = vld [vmem:[#allocation16 + $0x268] sm:$0xff] }
 0x53d   :  { %4010 = vmatpush1.bf16.msra.mxu1 %v4009_v6  ;;  %v630_v6 = vld [vmem:[#allocation16 + $0xaf0] sm:$0xff]  ;;  %3982 = vmatpush1.bf16.msra.mxu0 %v3981_v4  ;;  %v359_v4 = vld [vmem:[#allocation16 + $0x278] sm:$0xff] }
 0x53e   :  { %4012 = vmatprep.subr.bf16.mxu1 %v4011_v11  ;;  %v4045_v11 = vpack.c.bf16 %v630_v6, %v618_v5  ;;  %3984 = vmatprep.subr.bf16.mxu0 %v3983_v15  ;;  %v371_v5 = vld [vmem:[#allocation16 + $0x2d8] sm:$0xff]  ;;  %v4061_v6 = vpack.c.bf16 %v344_v60, %v332_v59 }
 0x53f   :  { %v4127_v15 = vpack.c.bf16 %v371_v5, %v359_v4  ;;  %v477_v4 = vld [vmem:[#allocation16 + $0x628] sm:$0xff] }
 0x540   :  { %v489_v5 = vld [vmem:[#allocation16 + $0x688] sm:$0xff] }
 0x541   :  { %4014 = vmatpush1.bf16.msra.mxu1 %v4013_v16  ;;  %v655_v16 = vld [vmem:[#allocation16 + $0xbb8] sm:$0xff] }
 0x542   :  { %4016 = vmatprep.subr.bf16.mxu1 %v4015_v17  ;;  %v640_v17 = vld [vmem:[#allocation16 + $0xb40] sm:$0xff]  ;;  %v4047_v19 = vpack.c.bf16 %v655_v16, %v643_v14  ;;  %v358_v16 = vld [vmem:[#allocation16 + $0x270] sm:$0xff] }
 0x543   :  { %v3985_v20 = vpack.c.bf16 %v652_v18, %v640_v17  ;;  %v370_v17 = vld [vmem:[#allocation16 + $0x2d0] sm:$0xff]  ;;  %v381_v18 = vld [vmem:[#allocation16 + $0x328] sm:$0xff] }
 0x545   :  { %4018 = vmatpush1.bf16.msra.mxu1 %v4017_v22  ;;  %v654_v22 = vld [vmem:[#allocation16 + $0xbb0] sm:$0xff]  ;;  %3986 = vmatpush1.bf16.msra.mxu0 %v3985_v20  ;;  %v383_v20 = vld [vmem:[#allocation16 + $0x338] sm:$0xff] }
 0x546   :  { %4020 = vmatprep.subr.bf16.mxu1 %v4019_v23  ;;  %v4049_v23 = vpack.c.bf16 %v654_v22, %v642_v21  ;;  %4052 = vmatprep.subr.bf16.mxu0 %v4051_v31  ;;  %v395_v21 = vld [vmem:[#allocation16 + $0x398] sm:$0xff]  ;;  %v4065_v22 = vpack.c.bf16 %v368_v13, %v356_v12 }
 0x547   :  { %v4131_v31 = vpack.c.bf16 %v395_v21, %v383_v20  ;;  %v501_v20 = vld [vmem:[#allocation16 + $0x6e8] sm:$0xff] }
 0x548   :  { %v513_v21 = vld [vmem:[#allocation16 + $0x748] sm:$0xff] }
 0x549   :  { %4022 = vmatpush1.bf16.msra.mxu1 %v4021_v32  ;;  %v299_v32 = vld [vmem:[#allocation16 + $0x98] sm:$0xff] }
 0x54a   :  { %4024 = vmatprep.subr.bf16.mxu1 %v4023_v33  ;;  %v4115_v33 = vpack.c.bf16 %v299_v32, %v287_v30  ;;  %v382_v32 = vld [vmem:[#allocation16 + $0x330] sm:$0xff] }
 0x54d   :  { %4026 = vmatpush1.bf16.msra.mxu1 %v4025_v7  ;;  %v284_v7 = vld [vmem:[#allocation16 + $0x20] sm:$0xff] }
 0x54e   :  { %4028 = vmatprep.subr.bf16.mxu1 %v4027_v8  ;;  %v296_v8 = vld [vmem:[#allocation16 + $0x80] sm:$0xff] }
 0x551   :  { %4030 = vmatpush1.bf16.msra.mxu1 %v4029_v41 }
 0x552   :  { %4032 = vmatprep.subr.bf16.mxu1 %v4031_v42 }
 0x555   :  { %4034 = vmatpush1.bf16.msra.mxu1 %v4033_v47  ;;  %v4053_v47 = vpack.c.bf16 %v296_v8, %v284_v7  ;;  %v4069_v7 = vpack.c.bf16 %v392_v29, %v380_v28 }
 0x556   :  { %4036 = vmatprep.subr.bf16.mxu1 %v4035_v26  ;;  %v4117_v26 = vpack.c.bf16 %v298_v10, %v286_v9  ;;  %v404_v9 = vld [vmem:[#allocation16 + $0x3e0] sm:$0xff] }
 0x557   :  { %v416_v10 = vld [vmem:[#allocation16 + $0x440] sm:$0xff] }
 0x558   :  { %v4073_v46 = vpack.c.bf16 %v416_v10, %v404_v9 }
 0x559   :  { %4038 = vmatpush1.bf16.msra.mxu1 %v4037_v51  ;;  %v333_v51 = vld [vmem:[#allocation16 + $0x1a8] sm:$0xff] }
 0x55a   :  { %4040 = vmatprep.subr.bf16.mxu1 %v4039_v52  ;;  %v4055_v52 = vpack.c.bf16 %v321_v43, %v309_v40  ;;  %v4059_v61 = vpack.c.bf16 %v345_v54, %v333_v51  ;;  %v418_v43 = vld [vmem:[#allocation16 + $0x450] sm:$0xff]  ;;  %v4075_v51 = vpack.c.bf16 %v441_v27, %v429_v44 }
 0x55b   :  { %v442_v54 = vld [vmem:[#allocation16 + $0x510] sm:$0xff] }
 0x55c   :  { %v526_v44 = vld [vmem:[#allocation16 + $0x7b0] sm:$0xff] }
 0x55d   :  { %4042 = vmatpush1.bf16.msra.mxu1 %v4041_v58  ;;  %v4121_v58 = vpack.c.bf16 %v322_v50, %v310_v49  ;;  %v428_v49 = vld [vmem:[#allocation16 + $0x4a0] sm:$0xff]  ;;  %v538_v27 = vld [vmem:[#allocation16 + $0x810] sm:$0xff] }
 0x55e   :  { %4044 = vmatprep.subr.bf16.mxu1 %v4043_v3  ;;  %v369_v3 = vld [vmem:[#allocation16 + $0x2c8] sm:$0xff]  ;;  %v440_v50 = vld [vmem:[#allocation16 + $0x500] sm:$0xff] }
 0x55f   :  { %v4063_v14 = vpack.c.bf16 %v369_v3, %v357_v2  ;;  %v4077_v59 = vpack.c.bf16 %v440_v50, %v428_v49  ;;  %v454_v2 = vld [vmem:[#allocation16 + $0x570] sm:$0xff]  ;;  %v4157_v50 = vpack.c.bf16 %v538_v27, %v526_v44 }
 0x560   :  { %v466_v3 = vld [vmem:[#allocation16 + $0x5d0] sm:$0xff] }
 0x561   :  { %4046 = vmatpush1.bf16.msra.mxu1 %v4045_v11  ;;  %v4125_v11 = vpack.c.bf16 %v346_v0, %v334_v63  ;;  %v4079_v63 = vpack.c.bf16 %v465_v56, %v453_v55  ;;  %v4145_v13 = vpack.c.bf16 %v466_v3, %v454_v2  ;;  %v550_v55 = vld [vmem:[#allocation16 + $0x870] sm:$0xff] }
 0x562   :  { %4048 = vmatprep.subr.bf16.mxu1 %v4047_v19  ;;  %v393_v19 = vld [vmem:[#allocation16 + $0x388] sm:$0xff]  ;;  %v562_v56 = vld [vmem:[#allocation16 + $0x8d0] sm:$0xff] }
 0x563   :  { %v4067_v30 = vpack.c.bf16 %v393_v19, %v381_v18  ;;  %v478_v18 = vld [vmem:[#allocation16 + $0x630] sm:$0xff] }
 0x564   :  { %v490_v19 = vld [vmem:[#allocation16 + $0x690] sm:$0xff] }
 0x565   :  { %4050 = vmatpush1.bf16.msra.mxu1 %v4049_v23  ;;  %v4129_v23 = vpack.c.bf16 %v370_v17, %v358_v16  ;;  %v4083_v16 = vpack.c.bf16 %v489_v5, %v477_v4  ;;  %v4149_v29 = vpack.c.bf16 %v490_v19, %v478_v18  ;;  %v574_v4 = vld [vmem:[#allocation16 + $0x930] sm:$0xff] }
 0x566   :  { %4116 = vmatprep.subr.bf16.mxu1 %v4115_v33  ;;  %v394_v33 = vld [vmem:[#allocation16 + $0x390] sm:$0xff] }
 0x567   :  { %v4133_v8 = vpack.c.bf16 %v394_v33, %v382_v32  ;;  %v4087_v32 = vpack.c.bf16 %v513_v21, %v501_v20  ;;  %v586_v5 = vld [vmem:[#allocation16 + $0x990] sm:$0xff] }
 0x568   :  { %v598_v20 = vld [vmem:[#allocation16 + $0x9f0] sm:$0xff] }
 0x569   :  { %v610_v21 = vld [vmem:[#allocation16 + $0xa50] sm:$0xff] }
 0x5f3   :  { %v1361_v34 = vpop.f32.mrb[12].mxu1 }
 0x5f4   :  { %v1363_v35 = vpop.f32.mrb[13].mxu1 }
 0x5f5   :  { %v1365_v36 = vpop.f32.mrb[14].mxu1 }
 0x5f6   :  { %v1366_v37 = vpop.f32.mrb[15].mxu1  ;;  %v407_v36 = vld [vmem:[#allocation16 + $0x3f8] sm:$0xff] }
 0x5f7   :  { %v419_v37 = vld [vmem:[#allocation16 + $0x458] sm:$0xff] }
 0x5f8   :  { %v4135_v40 = vpack.c.bf16 %v419_v37, %v407_v36  ;;  %v525_v36 = vld [vmem:[#allocation16 + $0x7a8] sm:$0xff] }
 0x5f9   :  { %v537_v37 = vld [vmem:[#allocation16 + $0x808] sm:$0xff] }
 0x5fb   :  { %v1479_v38 = vpop.f32.mrb[10].mxu1 }
 0x5fc   :  { %v5173_v41 = vmul.f32 %v1479_v38, %v1361_v34  ;;  %v1481_v42 = vpop.f32.mrb[11].mxu1  ;;  %v405_v34 = vld [vmem:[#allocation16 + $0x3e8] sm:$0xff] }
 0x5fd   :  { %v5175_v45 = vmul.f32 %v1481_v42, %v1363_v35  ;;  %v417_v35 = vld [vmem:[#allocation16 + $0x448] sm:$0xff]  ;;  %v406_v42 = vld [vmem:[#allocation16 + $0x3f0] sm:$0xff] }
 0x5fe   :  { %v4071_v38 = vpack.c.bf16 %v417_v35, %v405_v34  ;;  %v4137_v48 = vpack.c.bf16 %v418_v43, %v406_v42  ;;  %v502_v34 = vld [vmem:[#allocation16 + $0x6f0] sm:$0xff]  ;;  %v4091_v42 = vpack.c.bf16 %v537_v37, %v525_v36 }
 0x5ff   :  { %1550 = vmatprep.mubr.f32.mxu0 %v5175_v45  ;;  %1621 = vmatprep.mubr.f32.mxu1 %v5175_v45  ;;  %v514_v35 = vld [vmem:[#allocation16 + $0x750] sm:$0xff] }
 0x600   :  { %1551 = vmatmul.mubr.f32.vlgmr.msra.gmra.mrb[10].mxu0 %v5173_v41  ;;  %1622 = vmatmul.mubr.f32.vlgmr.msra.gmra.mrb[16].mxu1 %v5173_v41  ;;  %v4153_v10 = vpack.c.bf16 %v514_v35, %v502_v34  ;;  %v622_v36 = vld [vmem:[#allocation16 + $0xab0] sm:$0xff] }
 0x601   :  { %4054 = vmatpush1.bf16.msra.mxu0 %v4053_v47  ;;  %4118 = vmatpush1.bf16.msra.mxu1 %v4117_v26  ;;  %v431_v47 = vld [vmem:[#allocation16 + $0x4b8] sm:$0xff]  ;;  %v634_v37 = vld [vmem:[#allocation16 + $0xb10] sm:$0xff] }
 0x602   :  { %1692 = vmatprep.mubr.f32.mxu0 %v5175_v45  ;;  %1763 = vmatprep.mubr.f32.mxu1 %v5175_v45  ;;  %v443_v26 = vld [vmem:[#allocation16 + $0x518] sm:$0xff] }
 0x603   :  { %4056 = vmatprep.subr.bf16.mxu0 %v4055_v52  ;;  %4120 = vmatprep.subr.bf16.mxu1 %v4119_v53  ;;  %v4139_v52 = vpack.c.bf16 %v443_v26, %v431_v47  ;;  %v430_v53 = vld [vmem:[#allocation16 + $0x4b0] sm:$0xff]  ;;  %v549_v47 = vld [vmem:[#allocation16 + $0x868] sm:$0xff] }
 0x604   :  { %v4141_v60 = vpack.c.bf16 %v442_v54, %v430_v53  ;;  %v561_v26 = vld [vmem:[#allocation16 + $0x8c8] sm:$0xff] }
 0x605   :  { %4058 = vmatpush1.bf16.msra.mxu0 %v4057_v57  ;;  %4122 = vmatpush1.bf16.msra.mxu1 %v4121_v58  ;;  %v455_v57 = vld [vmem:[#allocation16 + $0x578] sm:$0xff]  ;;  %v4095_v53 = vpack.c.bf16 %v561_v26, %v549_v47  ;;  %v646_v47 = vld [vmem:[#allocation16 + $0xb70] sm:$0xff] }
 0x606   :  { %4060 = vmatprep.subr.bf16.mxu0 %v4059_v61  ;;  %4124 = vmatprep.subr.bf16.mxu1 %v4123_v62  ;;  %v467_v58 = vld [vmem:[#allocation16 + $0x5d8] sm:$0xff]  ;;  %v452_v61 = vld [vmem:[#allocation16 + $0x560] sm:$0xff]  ;;  %v658_v26 = vld [vmem:[#allocation16 + $0xbd0] sm:$0xff] }
 0x607   :  { %v464_v62 = vld [vmem:[#allocation16 + $0x5c0] sm:$0xff]  ;;  %v4143_v0 = vpack.c.bf16 %v467_v58, %v455_v57  ;;  %v573_v57 = vld [vmem:[#allocation16 + $0x928] sm:$0xff] }
 0x608   :  { %v4081_v12 = vpack.c.bf16 %v464_v62, %v452_v61  ;;  %v585_v58 = vld [vmem:[#allocation16 + $0x988] sm:$0xff]  ;;  %v4161_v62 = vpack.c.bf16 %v562_v56, %v550_v55  ;;  %v288_v55 = vld [vmem:[#allocation16 + $0x40] sm:$0xff] }
 0x609   :  { %4062 = vmatpush1.bf16.msra.mxu0 %v4061_v6  ;;  %4126 = vmatpush1.bf16.msra.mxu1 %v4125_v11  ;;  %v479_v6 = vld [vmem:[#allocation16 + $0x638] sm:$0xff]  ;;  %v4099_v2 = vpack.c.bf16 %v585_v58, %v573_v57  ;;  %v300_v56 = vld [vmem:[#allocation16 + $0xa0] sm:$0xff]  ;;  %v290_v57 = vld [vmem:[#allocation16 + $0x50] sm:$0xff] }
 0x60a   :  { %4064 = vmatprep.subr.bf16.mxu0 %v4063_v14  ;;  %4128 = vmatprep.subr.bf16.mxu1 %v4127_v15  ;;  %v491_v11 = vld [vmem:[#allocation16 + $0x698] sm:$0xff]  ;;  %v476_v14 = vld [vmem:[#allocation16 + $0x620] sm:$0xff]  ;;  %v302_v58 = vld [vmem:[#allocation16 + $0xb0] sm:$0xff] }
 0x60b   :  { %v488_v15 = vld [vmem:[#allocation16 + $0x680] sm:$0xff]  ;;  %v4147_v17 = vpack.c.bf16 %v491_v11, %v479_v6  ;;  %v597_v6 = vld [vmem:[#allocation16 + $0x9e8] sm:$0xff] }
 0x60c   :  { %v4085_v28 = vpack.c.bf16 %v488_v15, %v476_v14  ;;  %v609_v11 = vld [vmem:[#allocation16 + $0xa48] sm:$0xff]  ;;  %v4165_v15 = vpack.c.bf16 %v586_v5, %v574_v4  ;;  %v314_v4 = vld [vmem:[#allocation16 + $0x110] sm:$0xff] }
 0x60d   :  { %4066 = vmatpush1.bf16.msra.mxu0 %v4065_v22  ;;  %4130 = vmatpush1.bf16.msra.mxu1 %v4129_v23  ;;  %v503_v22 = vld [vmem:[#allocation16 + $0x6f8] sm:$0xff]  ;;  %v4103_v18 = vpack.c.bf16 %v609_v11, %v597_v6  ;;  %v326_v11 = vld [vmem:[#allocation16 + $0x170] sm:$0xff] }
 0x60e   :  { %4068 = vmatprep.subr.bf16.mxu0 %v4067_v30  ;;  %4132 = vmatprep.subr.bf16.mxu1 %v4131_v31  ;;  %v515_v23 = vld [vmem:[#allocation16 + $0x758] sm:$0xff]  ;;  %v500_v30 = vld [vmem:[#allocation16 + $0x6e0] sm:$0xff] }
 0x60f   :  { %v512_v31 = vld [vmem:[#allocation16 + $0x740] sm:$0xff]  ;;  %v4151_v33 = vpack.c.bf16 %v515_v23, %v503_v22  ;;  %v621_v22 = vld [vmem:[#allocation16 + $0xaa8] sm:$0xff] }
 0x610   :  { %v4089_v9 = vpack.c.bf16 %v512_v31, %v500_v30  ;;  %v633_v23 = vld [vmem:[#allocation16 + $0xb08] sm:$0xff]  ;;  %v4169_v31 = vpack.c.bf16 %v610_v21, %v598_v20  ;;  %v348_v20 = vld [vmem:[#allocation16 + $0x220] sm:$0xff]  ;;  %v338_v21 = vld [vmem:[#allocation16 + $0x1d0] sm:$0xff] }
 0x611   :  { %4070 = vmatpush1.bf16.msra.mxu0 %v4069_v7  ;;  %4134 = vmatpush1.bf16.msra.mxu1 %v4133_v8  ;;  %v527_v7 = vld [vmem:[#allocation16 + $0x7b8] sm:$0xff]  ;;  %v4107_v34 = vpack.c.bf16 %v633_v23, %v621_v22  ;;  %v350_v23 = vld [vmem:[#allocation16 + $0x230] sm:$0xff] }
 0x612   :  { %4072 = vmatprep.subr.bf16.mxu0 %v4071_v38  ;;  %4136 = vmatprep.subr.bf16.mxu1 %v4135_v40  ;;  %v539_v8 = vld [vmem:[#allocation16 + $0x818] sm:$0xff]  ;;  %v524_v38 = vld [vmem:[#allocation16 + $0x7a0] sm:$0xff] }
 0x613   :  { %v536_v40 = vld [vmem:[#allocation16 + $0x800] sm:$0xff]  ;;  %v4155_v43 = vpack.c.bf16 %v539_v8, %v527_v7  ;;  %v645_v7 = vld [vmem:[#allocation16 + $0xb68] sm:$0xff] }
 0x614   :  { %v4093_v49 = vpack.c.bf16 %v536_v40, %v524_v38  ;;  %v657_v8 = vld [vmem:[#allocation16 + $0xbc8] sm:$0xff]  ;;  %v4173_v40 = vpack.c.bf16 %v634_v37, %v622_v36  ;;  %v362_v36 = vld [vmem:[#allocation16 + $0x290] sm:$0xff] }
 0x615   :  { %4074 = vmatpush1.bf16.msra.mxu0 %v4073_v46  ;;  %4138 = vmatpush1.bf16.msra.mxu1 %v4137_v48  ;;  %v551_v46 = vld [vmem:[#allocation16 + $0x878] sm:$0xff]  ;;  %v4111_v44 = vpack.c.bf16 %v657_v8, %v645_v7  ;;  %v374_v7 = vld [vmem:[#allocation16 + $0x2f0] sm:$0xff]  ;;  %v385_v8 = vld [vmem:[#allocation16 + $0x348] sm:$0xff] }
 0x616   :  { %4076 = vmatprep.subr.bf16.mxu0 %v4075_v51  ;;  %4140 = vmatprep.subr.bf16.mxu1 %v4139_v52  ;;  %v563_v48 = vld [vmem:[#allocation16 + $0x8d8] sm:$0xff]  ;;  %v548_v51 = vld [vmem:[#allocation16 + $0x860] sm:$0xff] }
 0x617   :  { %v560_v52 = vld [vmem:[#allocation16 + $0x8c0] sm:$0xff]  ;;  %v4159_v54 = vpack.c.bf16 %v563_v48, %v551_v46  ;;  %v289_v46 = vld [vmem:[#allocation16 + $0x48] sm:$0xff] }
 0x618   :  { %v4097_v61 = vpack.c.bf16 %v560_v52, %v548_v51  ;;  %v301_v48 = vld [vmem:[#allocation16 + $0xa8] sm:$0xff]  ;;  %v4177_v52 = vpack.c.bf16 %v658_v26, %v646_v47  ;;  %v386_v47 = vld [vmem:[#allocation16 + $0x350] sm:$0xff] }
 0x619   :  { %4078 = vmatpush1.bf16.msra.mxu0 %v4077_v59  ;;  %4142 = vmatpush1.bf16.msra.mxu1 %v4141_v60  ;;  %v575_v59 = vld [vmem:[#allocation16 + $0x938] sm:$0xff] }
 0x61a   :  { %4080 = vmatprep.subr.bf16.mxu0 %v4079_v63  ;;  %4144 = vmatprep.subr.bf16.mxu1 %v4143_v0  ;;  %v587_v60 = vld [vmem:[#allocation16 + $0x998] sm:$0xff]  ;;  %v572_v63 = vld [vmem:[#allocation16 + $0x920] sm:$0xff] }
 0x61b   :  { %v584_v0 = vld [vmem:[#allocation16 + $0x980] sm:$0xff]  ;;  %v4163_v3 = vpack.c.bf16 %v587_v60, %v575_v59  ;;  %v313_v59 = vld [vmem:[#allocation16 + $0x108] sm:$0xff] }
 0x61c   :  { %v4101_v14 = vpack.c.bf16 %v584_v0, %v572_v63  ;;  %v325_v60 = vld [vmem:[#allocation16 + $0x168] sm:$0xff]  ;;  %v4181_v63 = vpack.c.bf16 %v300_v56, %v288_v55  ;;  %v4245_v0 = vpack.c.bf16 %v302_v58, %v290_v57  ;;  %v408_v55 = vld [vmem:[#allocation16 + $0x400] sm:$0xff]  ;;  %v410_v57 = vld [vmem:[#allocation16 + $0x410] sm:$0xff] }
 0x61d   :  { %4082 = vmatpush1.bf16.msra.mxu0 %v4081_v12  ;;  %4146 = vmatpush1.bf16.msra.mxu1 %v4145_v13  ;;  %v599_v12 = vld [vmem:[#allocation16 + $0x9f8] sm:$0xff]  ;;  %v4183_v5 = vpack.c.bf16 %v325_v60, %v313_v59  ;;  %v420_v56 = vld [vmem:[#allocation16 + $0x460] sm:$0xff]  ;;  %v422_v59 = vld [vmem:[#allocation16 + $0x470] sm:$0xff] }
 0x61e   :  { %4084 = vmatprep.subr.bf16.mxu0 %v4083_v16  ;;  %4148 = vmatprep.subr.bf16.mxu1 %v4147_v17  ;;  %v611_v13 = vld [vmem:[#allocation16 + $0xa58] sm:$0xff]  ;;  %v596_v16 = vld [vmem:[#allocation16 + $0x9e0] sm:$0xff]  ;;  %v433_v60 = vld [vmem:[#allocation16 + $0x4c8] sm:$0xff] }
 0x61f   :  { %v608_v17 = vld [vmem:[#allocation16 + $0xa40] sm:$0xff]  ;;  %v4167_v19 = vpack.c.bf16 %v611_v13, %v599_v12  ;;  %v337_v12 = vld [vmem:[#allocation16 + $0x1c8] sm:$0xff] }
 0x620   :  { %v4105_v30 = vpack.c.bf16 %v608_v17, %v596_v16  ;;  %v349_v13 = vld [vmem:[#allocation16 + $0x228] sm:$0xff]  ;;  %v4249_v17 = vpack.c.bf16 %v326_v11, %v314_v4  ;;  %v432_v4 = vld [vmem:[#allocation16 + $0x4c0] sm:$0xff] }
 0x621   :  { %4086 = vmatpush1.bf16.msra.mxu0 %v4085_v28  ;;  %4150 = vmatpush1.bf16.msra.mxu1 %v4149_v29  ;;  %v623_v28 = vld [vmem:[#allocation16 + $0xab8] sm:$0xff] }
 0x622   :  { %4088 = vmatprep.subr.bf16.mxu0 %v4087_v32  ;;  %4152 = vmatprep.subr.bf16.mxu1 %v4151_v33  ;;  %v635_v29 = vld [vmem:[#allocation16 + $0xb18] sm:$0xff]  ;;  %v620_v32 = vld [vmem:[#allocation16 + $0xaa0] sm:$0xff] }
 0x623   :  { %v632_v33 = vld [vmem:[#allocation16 + $0xb00] sm:$0xff]  ;;  %v4171_v35 = vpack.c.bf16 %v635_v29, %v623_v28  ;;  %v361_v28 = vld [vmem:[#allocation16 + $0x288] sm:$0xff] }
 0x624   :  { %v4109_v38 = vpack.c.bf16 %v632_v33, %v620_v32  ;;  %v373_v29 = vld [vmem:[#allocation16 + $0x2e8] sm:$0xff]  ;;  %v4253_v33 = vpack.c.bf16 %v350_v23, %v338_v21  ;;  %v468_v21 = vld [vmem:[#allocation16 + $0x5e0] sm:$0xff] }
 0x625   :  { %4090 = vmatpush1.bf16.msra.mxu0 %v4089_v9  ;;  %4154 = vmatpush1.bf16.msra.mxu1 %v4153_v10  ;;  %v647_v9 = vld [vmem:[#allocation16 + $0xb78] sm:$0xff] }
 0x626   :  { %4092 = vmatprep.subr.bf16.mxu0 %v4091_v42  ;;  %4156 = vmatprep.subr.bf16.mxu1 %v4155_v43  ;;  %v659_v10 = vld [vmem:[#allocation16 + $0xbd8] sm:$0xff]  ;;  %v644_v42 = vld [vmem:[#allocation16 + $0xb60] sm:$0xff] }
 0x627   :  { %v656_v43 = vld [vmem:[#allocation16 + $0xbc0] sm:$0xff]  ;;  %v4175_v27 = vpack.c.bf16 %v659_v10, %v647_v9  ;;  %v397_v9 = vld [vmem:[#allocation16 + $0x3a8] sm:$0xff]  ;;  %v387_v10 = vld [vmem:[#allocation16 + $0x358] sm:$0xff] }
 0x628   :  { %v4113_v51 = vpack.c.bf16 %v656_v43, %v644_v42  ;;  %v4257_v42 = vpack.c.bf16 %v374_v7, %v362_v36  ;;  %v4195_v43 = vpack.c.bf16 %v397_v9, %v385_v8  ;;  %v492_v36 = vld [vmem:[#allocation16 + $0x6a0] sm:$0xff]  ;;  %v494_v8 = vld [vmem:[#allocation16 + $0x6b0] sm:$0xff]  ;;  %v505_v9 = vld [vmem:[#allocation16 + $0x708] sm:$0xff] }
 0x629   :  { %4094 = vmatpush1.bf16.msra.mxu0 %v4093_v49  ;;  %4158 = vmatpush1.bf16.msra.mxu1 %v4157_v50  ;;  %v291_v49 = vld [vmem:[#allocation16 + $0x58] sm:$0xff] }
 0x62a   :  { %4096 = vmatprep.subr.bf16.mxu0 %v4095_v53  ;;  %4160 = vmatprep.subr.bf16.mxu1 %v4159_v54  ;;  %v303_v50 = vld [vmem:[#allocation16 + $0xb8] sm:$0xff]  ;;  %v4179_v53 = vpack.c.bf16 %v301_v48, %v289_v46  ;;  %v398_v46 = vld [vmem:[#allocation16 + $0x3b0] sm:$0xff]  ;;  %v409_v48 = vld [vmem:[#allocation16 + $0x408] sm:$0xff] }
 0x62b   :  { %v4243_v54 = vpack.c.bf16 %v303_v50, %v291_v49  ;;  %v421_v49 = vld [vmem:[#allocation16 + $0x468] sm:$0xff]  ;;  %v411_v50 = vld [vmem:[#allocation16 + $0x418] sm:$0xff] }
 0x62d   :  { %4098 = vmatpush1.bf16.msra.mxu0 %v4097_v61  ;;  %4162 = vmatpush1.bf16.msra.mxu1 %v4161_v62  ;;  %v315_v61 = vld [vmem:[#allocation16 + $0x118] sm:$0xff] }
 0x62e   :  { %4100 = vmatprep.subr.bf16.mxu0 %v4099_v2  ;;  %4164 = vmatprep.subr.bf16.mxu1 %v4163_v3  ;;  %v327_v62 = vld [vmem:[#allocation16 + $0x178] sm:$0xff]  ;;  %v312_v2 = vld [vmem:[#allocation16 + $0x100] sm:$0xff] }
 0x62f   :  { %v324_v3 = vld [vmem:[#allocation16 + $0x160] sm:$0xff]  ;;  %v4247_v6 = vpack.c.bf16 %v327_v62, %v315_v61  ;;  %v445_v61 = vld [vmem:[#allocation16 + $0x528] sm:$0xff]  ;;  %v435_v62 = vld [vmem:[#allocation16 + $0x4d8] sm:$0xff] }
 0x630   :  { %v4185_v16 = vpack.c.bf16 %v324_v3, %v312_v2  ;;  %v4265_v2 = vpack.c.bf16 %v422_v59, %v410_v57  ;;  %v4203_v3 = vpack.c.bf16 %v445_v61, %v433_v60  ;;  %v540_v57 = vld [vmem:[#allocation16 + $0x820] sm:$0xff]  ;;  %v542_v60 = vld [vmem:[#allocation16 + $0x830] sm:$0xff]  ;;  %v553_v61 = vld [vmem:[#allocation16 + $0x888] sm:$0xff] }
 0x631   :  { %4102 = vmatpush1.bf16.msra.mxu0 %v4101_v14  ;;  %4166 = vmatpush1.bf16.msra.mxu1 %v4165_v15  ;;  %v339_v14 = vld [vmem:[#allocation16 + $0x1d8] sm:$0xff] }
 0x632   :  { %4104 = vmatprep.subr.bf16.mxu0 %v4103_v18  ;;  %4168 = vmatprep.subr.bf16.mxu1 %v4167_v19  ;;  %v351_v15 = vld [vmem:[#allocation16 + $0x238] sm:$0xff]  ;;  %v4187_v18 = vpack.c.bf16 %v349_v13, %v337_v12  ;;  %v336_v19 = vld [vmem:[#allocation16 + $0x1c0] sm:$0xff]  ;;  %v446_v12 = vld [vmem:[#allocation16 + $0x530] sm:$0xff] }
 0x633   :  { %v4251_v22 = vpack.c.bf16 %v351_v15, %v339_v14  ;;  %v4189_v32 = vpack.c.bf16 %v348_v20, %v336_v19  ;;  %v457_v13 = vld [vmem:[#allocation16 + $0x588] sm:$0xff]  ;;  %v459_v15 = vld [vmem:[#allocation16 + $0x598] sm:$0xff]  ;;  %v456_v20 = vld [vmem:[#allocation16 + $0x580] sm:$0xff] }
 0x634   :  { %v469_v14 = vld [vmem:[#allocation16 + $0x5e8] sm:$0xff] }
 0x635   :  { %4106 = vmatpush1.bf16.msra.mxu0 %v4105_v30  ;;  %4170 = vmatpush1.bf16.msra.mxu1 %v4169_v31  ;;  %v363_v30 = vld [vmem:[#allocation16 + $0x298] sm:$0xff]  ;;  %v4207_v19 = vpack.c.bf16 %v469_v14, %v457_v13  ;;  %v566_v13 = vld [vmem:[#allocation16 + $0x8f0] sm:$0xff]  ;;  %v577_v14 = vld [vmem:[#allocation16 + $0x948] sm:$0xff] }
 0x636   :  { %4108 = vmatprep.subr.bf16.mxu0 %v4107_v34  ;;  %4172 = vmatprep.subr.bf16.mxu1 %v4171_v35  ;;  %v375_v31 = vld [vmem:[#allocation16 + $0x2f8] sm:$0xff]  ;;  %v4191_v34 = vpack.c.bf16 %v373_v29, %v361_v28  ;;  %v372_v35 = vld [vmem:[#allocation16 + $0x2e0] sm:$0xff]  ;;  %v470_v28 = vld [vmem:[#allocation16 + $0x5f0] sm:$0xff] }
 0x637   :  { %v4255_v37 = vpack.c.bf16 %v375_v31, %v363_v30  ;;  %v481_v29 = vld [vmem:[#allocation16 + $0x648] sm:$0xff]  ;;  %v483_v31 = vld [vmem:[#allocation16 + $0x658] sm:$0xff] }
 0x638   :  { %v493_v30 = vld [vmem:[#allocation16 + $0x6a8] sm:$0xff] }
 0x639   :  { %4110 = vmatpush1.bf16.msra.mxu0 %v4109_v38  ;;  %4174 = vmatpush1.bf16.msra.mxu1 %v4173_v40  ;;  %v399_v38 = vld [vmem:[#allocation16 + $0x3b8] sm:$0xff] }
 0x63a   :  { %4112 = vmatprep.subr.bf16.mxu0 %v4111_v44  ;;  %4176 = vmatprep.subr.bf16.mxu1 %v4175_v27  ;;  %v384_v44 = vld [vmem:[#allocation16 + $0x340] sm:$0xff]  ;;  %v4259_v26 = vpack.c.bf16 %v399_v38, %v387_v10  ;;  %v517_v10 = vld [vmem:[#allocation16 + $0x768] sm:$0xff]  ;;  %v507_v38 = vld [vmem:[#allocation16 + $0x718] sm:$0xff] }
 0x63b   :  { %v396_v27 = vld [vmem:[#allocation16 + $0x3a0] sm:$0xff] }
 0x63d   :  { %4114 = vmatpush1.bf16.msra.mxu0 %v4113_v51  ;;  %4178 = vmatpush1.bf16.msra.mxu1 %v4177_v52  ;;  %v423_v51 = vld [vmem:[#allocation16 + $0x478] sm:$0xff]  ;;  %v4197_v52 = vpack.c.bf16 %v396_v27, %v384_v44  ;;  %v4215_v44 = vpack.c.bf16 %v517_v10, %v505_v9  ;;  %v504_v27 = vld [vmem:[#allocation16 + $0x700] sm:$0xff]  ;;  %v614_v9 = vld [vmem:[#allocation16 + $0xa70] sm:$0xff] }
 0x63e   :  { %4180 = vmatprep.subr.bf16.mxu0 %v4179_v53  ;;  %4244 = vmatprep.subr.bf16.mxu1 %v4243_v54  ;;  %v4261_v53 = vpack.c.bf16 %v398_v46, %v386_v47  ;;  %v4199_v54 = vpack.c.bf16 %v421_v49, %v409_v48  ;;  %v4263_v58 = vpack.c.bf16 %v423_v51, %v411_v50  ;;  %v516_v47 = vld [vmem:[#allocation16 + $0x760] sm:$0xff]  ;;  %v518_v48 = vld [vmem:[#allocation16 + $0x770] sm:$0xff]  ;;  %v529_v49 = vld [vmem:[#allocation16 + $0x7c8] sm:$0xff] }
 0x63f   :  { %v541_v50 = vld [vmem:[#allocation16 + $0x828] sm:$0xff]  ;;  %v531_v51 = vld [vmem:[#allocation16 + $0x7d8] sm:$0xff] }
 0x640   :  { %1693 = vmatmul.mubr.f32.vlgmr.msra.gmra.mrb[16].mxu0 %v5173_v41  ;;  %1764 = vmatmul.mubr.f32.vlgmr.msra.gmra.mrb[18].mxu1 %v5173_v41  ;;  %v625_v10 = vld [vmem:[#allocation16 + $0xac8] sm:$0xff] }
 0x641   :  { %4182 = vmatpush1.bf16.msra.mxu0 %v4181_v63  ;;  %1834 = vmatprep.mubr.f32.mxu0 %v5175_v45  ;;  %v447_v63 = vld [vmem:[#allocation16 + $0x538] sm:$0xff] }
 0x642   :  { %4246 = vmatpush1.bf16.msra.mxu1 %v4245_v0  ;;  %1905 = vmatprep.mubr.f32.mxu1 %v5175_v45  ;;  %v360_v45 = vld [vmem:[#allocation16 + $0x280] sm:$0xff]  ;;  %v4201_v0 = vpack.c.bf16 %v420_v56, %v408_v55  ;;  %v4267_v11 = vpack.c.bf16 %v447_v63, %v435_v62  ;;  %v4219_v55 = vpack.c.bf16 %v541_v50, %v529_v49  ;;  %v565_v62 = vld [vmem:[#allocation16 + $0x8e8] sm:$0xff]  ;;  %v555_v63 = vld [vmem:[#allocation16 + $0x898] sm:$0xff] }
 0x643   :  { %4184 = vmatprep.subr.bf16.mxu0 %v4183_v5  ;;  %4248 = vmatprep.subr.bf16.mxu1 %v4247_v6  ;;  %v4193_v40 = vpack.c.bf16 %v372_v35, %v360_v45  ;;  %v444_v5 = vld [vmem:[#allocation16 + $0x520] sm:$0xff]  ;;  %v434_v6 = vld [vmem:[#allocation16 + $0x4d0] sm:$0xff]  ;;  %v4211_v45 = vpack.c.bf16 %v493_v30, %v481_v29  ;;  %v601_v30 = vld [vmem:[#allocation16 + $0xa08] sm:$0xff] }
 0x644   :  { %v480_v35 = vld [vmem:[#allocation16 + $0x640] sm:$0xff]  ;;  %v590_v29 = vld [vmem:[#allocation16 + $0x9b0] sm:$0xff]  ;;  %v649_v50 = vld [vmem:[#allocation16 + $0xb88] sm:$0xff] }
 0x645   :  { %4186 = vmatpush1.bf16.msra.mxu0 %v4185_v16  ;;  %v471_v16 = vld [vmem:[#allocation16 + $0x5f8] sm:$0xff]  ;;  %v528_v56 = vld [vmem:[#allocation16 + $0x7c0] sm:$0xff]  ;;  %v638_v49 = vld [vmem:[#allocation16 + $0xb30] sm:$0xff] }
 0x646   :  { %4250 = vmatpush1.bf16.msra.mxu1 %v4249_v17  ;;  %4188 = vmatprep.subr.bf16.mxu0 %v4187_v18  ;;  %v4205_v17 = vpack.c.bf16 %v444_v5, %v432_v4  ;;  %v4269_v18 = vpack.c.bf16 %v446_v12, %v434_v6  ;;  %v4271_v23 = vpack.c.bf16 %v471_v16, %v459_v15  ;;  %v552_v5 = vld [vmem:[#allocation16 + $0x880] sm:$0xff]  ;;  %v589_v15 = vld [vmem:[#allocation16 + $0x9a8] sm:$0xff]  ;;  %v579_v16 = vld [vmem:[#allocation16 + $0x958] sm:$0xff] }
 0x647   :  { %4252 = vmatprep.subr.bf16.mxu1 %v4251_v22  ;;  %v458_v22 = vld [vmem:[#allocation16 + $0x590] sm:$0xff]  ;;  %v4223_v4 = vpack.c.bf16 %v565_v62, %v553_v61  ;;  %v564_v6 = vld [vmem:[#allocation16 + $0x8e0] sm:$0xff] }
 0x648   :  { %v662_v61 = vld [vmem:[#allocation16 + $0xbf0] sm:$0xff] }
 0x649   :  { %4190 = vmatpush1.bf16.msra.mxu0 %v4189_v32  ;;  %v495_v32 = vld [vmem:[#allocation16 + $0x6b8] sm:$0xff] }
 0x64a   :  { %4254 = vmatpush1.bf16.msra.mxu1 %v4253_v33  ;;  %4192 = vmatprep.subr.bf16.mxu0 %v4191_v34  ;;  %v4209_v33 = vpack.c.bf16 %v468_v21, %v456_v20  ;;  %v4273_v34 = vpack.c.bf16 %v470_v28, %v458_v22  ;;  %v4275_v7 = vpack.c.bf16 %v495_v32, %v483_v31  ;;  %v576_v21 = vld [vmem:[#allocation16 + $0x940] sm:$0xff]  ;;  %v613_v31 = vld [vmem:[#allocation16 + $0xa68] sm:$0xff]  ;;  %v603_v32 = vld [vmem:[#allocation16 + $0xa18] sm:$0xff] }
 0x64b   :  { %4256 = vmatprep.subr.bf16.mxu1 %v4255_v37  ;;  %v482_v37 = vld [vmem:[#allocation16 + $0x650] sm:$0xff]  ;;  %v4227_v20 = vpack.c.bf16 %v589_v15, %v577_v14  ;;  %v588_v22 = vld [vmem:[#allocation16 + $0x9a0] sm:$0xff]  ;;  %v665_v15 = vld [vmem:[#allocation17 + $0x8] sm:$0xff] }
 0x64d   :  { %4194 = vmatpush1.bf16.msra.mxu0 %v4193_v40  ;;  %v519_v40 = vld [vmem:[#allocation16 + $0x778] sm:$0xff] }
 0x64e   :  { %4258 = vmatpush1.bf16.msra.mxu1 %v4257_v42  ;;  %4196 = vmatprep.subr.bf16.mxu0 %v4195_v43  ;;  %v4213_v42 = vpack.c.bf16 %v492_v36, %v480_v35  ;;  %v4277_v43 = vpack.c.bf16 %v494_v8, %v482_v37  ;;  %v4279_v46 = vpack.c.bf16 %v519_v40, %v507_v38  ;;  %v600_v36 = vld [vmem:[#allocation16 + $0xa00] sm:$0xff]  ;;  %v637_v38 = vld [vmem:[#allocation16 + $0xb28] sm:$0xff]  ;;  %v627_v40 = vld [vmem:[#allocation16 + $0xad8] sm:$0xff] }
 0x64f   :  { %4260 = vmatprep.subr.bf16.mxu1 %v4259_v26  ;;  %v506_v26 = vld [vmem:[#allocation16 + $0x710] sm:$0xff]  ;;  %v4231_v35 = vpack.c.bf16 %v613_v31, %v601_v30  ;;  %v612_v37 = vld [vmem:[#allocation16 + $0xa60] sm:$0xff] }
 0x650   :  { %v664_v30 = vld [vmem:[#allocation17] sm:$0xff]  ;;  %v666_v31 = vld [vmem:[#allocation17 + $0x10] sm:$0xff] }
 0x651   :  { %4198 = vmatpush1.bf16.msra.mxu0 %v4197_v52  ;;  %v543_v52 = vld [vmem:[#allocation16 + $0x838] sm:$0xff] }
 0x652   :  { %4262 = vmatpush1.bf16.msra.mxu1 %v4261_v53  ;;  %4200 = vmatprep.subr.bf16.mxu0 %v4199_v54  ;;  %v4217_v53 = vpack.c.bf16 %v516_v47, %v504_v27  ;;  %v4281_v54 = vpack.c.bf16 %v518_v48, %v506_v26  ;;  %v4283_v59 = vpack.c.bf16 %v543_v52, %v531_v51  ;;  %v624_v47 = vld [vmem:[#allocation16 + $0xac0] sm:$0xff]  ;;  %v661_v51 = vld [vmem:[#allocation16 + $0xbe8] sm:$0xff]  ;;  %v651_v52 = vld [vmem:[#allocation16 + $0xb98] sm:$0xff] }
 0x653   :  { %4264 = vmatprep.subr.bf16.mxu1 %v4263_v58  ;;  %v530_v58 = vld [vmem:[#allocation16 + $0x7d0] sm:$0xff]  ;;  %v4235_v27 = vpack.c.bf16 %v637_v38, %v625_v10  ;;  %v636_v26 = vld [vmem:[#allocation16 + $0xb20] sm:$0xff] }
 0x655   :  { %4202 = vmatpush1.bf16.msra.mxu0 %v4201_v0  ;;  %v567_v0 = vld [vmem:[#allocation16 + $0x8f8] sm:$0xff] }
 0x656   :  { %4266 = vmatpush1.bf16.msra.mxu1 %v4265_v2  ;;  %4204 = vmatprep.subr.bf16.mxu0 %v4203_v3  ;;  %v4221_v2 = vpack.c.bf16 %v540_v57, %v528_v56  ;;  %v4285_v3 = vpack.c.bf16 %v542_v60, %v530_v58  ;;  %v4287_v12 = vpack.c.bf16 %v567_v0, %v555_v63  ;;  %v648_v57 = vld [vmem:[#allocation16 + $0xb80] sm:$0xff]  ;;  %v650_v60 = vld [vmem:[#allocation16 + $0xb90] sm:$0xff] }
 0x657   :  { %4268 = vmatprep.subr.bf16.mxu1 %v4267_v11  ;;  %v554_v11 = vld [vmem:[#allocation16 + $0x890] sm:$0xff]  ;;  %v4239_v56 = vpack.c.bf16 %v661_v51, %v649_v50  ;;  %v660_v58 = vld [vmem:[#allocation16 + $0xbe0] sm:$0xff]  ;;  %v4305_v63 = vpack.c.bf16 %v662_v61, %v650_v60 }
 0x658   :  { %v4241_v62 = vpack.c.bf16 %v660_v58, %v648_v57  ;;  %v696_v58 = vld [vmem:[%s5579_s13 + $0x80] sm:$0xff] }
 0x659   :  { %4206 = vmatpush1.bf16.msra.mxu0 %v4205_v17  ;;  %v591_v17 = vld [vmem:[#allocation16 + $0x9b8] sm:$0xff]  ;;  %v680_v60 = vld [vmem:[%s5579_s13] sm:$0xff] }
 0x65a   :  { %4270 = vmatpush1.bf16.msra.mxu1 %v4269_v18  ;;  %4208 = vmatprep.subr.bf16.mxu0 %v4207_v19  ;;  %v4225_v18 = vpack.c.bf16 %v564_v6, %v552_v5  ;;  %v4289_v19 = vpack.c.bf16 %v566_v13, %v554_v11  ;;  %v4291_v28 = vpack.c.bf16 %v591_v17, %v579_v16  ;;  %v667_v16 = vld [vmem:[#allocation17 + $0x18] sm:$0xff] }
 0x65b   :  { %4272 = vmatprep.subr.bf16.mxu1 %v4271_v23  ;;  %v578_v23 = vld [vmem:[#allocation16 + $0x950] sm:$0xff] }
 0x65d   :  { %4210 = vmatpush1.bf16.msra.mxu0 %v4209_v33  ;;  %v615_v33 = vld [vmem:[#allocation16 + $0xa78] sm:$0xff] }
 0x65e   :  { %4274 = vmatpush1.bf16.msra.mxu1 %v4273_v34  ;;  %4212 = vmatprep.subr.bf16.mxu0 %v4211_v45  ;;  %v4229_v34 = vpack.c.bf16 %v588_v22, %v576_v21  ;;  %v4293_v45 = vpack.c.bf16 %v590_v29, %v578_v23  ;;  %v4295_v8 = vpack.c.bf16 %v615_v33, %v603_v32 }
 0x65f   :  { %4276 = vmatprep.subr.bf16.mxu1 %v4275_v7  ;;  %v602_v7 = vld [vmem:[#allocation16 + $0xa10] sm:$0xff]  ;;  %v4307_v29 = vpack.c.bf16 %v667_v16, %v665_v15  ;;  %v702_v15 = vld [vmem:[%s5579_s13 + $0xb0] sm:$0xff]  ;;  %v703_v16 = vld [vmem:[%s5579_s13 + $0xb8] sm:$0xff] }
 0x661   :  { %4214 = vmatpush1.bf16.msra.mxu0 %v4213_v42  ;;  %v639_v42 = vld [vmem:[#allocation16 + $0xb38] sm:$0xff] }
 0x662   :  { %4278 = vmatpush1.bf16.msra.mxu1 %v4277_v43  ;;  %4216 = vmatprep.subr.bf16.mxu0 %v4215_v44  ;;  %v4233_v43 = vpack.c.bf16 %v612_v37, %v600_v36  ;;  %v4297_v44 = vpack.c.bf16 %v614_v9, %v602_v7  ;;  %v4299_v48 = vpack.c.bf16 %v639_v42, %v627_v40  ;;  %v668_v37 = vld [vmem:[#allocation17 + $0x20] sm:$0xff]  ;;  %v670_v7 = vld [vmem:[#allocation17 + $0x30] sm:$0xff]  ;;  %v675_v9 = vld [vmem:[#allocation17 + $0x58] sm:$0xff] }
 0x663   :  { %4280 = vmatprep.subr.bf16.mxu1 %v4279_v46  ;;  %v626_v46 = vld [vmem:[#allocation16 + $0xad0] sm:$0xff]  ;;  %v4313_v10 = vpack.c.bf16 %v670_v7, %v668_v37  ;;  %v672_v40 = vld [vmem:[#allocation17 + $0x40] sm:$0xff] }
 0x664   :  { %v674_v42 = vld [vmem:[#allocation17 + $0x50] sm:$0xff] }
 0x665   :  { %4218 = vmatpush1.bf16.msra.mxu0 %v4217_v53  ;;  %v663_v53 = vld [vmem:[#allocation16 + $0xbf8] sm:$0xff] }
 0x666   :  { %4282 = vmatpush1.bf16.msra.mxu1 %v4281_v54  ;;  %4220 = vmatprep.subr.bf16.mxu0 %v4219_v55  ;;  %v4237_v54 = vpack.c.bf16 %v636_v26, %v624_v47  ;;  %v4301_v55 = vpack.c.bf16 %v638_v49, %v626_v46  ;;  %v676_v26 = vld [vmem:[#allocation17 + $0x60] sm:$0xff]  ;;  %v678_v46 = vld [vmem:[#allocation17 + $0x70] sm:$0xff] }
 0x667   :  { %4284 = vmatprep.subr.bf16.mxu1 %v4283_v59  ;;  %v4303_v59 = vpack.c.bf16 %v663_v53, %v651_v52 }
 0x669   :  { %4222 = vmatpush1.bf16.msra.mxu0 %v4221_v2 }
 0x66a   :  { %4286 = vmatpush1.bf16.msra.mxu1 %v4285_v3  ;;  %4224 = vmatprep.subr.bf16.mxu0 %v4223_v4 }
 0x66b   :  { %4288 = vmatprep.subr.bf16.mxu1 %v4287_v12 }
 0x66d   :  { %4226 = vmatpush1.bf16.msra.mxu0 %v4225_v18 }
 0x66e   :  { %4290 = vmatpush1.bf16.msra.mxu1 %v4289_v19  ;;  %4228 = vmatprep.subr.bf16.mxu0 %v4227_v20 }
 0x66f   :  { %4292 = vmatprep.subr.bf16.mxu1 %v4291_v28 }
 0x671   :  { %4230 = vmatpush1.bf16.msra.mxu0 %v4229_v34  ;;  %v669_v34 = vld [vmem:[#allocation17 + $0x28] sm:$0xff] }
 0x672   :  { %4294 = vmatpush1.bf16.msra.mxu1 %v4293_v45  ;;  %4232 = vmatprep.subr.bf16.mxu0 %v4231_v35  ;;  %v671_v45 = vld [vmem:[#allocation17 + $0x38] sm:$0xff]  ;;  %v4309_v35 = vpack.c.bf16 %v666_v31, %v664_v30 }
 0x673   :  { %4296 = vmatprep.subr.bf16.mxu1 %v4295_v8  ;;  %v4311_v36 = vpack.c.bf16 %v671_v45, %v669_v34  ;;  %v673_v8 = vld [vmem:[#allocation17 + $0x48] sm:$0xff]  ;;  %v689_v30 = vld [vmem:[%s5579_s13 + $0x48] sm:$0xff]  ;;  %v706_v31 = vld [vmem:[%s5579_s13 + $0xd0] sm:$0xff] }
 0x674   :  { %v4315_v38 = vpack.c.bf16 %v675_v9, %v673_v8  ;;  %v690_v45 = vld [vmem:[%s5579_s13 + $0x50] sm:$0xff] }
 0x675   :  { %4234 = vmatpush1.bf16.msra.mxu0 %v4233_v43  ;;  %v677_v43 = vld [vmem:[#allocation17 + $0x68] sm:$0xff] }
 0x676   :  { %4298 = vmatpush1.bf16.msra.mxu1 %v4297_v44  ;;  %4236 = vmatprep.subr.bf16.mxu0 %v4235_v27  ;;  %v679_v44 = vld [vmem:[#allocation17 + $0x78] sm:$0xff]  ;;  %v4317_v27 = vpack.c.bf16 %v674_v42, %v672_v40 }
 0x677   :  { %4300 = vmatprep.subr.bf16.mxu1 %v4299_v48  ;;  %v4319_v47 = vpack.c.bf16 %v679_v44, %v677_v43  ;;  %v4321_v48 = vpack.c.bf16 %v678_v46, %v676_v26  ;;  %v708_v43 = vld [vmem:[%s5579_s13 + $0xe0] sm:$0xff]  ;;  %v709_v44 = vld [vmem:[%s5579_s13 + $0xe8] sm:$0xff] }
 0x678   :  { %v693_v26 = vld [vmem:[%s5579_s13 + $0x68] sm:$0xff] }
 0x679   :  { %4238 = vmatpush1.bf16.msra.mxu0 %v4237_v54 }
 0x67a   :  { %4302 = vmatpush1.bf16.msra.mxu1 %v4301_v55  ;;  %4240 = vmatprep.subr.bf16.mxu0 %v4239_v56 }
 0x67b   :  { %4304 = vmatprep.subr.bf16.mxu1 %v4303_v59  ;;  %v697_v59 = vld [vmem:[%s5579_s13 + $0x88] sm:$0xff] }
 0x67c   :  { %v4323_v61 = vpack.c.bf16 %v697_v59, %v696_v58 }
 0x67d   :  { %4242 = vmatpush1.bf16.msra.mxu0 %v4241_v62  ;;  %v681_v62 = vld [vmem:[%s5579_s13 + $0x8] sm:$0xff] }
 0x67e   :  { %4306 = vmatpush1.bf16.msra.mxu1 %v4305_v63  ;;  %v698_v63 = vld [vmem:[%s5579_s13 + $0x90] sm:$0xff] }
 0x680   :  { %1835 = vmatmul.mubr.f32.vlgmr.msra.gmra.mrb[18].mxu0 %v5173_v41 }
 0x681   :  { %1906 = vmatmul.mubr.f32.vlgmr.msra.gmra.mrb[20].mxu1 %v5173_v41  ;;  %1984 = vmatprep.mubr.bf16.mxu0 %v4792_v39  ;;  %v5198_v41 = vld [vmem:[%s5600_s30] sm:$0xff]  }
 0x682   :  { %2027 = vmatprep.mubr.bf16.mxu1 %v4792_v39 }
 0x6d3   :  { %v1552_v0 = vpop.f32.mrb[10].mxu0  ;;  %v1623_v2 = vpop.f32.mrb[16].mxu1 }
 0x6d4   :  { %v1912_v3 = vpack.c.bf16 %v1552_v0, %v1552_v0  ;;  %v1914_v4 = vpack.c.bf16 %v1623_v2, %v1623_v2  ;;  %v1554_v5 = vpop.f32.mrb[11].mxu0  ;;  %v1625_v6 = vpop.f32.mrb[17].mxu1  ;;  %v699_v0 = vld [vmem:[%s5579_s13 + $0x98] sm:$0xff]  ;;  %v4325_v2 = vpack.c.bf16 %v681_v62, %v680_v60 }
 0x6d5   :  { %v1913_v11 = vpack.c.bf16 %v1554_v5, %v1554_v5  ;;  %v1915_v12 = vpack.c.bf16 %v1625_v6, %v1625_v6  ;;  %v683_v5 = vld [vmem:[%s5579_s13 + $0x18] sm:$0xff]  ;;  %v700_v6 = vld [vmem:[%s5579_s13 + $0xa0] sm:$0xff] }
 0x6d6   :  { %v1923_v13 = vsel %vm874_vm2, %v1912_v3, 0  ;;  %v1929_v14 = vsel %vm874_vm2, %v1914_v4, 0  ;;  %v4327_v3 = vpack.c.bf16 %v699_v0, %v698_v63  ;;  %v682_v4 = vld [vmem:[%s5579_s13 + $0x10] sm:$0xff] }
 0x6d7   :  { %3677 = vmatprep.subr.msk.bf16.mxu0 %vm874_vm2, %v1913_v11  ;;  %3679 = vmatprep.subr.msk.bf16.mxu1 %vm874_vm2, %v1915_v12  ;;  %v701_v11 = vld [vmem:[%s5579_s13 + $0xa8] sm:$0xff]  ;;  %v4329_v12 = vpack.c.bf16 %v683_v5, %v682_v4  ;;  %v712_v5 = vld [vmem:[#allocation19] sm:$0x3] }
 0x6d8   :  { %1953 = vmatpush1.bf16.msra.mxu0 %v1923_v13  ;;  %1996 = vmatpush1.bf16.msra.mxu1 %v1929_v14  ;;  %v4331_v13 = vpack.c.bf16 %v701_v11, %v700_v6  ;;  %v684_v14 = vld [vmem:[%s5579_s13 + $0x20] sm:$0xff] }
 0x6db   :  { %3680 = vmatmul.mubr.msk.bf16.vlgmr.msra.gmra.mrb[24].mxu1 %vm870_vm3, %v5198_v41  ;;  %3678 = vmatmul.mubr.msk.bf16.vlgmr.msra.gmra.mrb[20].mxu0 %vm870_vm3, %v5198_v41 }
 0x6dc   :  { %2113 = vmatprep.mubr.bf16.mxu1 %v4792_v39  ;;  %2070 = vmatprep.mubr.bf16.mxu0 %v4792_v39 }
 0x713   :  { %v1694_v17 = vpop.f32.mrb[16].mxu0  ;;  %v1765_v18 = vpop.f32.mrb[18].mxu1 }
 0x714   :  { %v1916_v19 = vpack.c.bf16 %v1694_v17, %v1694_v17  ;;  %v1918_v20 = vpack.c.bf16 %v1765_v18, %v1765_v18  ;;  %v1696_v21 = vpop.f32.mrb[17].mxu0  ;;  %v1767_v22 = vpop.f32.mrb[19].mxu1  ;;  %v4335_v18 = vpack.c.bf16 %v703_v16, %v702_v15 }
 0x715   :  { %v1917_v23 = vpack.c.bf16 %v1696_v21, %v1696_v21  ;;  %v1919_v28 = vpack.c.bf16 %v1767_v22, %v1767_v22  ;;  %v704_v21 = vld [vmem:[%s5579_s13 + $0xc0] sm:$0xff]  ;;  %v705_v22 = vld [vmem:[%s5579_s13 + $0xc8] sm:$0xff] }
 0x716   :  { %v1935_v32 = vsel %vm874_vm2, %v1916_v19, 0  ;;  %v1941_v33 = vsel %vm874_vm2, %v1918_v20, 0  ;;  %v686_v19 = vld [vmem:[%s5579_s13 + $0x30] sm:$0xff]  ;;  %v687_v20 = vld [vmem:[%s5579_s13 + $0x38] sm:$0xff] }
 0x717   :  { %3681 = vmatprep.subr.msk.bf16.mxu0 %vm874_vm2, %v1917_v23  ;;  %3683 = vmatprep.subr.msk.bf16.mxu1 %vm874_vm2, %v1919_v28  ;;  %v4337_v23 = vpack.c.bf16 %v687_v20, %v686_v19  ;;  %v4339_v28 = vpack.c.bf16 %v705_v22, %v704_v21 }
 0x718   :  { %2039 = vmatpush1.bf16.msra.mxu0 %v1935_v32  ;;  %2082 = vmatpush1.bf16.msra.mxu1 %v1941_v33  ;;  %v707_v32 = vld [vmem:[%s5579_s13 + $0xd8] sm:$0xff] }
 0x719   :  { %4308 = vmatprep.subr.bf16.mxu1 %v4307_v29  ;;  %v688_v29 = vld [vmem:[%s5579_s13 + $0x40] sm:$0xff]  ;;  %v4343_v34 = vpack.c.bf16 %v707_v32, %v706_v31 }
 0x71a   :  { %v4341_v33 = vpack.c.bf16 %v689_v30, %v688_v29 }
 0x71b   :  { %3684 = vmatmul.mubr.msk.bf16.vlgmr.msra.gmra.mrb[28].mxu1 %vm870_vm3, %v5198_v41  ;;  %3682 = vmatmul.mubr.msk.bf16.vlgmr.msra.gmra.mrb[24].mxu0 %vm870_vm3, %v5198_v41 }
 0x71c   :  { %4310 = vmatpush1.bf16.msra.mxu1 %v4309_v35  ;;  %2282 = vmatprep.mubr.f32.mxu1 %v4791_v1  ;;  %v691_v35 = vld [vmem:[%s5579_s13 + $0x58] sm:$0xff] }
 0x71d   :  { %4312 = vmatprep.subr.bf16.mxu1 %v4311_v36  ;;  %2156 = vmatprep.mubr.bf16.mxu0 %v4792_v39  ;;  %v4345_v36 = vpack.c.bf16 %v691_v35, %v690_v45  ;;  %v4794_v35 = vmov 1983009808  }
 0x720   :  { %4314 = vmatpush1.bf16.msra.mxu1 %v4313_v10 }
 0x721   :  { %4316 = vmatprep.subr.bf16.mxu1 %v4315_v38 }
 0x724   :  { %4318 = vmatpush1.bf16.msra.mxu1 %v4317_v27  ;;  %v4347_v27 = vpack.c.bf16 %v709_v44, %v708_v43  ;;  %v713_v44 = vld [vmem:[#allocation20] sm:$0xff] }
 0x725   :  { %4320 = vmatprep.subr.bf16.mxu1 %v4319_v47  ;;  %v692_v47 = vld [vmem:[%s5579_s13 + $0x60] sm:$0xff] }
 0x726   :  { %v4349_v46 = vpack.c.bf16 %v693_v26, %v692_v47 }
 0x728   :  { %4322 = vmatpush1.bf16.msra.mxu1 %v4321_v48  ;;  %v710_v48 = vld [vmem:[%s5579_s13 + $0xf0] sm:$0xff] }
 0x72b   :  { %3689 = vmatmul.mubr.msk.f32.vlgmr.msra.gmra.mrb[22].mxu1 %vm717_vm1, %v5131_v24 }
 0x72c   :  { %2288 = vmatprep.mubr.f32.mxu1 %v4791_v1 }
 0x72f   :  { %3690 = vmatmul.mubr.msk.f32.gmra.mrb[32].mxu1 %vm717_vm1, %v5135_v25  ;;  %v5232_v25 = vld [vmem:[%s5601_s26] sm:$0xff]  }
 0x730   :  { %2542 = vmatprep.mubr.f32.mxu1 %v4791_v1 }
 0x753   :  { %v1836_v49 = vpop.f32.mrb[18].mxu0 }
 0x754   :  { %v1920_v50 = vpack.c.bf16 %v1836_v49, %v1836_v49  ;;  %v1907_v51 = vpop.f32.mrb[20].mxu1  ;;  %v1838_v52 = vpop.f32.mrb[19].mxu0  ;;  %v711_v49 = vld [vmem:[%s5579_s13 + $0xf8] sm:$0xff] }
 0x755   :  { %v1921_v53 = vpack.c.bf16 %v1838_v52, %v1838_v52  ;;  %v1909_v54 = vpop.f32.mrb[21].mxu1  ;;  %v2167_v56 = vpack.c.bf16 %v1907_v51, %v1907_v51  ;;  %v694_v51 = vld [vmem:[%s5579_s13 + $0x70] sm:$0xff]  ;;  %v695_v52 = vld [vmem:[%s5579_s13 + $0x78] sm:$0xff] }
 0x756   :  { %v1947_v55 = vsel %vm874_vm2, %v1920_v50, 0  ;;  %v2168_v57 = vpack.c.bf16 %v1909_v54, %v1909_v54  ;;  %v4351_v50 = vpack.c.bf16 %v711_v49, %v710_v48 }
 0x757   :  { %3685 = vmatprep.subr.msk.bf16.mxu0 %vm874_vm2, %v1921_v53  ;;  %v2170_v24 = vsel %vm874_vm2, %v2167_v56, 0  ;;  %v4353_v53 = vpack.c.bf16 %v695_v52, %v694_v51 }
 0x758   :  { %2125 = vmatpush1.bf16.msra.mxu0 %v1947_v55 }
 0x759   :  { %3687 = vmatprep.subr.msk.bf16.mxu0 %vm874_vm2, %v2168_v57 }
 0x75b   :  { %3686 = vmatmul.mubr.msk.bf16.vlgmr.msra.gmra.mrb[28].mxu0 %vm870_vm3, %v5198_v41  ;;  %v685_v41 = vld [vmem:[%s5579_s13 + $0x28] sm:$0xff] }
 0x75c   :  { %2176 = vmatpush1.bf16.msra.mxu0 %v2170_v24  ;;  %2207 = vmatprep.mubr.bf16.mxu0 %v4792_v39  ;;  %v4333_v17 = vpack.c.bf16 %v685_v41, %v684_v14 }
 0x75d   :  { %4324 = vmatprep.subr.bf16.mxu0 %v4323_v61 }
 0x767   :  { %3688 = vmatmul.mubr.msk.bf16.vlgmr.msra.gmra.mrb[28].mxu0 %vm870_vm3, %v5232_v25 }
 0x768   :  { %4326 = vmatpush3.bf16.msra.mxu0 %v4325_v2  ;;  %v2304_v2 = vlaneseq }
 0x769   :  { %4328 = vmatprep.subr.bf16.mxu0 %v4327_v3 }
 0x76a   :  { %v5364_v3 = vshrl.u32 %v2304_v2, 7 }
 0x76c   :  { %4330 = vmatpush3.bf16.msra.mxu0 %v4329_v12  ;;  %v5367_v4 = vsub.s32 0, %v5364_v3  ;;  %v5370_v6 = vsub.s32 1, %v5364_v3 }
 0x76d   :  { %4332 = vmatprep.subr.bf16.mxu0 %v4331_v13 }
 0x76e   :  { %v2307_v11 = vrot.slane %v712_v5, %v5367_v4  ;;  %v2311_v13 = vrot.slane %v712_v5, %v5370_v6 }
 0x770   :  { %4334 = vmatpush3.bf16.msra.mxu0 %v4333_v17 }
 0x771   :  { %4336 = vmatprep.subr.bf16.mxu0 %v4335_v18 }
 0x774   :  { %4338 = vmatpush3.bf16.msra.mxu0 %v4337_v23 }
 0x775   :  { %4340 = vmatprep.subr.bf16.mxu0 %v4339_v28 }
 0x778   :  { %4342 = vmatpush3.bf16.msra.mxu0 %v4341_v33 }
 0x779   :  { %4344 = vmatprep.subr.bf16.mxu0 %v4343_v34 }
 0x77c   :  { %4346 = vmatpush3.bf16.msra.mxu0 %v4345_v36  ;;  %v2424_v36 = vunpack.c.l.s4 %v4794_v35 }
 0x77d   :  { %4348 = vmatprep.subr.bf16.mxu0 %v4347_v27 }
 0x77e   :  { %v2425_v43 = vunpack.c.0.s8 %v2424_v36 }
 0x780   :  { %4350 = vmatpush3.bf16.msra.mxu0 %v4349_v46  ;;  %v5376_v27 = vsub.s32 %v2425_v43, %v5364_v3  ;;  %v2422_v46 = vcombine.high %v713_v44, %v713_v44 }
 0x781   :  { %4352 = vmatprep.subr.bf16.mxu0 %v4351_v50 }
 0x782   :  { %v5379_v47 = vrot.slane %v713_v44, %v5376_v27  ;;  %v5390_v48 = vrot.slane %v2422_v46, %v5376_v27 }
 0x784   :  { %4354 = vmatpush3.bf16.msra.mxu0 %v4353_v53  ;;  %v5383_v26 = vcombine.high %v5379_v47, %v5379_v47  ;;  %v5394_v49 = vcombine.high %v5390_v48, %v5390_v48 }
 0x786   :  { %3691 = vmatprep.subr.msk.mxu1 %vm1235_vm7, %v5383_v26 }
 0x787   :  { %3692 = vmatpush1.msk.msra.mxu1 %vm1235_vm7, %v5379_v47 }
 0x788   :  { %3695 = vmatprep.subr.msk.mxu1 %vm1235_vm7, %v5394_v49 }
 0x7ae   :  { %v5308_v37 = vpop.f32.mrb[24].mxu1  ;;  %v5310_v7 = vpop.f32.mrb[20].mxu0 }
 0x7af   :  { %v5312_v8 = vpop.f32.mrb[25].mxu1  ;;  %v5314_v9 = vpop.f32.mrb[21].mxu0 }
 0x7b0   :  { %v5316_v10 = vpop.f32.mrb[26].mxu1  ;;  %v5318_v38 = vpop.f32.mrb[22].mxu0 }
 0x7b1   :  { %v5320_v40 = vpop.f32.mrb[27].mxu1  ;;  %v5322_v42 = vpop.f32.mrb[23].mxu0 }
 0x7ee   :  { %v5348_v54 = vpop.f32.mrb[28].mxu1  ;;  %v5350_v55 = vpop.f32.mrb[24].mxu0 }
 0x7ef   :  { %v5352_v56 = vpop.f32.mrb[29].mxu1  ;;  %v5354_v57 = vpop.f32.mrb[25].mxu0 }
 0x7f0   :  { %v5356_v24 = vpop.f32.mrb[30].mxu1  ;;  %v5358_v58 = vpop.f32.mrb[26].mxu0 }
 0x7f1   :  { %v5360_v59 = vpop.f32.mrb[31].mxu1  ;;  %v5362_v60 = vpop.f32.mrb[27].mxu0 }
 0x7fe   :  { %v2284_v61 = vpop.f32.mrb[22].mxu1 }
 0x7ff   :  { %v2286_v62 = vpop.f32.mrb[23].mxu1 }
 0x802   :  { %v2290_v63 = vpop.f32.mrb[32].mxu1 }
 0x803   :  { %v2292_v0 = vpop.f32.mrb[33].mxu1 }
 0x83a   :  { %v2209_v12 = vpop.f32.mrb[28].mxu0 }
 0x83b   :  { %v2299_v14 = vadd.f32 %v2284_v61, %v2209_v12  ;;  %v2211_v41 = vpop.f32.mrb[29].mxu0 }
 0x83c   :  { %v2300_v15 = vadd.f32 %v2286_v62, %v2211_v41  ;;  %v2213_v16 = vpop.f32.mrb[30].mxu0 }
 0x83d   :  { %v2314_v17 = vadd.f32 %v2307_v11, %v2299_v14  ;;  %v2301_v18 = vadd.f32 %v2290_v63, %v2213_v16  ;;  %v2215_v19 = vpop.f32.mrb[31].mxu0 }
 0x83e   :  { %v2315_v20 = vadd.f32 %v2311_v13, %v2300_v15  ;;  %v2302_v21 = vadd.f32 %v2292_v0, %v2215_v19  ;;  %v714_v19 = vld [vmem:[#allocation20 + $0x8] sm:$0xff] }
 0x83f   :  { %v2322_v22 = vmul.f32 0.01, %v2314_v17  ;;  %v2316_v23 = vadd.f32 %v2307_v11, %v2301_v18  ;;  %vm2318_vm10 = vcmp.gt.f32.partialorder %v2314_v17, 0.0 }
 0x840   :  { %v2317_v28 = vadd.f32 %v2311_v13, %v2302_v21  ;;  %vm2319_vm9 = vcmp.gt.f32.partialorder %v2315_v20, 0.0  ;;  %v2323_v29 = vmul.f32 0.01, %v2315_v20 }
 0x841   :  { %v2326_v32 = vsel %vm2318_vm10, %v2314_v17, %v2322_v22  ;;  %v2324_v33 = vmul.f32 0.01, %v2316_v23  ;;  %vm2320_vm12 = vcmp.gt.f32.partialorder %v2316_v23, 0.0  ;;  %v2439_v22 = vcombine.high %v714_v19, %v714_v19 }
 0x842   :  { %v2327_v30 = vsel %vm2319_vm9, %v2315_v20, %v2323_v29  ;;  %vm2321_vm11 = vcmp.gt.f32.partialorder %v2317_v28, 0.0  ;;  %v2325_v31 = vmul.f32 0.01, %v2317_v28  ;;  %v5401_v20 = vrot.slane %v714_v19, %v5376_v27 }
 0x843   :  { %2394 = vmatprep.mubr.f32.mxu0 %v2327_v30  ;;  %v2328_v45 = vsel %vm2320_vm12, %v2316_v23, %v2324_v33 }
 0x844   :  { %2395 = vmatmul.mubr.f32.vlgmr.msra.gmra.mrb[32].mxu0 %v2326_v32  ;;  %v2329_v34 = vsel %vm2321_vm11, %v2317_v28, %v2325_v31  ;;  %v5405_v21 = vcombine.high %v5401_v20, %v5401_v20  ;;  %v5417_v28 = vrot.slane %v2439_v22, %v5376_v27 }
 0x845   :  { %2399 = vmatprep.mubr.f32.mxu0 %v2329_v34 }
 0x846   :  { %v5426_v30 = vcombine.high %v5417_v28, %v5417_v28 }
 0x848   :  { %2400 = vmatmul.mubr.f32.gmra.mrb[34].mxu0 %v2328_v45 }
 0x849   :  { %2843 = vmatprep.mubr.bf16.mxu0 %v4792_v39 }
 0x917   :  { %v3790_v50 = vpop.f32.mrb[32].mxu0 }
 0x918   :  { %v3791_v51 = vpop.f32.mrb[33].mxu0 }
 0x919   :  { %v3792_v52 = vadd.f32 %v3791_v51, %v3790_v50 }
 0x91b   :  { %v3793_v53 = vpop.f32.mrb[34].mxu0  ;;  %v2405_v63 = vsel %vm1204_vm8, %v3792_v52, -inf }
 0x91c   :  { %v3794_v61 = vpop.f32.mrb[35].mxu0 }
 0x91d   :  { %v3795_v62 = vadd.f32 %v3794_v61, %v3793_v53 }
 0x91f   :  { %v2406_v0 = vsel %vm1204_vm8, %v3795_v62, -inf }
 0x920   :  { %v2407_v2 = vmax.f32 %v2405_v63, %v2406_v0 }
 0x922   :  { %v2408_v5 = vrot.slane %v2407_v2, 4 }
 0x924   :  { %v2409_v11 = vmax.f32 %v2407_v2, %v2408_v5 }
 0x926   :  { %v2410_v12 = vrot.slane %v2409_v11, 2 }
 0x928   :  { %v2411_v13 = vmax.f32 %v2409_v11, %v2410_v12 }
 0x92a   :  { %v2412_v14 = vrot.slane %v2411_v13, 1 }
 0x92c   :  { %v2413_v41 = vmax.f32 %v2411_v13, %v2412_v14 }
 0x92e   :  { %v2414_v15 = vsub.f32 %v3792_v52, %v2413_v41  ;;  %v2415_v16 = vsub.f32 %v3795_v62, %v2413_v41 }
 0x930   :  { %v2416_v17 = vmul.f32 1.442695, %v2414_v15  ;;  %v2418_v18 = vmul.f32 1.442695, %v2415_v16 }
 0x932   :  { %4402 = vpow2.f32 %v2416_v17 }
 0x933   :  { %4404 = vpow2.f32 %v2418_v18 }
 0x93c   :  { %v5407_v23 = vpop.eup %4402 }
 0x93d   :  { %3693 = vmatmul.mubr.msk.f32.vlgmr.msra.gmra.mrb[34].mxu1 %vm1204_vm8, %v5407_v23  ;;  %v5419_v29 = vpop.eup %4404 }
 0x93e   :  { %2548 = vmatprep.mubr.f32.mxu1 %v4791_v1  ;;  %3696 = vmatpush1.msk.msra.mxu1 %vm1235_vm7, %v5390_v48  ;;  %v2810_v16 = vpack.c.bf16 %v5419_v29, %v5407_v23 }
 0x93f   :  { %3699 = vmatprep.subr.msk.mxu1 %vm1235_vm7, %v5405_v21 }
 0x941   :  { %3694 = vmatmul.mubr.msk.f32.gmra.mrb[36].mxu1 %vm1204_vm8, %v5419_v29 }
 0x942   :  { %2619 = vmatprep.mubr.f32.mxu1 %v4791_v1 }
 0x945   :  { %3697 = vmatmul.mubr.msk.f32.vlgmr.msra.gmra.mrb[38].mxu1 %vm1204_vm8, %v5407_v23 }
 0x946   :  { %2625 = vmatprep.mubr.f32.mxu1 %v4791_v1  ;;  %3700 = vmatpush1.msk.msra.mxu1 %vm1235_vm7, %v5401_v20 }
 0x947   :  { %3703 = vmatprep.subr.msk.mxu1 %vm1235_vm7, %v5426_v30 }
 0x949   :  { %3698 = vmatmul.mubr.msk.f32.gmra.mrb[40].mxu1 %vm1204_vm8, %v5419_v29 }
 0x94a   :  { %2696 = vmatprep.mubr.f32.mxu1 %v4791_v1 }
 0x94d   :  { %3701 = vmatmul.mubr.msk.f32.vlgmr.msra.gmra.mrb[42].mxu1 %vm1204_vm8, %v5407_v23 }
 0x94e   :  { %2702 = vmatprep.mubr.f32.mxu1 %v4791_v1  ;;  %3704 = vmatpush1.msk.msra.mxu1 %vm1235_vm7, %v5417_v28 }
 0x951   :  { %3702 = vmatmul.mubr.msk.f32.gmra.mrb[44].mxu1 %vm1204_vm8, %v5419_v29 }
 0x952   :  { %2773 = vmatprep.mubr.f32.mxu1 %v4791_v1 }
 0x955   :  { %3705 = vmatmul.mubr.msk.f32.vlgmr.msra.gmra.mrb[46].mxu1 %vm1204_vm8, %v5407_v23 }
 0x956   :  { %2779 = vmatprep.mubr.f32.mxu1 %v4791_v1 }
 0x959   :  { %3706 = vmatmul.mubr.msk.f32.gmra.mrb[48].mxu1 %vm1204_vm8, %v5419_v29 }
 0x95a   :  { %2884 = vmatprep.mubr.bf16.mxu1 %v4792_v39 }
 0xa10   :  { %v2544_v31 = vpop.f32.mrb[34].mxu1 }
 0xa11   :  { %v2786_v32 = vmul.f32 %v2544_v31, %v5310_v7  ;;  %v2546_v33 = vpop.f32.mrb[35].mxu1 }
 0xa12   :  { %v2787_v34 = vmul.f32 %v2546_v33, %v5314_v9 }
 0xa14   :  { %v2550_v45 = vpop.f32.mrb[36].mxu1 }
 0xa15   :  { %v2794_v35 = vmul.f32 %v2550_v45, %v5318_v38  ;;  %v2552_v36 = vpop.f32.mrb[37].mxu1  ;;  %v4418_v38 = vld [vmem:[#allocation7] sm:$0xf] }
 0xa16   :  { %v2795_v43 = vmul.f32 %v2552_v36, %v5322_v42 }
 0xa17   :  { %v2802_v44 = vpack.c.bf16 %v2794_v35, %v2786_v32 }
 0xa18   :  { %v2803_v46 = vpack.c.bf16 %v2795_v43, %v2787_v34  ;;  %v2621_v50 = vpop.f32.mrb[38].mxu1 }
 0xa19   :  { %v2788_v51 = vmul.f32 %v2621_v50, %v5308_v37  ;;  %v2623_v52 = vpop.f32.mrb[39].mxu1 }
 0xa1a   :  { %v2789_v53 = vmul.f32 %v2623_v52, %v5312_v8  ;;  %2811 = vmatprep.subr.bf16.mxu0 %v2803_v46 }
 0xa1b   :  { %2812 = vmatpush1.bf16.msra.mxu0 %v2802_v44 }
 0xa1c   :  { %v2627_v7 = vpop.f32.mrb[40].mxu1 }
 0xa1d   :  { %v2796_v61 = vmul.f32 %v2627_v7, %v5316_v10  ;;  %v2629_v9 = vpop.f32.mrb[41].mxu1 }
 0xa1e   :  { %v2797_v62 = vmul.f32 %v2629_v9, %v5320_v40  ;;  %3707 = vmatmul.mubr.msk.bf16.vlgmr.msra.gmra.mrb[36].mxu0 %vm1023_vm4, %v4418_v38 }
 0xa1f   :  { %v2804_v42 = vpack.c.bf16 %v2796_v61, %v2788_v51  ;;  %2925 = vmatprep.mubr.bf16.mxu0 %v4792_v39 }
 0xa20   :  { %v2805_v63 = vpack.c.bf16 %v2797_v62, %v2789_v53  ;;  %v2698_v0 = vpop.f32.mrb[42].mxu1 }
 0xa21   :  { %v2790_v37 = vmul.f32 %v2698_v0, %v5350_v55  ;;  %v2700_v2 = vpop.f32.mrb[43].mxu1 }
 0xa22   :  { %v2791_v8 = vmul.f32 %v2700_v2, %v5354_v57  ;;  %2852 = vmatprep.subr.bf16.mxu1 %v2805_v63 }
 0xa23   :  { %2853 = vmatpush1.bf16.msra.mxu1 %v2804_v42 }
 0xa24   :  { %v2704_v5 = vpop.f32.mrb[44].mxu1 }
 0xa25   :  { %v2798_v10 = vmul.f32 %v2704_v5, %v5358_v58  ;;  %v2706_v11 = vpop.f32.mrb[45].mxu1 }
 0xa26   :  { %v2799_v40 = vmul.f32 %v2706_v11, %v5362_v60  ;;  %3708 = vmatmul.mubr.msk.bf16.vlgmr.msra.gmra.mrb[52].mxu1 %vm1023_vm4, %v4418_v38 }
 0xa27   :  { %v2806_v12 = vpack.c.bf16 %v2798_v10, %v2790_v37  ;;  %2966 = vmatprep.mubr.bf16.mxu1 %v4792_v39 }
 0xa28   :  { %v2807_v13 = vpack.c.bf16 %v2799_v40, %v2791_v8  ;;  %v2775_v14 = vpop.f32.mrb[46].mxu1 }
 0xa29   :  { %v2792_v55 = vmul.f32 %v2775_v14, %v5348_v54  ;;  %v2777_v41 = vpop.f32.mrb[47].mxu1 }
 0xa2a   :  { %v2793_v57 = vmul.f32 %v2777_v41, %v5352_v56  ;;  %2893 = vmatprep.subr.bf16.mxu0 %v2807_v13 }
 0xa2b   :  { %2894 = vmatpush1.bf16.msra.mxu0 %v2806_v12 }
 0xa2c   :  { %v2781_v15 = vpop.f32.mrb[48].mxu1  ;;  %3863 = vmatprep.subr.bf16.mxu0 %v4791_v1 }
 0xa2d   :  { %v2800_v58 = vmul.f32 %v2781_v15, %v5356_v24  ;;  %v2783_v60 = vpop.f32.mrb[49].mxu1 }
 0xa2e   :  { %v2801_v17 = vmul.f32 %v2783_v60, %v5360_v59  ;;  %3709 = vmatmul.mubr.msk.bf16.vlgmr.msra.gmra.mrb[40].mxu0 %vm1023_vm4, %v4418_v38 }
 0xa2f   :  { %v2808_v18 = vpack.c.bf16 %v2800_v58, %v2792_v55  ;;  %3864 = vmatpush3.bf16.msra.mxu0 %v2810_v16  ;;  %3865 = vmatprep.mubr.msk.bf16.mxu0 %vm4790_vm0, %v4791_v1 }
 0xa30   :  { %v2809_v54 = vpack.c.bf16 %v2801_v17, %v2793_v57  ;;  %3715 = vmatprep.subr.msk.mxu0 %vm1235_vm7, %v5394_v49 }
 0xa32   :  { %2934 = vmatprep.subr.bf16.mxu1 %v2809_v54 }
 0xa33   :  { %2935 = vmatpush1.bf16.msra.mxu1 %v2808_v18 }
 0xa34   :  { %3712 = vmatprep.subr.msk.mxu1 %vm1235_vm7, %v5383_v26 }
 0xa36   :  { %3866 = vmatmul.mubr.msk.bf16.vlgmr.msra.gmra.mrb[44].mxu0 %vm1023_vm4, %v4418_v38  ;;  %3710 = vmatmul.mubr.msk.bf16.vlgmr.msra.gmra.mrb[56].mxu1 %vm1023_vm4, %v4418_v38 }
 0xa37   :  { %3713 = vmatpush1.msk.msra.mxu1 %vm1235_vm7, %v5379_v47  ;;  %3084 = vmatprep.mubr.f32.mxu1 %v4791_v1 }
 0xa38   :  { %3716 = vmatpush1.msk.msra.mxu0 %vm1235_vm7, %v5390_v48  ;;  %3155 = vmatprep.mubr.f32.mxu0 %v4791_v1 }
 0xa39   :  { %3718 = vmatprep.subr.msk.mxu1 %vm1235_vm7, %v5405_v21  ;;  %3721 = vmatprep.subr.msk.mxu0 %vm1235_vm7, %v5426_v30 }
 0xaf1   :  { %v2845_v56 = vpop.f32.mrb[36].mxu0 }
 0xaf2   :  { %v2847_v24 = vpop.f32.mrb[37].mxu0 }
 0xaf3   :  { %v2849_v59 = vpop.f32.mrb[38].mxu0 }
 0xaf4   :  { %v2850_v26 = vpop.f32.mrb[39].mxu0 }
 0xaf9   :  { %v2886_v49 = vpop.f32.mrb[52].mxu1 }
 0xafa   :  { %v2888_v19 = vpop.f32.mrb[53].mxu1 }
 0xafb   :  { %v2890_v47 = vpop.f32.mrb[54].mxu1 }
 0xafc   :  { %v2891_v22 = vpop.f32.mrb[55].mxu1 }
 0xb01   :  { %v2927_v31 = vpop.f32.mrb[40].mxu0 }
 0xb02   :  { %v2929_v32 = vpop.f32.mrb[41].mxu0 }
 0xb03   :  { %v2931_v33 = vpop.f32.mrb[42].mxu0 }
 0xb04   :  { %v2932_v48 = vpop.f32.mrb[43].mxu0 }
 0xb09   :  { %v3009_v34 = vpop.f32.mrb[44].mxu0  ;;  %v2968_v45 = vpop.f32.mrb[56].mxu1 }
 0xb0a   :  { %v3015_v35 = vmax.f32 %v3009_v34, 1e-38  ;;  %v3867_v36 = vpop.f32.mrb[45].mxu0  ;;  %v2970_v21 = vpop.f32.mrb[57].mxu1 }
 0xb0b   :  { %v3012_v43 = vpop.f32.mrb[46].mxu0  ;;  %v2972_v44 = vpop.f32.mrb[58].mxu1 }
 0xb0c   :  { %4406 = vrcp.f32 %v3015_v35  ;;  %v3868_v30 = vpop.f32.mrb[47].mxu0  ;;  %v2973_v46 = vpop.f32.mrb[59].mxu1 }
 0xb16   :  { %v4407_v50 = vpop.eup %4406 }
 0xb17   :  { %3714 = vmatmul.mubr.msk.f32.vlgmr.msra.gmra.mrb[50].mxu1 %vm1204_vm8, %v4407_v50  ;;  %3717 = vmatmul.mubr.msk.f32.vlgmr.msra.gmra.mrb[48].mxu0 %vm1204_vm8, %v4407_v50  ;;  %v3312_v51 = vpack.c.bf16 %v4407_v50, %v4407_v50 }
 0xb18   :  { %3719 = vmatpush1.msk.msra.mxu1 %vm1235_vm7, %v5401_v20  ;;  %3226 = vmatprep.mubr.f32.mxu1 %v4791_v1 }
 0xb19   :  { %3722 = vmatpush1.msk.msra.mxu0 %vm1235_vm7, %v5417_v28  ;;  %3297 = vmatprep.mubr.f32.mxu0 %v4791_v1  ;;  %v3314_v52 = vsel %vm874_vm2, %v3312_v51, 0 }
 0xb1a   :  { %3869 = vmatprep.subr.bf16.mxu1 %v4791_v1 }
 0xb1b   :  { %3720 = vmatmul.mubr.msk.f32.vlgmr.msra.gmra.mrb[60].mxu1 %vm1204_vm8, %v4407_v50  ;;  %3723 = vmatmul.mubr.msk.f32.vlgmr.msra.gmra.mrb[50].mxu0 %vm1204_vm8, %v4407_v50 }
 0xb1c   :  { %3870 = vmatpush3.bf16.msra.mxu1 %v3314_v52  ;;  %3871 = vmatprep.mubr.msk.bf16.mxu1 %vm4790_vm0, %v4791_v1 }
 0xb1d   :  { %3420 = vmatprep.mubr.bf16.mxu0 %v4792_v39 }
 0xb1f   :  { %3872 = vmatmul.mubr.msk.bf16.vlgmr.msra.gmra.mrb[64].mxu1 %vm870_vm3, %v5232_v25 }
 0xb20   :  { %3461 = vmatprep.mubr.bf16.mxu1 %v4792_v39 }
 0xbea   :  { %v3086_v20 = vpop.f32.mrb[50].mxu1  ;;  %v3157_v28 = vpop.f32.mrb[48].mxu0 }
 0xbeb   :  { %v3304_v53 = vmul.f32 %v3086_v20, %v2845_v56  ;;  %v3306_v7 = vmul.f32 %v3157_v28, %v2886_v49  ;;  %v3088_v61 = vpop.f32.mrb[51].mxu1  ;;  %v3159_v9 = vpop.f32.mrb[49].mxu0 }
 0xbec   :  { %v3305_v62 = vmul.f32 %v3088_v61, %v2847_v24  ;;  %v3307_v38 = vmul.f32 %v3159_v9, %v2888_v19  ;;  %v243_v24 = vld [vmem:[#allocation8] sm:$0x1] }
 0xbee   :  { %v3228_v42 = vpop.f32.mrb[60].mxu1  ;;  %v3299_v63 = vpop.f32.mrb[50].mxu0 }
 0xbef   :  { %v3308_v0 = vmul.f32 %v3228_v42, %v2927_v31  ;;  %v3310_v37 = vmul.f32 %v3299_v63, %v2968_v45  ;;  %v3230_v1 = vpop.f32.mrb[61].mxu1  ;;  %v3301_v2 = vpop.f32.mrb[51].mxu0 }
 0xbf0   :  { %v3309_v8 = vmul.f32 %v3230_v1, %v2929_v32  ;;  %v3311_v5 = vmul.f32 %v3301_v2, %v2970_v21 }
 0xbf1   :  { %v3361_v10 = vadd.f32 %v3308_v0, %v3304_v53  ;;  %v3363_v25 = vadd.f32 %v3310_v37, %v3306_v7 }
 0xbf2   :  { %v3362_v11 = vadd.f32 %v3309_v8, %v3305_v62  ;;  %v3364_v39 = vadd.f32 %v3311_v5, %v3307_v38  ;;  %v3350_v40 = vpop.f32.mrb[64].mxu1 }
 0xbf3   :  { %v3365_v12 = vmul.f32 0.5, %v3361_v10  ;;  %v3367_v13 = vmul.f32 0.5, %v3363_v25  ;;  %v3357_v14 = vmul.f32 %v5407_v23, %v3350_v40  ;;  %v3873_v55 = vpop.f32.mrb[65].mxu1 }
 0xbf4   :  { %v3366_v41 = vmul.f32 0.5, %v3362_v11  ;;  %v3368_v57 = vmul.f32 0.5, %v3364_v39  ;;  %v3353_v15 = vpop.f32.mrb[66].mxu1 }
 0xbf5   :  { %v3369_v58 = vpack.c.bf16 %v3365_v12, %v3365_v12  ;;  %v3371_v60 = vpack.c.bf16 %v3367_v13, %v3367_v13  ;;  %3359 = vst.msk [vmem:[%s5602_s22] sm:$0xff] %vm1204_vm8, %v3357_v14  ;;  %v3358_v16 = vmul.f32 %v5419_v29, %v3353_v15  ;;  %v3874_v17 = vpop.f32.mrb[67].mxu1 }
 0xbf6   :  { %v3370_v18 = vpack.c.bf16 %v3366_v41, %v3366_v41  ;;  %v3372_v54 = vpack.c.bf16 %v3368_v57, %v3368_v57 }
 0xbf7   :  { %3360 = vst.msk [vmem:[%s5602_s22 + $0x8] sm:$0xff] %vm1204_vm8, %v3358_v16  ;;  %v3377_v23 = vsel %vm874_vm2, %v3369_v58, 0  ;;  %v3383_v56 = vsel %vm874_vm2, %v3371_v60, 0 }
 0xbf8   :  { %3725 = vmatprep.subr.msk.bf16.mxu0 %vm874_vm2, %v3370_v18  ;;  %3727 = vmatprep.subr.msk.bf16.mxu1 %vm874_vm2, %v3372_v54 }
 0xbf9   :  { %3389 = vmatpush1.bf16.msra.mxu0 %v3377_v23  ;;  %3430 = vmatpush1.bf16.msra.mxu1 %v3383_v56 }
 0xbfc   :  { %3726 = vmatmul.mubr.msk.bf16.vlgmr.msra.gmra.mrb[52].mxu0 %vm870_vm3, %v243_v24  ;;  %3728 = vmatmul.mubr.msk.bf16.vlgmr.msra.gmra.mrb[68].mxu1 %vm870_vm3, %v243_v24 }
 0xccf   :  { %v3422_v29 = vpop.f32.mrb[52].mxu0  ;;  %v3463_v59 = vpop.f32.mrb[68].mxu1 }
 0xcd0   :  { %v3470_v26 = vsel %vm1235_vm7, %v3422_v29, 0.0  ;;  %v3484_v49 = vsel %vm1235_vm7, %v3463_v59, 0.0  ;;  %v3424_v19 = vpop.f32.mrb[53].mxu0  ;;  %v3465_v47 = vpop.f32.mrb[69].mxu1 }
 0xcd1   :  { %v3471_v22 = vrot.slane %v3470_v26, 4  ;;  %v3485_v31 = vrot.slane %v3484_v49, 4  ;;  %v3477_v32 = vsel %vm1235_vm7, %v3424_v19, 0.0  ;;  %v3491_v33 = vsel %vm1235_vm7, %v3465_v47, 0.0  ;;  %v3426_v48 = vpop.f32.mrb[54].mxu0  ;;  %v3467_v34 = vpop.f32.mrb[70].mxu1 }
 0xcd2   :  { %v3478_v45 = vrot.slane %v3477_v32, 4  ;;  %v3492_v35 = vrot.slane %v3491_v33, 4  ;;  %v3427_v36 = vpop.f32.mrb[55].mxu0  ;;  %v3468_v21 = vpop.f32.mrb[71].mxu1 }
 0xcd3   :  { %v3472_v43 = vadd.f32 %v3471_v22, %v3470_v26  ;;  %v3486_v44 = vadd.f32 %v3485_v31, %v3484_v49 }
 0xcd4   :  { %v3479_v30 = vadd.f32 %v3478_v45, %v3477_v32  ;;  %v3493_v46 = vadd.f32 %v3492_v35, %v3491_v33 }
 0xcd5   :  { %v3473_v50 = vrot.slane %v3472_v43, 2  ;;  %v3487_v51 = vrot.slane %v3486_v44, 2 }
 0xcd6   :  { %v3480_v52 = vrot.slane %v3479_v30, 2  ;;  %v3494_v20 = vrot.slane %v3493_v46, 2 }
 0xcd7   :  { %v3474_v28 = vadd.f32 %v3473_v50, %v3472_v43  ;;  %v3488_v53 = vadd.f32 %v3487_v51, %v3486_v44 }
 0xcd8   :  { %v3481_v7 = vadd.f32 %v3480_v52, %v3479_v30  ;;  %v3495_v61 = vadd.f32 %v3494_v20, %v3493_v46 }
 0xcd9   :  { %v3475_v9 = vrot.slane %v3474_v28, 1  ;;  %v3489_v62 = vrot.slane %v3488_v53, 1 }
 0xcda   :  { %v3482_v38 = vrot.slane %v3481_v7, 1  ;;  %v3496_v42 = vrot.slane %v3495_v61, 1 }
 0xcdb   :  { %v3476_v63 = vadd.f32 %v3475_v9, %v3474_v28  ;;  %v3490_v0 = vadd.f32 %v3489_v62, %v3488_v53  ;;  %v715_v28 = vld [vmem:[#allocation22] sm:$0xf]  ;;  %v3566_v53 = vsub.s32 2, %v5364_v3 }
 0xcdc   :  { %v3483_v37 = vadd.f32 %v3482_v38, %v3481_v7  ;;  %v3497_v1 = vadd.f32 %v3496_v42, %v3495_v61  ;;  %v716_v7 = vld [vmem:[#allocation23] sm:$0xf]  ;;  %v3570_v61 = vsub.s32 3, %v5364_v3  ;;  %v3559_v9 = vrot.slane %v715_v28, %v5367_v4 }
 0xcdd   :  { %v3499_v2 = vmul.f32 0.5, %v3476_v63  ;;  %v3501_v8 = vmul.f32 0.5, %v3490_v0  ;;  %v3567_v38 = vrot.slane %v715_v28, %v3566_v53  ;;  %v3584_v0 = vrot.slane %v716_v7, %v5367_v4 }
 0xcde   :  { %v3500_v5 = vmul.f32 0.5, %v3483_v37  ;;  %v3502_v10 = vmul.f32 0.5, %v3497_v1  ;;  %v3563_v37 = vrot.slane %v715_v28, %v5370_v6  ;;  %v3588_v3 = vrot.slane %v716_v7, %v5370_v6 }
 0xcdf   :  { %v3503_v25 = vsub.f32 %v3422_v29, %v3499_v2  ;;  %v3505_v11 = vsub.f32 %v3463_v59, %v3501_v8  ;;  %v3592_v8 = vrot.slane %v716_v7, %v3566_v53 }
 0xce0   :  { %v5532_v39 = vsub.f32 %v3424_v19, %v3500_v5  ;;  %v5534_v40 = vsub.f32 %v3465_v47, %v3502_v10  ;;  %v3571_v5 = vrot.slane %v715_v28, %v3570_v61 }
 0xce1   :  { %v3507_v12 = vmul.f32 %v3503_v25, %v3503_v25  ;;  %v3509_v13 = vmul.f32 %v3505_v11, %v3505_v11 }
 0xce2   :  { %v3508_v14 = vmul.f32 %v5532_v39, %v5532_v39  ;;  %v3510_v55 = vmul.f32 %v5534_v40, %v5534_v40 }
 0xce3   :  { %v3511_v41 = vsel %vm1235_vm7, %v3507_v12, 0.0  ;;  %v3525_v57 = vsel %vm1235_vm7, %v3509_v13, 0.0 }
 0xce4   :  { %v3512_v15 = vrot.slane %v3511_v41, 4  ;;  %v3526_v58 = vrot.slane %v3525_v57, 4  ;;  %v3518_v60 = vsel %vm1235_vm7, %v3508_v14, 0.0  ;;  %v3532_v16 = vsel %vm1235_vm7, %v3510_v55, 0.0 }
 0xce5   :  { %v3519_v17 = vrot.slane %v3518_v60, 4  ;;  %v3533_v18 = vrot.slane %v3532_v16, 4 }
 0xce6   :  { %v3513_v54 = vadd.f32 %v3512_v15, %v3511_v41  ;;  %v3527_v23 = vadd.f32 %v3526_v58, %v3525_v57  ;;  %v3596_v41 = vrot.slane %v716_v7, %v3570_v61 }
 0xce7   :  { %v3520_v56 = vadd.f32 %v3519_v17, %v3518_v60  ;;  %v3534_v24 = vadd.f32 %v3533_v18, %v3532_v16 }
 0xce8   :  { %v3514_v29 = vrot.slane %v3513_v54, 2  ;;  %v3528_v59 = vrot.slane %v3527_v23, 2 }
 0xce9   :  { %v3521_v26 = vrot.slane %v3520_v56, 2  ;;  %v3535_v49 = vrot.slane %v3534_v24, 2 }
 0xcea   :  { %v3515_v19 = vadd.f32 %v3514_v29, %v3513_v54  ;;  %v3529_v47 = vadd.f32 %v3528_v59, %v3527_v23 }
 0xceb   :  { %v3522_v22 = vadd.f32 %v3521_v26, %v3520_v56  ;;  %v3536_v31 = vadd.f32 %v3535_v49, %v3534_v24 }
 0xcec   :  { %v3516_v32 = vrot.slane %v3515_v19, 1  ;;  %v3530_v33 = vrot.slane %v3529_v47, 1 }
 0xced   :  { %v3523_v48 = vrot.slane %v3522_v22, 1  ;;  %v3537_v34 = vrot.slane %v3536_v31, 1 }
 0xcee   :  { %v3517_v45 = vadd.f32 %v3516_v32, %v3515_v19  ;;  %v3531_v35 = vadd.f32 %v3530_v33, %v3529_v47 }
 0xcef   :  { %v3524_v36 = vadd.f32 %v3523_v48, %v3522_v22  ;;  %v3538_v21 = vadd.f32 %v3537_v34, %v3536_v31 }
 0xcf0   :  { %v3539_v43 = vmul.f32 0.5, %v3517_v45  ;;  %v3541_v44 = vmul.f32 0.5, %v3531_v35 }
 0xcf1   :  { %v3540_v30 = vmul.f32 0.5, %v3524_v36  ;;  %v3542_v46 = vmul.f32 0.5, %v3538_v21 }
 0xcf2   :  { %v3543_v50 = vadd.f32 1e-05, %v3539_v43  ;;  %v3545_v51 = vadd.f32 1e-05, %v3541_v44 }
 0xcf3   :  { %v3544_v52 = vadd.f32 1e-05, %v3540_v30  ;;  %v3546_v20 = vadd.f32 1e-05, %v3542_v46 }
 0xcf4   :  { %4408 = vrsqrt.f32 %v3543_v50 }
 0xcf5   :  { %4410 = vrsqrt.f32 %v3545_v51 }
 0xcf6   :  { %4412 = vrsqrt.f32 %v3544_v52 }
 0xcf7   :  { %4414 = vrsqrt.f32 %v3546_v20 }
 0xcfe   :  { %v4409_v62 = vpop.eup %4408 }
 0xcff   :  { %v4411_v42 = vpop.eup %4410  ;;  %v3551_v63 = vmul.f32 %v4409_v62, %v3503_v25 }
 0xd00   :  { %v4413_v1 = vpop.eup %4412  ;;  %v3553_v2 = vmul.f32 %v4411_v42, %v3505_v11 }
 0xd01   :  { %v4415_v10 = vpop.eup %4414  ;;  %v3576_v12 = vmul.f32 %v3559_v9, %v3551_v63  ;;  %v3552_v13 = vmul.f32 %v4413_v1, %v5532_v39 }
 0xd02   :  { %v3578_v14 = vmul.f32 %v3567_v38, %v3553_v2  ;;  %v3554_v55 = vmul.f32 %v4415_v10, %v5534_v40 }
 0xd03   :  { %v3601_v57 = vadd.f32 %v3584_v0, %v3576_v12  ;;  %v3577_v25 = vmul.f32 %v3563_v37, %v3552_v13 }
 0xd04   :  { %v3603_v15 = vadd.f32 %v3592_v8, %v3578_v14  ;;  %v3579_v4 = vmul.f32 %v3571_v5, %v3554_v55 }
 0xd05   :  { %v3602_v58 = vadd.f32 %v3588_v3, %v3577_v25 }
 0xd06   :  { %v3604_v60 = vadd.f32 %v3596_v41, %v3579_v4 }
 0xd07   :  { %v3609_v16 = vcombine.low %v3601_v57, %v3602_v58 }
 0xd08   :  { %v3610_v11 = vcombine.low %v3603_v15, %v3604_v60 }
 0xd09   :  { %v3617_v17 = vrot.slane %v3609_v16, %v5376_v27 }
 0xd0a   :  { %v3624_v39 = vrot.slane %v3610_v11, %v5376_v27 }
 0xd0c   :  { %v3625_v18 = vcombine.low %v3617_v17, %v3624_v39 }
 0xd0e   :  { %3627 = vst [vmem:[#allocation25] sm:$0xff] %v3625_v18 }
 0xd0f   :  { %4738 = shalt.err (!%p4735_p4)
}
 0xd10   :  { %s5603_s15 = sld [smem:[#allocation39_spill]] }
 0xd16   :  { %s4739_s19 = scalar_lea.hbm %s5603_s15, 128 }
 0xd17   :  { %p4740_p5 = scmp.ne.s32.totalorder %s5603_s15, %s4739_s19  ;;  %p4743_p6 = scmp.lt.u32.totalorder %s4739_s19, %s5603_s15 }
 0xd19   :  { %p4745_p7 = pnand %p4743_p6, %p4740_p5 }
 0xd1b   :  { %4748 = shalt.err (!%p4745_p7)
}
 0xd1c   :  { %3637 = dma.vmem_to_hbm [thread:$0]  %s3635_s0, 128, %s5603_s15, [#allocation4]  }
 0xd1d   :  { %4765 = dma.done.wait [#allocation4], 128  }
 0xd1e   :  { %4766 = vsyncadd [#allocation4], 4294967168 }
 0xd1f   :  { %3645 = vsyncpa [#allocation3], 1 }
 0xd20   :  { %3646 = vsyncpa [#allocation6], 1 }
 0xd21   :  { %3647 = vsyncpa [#allocation9], 1 }
 0xd22   :  { %3648 = vsyncpa [#allocation12], 1 }
 0xd23   :  { %3649 = vsyncpa [#allocation15], 1 }
 0xd24   :  { %3650 = vsyncpa [#allocation18], 1 }
 0xd25   :  { %3651 = vsyncpa [#allocation21], 1 }
 0xd26   :  { %3652 = vsyncpa [#allocation24], 1 }
 0xd27   :  { %3653 = vsyncpa [#allocation4], 1 }

</bundles_post_ra>
